<compile_context>
chip_gen: v7x
topology: tpu7x:2x2x1
jax: 0.10.0
libtpu: 0.0.40
codegen_flags: <defaults>
</compile_context>

<pallas_src>
import math

import jax
import jax.numpy as jnp
from jax.experimental import pallas as pl
from jax.experimental.pallas import tpu as pltpu

_SQRT2 = math.sqrt(2.0)
_GELU_K = math.sqrt(2.0 / math.pi)


def _nearest_runs(L_in, L_out):
    """Decompose torch nearest-interp (L_in -> L_out, L_in <= L_out) into contiguous
    row runs: returns [(start, length), ...] whose concatenation equals the gather."""
    idx = [min((i * L_in) // L_out, L_in - 1) for i in range(L_out)]
    runs = []
    start, length = idx[0], 1
    for i in range(1, L_out):
        if idx[i] == idx[i - 1] + 1:
            length += 1
        else:                       # duplicated source row -> new run
            runs.append((start, length))
            start, length = idx[i], 1
    runs.append((start, length))
    return runs


def _forward_slab(x_slab, n_seq, seq_len, params, *, exact=False):
    """ProCnn_muti forward for `n_seq` sequences stacked along rows.

    x_slab: (n_seq*seq_len, emb_dim) f32.  Returns (n_seq*seq_len, out_channel) f32
    (time-major per sequence).  All sequence lengths are static Python ints.
    """
    (stem_w1, stem_bn1, stem_w2, stem_bn2,
     b1_w, b1_p, b2_w, b2_p, b3_w, b3_p,
     smooth_w, smooth_b, sm_w, sm_b,
     ffn1_w, ffn1_p, dw_w, dw_p, ffn2_w, ffn2_p) = params

    if exact:
        def dot(a, b):
            return jnp.dot(a, b, preferred_element_type=jnp.float32,
                           precision=jax.lax.Precision.HIGHEST)

        def gelu(v):                 # exact erf GELU (reference)
            return 0.5 * v * (1.0 + jax.lax.erf(v * (1.0 / _SQRT2)))
    else:
        def dot(a, b):               # bf16 operands on the MXU, f32 accumulation
            return jnp.dot(a.astype(jnp.bfloat16), b.astype(jnp.bfloat16),
                           preferred_element_type=jnp.float32)

        def gelu(v):                 # tanh-approx GELU (transcendental on the EUP)
            return 0.5 * v * (1.0 + jnp.tanh(_GELU_K * (v + 0.044715 * (v * v * v))))

    # ---- time-structured helpers (all static slices + concats, per sequence) ----
    def windows(slab, L, k, L_out):
        # rows [b*L+k, b*L+k+L_out) of every sequence, restacked -> (n_seq*L_out, C)
        if n_seq == 1:
            return slab[k:k + L_out, :]
        return jnp.concatenate(
            [slab[b * L + k: b * L + k + L_out, :] for b in range(n_seq)], axis=0)

    def zero_pad_time(slab, L, p):
        z = jnp.zeros((p, slab.shape[1]), slab.dtype)
        parts = []
        for b in range(n_seq):
            parts += [z, slab[b * L:(b + 1) * L, :], z]
        return jnp.concatenate(parts, axis=0), L + 2 * p

    def conv1d(slab, L, w, bias=None):
        # w: (K, Cin, Cout); per-tap (n_seq*L_out, Cin) @ (Cin, Cout) MXU matmuls
        K = w.shape[0]
        L_out = L - K + 1
        acc = dot(windows(slab, L, 0, L_out), w[0])
        for k in range(1, K):
            acc = acc + dot(windows(slab, L, k, L_out), w[k])
        if bias is not None:
            acc = acc + bias
        return acc, L_out

    def maxpool1d(slab, L, K):
        L_out = L - K + 1
        taps = [windows(slab, L, k, L_out) for k in range(K)]
        while len(taps) > 1:          # pairwise tree: ~log2(K) deep VPU chain
            nxt = [jnp.maximum(taps[i], taps[i + 1])
                   for i in range(0, len(taps) - 1, 2)]
            if len(taps) % 2:
                nxt.append(taps[-1])
            taps = nxt
        return taps[0], L_out

    def upsample_nearest(slab, L_in, L_out):
        runs = _nearest_runs(L_in, L_out)
        parts = []
        for b in range(n_seq):
            base = b * L_in
            parts += [slab[base + s: base + s + l, :] for (s, l) in runs]
        return jnp.concatenate(parts, axis=0) if len(parts) > 1 else parts[0]

    T = seq_len

    # ---- Stem: [Conv1d(k=1, pad=1, no bias) -> GELU -> BN(eval)] x 2 ----
    # (k=1 conv of a zero-padded input == conv then append zero rows)
    h = dot(x_slab, stem_w1)
    h, L = zero_pad_time(h, T, 1)
    h = gelu(h) * stem_bn1[0:1, :] + stem_bn1[1:2, :]
    h = dot(h, stem_w2)
    h, L = zero_pad_time(h, L, 1)                                  # L = T + 4
    h = gelu(h) * stem_bn2[0:1, :] + stem_bn2[1:2, :]

    # ---- block1/2/3: Conv1d -> ReLU -> BN ; MaxPool1d(stride=1) ----
    x1, L1 = conv1d(h, L, b1_w, bias=b1_p[0:1, :])                 # L1 = T + 2
    x1 = jnp.maximum(x1, 0.0) * b1_p[1:2, :] + b1_p[2:3, :]
    r1, P1 = maxpool1d(x1, L1, 3)                                  # P1 = T

    x2, L2 = conv1d(x1, L1, b2_w, bias=b2_p[0:1, :])               # L2 = T - 3
    x2 = jnp.maximum(x2, 0.0) * b2_p[1:2, :] + b2_p[2:3, :]
    r2, P2 = maxpool1d(x2, L2, 6)                                  # P2 = T - 8

    x3, L3 = conv1d(x2, L2, b3_w, bias=b3_p[0:1, :])               # L3 = T - 11
    x3 = jnp.maximum(x3, 0.0) * b3_p[1:2, :] + b3_p[2:3, :]
    r3, P3 = maxpool1d(x3, L3, 9)                                  # P3 = T - 19

    # ---- nearest interpolate to len T + fused smooth1/2/3 (one matmul) ----
    r2u = upsample_nearest(r2, P2, P1)
    r3u = upsample_nearest(r3, P3, P1)
    cat = jnp.concatenate([r1, r2u, r3u], axis=1)                  # (n*T, C0+C1+C2)
    s = dot(cat, smooth_w) + smooth_b
    s = dot(s, sm_w) + sm_b                                        # (n*T, OC)

    # ---- IRFFN: 1x1 -> BN -> GELU ; depthwise k=3 pad=1 -> BN -> GELU ; 1x1 -> BN ; +x
    h1 = dot(s, ffn1_w) + ffn1_p[0:1, :]
    h1 = gelu(h1 * ffn1_p[1:2, :] + ffn1_p[2:3, :])                # (n*T, E)
    hp, Lp = zero_pad_time(h1, T, 1)
    d = (windows(hp, Lp, 0, T) * dw_w[0:1, :]
         + windows(hp, Lp, 1, T) * dw_w[1:2, :]
         + windows(hp, Lp, 2, T) * dw_w[2:3, :]
         + dw_p[0:1, :])
    d = gelu(d * dw_p[1:2, :] + dw_p[2:3, :])
    h2 = dot(d, ffn2_w) + ffn2_p[0:1, :]
    h2 = h2 * ffn2_p[1:2, :] + ffn2_p[2:3, :]
    return s + h2                                                  # (n*T, OC)


def init_params(key, emb_dim, stem_channel, channels, out_channel):
    """Deterministic synthetic parameters with the shapes implied by ProCnn_muti."""
    C0, C1, C2 = channels
    E_eff = int(out_channel * 3.6)              # PyTorch IRFFN expansion (57 for OC=16)
    E = ((E_eff + 7) // 8) * 8                  # zero-padded to 64 for alignment
    keys = iter(jax.random.split(key, 64))

    def nrm(shape, std):
        return (std * jax.random.normal(next(keys), shape)).astype(jnp.float32)

    def conv_w(shape):                          # fan-in scaled; layout (K, Cin, Cout)/(Cin, Cout)
        fan_in = int(math.prod(shape[:-1]))
        return nrm(shape, 1.0 / math.sqrt(fan_in))

    def bn(c):
        # TODO(synk): BatchNorm1d is folded as eval-mode per-channel affine
        # (training-mode batch statistics are not implemented).
        gamma = 1.0 + nrm((c,), 0.1)
        beta = nrm((c,), 0.1)
        mean = jnp.zeros((c,), jnp.float32)
        var = jnp.ones((c,), jnp.float32)
        scale = gamma * jax.lax.rsqrt(var + 1e-5)
        shift = beta - mean * scale
        return jnp.stack([scale, shift], axis=0)                    # (2, c)

    def bias_bn(c):
        return jnp.concatenate([nrm((1, c), 0.1), bn(c)], axis=0)   # (3, c): bias/scale/shift

    def pad_last(a, width):                     # zero-pad last dim to `width`
        extra = width - a.shape[-1]
        if extra == 0:
            return a
        return jnp.pad(a, [(0, 0)] * (a.ndim - 1) + [(0, extra)])

    emb_table = nrm((26, emb_dim), 1.0)

    stem_w1, stem_bn1 = conv_w((emb_dim, stem_channel)), bn(stem_channel)
    stem_w2, stem_bn2 = conv_w((stem_channel, stem_channel)), bn(stem_channel)

    b1_w, b1_p = conv_w((3, stem_channel, C0)), bias_bn(C0)
    b2_w, b2_p = conv_w((6, C0, C1)), bias_bn(C1)
    b3_w, b3_p = conv_w((9, C1, C2)), bias_bn(C2)

    # smooth1/2/3 fused: stacked weight over concatenated [r1|r2u|r3u] channels,
    # biases summed (all three are added to the same output map).
    sm1_w, sm1_b = conv_w((C0, out_channel)), nrm((1, out_channel), 0.1)
    sm2_w, sm2_b = conv_w((C1, out_channel)), nrm((1, out_channel), 0.1)
    sm3_w, sm3_b = conv_w((C2, out_channel)), nrm((1, out_channel), 0.1)
    smooth_w = jnp.concatenate([sm1_w, sm2_w, sm3_w], axis=0)       # (C0+C1+C2, OC)
    smooth_b = sm1_b + sm2_b + sm3_b
    sm_w, sm_b = conv_w((out_channel, out_channel)), nrm((1, out_channel), 0.1)

    # IRFFN with the expansion dim zero-padded E_eff -> E; padded channels stay
    # exactly 0 end-to-end and contribute nothing through ffn2_w (zero rows).
    ffn1_w = pad_last(conv_w((out_channel, E_eff)), E)
    ffn1_p = pad_last(bias_bn(E_eff), E)
    dw_w = pad_last(conv_w((3, E_eff)), E)
    dw_p = pad_last(bias_bn(E_eff), E)
    ffn2_w = jnp.concatenate(
        [conv_w((E_eff, out_channel)),
         jnp.zeros((E - E_eff, out_channel), jnp.float32)], axis=0)
    ffn2_p = bias_bn(out_channel)

    weights = (stem_w1, stem_bn1, stem_w2, stem_bn2,
               b1_w, b1_p, b2_w, b2_p, b3_w, b3_p,
               smooth_w, smooth_b, sm_w, sm_b,
               ffn1_w, ffn1_p, dw_w, dw_p, ffn2_w, ffn2_p)
    return emb_table, weights


def procnn_pallas(tokens, emb_table, weights, out_channel, block_b=None):
    B, T = tokens.shape
    D = emb_table.shape[1]
    assert T >= 20, "T must be >= 20 (mpool3 output length is T-19)"

    if block_b is None:
        # Pack batch into the matmul M dimension; prefer a grid of >= 2 steps so
        # both v7x TensorCores get work.
        block_b = 1
        for cand in (8, 4, 2):
            if B % cand == 0 and B // cand >= 2:
                block_b = cand
                break
    assert B % block_b == 0, (B, block_b)

    # Embedding lookup stays in the JAX wrapper (XLA gather); kernel is time-major.
    x = jnp.take(emb_table, tokens.astype(jnp.int32), axis=0).astype(jnp.float32)  # (B,T,D)

    def kernel(x_ref, *refs):
        o_ref = refs[-1]
        params = tuple(r[...] for r in refs[:-1])
        xb = x_ref[...]                                            # (block_b, T, D)
        if block_b == 1:
            slab = xb[0]
        else:
            slab = jnp.concatenate([xb[b] for b in range(block_b)], axis=0)
        out_slab = _forward_slab(slab, block_b, T, params, exact=False)   # (block_b*T, OC)
        out_t = out_slab.T.astype(o_ref.dtype)                     # (OC, block_b*T)
        for b in range(block_b):                                   # store in (B, OC, T) layout
            o_ref[b] = out_t[:, b * T:(b + 1) * T]

    in_specs = [pl.BlockSpec((block_b, T, D), lambda i: (i, 0, 0))]
    for w in weights:
        in_specs.append(
            pl.BlockSpec(w.shape, (lambda nd: (lambda i: (0,) * nd))(w.ndim)))

    out_bct = pl.pallas_call(
        kernel,
        out_shape=jax.ShapeDtypeStruct((B, out_channel, T), jnp.float32),
        grid=(B // block_b,),
        in_specs=in_specs,
        out_specs=pl.BlockSpec((block_b, out_channel, T), lambda i: (i, 0, 0)),
        compiler_params=pltpu.CompilerParams(dimension_semantics=("parallel",)),
    )(x, *weights)

    # PyTorch: result is (B, OC, T) contiguous; result.view(B, T, -1) is a RAW memory
    # reshape — the kernel already stored (B, OC, T), so this reshape is free.
    return jnp.reshape(out_bct, (B, T, out_channel))


def procnn_reference(tokens, emb_table, weights, out_channel):
    B, T = tokens.shape
    D = emb_table.shape[1]
    x = jnp.take(emb_table, tokens.astype(jnp.int32), axis=0).astype(jnp.float32)
    out_slab = _forward_slab(x.reshape(B * T, D), B, T, weights, exact=True)  # (B*T, OC)
    out_bct = jnp.transpose(out_slab.reshape(B, T, out_channel), (0, 2, 1))
    return jnp.reshape(out_bct, (B, T, out_channel))


if __name__ == "__main__":
    B, T = 8, 32                      # T must be >= 20; block_b=4 -> grid of 2 steps
    emb_dim, stem_channel = 8, 16
    channels, out_channel = (16, 32, 32), 16

    key = jax.random.PRNGKey(0)
    k_tok, k_par = jax.random.split(key)
    tokens = jax.random.randint(k_tok, (B, T), 0, 26, dtype=jnp.int32)
    emb_table, weights = init_params(k_par, emb_dim, stem_channel, channels, out_channel)

    out = jax.block_until_ready(procnn_pallas(tokens, emb_table, weights, out_channel))
    assert out.shape == (B, T, out_channel), out.shape
    assert bool(jnp.all(jnp.isfinite(out)))

    ref = procnn_reference(tokens, emb_table, weights, out_channel)
    rel_err = float(jnp.max(jnp.abs(out - ref)) / (jnp.max(jnp.abs(ref)) + 1e-6))
    assert rel_err < 5e-2, f"relative error too large: {rel_err}"

    print("KERNEL_OK")
</pallas_src>

<mosaic_0001>
module attributes {stable_mosaic.version = 11 : i64} {
  func.func @kernel(%arg0: i32, %arg1: memref<4x32x8xf32, #tpu.memory_space<vmem>>, %arg2: memref<8x16xf32, #tpu.memory_space<vmem>>, %arg3: memref<2x16xf32, #tpu.memory_space<vmem>>, %arg4: memref<16x16xf32, #tpu.memory_space<vmem>>, %arg5: memref<2x16xf32, #tpu.memory_space<vmem>>, %arg6: memref<3x16x16xf32, #tpu.memory_space<vmem>>, %arg7: memref<3x16xf32, #tpu.memory_space<vmem>>, %arg8: memref<6x16x32xf32, #tpu.memory_space<vmem>>, %arg9: memref<3x32xf32, #tpu.memory_space<vmem>>, %arg10: memref<9x32x32xf32, #tpu.memory_space<vmem>>, %arg11: memref<3x32xf32, #tpu.memory_space<vmem>>, %arg12: memref<80x16xf32, #tpu.memory_space<vmem>>, %arg13: memref<1x16xf32, #tpu.memory_space<vmem>>, %arg14: memref<16x16xf32, #tpu.memory_space<vmem>>, %arg15: memref<1x16xf32, #tpu.memory_space<vmem>>, %arg16: memref<16x64xf32, #tpu.memory_space<vmem>>, %arg17: memref<3x64xf32, #tpu.memory_space<vmem>>, %arg18: memref<3x64xf32, #tpu.memory_space<vmem>>, %arg19: memref<3x64xf32, #tpu.memory_space<vmem>>, %arg20: memref<64x16xf32, #tpu.memory_space<vmem>>, %arg21: memref<3x16xf32, #tpu.memory_space<vmem>>, %arg22: memref<4x16x32xf32, #tpu.memory_space<vmem>>) attributes {dimension_semantics = [#tpu.dimension_semantics<parallel>], iteration_bounds = array<i64: 2>, scalar_prefetch = 0 : i64, scratch_operands = 0 : i64, tpu.core_type = #tpu.core_type<tc>, window_params = [{transform_indices = @transform_0, window_bounds = array<i64: 4, 32, 8>}, {pipeline_mode = #tpu.pipeline_mode<synchronous>, transform_indices = @transform_1, window_bounds = array<i64: 8, 16>}, {pipeline_mode = #tpu.pipeline_mode<synchronous>, transform_indices = @transform_2, window_bounds = array<i64: 2, 16>}, {pipeline_mode = #tpu.pipeline_mode<synchronous>, transform_indices = @transform_3, window_bounds = array<i64: 16, 16>}, {pipeline_mode = #tpu.pipeline_mode<synchronous>, transform_indices = @transform_4, window_bounds = array<i64: 2, 16>}, {pipeline_mode = #tpu.pipeline_mode<synchronous>, transform_indices = @transform_5, window_bounds = array<i64: 3, 16, 16>}, {pipeline_mode = #tpu.pipeline_mode<synchronous>, transform_indices = @transform_6, window_bounds = array<i64: 3, 16>}, {pipeline_mode = #tpu.pipeline_mode<synchronous>, transform_indices = @transform_7, window_bounds = array<i64: 6, 16, 32>}, {pipeline_mode = #tpu.pipeline_mode<synchronous>, transform_indices = @transform_8, window_bounds = array<i64: 3, 32>}, {pipeline_mode = #tpu.pipeline_mode<synchronous>, transform_indices = @transform_9, window_bounds = array<i64: 9, 32, 32>}, {pipeline_mode = #tpu.pipeline_mode<synchronous>, transform_indices = @transform_10, window_bounds = array<i64: 3, 32>}, {pipeline_mode = #tpu.pipeline_mode<synchronous>, transform_indices = @transform_11, window_bounds = array<i64: 80, 16>}, {pipeline_mode = #tpu.pipeline_mode<synchronous>, transform_indices = @transform_12, window_bounds = array<i64: 1, 16>}, {pipeline_mode = #tpu.pipeline_mode<synchronous>, transform_indices = @transform_13, window_bounds = array<i64: 16, 16>}, {pipeline_mode = #tpu.pipeline_mode<synchronous>, transform_indices = @transform_14, window_bounds = array<i64: 1, 16>}, {pipeline_mode = #tpu.pipeline_mode<synchronous>, transform_indices = @transform_15, window_bounds = array<i64: 16, 64>}, {pipeline_mode = #tpu.pipeline_mode<synchronous>, transform_indices = @transform_16, window_bounds = array<i64: 3, 64>}, {pipeline_mode = #tpu.pipeline_mode<synchronous>, transform_indices = @transform_17, window_bounds = array<i64: 3, 64>}, {pipeline_mode = #tpu.pipeline_mode<synchronous>, transform_indices = @transform_18, window_bounds = array<i64: 3, 64>}, {pipeline_mode = #tpu.pipeline_mode<synchronous>, transform_indices = @transform_19, window_bounds = array<i64: 64, 16>}, {pipeline_mode = #tpu.pipeline_mode<synchronous>, transform_indices = @transform_20, window_bounds = array<i64: 3, 16>}, {transform_indices = @transform_21, window_bounds = array<i64: 4, 16, 32>}]} {
    %c0 = arith.constant 0 : index
    %c0_0 = arith.constant 0 : index
    %0 = vector.load %arg2[%c0, %c0_0] : memref<8x16xf32, #tpu.memory_space<vmem>>, vector<8x16xf32>
    %c0_1 = arith.constant 0 : index
    %c0_2 = arith.constant 0 : index
    %1 = vector.load %arg3[%c0_1, %c0_2] : memref<2x16xf32, #tpu.memory_space<vmem>>, vector<2x16xf32>
    %c0_3 = arith.constant 0 : index
    %c0_4 = arith.constant 0 : index
    %2 = vector.load %arg4[%c0_3, %c0_4] : memref<16x16xf32, #tpu.memory_space<vmem>>, vector<16x16xf32>
    %c0_5 = arith.constant 0 : index
    %c0_6 = arith.constant 0 : index
    %3 = vector.load %arg5[%c0_5, %c0_6] : memref<2x16xf32, #tpu.memory_space<vmem>>, vector<2x16xf32>
    %c0_7 = arith.constant 0 : index
    %c0_8 = arith.constant 0 : index
    %c0_9 = arith.constant 0 : index
    %4 = vector.load %arg6[%c0_7, %c0_8, %c0_9] : memref<3x16x16xf32, #tpu.memory_space<vmem>>, vector<3x16x16xf32>
    %c0_10 = arith.constant 0 : index
    %c0_11 = arith.constant 0 : index
    %5 = vector.load %arg7[%c0_10, %c0_11] : memref<3x16xf32, #tpu.memory_space<vmem>>, vector<3x16xf32>
    %c0_12 = arith.constant 0 : index
    %c0_13 = arith.constant 0 : index
    %c0_14 = arith.constant 0 : index
    %6 = vector.load %arg8[%c0_12, %c0_13, %c0_14] : memref<6x16x32xf32, #tpu.memory_space<vmem>>, vector<6x16x32xf32>
    %c0_15 = arith.constant 0 : index
    %c0_16 = arith.constant 0 : index
    %7 = vector.load %arg9[%c0_15, %c0_16] : memref<3x32xf32, #tpu.memory_space<vmem>>, vector<3x32xf32>
    %c0_17 = arith.constant 0 : index
    %c0_18 = arith.constant 0 : index
    %c0_19 = arith.constant 0 : index
    %8 = vector.load %arg10[%c0_17, %c0_18, %c0_19] : memref<9x32x32xf32, #tpu.memory_space<vmem>>, vector<9x32x32xf32>
    %c0_20 = arith.constant 0 : index
    %c0_21 = arith.constant 0 : index
    %9 = vector.load %arg11[%c0_20, %c0_21] : memref<3x32xf32, #tpu.memory_space<vmem>>, vector<3x32xf32>
    %c0_22 = arith.constant 0 : index
    %c0_23 = arith.constant 0 : index
    %10 = vector.load %arg12[%c0_22, %c0_23] : memref<80x16xf32, #tpu.memory_space<vmem>>, vector<80x16xf32>
    %c0_24 = arith.constant 0 : index
    %c0_25 = arith.constant 0 : index
    %11 = vector.load %arg13[%c0_24, %c0_25] : memref<1x16xf32, #tpu.memory_space<vmem>>, vector<1x16xf32>
    %c0_26 = arith.constant 0 : index
    %c0_27 = arith.constant 0 : index
    %12 = vector.load %arg14[%c0_26, %c0_27] : memref<16x16xf32, #tpu.memory_space<vmem>>, vector<16x16xf32>
    %c0_28 = arith.constant 0 : index
    %c0_29 = arith.constant 0 : index
    %13 = vector.load %arg15[%c0_28, %c0_29] : memref<1x16xf32, #tpu.memory_space<vmem>>, vector<1x16xf32>
    %c0_30 = arith.constant 0 : index
    %c0_31 = arith.constant 0 : index
    %14 = vector.load %arg16[%c0_30, %c0_31] : memref<16x64xf32, #tpu.memory_space<vmem>>, vector<16x64xf32>
    %c0_32 = arith.constant 0 : index
    %c0_33 = arith.constant 0 : index
    %15 = vector.load %arg17[%c0_32, %c0_33] : memref<3x64xf32, #tpu.memory_space<vmem>>, vector<3x64xf32>
    %c0_34 = arith.constant 0 : index
    %c0_35 = arith.constant 0 : index
    %16 = vector.load %arg18[%c0_34, %c0_35] : memref<3x64xf32, #tpu.memory_space<vmem>>, vector<3x64xf32>
    %c0_36 = arith.constant 0 : index
    %c0_37 = arith.constant 0 : index
    %17 = vector.load %arg19[%c0_36, %c0_37] : memref<3x64xf32, #tpu.memory_space<vmem>>, vector<3x64xf32>
    %c0_38 = arith.constant 0 : index
    %c0_39 = arith.constant 0 : index
    %18 = vector.load %arg20[%c0_38, %c0_39] : memref<64x16xf32, #tpu.memory_space<vmem>>, vector<64x16xf32>
    %c0_40 = arith.constant 0 : index
    %c0_41 = arith.constant 0 : index
    %19 = vector.load %arg21[%c0_40, %c0_41] : memref<3x16xf32, #tpu.memory_space<vmem>>, vector<3x16xf32>
    %c0_42 = arith.constant 0 : index
    %c0_43 = arith.constant 0 : index
    %c0_44 = arith.constant 0 : index
    %20 = vector.load %arg1[%c0_42, %c0_43, %c0_44] : memref<4x32x8xf32, #tpu.memory_space<vmem>>, vector<4x32x8xf32>
    %21 = vector.extract_strided_slice %20 {offsets = [0, 0, 0], sizes = [1, 32, 8], strides = [1, 1, 1]} : vector<4x32x8xf32> to vector<1x32x8xf32>
    %22 = vector.shape_cast %21 : vector<1x32x8xf32> to vector<32x8xf32>
    %23 = vector.extract_strided_slice %20 {offsets = [1, 0, 0], sizes = [1, 32, 8], strides = [1, 1, 1]} : vector<4x32x8xf32> to vector<1x32x8xf32>
    %24 = vector.shape_cast %23 : vector<1x32x8xf32> to vector<32x8xf32>
    %25 = vector.extract_strided_slice %20 {offsets = [2, 0, 0], sizes = [1, 32, 8], strides = [1, 1, 1]} : vector<4x32x8xf32> to vector<1x32x8xf32>
    %26 = vector.shape_cast %25 : vector<1x32x8xf32> to vector<32x8xf32>
    %27 = vector.extract_strided_slice %20 {offsets = [3, 0, 0], sizes = [1, 32, 8], strides = [1, 1, 1]} : vector<4x32x8xf32> to vector<1x32x8xf32>
    %28 = vector.shape_cast %27 : vector<1x32x8xf32> to vector<32x8xf32>
    %29 = tpu.concatenate %22, %24, %26, %28 in 0 : vector<32x8xf32>, vector<32x8xf32>, vector<32x8xf32>, vector<32x8xf32> -> vector<128x8xf32>
    %30 = arith.truncf %29 : vector<128x8xf32> to vector<128x8xbf16>
    %31 = arith.truncf %0 : vector<8x16xf32> to vector<8x16xbf16>
    %cst = arith.constant dense<0.000000e+00> : vector<128x16xf32>
    %32 = tpu.matmul %30, %31, %cst {dimension_numbers = #tpu.dot_dimension_numbers<[1], [0], [0], [1], [0, 0, 1, 1], [], []>} : vector<128x8xbf16>, vector<8x16xbf16>, vector<128x16xf32> -> vector<128x16xf32>
    %cst_45 = arith.constant 0.000000e+00 : f32
    %33 = vector.broadcast %cst_45 : f32 to vector<1x16xf32>
    %34 = vector.extract_strided_slice %32 {offsets = [0, 0], sizes = [32, 16], strides = [1, 1]} : vector<128x16xf32> to vector<32x16xf32>
    %35 = vector.extract_strided_slice %32 {offsets = [32, 0], sizes = [32, 16], strides = [1, 1]} : vector<128x16xf32> to vector<32x16xf32>
    %36 = vector.extract_strided_slice %32 {offsets = [64, 0], sizes = [32, 16], strides = [1, 1]} : vector<128x16xf32> to vector<32x16xf32>
    %37 = vector.extract_strided_slice %32 {offsets = [96, 0], sizes = [32, 16], strides = [1, 1]} : vector<128x16xf32> to vector<32x16xf32>
    %38 = tpu.concatenate %33, %34, %33, %33, %35, %33, %33, %36, %33, %33, %37, %33 in 0 : vector<1x16xf32>, vector<32x16xf32>, vector<1x16xf32>, vector<1x16xf32>, vector<32x16xf32>, vector<1x16xf32>, vector<1x16xf32>, vector<32x16xf32>, vector<1x16xf32>, vector<1x16xf32>, vector<32x16xf32>, vector<1x16xf32> -> vector<136x16xf32>
    %cst_46 = arith.constant 5.000000e-01 : f32
    %39 = vector.broadcast %cst_46 : f32 to vector<136x16xf32>
    %40 = arith.mulf %39, %38 : vector<136x16xf32>
    %41 = arith.mulf %38, %38 : vector<136x16xf32>
    %42 = arith.mulf %41, %38 : vector<136x16xf32>
    %cst_47 = arith.constant 4.471500e-02 : f32
    %43 = vector.broadcast %cst_47 : f32 to vector<136x16xf32>
    %44 = arith.mulf %43, %42 : vector<136x16xf32>
    %45 = arith.addf %38, %44 : vector<136x16xf32>
    %cst_48 = arith.constant 0.797884583 : f32
    %46 = vector.broadcast %cst_48 : f32 to vector<136x16xf32>
    %47 = arith.mulf %46, %45 : vector<136x16xf32>
    %48 = math.tanh %47 : vector<136x16xf32>
    %cst_49 = arith.constant 1.000000e+00 : f32
    %49 = vector.broadcast %cst_49 : f32 to vector<136x16xf32>
    %50 = arith.addf %49, %48 : vector<136x16xf32>
    %51 = arith.mulf %40, %50 : vector<136x16xf32>
    %52 = vector.extract_strided_slice %1 {offsets = [0, 0], sizes = [1, 16], strides = [1, 1]} : vector<2x16xf32> to vector<1x16xf32>
    %53 = vector.broadcast %52 : vector<1x16xf32> to vector<136x16xf32>
    %54 = arith.mulf %51, %53 : vector<136x16xf32>
    %55 = vector.extract_strided_slice %1 {offsets = [1, 0], sizes = [1, 16], strides = [1, 1]} : vector<2x16xf32> to vector<1x16xf32>
    %56 = vector.broadcast %55 : vector<1x16xf32> to vector<136x16xf32>
    %57 = arith.addf %54, %56 : vector<136x16xf32>
    %58 = arith.truncf %57 : vector<136x16xf32> to vector<136x16xbf16>
    %59 = arith.truncf %2 : vector<16x16xf32> to vector<16x16xbf16>
    %cst_50 = arith.constant dense<0.000000e+00> : vector<136x16xf32>
    %60 = tpu.matmul %58, %59, %cst_50 {dimension_numbers = #tpu.dot_dimension_numbers<[1], [0], [0], [1], [0, 0, 1, 1], [], []>} : vector<136x16xbf16>, vector<16x16xbf16>, vector<136x16xf32> -> vector<136x16xf32>
    %cst_51 = arith.constant 0.000000e+00 : f32
    %61 = vector.broadcast %cst_51 : f32 to vector<1x16xf32>
    %62 = vector.extract_strided_slice %60 {offsets = [0, 0], sizes = [34, 16], strides = [1, 1]} : vector<136x16xf32> to vector<34x16xf32>
    %63 = vector.extract_strided_slice %60 {offsets = [34, 0], sizes = [34, 16], strides = [1, 1]} : vector<136x16xf32> to vector<34x16xf32>
    %64 = vector.extract_strided_slice %60 {offsets = [68, 0], sizes = [34, 16], strides = [1, 1]} : vector<136x16xf32> to vector<34x16xf32>
    %65 = vector.extract_strided_slice %60 {offsets = [102, 0], sizes = [34, 16], strides = [1, 1]} : vector<136x16xf32> to vector<34x16xf32>
    %66 = tpu.concatenate %61, %62, %61, %61, %63, %61, %61, %64, %61, %61, %65, %61 in 0 : vector<1x16xf32>, vector<34x16xf32>, vector<1x16xf32>, vector<1x16xf32>, vector<34x16xf32>, vector<1x16xf32>, vector<1x16xf32>, vector<34x16xf32>, vector<1x16xf32>, vector<1x16xf32>, vector<34x16xf32>, vector<1x16xf32> -> vector<144x16xf32>
    %cst_52 = arith.constant 5.000000e-01 : f32
    %67 = vector.broadcast %cst_52 : f32 to vector<144x16xf32>
    %68 = arith.mulf %67, %66 : vector<144x16xf32>
    %69 = arith.mulf %66, %66 : vector<144x16xf32>
    %70 = arith.mulf %69, %66 : vector<144x16xf32>
    %cst_53 = arith.constant 4.471500e-02 : f32
    %71 = vector.broadcast %cst_53 : f32 to vector<144x16xf32>
    %72 = arith.mulf %71, %70 : vector<144x16xf32>
    %73 = arith.addf %66, %72 : vector<144x16xf32>
    %cst_54 = arith.constant 0.797884583 : f32
    %74 = vector.broadcast %cst_54 : f32 to vector<144x16xf32>
    %75 = arith.mulf %74, %73 : vector<144x16xf32>
    %76 = math.tanh %75 : vector<144x16xf32>
    %cst_55 = arith.constant 1.000000e+00 : f32
    %77 = vector.broadcast %cst_55 : f32 to vector<144x16xf32>
    %78 = arith.addf %77, %76 : vector<144x16xf32>
    %79 = arith.mulf %68, %78 : vector<144x16xf32>
    %80 = vector.extract_strided_slice %3 {offsets = [0, 0], sizes = [1, 16], strides = [1, 1]} : vector<2x16xf32> to vector<1x16xf32>
    %81 = vector.broadcast %80 : vector<1x16xf32> to vector<144x16xf32>
    %82 = arith.mulf %79, %81 : vector<144x16xf32>
    %83 = vector.extract_strided_slice %3 {offsets = [1, 0], sizes = [1, 16], strides = [1, 1]} : vector<2x16xf32> to vector<1x16xf32>
    %84 = vector.broadcast %83 : vector<1x16xf32> to vector<144x16xf32>
    %85 = arith.addf %82, %84 : vector<144x16xf32>
    %86 = vector.extract_strided_slice %5 {offsets = [0, 0], sizes = [1, 16], strides = [1, 1]} : vector<3x16xf32> to vector<1x16xf32>
    %87 = vector.extract_strided_slice %85 {offsets = [0, 0], sizes = [34, 16], strides = [1, 1]} : vector<144x16xf32> to vector<34x16xf32>
    %88 = vector.extract_strided_slice %85 {offsets = [36, 0], sizes = [34, 16], strides = [1, 1]} : vector<144x16xf32> to vector<34x16xf32>
    %89 = vector.extract_strided_slice %85 {offsets = [72, 0], sizes = [34, 16], strides = [1, 1]} : vector<144x16xf32> to vector<34x16xf32>
    %90 = vector.extract_strided_slice %85 {offsets = [108, 0], sizes = [34, 16], strides = [1, 1]} : vector<144x16xf32> to vector<34x16xf32>
    %91 = tpu.concatenate %87, %88, %89, %90 in 0 : vector<34x16xf32>, vector<34x16xf32>, vector<34x16xf32>, vector<34x16xf32> -> vector<136x16xf32>
    %92 = vector.extract_strided_slice %4 {offsets = [0, 0, 0], sizes = [1, 16, 16], strides = [1, 1, 1]} : vector<3x16x16xf32> to vector<1x16x16xf32>
    %93 = vector.shape_cast %92 : vector<1x16x16xf32> to vector<16x16xf32>
    %94 = arith.truncf %91 : vector<136x16xf32> to vector<136x16xbf16>
    %95 = arith.truncf %93 : vector<16x16xf32> to vector<16x16xbf16>
    %cst_56 = arith.constant dense<0.000000e+00> : vector<136x16xf32>
    %96 = tpu.matmul %94, %95, %cst_56 {dimension_numbers = #tpu.dot_dimension_numbers<[1], [0], [0], [1], [0, 0, 1, 1], [], []>} : vector<136x16xbf16>, vector<16x16xbf16>, vector<136x16xf32> -> vector<136x16xf32>
    %97 = vector.extract_strided_slice %85 {offsets = [1, 0], sizes = [34, 16], strides = [1, 1]} : vector<144x16xf32> to vector<34x16xf32>
    %98 = vector.extract_strided_slice %85 {offsets = [37, 0], sizes = [34, 16], strides = [1, 1]} : vector<144x16xf32> to vector<34x16xf32>
    %99 = vector.extract_strided_slice %85 {offsets = [73, 0], sizes = [34, 16], strides = [1, 1]} : vector<144x16xf32> to vector<34x16xf32>
    %100 = vector.extract_strided_slice %85 {offsets = [109, 0], sizes = [34, 16], strides = [1, 1]} : vector<144x16xf32> to vector<34x16xf32>
    %101 = tpu.concatenate %97, %98, %99, %100 in 0 : vector<34x16xf32>, vector<34x16xf32>, vector<34x16xf32>, vector<34x16xf32> -> vector<136x16xf32>
    %102 = vector.extract_strided_slice %4 {offsets = [1, 0, 0], sizes = [1, 16, 16], strides = [1, 1, 1]} : vector<3x16x16xf32> to vector<1x16x16xf32>
    %103 = vector.shape_cast %102 : vector<1x16x16xf32> to vector<16x16xf32>
    %104 = arith.truncf %101 : vector<136x16xf32> to vector<136x16xbf16>
    %105 = arith.truncf %103 : vector<16x16xf32> to vector<16x16xbf16>
    %cst_57 = arith.constant dense<0.000000e+00> : vector<136x16xf32>
    %106 = tpu.matmul %104, %105, %cst_57 {dimension_numbers = #tpu.dot_dimension_numbers<[1], [0], [0], [1], [0, 0, 1, 1], [], []>} : vector<136x16xbf16>, vector<16x16xbf16>, vector<136x16xf32> -> vector<136x16xf32>
    %107 = arith.addf %96, %106 : vector<136x16xf32>
    %108 = vector.extract_strided_slice %85 {offsets = [2, 0], sizes = [34, 16], strides = [1, 1]} : vector<144x16xf32> to vector<34x16xf32>
    %109 = vector.extract_strided_slice %85 {offsets = [38, 0], sizes = [34, 16], strides = [1, 1]} : vector<144x16xf32> to vector<34x16xf32>
    %110 = vector.extract_strided_slice %85 {offsets = [74, 0], sizes = [34, 16], strides = [1, 1]} : vector<144x16xf32> to vector<34x16xf32>
    %111 = vector.extract_strided_slice %85 {offsets = [110, 0], sizes = [34, 16], strides = [1, 1]} : vector<144x16xf32> to vector<34x16xf32>
    %112 = tpu.concatenate %108, %109, %110, %111 in 0 : vector<34x16xf32>, vector<34x16xf32>, vector<34x16xf32>, vector<34x16xf32> -> vector<136x16xf32>
    %113 = vector.extract_strided_slice %4 {offsets = [2, 0, 0], sizes = [1, 16, 16], strides = [1, 1, 1]} : vector<3x16x16xf32> to vector<1x16x16xf32>
    %114 = vector.shape_cast %113 : vector<1x16x16xf32> to vector<16x16xf32>
    %115 = arith.truncf %112 : vector<136x16xf32> to vector<136x16xbf16>
    %116 = arith.truncf %114 : vector<16x16xf32> to vector<16x16xbf16>
    %cst_58 = arith.constant dense<0.000000e+00> : vector<136x16xf32>
    %117 = tpu.matmul %115, %116, %cst_58 {dimension_numbers = #tpu.dot_dimension_numbers<[1], [0], [0], [1], [0, 0, 1, 1], [], []>} : vector<136x16xbf16>, vector<16x16xbf16>, vector<136x16xf32> -> vector<136x16xf32>
    %118 = arith.addf %107, %117 : vector<136x16xf32>
    %119 = vector.broadcast %86 : vector<1x16xf32> to vector<136x16xf32>
    %120 = arith.addf %118, %119 : vector<136x16xf32>
    %cst_59 = arith.constant 0.000000e+00 : f32
    %121 = vector.broadcast %cst_59 : f32 to vector<136x16xf32>
    %122 = arith.maximumf %120, %121 : vector<136x16xf32>
    %123 = vector.extract_strided_slice %5 {offsets = [1, 0], sizes = [1, 16], strides = [1, 1]} : vector<3x16xf32> to vector<1x16xf32>
    %124 = vector.broadcast %123 : vector<1x16xf32> to vector<136x16xf32>
    %125 = arith.mulf %122, %124 : vector<136x16xf32>
    %126 = vector.extract_strided_slice %5 {offsets = [2, 0], sizes = [1, 16], strides = [1, 1]} : vector<3x16xf32> to vector<1x16xf32>
    %127 = vector.broadcast %126 : vector<1x16xf32> to vector<136x16xf32>
    %128 = arith.addf %125, %127 : vector<136x16xf32>
    %129 = vector.extract_strided_slice %128 {offsets = [0, 0], sizes = [32, 16], strides = [1, 1]} : vector<136x16xf32> to vector<32x16xf32>
    %130 = vector.extract_strided_slice %128 {offsets = [34, 0], sizes = [32, 16], strides = [1, 1]} : vector<136x16xf32> to vector<32x16xf32>
    %131 = vector.extract_strided_slice %128 {offsets = [68, 0], sizes = [32, 16], strides = [1, 1]} : vector<136x16xf32> to vector<32x16xf32>
    %132 = vector.extract_strided_slice %128 {offsets = [102, 0], sizes = [32, 16], strides = [1, 1]} : vector<136x16xf32> to vector<32x16xf32>
    %133 = tpu.concatenate %129, %130, %131, %132 in 0 : vector<32x16xf32>, vector<32x16xf32>, vector<32x16xf32>, vector<32x16xf32> -> vector<128x16xf32>
    %134 = vector.extract_strided_slice %128 {offsets = [1, 0], sizes = [32, 16], strides = [1, 1]} : vector<136x16xf32> to vector<32x16xf32>
    %135 = vector.extract_strided_slice %128 {offsets = [35, 0], sizes = [32, 16], strides = [1, 1]} : vector<136x16xf32> to vector<32x16xf32>
    %136 = vector.extract_strided_slice %128 {offsets = [69, 0], sizes = [32, 16], strides = [1, 1]} : vector<136x16xf32> to vector<32x16xf32>
    %137 = vector.extract_strided_slice %128 {offsets = [103, 0], sizes = [32, 16], strides = [1, 1]} : vector<136x16xf32> to vector<32x16xf32>
    %138 = tpu.concatenate %134, %135, %136, %137 in 0 : vector<32x16xf32>, vector<32x16xf32>, vector<32x16xf32>, vector<32x16xf32> -> vector<128x16xf32>
    %139 = vector.extract_strided_slice %128 {offsets = [2, 0], sizes = [32, 16], strides = [1, 1]} : vector<136x16xf32> to vector<32x16xf32>
    %140 = vector.extract_strided_slice %128 {offsets = [36, 0], sizes = [32, 16], strides = [1, 1]} : vector<136x16xf32> to vector<32x16xf32>
    %141 = vector.extract_strided_slice %128 {offsets = [70, 0], sizes = [32, 16], strides = [1, 1]} : vector<136x16xf32> to vector<32x16xf32>
    %142 = vector.extract_strided_slice %128 {offsets = [104, 0], sizes = [32, 16], strides = [1, 1]} : vector<136x16xf32> to vector<32x16xf32>
    %143 = tpu.concatenate %139, %140, %141, %142 in 0 : vector<32x16xf32>, vector<32x16xf32>, vector<32x16xf32>, vector<32x16xf32> -> vector<128x16xf32>
    %144 = arith.maximumf %133, %138 : vector<128x16xf32>
    %145 = arith.maximumf %144, %143 : vector<128x16xf32>
    %146 = vector.extract_strided_slice %7 {offsets = [0, 0], sizes = [1, 32], strides = [1, 1]} : vector<3x32xf32> to vector<1x32xf32>
    %147 = vector.extract_strided_slice %128 {offsets = [0, 0], sizes = [29, 16], strides = [1, 1]} : vector<136x16xf32> to vector<29x16xf32>
    %148 = vector.extract_strided_slice %128 {offsets = [34, 0], sizes = [29, 16], strides = [1, 1]} : vector<136x16xf32> to vector<29x16xf32>
    %149 = vector.extract_strided_slice %128 {offsets = [68, 0], sizes = [29, 16], strides = [1, 1]} : vector<136x16xf32> to vector<29x16xf32>
    %150 = vector.extract_strided_slice %128 {offsets = [102, 0], sizes = [29, 16], strides = [1, 1]} : vector<136x16xf32> to vector<29x16xf32>
    %151 = tpu.concatenate %147, %148, %149, %150 in 0 : vector<29x16xf32>, vector<29x16xf32>, vector<29x16xf32>, vector<29x16xf32> -> vector<116x16xf32>
    %152 = vector.extract_strided_slice %6 {offsets = [0, 0, 0], sizes = [1, 16, 32], strides = [1, 1, 1]} : vector<6x16x32xf32> to vector<1x16x32xf32>
    %153 = vector.shape_cast %152 : vector<1x16x32xf32> to vector<16x32xf32>
    %154 = arith.truncf %151 : vector<116x16xf32> to vector<116x16xbf16>
    %155 = arith.truncf %153 : vector<16x32xf32> to vector<16x32xbf16>
    %cst_60 = arith.constant dense<0.000000e+00> : vector<116x32xf32>
    %156 = tpu.matmul %154, %155, %cst_60 {dimension_numbers = #tpu.dot_dimension_numbers<[1], [0], [0], [1], [0, 0, 1, 1], [], []>} : vector<116x16xbf16>, vector<16x32xbf16>, vector<116x32xf32> -> vector<116x32xf32>
    %157 = vector.extract_strided_slice %128 {offsets = [1, 0], sizes = [29, 16], strides = [1, 1]} : vector<136x16xf32> to vector<29x16xf32>
    %158 = vector.extract_strided_slice %128 {offsets = [35, 0], sizes = [29, 16], strides = [1, 1]} : vector<136x16xf32> to vector<29x16xf32>
    %159 = vector.extract_strided_slice %128 {offsets = [69, 0], sizes = [29, 16], strides = [1, 1]} : vector<136x16xf32> to vector<29x16xf32>
    %160 = vector.extract_strided_slice %128 {offsets = [103, 0], sizes = [29, 16], strides = [1, 1]} : vector<136x16xf32> to vector<29x16xf32>
    %161 = tpu.concatenate %157, %158, %159, %160 in 0 : vector<29x16xf32>, vector<29x16xf32>, vector<29x16xf32>, vector<29x16xf32> -> vector<116x16xf32>
    %162 = vector.extract_strided_slice %6 {offsets = [1, 0, 0], sizes = [1, 16, 32], strides = [1, 1, 1]} : vector<6x16x32xf32> to vector<1x16x32xf32>
    %163 = vector.shape_cast %162 : vector<1x16x32xf32> to vector<16x32xf32>
    %164 = arith.truncf %161 : vector<116x16xf32> to vector<116x16xbf16>
    %165 = arith.truncf %163 : vector<16x32xf32> to vector<16x32xbf16>
    %cst_61 = arith.constant dense<0.000000e+00> : vector<116x32xf32>
    %166 = tpu.matmul %164, %165, %cst_61 {dimension_numbers = #tpu.dot_dimension_numbers<[1], [0], [0], [1], [0, 0, 1, 1], [], []>} : vector<116x16xbf16>, vector<16x32xbf16>, vector<116x32xf32> -> vector<116x32xf32>
    %167 = arith.addf %156, %166 : vector<116x32xf32>
    %168 = vector.extract_strided_slice %128 {offsets = [2, 0], sizes = [29, 16], strides = [1, 1]} : vector<136x16xf32> to vector<29x16xf32>
    %169 = vector.extract_strided_slice %128 {offsets = [36, 0], sizes = [29, 16], strides = [1, 1]} : vector<136x16xf32> to vector<29x16xf32>
    %170 = vector.extract_strided_slice %128 {offsets = [70, 0], sizes = [29, 16], strides = [1, 1]} : vector<136x16xf32> to vector<29x16xf32>
    %171 = vector.extract_strided_slice %128 {offsets = [104, 0], sizes = [29, 16], strides = [1, 1]} : vector<136x16xf32> to vector<29x16xf32>
    %172 = tpu.concatenate %168, %169, %170, %171 in 0 : vector<29x16xf32>, vector<29x16xf32>, vector<29x16xf32>, vector<29x16xf32> -> vector<116x16xf32>
    %173 = vector.extract_strided_slice %6 {offsets = [2, 0, 0], sizes = [1, 16, 32], strides = [1, 1, 1]} : vector<6x16x32xf32> to vector<1x16x32xf32>
    %174 = vector.shape_cast %173 : vector<1x16x32xf32> to vector<16x32xf32>
    %175 = arith.truncf %172 : vector<116x16xf32> to vector<116x16xbf16>
    %176 = arith.truncf %174 : vector<16x32xf32> to vector<16x32xbf16>
    %cst_62 = arith.constant dense<0.000000e+00> : vector<116x32xf32>
    %177 = tpu.matmul %175, %176, %cst_62 {dimension_numbers = #tpu.dot_dimension_numbers<[1], [0], [0], [1], [0, 0, 1, 1], [], []>} : vector<116x16xbf16>, vector<16x32xbf16>, vector<116x32xf32> -> vector<116x32xf32>
    %178 = arith.addf %167, %177 : vector<116x32xf32>
    %179 = vector.extract_strided_slice %128 {offsets = [3, 0], sizes = [29, 16], strides = [1, 1]} : vector<136x16xf32> to vector<29x16xf32>
    %180 = vector.extract_strided_slice %128 {offsets = [37, 0], sizes = [29, 16], strides = [1, 1]} : vector<136x16xf32> to vector<29x16xf32>
    %181 = vector.extract_strided_slice %128 {offsets = [71, 0], sizes = [29, 16], strides = [1, 1]} : vector<136x16xf32> to vector<29x16xf32>
    %182 = vector.extract_strided_slice %128 {offsets = [105, 0], sizes = [29, 16], strides = [1, 1]} : vector<136x16xf32> to vector<29x16xf32>
    %183 = tpu.concatenate %179, %180, %181, %182 in 0 : vector<29x16xf32>, vector<29x16xf32>, vector<29x16xf32>, vector<29x16xf32> -> vector<116x16xf32>
    %184 = vector.extract_strided_slice %6 {offsets = [3, 0, 0], sizes = [1, 16, 32], strides = [1, 1, 1]} : vector<6x16x32xf32> to vector<1x16x32xf32>
    %185 = vector.shape_cast %184 : vector<1x16x32xf32> to vector<16x32xf32>
    %186 = arith.truncf %183 : vector<116x16xf32> to vector<116x16xbf16>
    %187 = arith.truncf %185 : vector<16x32xf32> to vector<16x32xbf16>
    %cst_63 = arith.constant dense<0.000000e+00> : vector<116x32xf32>
    %188 = tpu.matmul %186, %187, %cst_63 {dimension_numbers = #tpu.dot_dimension_numbers<[1], [0], [0], [1], [0, 0, 1, 1], [], []>} : vector<116x16xbf16>, vector<16x32xbf16>, vector<116x32xf32> -> vector<116x32xf32>
    %189 = arith.addf %178, %188 : vector<116x32xf32>
    %190 = vector.extract_strided_slice %128 {offsets = [4, 0], sizes = [29, 16], strides = [1, 1]} : vector<136x16xf32> to vector<29x16xf32>
    %191 = vector.extract_strided_slice %128 {offsets = [38, 0], sizes = [29, 16], strides = [1, 1]} : vector<136x16xf32> to vector<29x16xf32>
    %192 = vector.extract_strided_slice %128 {offsets = [72, 0], sizes = [29, 16], strides = [1, 1]} : vector<136x16xf32> to vector<29x16xf32>
    %193 = vector.extract_strided_slice %128 {offsets = [106, 0], sizes = [29, 16], strides = [1, 1]} : vector<136x16xf32> to vector<29x16xf32>
    %194 = tpu.concatenate %190, %191, %192, %193 in 0 : vector<29x16xf32>, vector<29x16xf32>, vector<29x16xf32>, vector<29x16xf32> -> vector<116x16xf32>
    %195 = vector.extract_strided_slice %6 {offsets = [4, 0, 0], sizes = [1, 16, 32], strides = [1, 1, 1]} : vector<6x16x32xf32> to vector<1x16x32xf32>
    %196 = vector.shape_cast %195 : vector<1x16x32xf32> to vector<16x32xf32>
    %197 = arith.truncf %194 : vector<116x16xf32> to vector<116x16xbf16>
    %198 = arith.truncf %196 : vector<16x32xf32> to vector<16x32xbf16>
    %cst_64 = arith.constant dense<0.000000e+00> : vector<116x32xf32>
    %199 = tpu.matmul %197, %198, %cst_64 {dimension_numbers = #tpu.dot_dimension_numbers<[1], [0], [0], [1], [0, 0, 1, 1], [], []>} : vector<116x16xbf16>, vector<16x32xbf16>, vector<116x32xf32> -> vector<116x32xf32>
    %200 = arith.addf %189, %199 : vector<116x32xf32>
    %201 = vector.extract_strided_slice %128 {offsets = [5, 0], sizes = [29, 16], strides = [1, 1]} : vector<136x16xf32> to vector<29x16xf32>
    %202 = vector.extract_strided_slice %128 {offsets = [39, 0], sizes = [29, 16], strides = [1, 1]} : vector<136x16xf32> to vector<29x16xf32>
    %203 = vector.extract_strided_slice %128 {offsets = [73, 0], sizes = [29, 16], strides = [1, 1]} : vector<136x16xf32> to vector<29x16xf32>
    %204 = vector.extract_strided_slice %128 {offsets = [107, 0], sizes = [29, 16], strides = [1, 1]} : vector<136x16xf32> to vector<29x16xf32>
    %205 = tpu.concatenate %201, %202, %203, %204 in 0 : vector<29x16xf32>, vector<29x16xf32>, vector<29x16xf32>, vector<29x16xf32> -> vector<116x16xf32>
    %206 = vector.extract_strided_slice %6 {offsets = [5, 0, 0], sizes = [1, 16, 32], strides = [1, 1, 1]} : vector<6x16x32xf32> to vector<1x16x32xf32>
    %207 = vector.shape_cast %206 : vector<1x16x32xf32> to vector<16x32xf32>
    %208 = arith.truncf %205 : vector<116x16xf32> to vector<116x16xbf16>
    %209 = arith.truncf %207 : vector<16x32xf32> to vector<16x32xbf16>
    %cst_65 = arith.constant dense<0.000000e+00> : vector<116x32xf32>
    %210 = tpu.matmul %208, %209, %cst_65 {dimension_numbers = #tpu.dot_dimension_numbers<[1], [0], [0], [1], [0, 0, 1, 1], [], []>} : vector<116x16xbf16>, vector<16x32xbf16>, vector<116x32xf32> -> vector<116x32xf32>
    %211 = arith.addf %200, %210 : vector<116x32xf32>
    %212 = vector.broadcast %146 : vector<1x32xf32> to vector<116x32xf32>
    %213 = arith.addf %211, %212 : vector<116x32xf32>
    %cst_66 = arith.constant 0.000000e+00 : f32
    %214 = vector.broadcast %cst_66 : f32 to vector<116x32xf32>
    %215 = arith.maximumf %213, %214 : vector<116x32xf32>
    %216 = vector.extract_strided_slice %7 {offsets = [1, 0], sizes = [1, 32], strides = [1, 1]} : vector<3x32xf32> to vector<1x32xf32>
    %217 = vector.broadcast %216 : vector<1x32xf32> to vector<116x32xf32>
    %218 = arith.mulf %215, %217 : vector<116x32xf32>
    %219 = vector.extract_strided_slice %7 {offsets = [2, 0], sizes = [1, 32], strides = [1, 1]} : vector<3x32xf32> to vector<1x32xf32>
    %220 = vector.broadcast %219 : vector<1x32xf32> to vector<116x32xf32>
    %221 = arith.addf %218, %220 : vector<116x32xf32>
    %222 = vector.extract_strided_slice %221 {offsets = [0, 0], sizes = [24, 32], strides = [1, 1]} : vector<116x32xf32> to vector<24x32xf32>
    %223 = vector.extract_strided_slice %221 {offsets = [29, 0], sizes = [24, 32], strides = [1, 1]} : vector<116x32xf32> to vector<24x32xf32>
    %224 = vector.extract_strided_slice %221 {offsets = [58, 0], sizes = [24, 32], strides = [1, 1]} : vector<116x32xf32> to vector<24x32xf32>
    %225 = vector.extract_strided_slice %221 {offsets = [87, 0], sizes = [24, 32], strides = [1, 1]} : vector<116x32xf32> to vector<24x32xf32>
    %226 = tpu.concatenate %222, %223, %224, %225 in 0 : vector<24x32xf32>, vector<24x32xf32>, vector<24x32xf32>, vector<24x32xf32> -> vector<96x32xf32>
    %227 = vector.extract_strided_slice %221 {offsets = [1, 0], sizes = [24, 32], strides = [1, 1]} : vector<116x32xf32> to vector<24x32xf32>
    %228 = vector.extract_strided_slice %221 {offsets = [30, 0], sizes = [24, 32], strides = [1, 1]} : vector<116x32xf32> to vector<24x32xf32>
    %229 = vector.extract_strided_slice %221 {offsets = [59, 0], sizes = [24, 32], strides = [1, 1]} : vector<116x32xf32> to vector<24x32xf32>
    %230 = vector.extract_strided_slice %221 {offsets = [88, 0], sizes = [24, 32], strides = [1, 1]} : vector<116x32xf32> to vector<24x32xf32>
    %231 = tpu.concatenate %227, %228, %229, %230 in 0 : vector<24x32xf32>, vector<24x32xf32>, vector<24x32xf32>, vector<24x32xf32> -> vector<96x32xf32>
    %232 = vector.extract_strided_slice %221 {offsets = [2, 0], sizes = [24, 32], strides = [1, 1]} : vector<116x32xf32> to vector<24x32xf32>
    %233 = vector.extract_strided_slice %221 {offsets = [31, 0], sizes = [24, 32], strides = [1, 1]} : vector<116x32xf32> to vector<24x32xf32>
    %234 = vector.extract_strided_slice %221 {offsets = [60, 0], sizes = [24, 32], strides = [1, 1]} : vector<116x32xf32> to vector<24x32xf32>
    %235 = vector.extract_strided_slice %221 {offsets = [89, 0], sizes = [24, 32], strides = [1, 1]} : vector<116x32xf32> to vector<24x32xf32>
    %236 = tpu.concatenate %232, %233, %234, %235 in 0 : vector<24x32xf32>, vector<24x32xf32>, vector<24x32xf32>, vector<24x32xf32> -> vector<96x32xf32>
    %237 = vector.extract_strided_slice %221 {offsets = [3, 0], sizes = [24, 32], strides = [1, 1]} : vector<116x32xf32> to vector<24x32xf32>
    %238 = vector.extract_strided_slice %221 {offsets = [32, 0], sizes = [24, 32], strides = [1, 1]} : vector<116x32xf32> to vector<24x32xf32>
    %239 = vector.extract_strided_slice %221 {offsets = [61, 0], sizes = [24, 32], strides = [1, 1]} : vector<116x32xf32> to vector<24x32xf32>
    %240 = vector.extract_strided_slice %221 {offsets = [90, 0], sizes = [24, 32], strides = [1, 1]} : vector<116x32xf32> to vector<24x32xf32>
    %241 = tpu.concatenate %237, %238, %239, %240 in 0 : vector<24x32xf32>, vector<24x32xf32>, vector<24x32xf32>, vector<24x32xf32> -> vector<96x32xf32>
    %242 = vector.extract_strided_slice %221 {offsets = [4, 0], sizes = [24, 32], strides = [1, 1]} : vector<116x32xf32> to vector<24x32xf32>
    %243 = vector.extract_strided_slice %221 {offsets = [33, 0], sizes = [24, 32], strides = [1, 1]} : vector<116x32xf32> to vector<24x32xf32>
    %244 = vector.extract_strided_slice %221 {offsets = [62, 0], sizes = [24, 32], strides = [1, 1]} : vector<116x32xf32> to vector<24x32xf32>
    %245 = vector.extract_strided_slice %221 {offsets = [91, 0], sizes = [24, 32], strides = [1, 1]} : vector<116x32xf32> to vector<24x32xf32>
    %246 = tpu.concatenate %242, %243, %244, %245 in 0 : vector<24x32xf32>, vector<24x32xf32>, vector<24x32xf32>, vector<24x32xf32> -> vector<96x32xf32>
    %247 = vector.extract_strided_slice %221 {offsets = [5, 0], sizes = [24, 32], strides = [1, 1]} : vector<116x32xf32> to vector<24x32xf32>
    %248 = vector.extract_strided_slice %221 {offsets = [34, 0], sizes = [24, 32], strides = [1, 1]} : vector<116x32xf32> to vector<24x32xf32>
    %249 = vector.extract_strided_slice %221 {offsets = [63, 0], sizes = [24, 32], strides = [1, 1]} : vector<116x32xf32> to vector<24x32xf32>
    %250 = vector.extract_strided_slice %221 {offsets = [92, 0], sizes = [24, 32], strides = [1, 1]} : vector<116x32xf32> to vector<24x32xf32>
    %251 = tpu.concatenate %247, %248, %249, %250 in 0 : vector<24x32xf32>, vector<24x32xf32>, vector<24x32xf32>, vector<24x32xf32> -> vector<96x32xf32>
    %252 = arith.maximumf %226, %231 : vector<96x32xf32>
    %253 = arith.maximumf %236, %241 : vector<96x32xf32>
    %254 = arith.maximumf %246, %251 : vector<96x32xf32>
    %255 = arith.maximumf %252, %253 : vector<96x32xf32>
    %256 = arith.maximumf %255, %254 : vector<96x32xf32>
    %257 = vector.extract_strided_slice %9 {offsets = [0, 0], sizes = [1, 32], strides = [1, 1]} : vector<3x32xf32> to vector<1x32xf32>
    %258 = vector.extract_strided_slice %221 {offsets = [0, 0], sizes = [21, 32], strides = [1, 1]} : vector<116x32xf32> to vector<21x32xf32>
    %259 = vector.extract_strided_slice %221 {offsets = [29, 0], sizes = [21, 32], strides = [1, 1]} : vector<116x32xf32> to vector<21x32xf32>
    %260 = vector.extract_strided_slice %221 {offsets = [58, 0], sizes = [21, 32], strides = [1, 1]} : vector<116x32xf32> to vector<21x32xf32>
    %261 = vector.extract_strided_slice %221 {offsets = [87, 0], sizes = [21, 32], strides = [1, 1]} : vector<116x32xf32> to vector<21x32xf32>
    %262 = tpu.concatenate %258, %259, %260, %261 in 0 : vector<21x32xf32>, vector<21x32xf32>, vector<21x32xf32>, vector<21x32xf32> -> vector<84x32xf32>
    %263 = vector.extract_strided_slice %8 {offsets = [0, 0, 0], sizes = [1, 32, 32], strides = [1, 1, 1]} : vector<9x32x32xf32> to vector<1x32x32xf32>
    %264 = vector.shape_cast %263 : vector<1x32x32xf32> to vector<32x32xf32>
    %265 = arith.truncf %262 : vector<84x32xf32> to vector<84x32xbf16>
    %266 = arith.truncf %264 : vector<32x32xf32> to vector<32x32xbf16>
    %cst_67 = arith.constant dense<0.000000e+00> : vector<84x32xf32>
    %267 = tpu.matmul %265, %266, %cst_67 {dimension_numbers = #tpu.dot_dimension_numbers<[1], [0], [0], [1], [0, 0, 1, 1], [], []>} : vector<84x32xbf16>, vector<32x32xbf16>, vector<84x32xf32> -> vector<84x32xf32>
    %268 = vector.extract_strided_slice %221 {offsets = [1, 0], sizes = [21, 32], strides = [1, 1]} : vector<116x32xf32> to vector<21x32xf32>
    %269 = vector.extract_strided_slice %221 {offsets = [30, 0], sizes = [21, 32], strides = [1, 1]} : vector<116x32xf32> to vector<21x32xf32>
    %270 = vector.extract_strided_slice %221 {offsets = [59, 0], sizes = [21, 32], strides = [1, 1]} : vector<116x32xf32> to vector<21x32xf32>
    %271 = vector.extract_strided_slice %221 {offsets = [88, 0], sizes = [21, 32], strides = [1, 1]} : vector<116x32xf32> to vector<21x32xf32>
    %272 = tpu.concatenate %268, %269, %270, %271 in 0 : vector<21x32xf32>, vector<21x32xf32>, vector<21x32xf32>, vector<21x32xf32> -> vector<84x32xf32>
    %273 = vector.extract_strided_slice %8 {offsets = [1, 0, 0], sizes = [1, 32, 32], strides = [1, 1, 1]} : vector<9x32x32xf32> to vector<1x32x32xf32>
    %274 = vector.shape_cast %273 : vector<1x32x32xf32> to vector<32x32xf32>
    %275 = arith.truncf %272 : vector<84x32xf32> to vector<84x32xbf16>
    %276 = arith.truncf %274 : vector<32x32xf32> to vector<32x32xbf16>
    %cst_68 = arith.constant dense<0.000000e+00> : vector<84x32xf32>
    %277 = tpu.matmul %275, %276, %cst_68 {dimension_numbers = #tpu.dot_dimension_numbers<[1], [0], [0], [1], [0, 0, 1, 1], [], []>} : vector<84x32xbf16>, vector<32x32xbf16>, vector<84x32xf32> -> vector<84x32xf32>
    %278 = arith.addf %267, %277 : vector<84x32xf32>
    %279 = vector.extract_strided_slice %221 {offsets = [2, 0], sizes = [21, 32], strides = [1, 1]} : vector<116x32xf32> to vector<21x32xf32>
    %280 = vector.extract_strided_slice %221 {offsets = [31, 0], sizes = [21, 32], strides = [1, 1]} : vector<116x32xf32> to vector<21x32xf32>
    %281 = vector.extract_strided_slice %221 {offsets = [60, 0], sizes = [21, 32], strides = [1, 1]} : vector<116x32xf32> to vector<21x32xf32>
    %282 = vector.extract_strided_slice %221 {offsets = [89, 0], sizes = [21, 32], strides = [1, 1]} : vector<116x32xf32> to vector<21x32xf32>
    %283 = tpu.concatenate %279, %280, %281, %282 in 0 : vector<21x32xf32>, vector<21x32xf32>, vector<21x32xf32>, vector<21x32xf32> -> vector<84x32xf32>
    %284 = vector.extract_strided_slice %8 {offsets = [2, 0, 0], sizes = [1, 32, 32], strides = [1, 1, 1]} : vector<9x32x32xf32> to vector<1x32x32xf32>
    %285 = vector.shape_cast %284 : vector<1x32x32xf32> to vector<32x32xf32>
    %286 = arith.truncf %283 : vector<84x32xf32> to vector<84x32xbf16>
    %287 = arith.truncf %285 : vector<32x32xf32> to vector<32x32xbf16>
    %cst_69 = arith.constant dense<0.000000e+00> : vector<84x32xf32>
    %288 = tpu.matmul %286, %287, %cst_69 {dimension_numbers = #tpu.dot_dimension_numbers<[1], [0], [0], [1], [0, 0, 1, 1], [], []>} : vector<84x32xbf16>, vector<32x32xbf16>, vector<84x32xf32> -> vector<84x32xf32>
    %289 = arith.addf %278, %288 : vector<84x32xf32>
    %290 = vector.extract_strided_slice %221 {offsets = [3, 0], sizes = [21, 32], strides = [1, 1]} : vector<116x32xf32> to vector<21x32xf32>
    %291 = vector.extract_strided_slice %221 {offsets = [32, 0], sizes = [21, 32], strides = [1, 1]} : vector<116x32xf32> to vector<21x32xf32>
    %292 = vector.extract_strided_slice %221 {offsets = [61, 0], sizes = [21, 32], strides = [1, 1]} : vector<116x32xf32> to vector<21x32xf32>
    %293 = vector.extract_strided_slice %221 {offsets = [90, 0], sizes = [21, 32], strides = [1, 1]} : vector<116x32xf32> to vector<21x32xf32>
    %294 = tpu.concatenate %290, %291, %292, %293 in 0 : vector<21x32xf32>, vector<21x32xf32>, vector<21x32xf32>, vector<21x32xf32> -> vector<84x32xf32>
    %295 = vector.extract_strided_slice %8 {offsets = [3, 0, 0], sizes = [1, 32, 32], strides = [1, 1, 1]} : vector<9x32x32xf32> to vector<1x32x32xf32>
    %296 = vector.shape_cast %295 : vector<1x32x32xf32> to vector<32x32xf32>
    %297 = arith.truncf %294 : vector<84x32xf32> to vector<84x32xbf16>
    %298 = arith.truncf %296 : vector<32x32xf32> to vector<32x32xbf16>
    %cst_70 = arith.constant dense<0.000000e+00> : vector<84x32xf32>
    %299 = tpu.matmul %297, %298, %cst_70 {dimension_numbers = #tpu.dot_dimension_numbers<[1], [0], [0], [1], [0, 0, 1, 1], [], []>} : vector<84x32xbf16>, vector<32x32xbf16>, vector<84x32xf32> -> vector<84x32xf32>
    %300 = arith.addf %289, %299 : vector<84x32xf32>
    %301 = vector.extract_strided_slice %221 {offsets = [4, 0], sizes = [21, 32], strides = [1, 1]} : vector<116x32xf32> to vector<21x32xf32>
    %302 = vector.extract_strided_slice %221 {offsets = [33, 0], sizes = [21, 32], strides = [1, 1]} : vector<116x32xf32> to vector<21x32xf32>
    %303 = vector.extract_strided_slice %221 {offsets = [62, 0], sizes = [21, 32], strides = [1, 1]} : vector<116x32xf32> to vector<21x32xf32>
    %304 = vector.extract_strided_slice %221 {offsets = [91, 0], sizes = [21, 32], strides = [1, 1]} : vector<116x32xf32> to vector<21x32xf32>
    %305 = tpu.concatenate %301, %302, %303, %304 in 0 : vector<21x32xf32>, vector<21x32xf32>, vector<21x32xf32>, vector<21x32xf32> -> vector<84x32xf32>
    %306 = vector.extract_strided_slice %8 {offsets = [4, 0, 0], sizes = [1, 32, 32], strides = [1, 1, 1]} : vector<9x32x32xf32> to vector<1x32x32xf32>
    %307 = vector.shape_cast %306 : vector<1x32x32xf32> to vector<32x32xf32>
    %308 = arith.truncf %305 : vector<84x32xf32> to vector<84x32xbf16>
    %309 = arith.truncf %307 : vector<32x32xf32> to vector<32x32xbf16>
    %cst_71 = arith.constant dense<0.000000e+00> : vector<84x32xf32>
    %310 = tpu.matmul %308, %309, %cst_71 {dimension_numbers = #tpu.dot_dimension_numbers<[1], [0], [0], [1], [0, 0, 1, 1], [], []>} : vector<84x32xbf16>, vector<32x32xbf16>, vector<84x32xf32> -> vector<84x32xf32>
    %311 = arith.addf %300, %310 : vector<84x32xf32>
    %312 = vector.extract_strided_slice %221 {offsets = [5, 0], sizes = [21, 32], strides = [1, 1]} : vector<116x32xf32> to vector<21x32xf32>
    %313 = vector.extract_strided_slice %221 {offsets = [34, 0], sizes = [21, 32], strides = [1, 1]} : vector<116x32xf32> to vector<21x32xf32>
    %314 = vector.extract_strided_slice %221 {offsets = [63, 0], sizes = [21, 32], strides = [1, 1]} : vector<116x32xf32> to vector<21x32xf32>
    %315 = vector.extract_strided_slice %221 {offsets = [92, 0], sizes = [21, 32], strides = [1, 1]} : vector<116x32xf32> to vector<21x32xf32>
    %316 = tpu.concatenate %312, %313, %314, %315 in 0 : vector<21x32xf32>, vector<21x32xf32>, vector<21x32xf32>, vector<21x32xf32> -> vector<84x32xf32>
    %317 = vector.extract_strided_slice %8 {offsets = [5, 0, 0], sizes = [1, 32, 32], strides = [1, 1, 1]} : vector<9x32x32xf32> to vector<1x32x32xf32>
    %318 = vector.shape_cast %317 : vector<1x32x32xf32> to vector<32x32xf32>
    %319 = arith.truncf %316 : vector<84x32xf32> to vector<84x32xbf16>
    %320 = arith.truncf %318 : vector<32x32xf32> to vector<32x32xbf16>
    %cst_72 = arith.constant dense<0.000000e+00> : vector<84x32xf32>
    %321 = tpu.matmul %319, %320, %cst_72 {dimension_numbers = #tpu.dot_dimension_numbers<[1], [0], [0], [1], [0, 0, 1, 1], [], []>} : vector<84x32xbf16>, vector<32x32xbf16>, vector<84x32xf32> -> vector<84x32xf32>
    %322 = arith.addf %311, %321 : vector<84x32xf32>
    %323 = vector.extract_strided_slice %221 {offsets = [6, 0], sizes = [21, 32], strides = [1, 1]} : vector<116x32xf32> to vector<21x32xf32>
    %324 = vector.extract_strided_slice %221 {offsets = [35, 0], sizes = [21, 32], strides = [1, 1]} : vector<116x32xf32> to vector<21x32xf32>
    %325 = vector.extract_strided_slice %221 {offsets = [64, 0], sizes = [21, 32], strides = [1, 1]} : vector<116x32xf32> to vector<21x32xf32>
    %326 = vector.extract_strided_slice %221 {offsets = [93, 0], sizes = [21, 32], strides = [1, 1]} : vector<116x32xf32> to vector<21x32xf32>
    %327 = tpu.concatenate %323, %324, %325, %326 in 0 : vector<21x32xf32>, vector<21x32xf32>, vector<21x32xf32>, vector<21x32xf32> -> vector<84x32xf32>
    %328 = vector.extract_strided_slice %8 {offsets = [6, 0, 0], sizes = [1, 32, 32], strides = [1, 1, 1]} : vector<9x32x32xf32> to vector<1x32x32xf32>
    %329 = vector.shape_cast %328 : vector<1x32x32xf32> to vector<32x32xf32>
    %330 = arith.truncf %327 : vector<84x32xf32> to vector<84x32xbf16>
    %331 = arith.truncf %329 : vector<32x32xf32> to vector<32x32xbf16>
    %cst_73 = arith.constant dense<0.000000e+00> : vector<84x32xf32>
    %332 = tpu.matmul %330, %331, %cst_73 {dimension_numbers = #tpu.dot_dimension_numbers<[1], [0], [0], [1], [0, 0, 1, 1], [], []>} : vector<84x32xbf16>, vector<32x32xbf16>, vector<84x32xf32> -> vector<84x32xf32>
    %333 = arith.addf %322, %332 : vector<84x32xf32>
    %334 = vector.extract_strided_slice %221 {offsets = [7, 0], sizes = [21, 32], strides = [1, 1]} : vector<116x32xf32> to vector<21x32xf32>
    %335 = vector.extract_strided_slice %221 {offsets = [36, 0], sizes = [21, 32], strides = [1, 1]} : vector<116x32xf32> to vector<21x32xf32>
    %336 = vector.extract_strided_slice %221 {offsets = [65, 0], sizes = [21, 32], strides = [1, 1]} : vector<116x32xf32> to vector<21x32xf32>
    %337 = vector.extract_strided_slice %221 {offsets = [94, 0], sizes = [21, 32], strides = [1, 1]} : vector<116x32xf32> to vector<21x32xf32>
    %338 = tpu.concatenate %334, %335, %336, %337 in 0 : vector<21x32xf32>, vector<21x32xf32>, vector<21x32xf32>, vector<21x32xf32> -> vector<84x32xf32>
    %339 = vector.extract_strided_slice %8 {offsets = [7, 0, 0], sizes = [1, 32, 32], strides = [1, 1, 1]} : vector<9x32x32xf32> to vector<1x32x32xf32>
    %340 = vector.shape_cast %339 : vector<1x32x32xf32> to vector<32x32xf32>
    %341 = arith.truncf %338 : vector<84x32xf32> to vector<84x32xbf16>
    %342 = arith.truncf %340 : vector<32x32xf32> to vector<32x32xbf16>
    %cst_74 = arith.constant dense<0.000000e+00> : vector<84x32xf32>
    %343 = tpu.matmul %341, %342, %cst_74 {dimension_numbers = #tpu.dot_dimension_numbers<[1], [0], [0], [1], [0, 0, 1, 1], [], []>} : vector<84x32xbf16>, vector<32x32xbf16>, vector<84x32xf32> -> vector<84x32xf32>
    %344 = arith.addf %333, %343 : vector<84x32xf32>
    %345 = vector.extract_strided_slice %221 {offsets = [8, 0], sizes = [21, 32], strides = [1, 1]} : vector<116x32xf32> to vector<21x32xf32>
    %346 = vector.extract_strided_slice %221 {offsets = [37, 0], sizes = [21, 32], strides = [1, 1]} : vector<116x32xf32> to vector<21x32xf32>
    %347 = vector.extract_strided_slice %221 {offsets = [66, 0], sizes = [21, 32], strides = [1, 1]} : vector<116x32xf32> to vector<21x32xf32>
    %348 = vector.extract_strided_slice %221 {offsets = [95, 0], sizes = [21, 32], strides = [1, 1]} : vector<116x32xf32> to vector<21x32xf32>
    %349 = tpu.concatenate %345, %346, %347, %348 in 0 : vector<21x32xf32>, vector<21x32xf32>, vector<21x32xf32>, vector<21x32xf32> -> vector<84x32xf32>
    %350 = vector.extract_strided_slice %8 {offsets = [8, 0, 0], sizes = [1, 32, 32], strides = [1, 1, 1]} : vector<9x32x32xf32> to vector<1x32x32xf32>
    %351 = vector.shape_cast %350 : vector<1x32x32xf32> to vector<32x32xf32>
    %352 = arith.truncf %349 : vector<84x32xf32> to vector<84x32xbf16>
    %353 = arith.truncf %351 : vector<32x32xf32> to vector<32x32xbf16>
    %cst_75 = arith.constant dense<0.000000e+00> : vector<84x32xf32>
    %354 = tpu.matmul %352, %353, %cst_75 {dimension_numbers = #tpu.dot_dimension_numbers<[1], [0], [0], [1], [0, 0, 1, 1], [], []>} : vector<84x32xbf16>, vector<32x32xbf16>, vector<84x32xf32> -> vector<84x32xf32>
    %355 = arith.addf %344, %354 : vector<84x32xf32>
    %356 = vector.broadcast %257 : vector<1x32xf32> to vector<84x32xf32>
    %357 = arith.addf %355, %356 : vector<84x32xf32>
    %cst_76 = arith.constant 0.000000e+00 : f32
    %358 = vector.broadcast %cst_76 : f32 to vector<84x32xf32>
    %359 = arith.maximumf %357, %358 : vector<84x32xf32>
    %360 = vector.extract_strided_slice %9 {offsets = [1, 0], sizes = [1, 32], strides = [1, 1]} : vector<3x32xf32> to vector<1x32xf32>
    %361 = vector.broadcast %360 : vector<1x32xf32> to vector<84x32xf32>
    %362 = arith.mulf %359, %361 : vector<84x32xf32>
    %363 = vector.extract_strided_slice %9 {offsets = [2, 0], sizes = [1, 32], strides = [1, 1]} : vector<3x32xf32> to vector<1x32xf32>
    %364 = vector.broadcast %363 : vector<1x32xf32> to vector<84x32xf32>
    %365 = arith.addf %362, %364 : vector<84x32xf32>
    %366 = vector.extract_strided_slice %365 {offsets = [0, 0], sizes = [13, 32], strides = [1, 1]} : vector<84x32xf32> to vector<13x32xf32>
    %367 = vector.extract_strided_slice %365 {offsets = [21, 0], sizes = [13, 32], strides = [1, 1]} : vector<84x32xf32> to vector<13x32xf32>
    %368 = vector.extract_strided_slice %365 {offsets = [42, 0], sizes = [13, 32], strides = [1, 1]} : vector<84x32xf32> to vector<13x32xf32>
    %369 = vector.extract_strided_slice %365 {offsets = [63, 0], sizes = [13, 32], strides = [1, 1]} : vector<84x32xf32> to vector<13x32xf32>
    %370 = tpu.concatenate %366, %367, %368, %369 in 0 : vector<13x32xf32>, vector<13x32xf32>, vector<13x32xf32>, vector<13x32xf32> -> vector<52x32xf32>
    %371 = vector.extract_strided_slice %365 {offsets = [1, 0], sizes = [13, 32], strides = [1, 1]} : vector<84x32xf32> to vector<13x32xf32>
    %372 = vector.extract_strided_slice %365 {offsets = [22, 0], sizes = [13, 32], strides = [1, 1]} : vector<84x32xf32> to vector<13x32xf32>
    %373 = vector.extract_strided_slice %365 {offsets = [43, 0], sizes = [13, 32], strides = [1, 1]} : vector<84x32xf32> to vector<13x32xf32>
    %374 = vector.extract_strided_slice %365 {offsets = [64, 0], sizes = [13, 32], strides = [1, 1]} : vector<84x32xf32> to vector<13x32xf32>
    %375 = tpu.concatenate %371, %372, %373, %374 in 0 : vector<13x32xf32>, vector<13x32xf32>, vector<13x32xf32>, vector<13x32xf32> -> vector<52x32xf32>
    %376 = vector.extract_strided_slice %365 {offsets = [2, 0], sizes = [13, 32], strides = [1, 1]} : vector<84x32xf32> to vector<13x32xf32>
    %377 = vector.extract_strided_slice %365 {offsets = [23, 0], sizes = [13, 32], strides = [1, 1]} : vector<84x32xf32> to vector<13x32xf32>
    %378 = vector.extract_strided_slice %365 {offsets = [44, 0], sizes = [13, 32], strides = [1, 1]} : vector<84x32xf32> to vector<13x32xf32>
    %379 = vector.extract_strided_slice %365 {offsets = [65, 0], sizes = [13, 32], strides = [1, 1]} : vector<84x32xf32> to vector<13x32xf32>
    %380 = tpu.concatenate %376, %377, %378, %379 in 0 : vector<13x32xf32>, vector<13x32xf32>, vector<13x32xf32>, vector<13x32xf32> -> vector<52x32xf32>
    %381 = vector.extract_strided_slice %365 {offsets = [3, 0], sizes = [13, 32], strides = [1, 1]} : vector<84x32xf32> to vector<13x32xf32>
    %382 = vector.extract_strided_slice %365 {offsets = [24, 0], sizes = [13, 32], strides = [1, 1]} : vector<84x32xf32> to vector<13x32xf32>
    %383 = vector.extract_strided_slice %365 {offsets = [45, 0], sizes = [13, 32], strides = [1, 1]} : vector<84x32xf32> to vector<13x32xf32>
    %384 = vector.extract_strided_slice %365 {offsets = [66, 0], sizes = [13, 32], strides = [1, 1]} : vector<84x32xf32> to vector<13x32xf32>
    %385 = tpu.concatenate %381, %382, %383, %384 in 0 : vector<13x32xf32>, vector<13x32xf32>, vector<13x32xf32>, vector<13x32xf32> -> vector<52x32xf32>
    %386 = vector.extract_strided_slice %365 {offsets = [4, 0], sizes = [13, 32], strides = [1, 1]} : vector<84x32xf32> to vector<13x32xf32>
    %387 = vector.extract_strided_slice %365 {offsets = [25, 0], sizes = [13, 32], strides = [1, 1]} : vector<84x32xf32> to vector<13x32xf32>
    %388 = vector.extract_strided_slice %365 {offsets = [46, 0], sizes = [13, 32], strides = [1, 1]} : vector<84x32xf32> to vector<13x32xf32>
    %389 = vector.extract_strided_slice %365 {offsets = [67, 0], sizes = [13, 32], strides = [1, 1]} : vector<84x32xf32> to vector<13x32xf32>
    %390 = tpu.concatenate %386, %387, %388, %389 in 0 : vector<13x32xf32>, vector<13x32xf32>, vector<13x32xf32>, vector<13x32xf32> -> vector<52x32xf32>
    %391 = vector.extract_strided_slice %365 {offsets = [5, 0], sizes = [13, 32], strides = [1, 1]} : vector<84x32xf32> to vector<13x32xf32>
    %392 = vector.extract_strided_slice %365 {offsets = [26, 0], sizes = [13, 32], strides = [1, 1]} : vector<84x32xf32> to vector<13x32xf32>
    %393 = vector.extract_strided_slice %365 {offsets = [47, 0], sizes = [13, 32], strides = [1, 1]} : vector<84x32xf32> to vector<13x32xf32>
    %394 = vector.extract_strided_slice %365 {offsets = [68, 0], sizes = [13, 32], strides = [1, 1]} : vector<84x32xf32> to vector<13x32xf32>
    %395 = tpu.concatenate %391, %392, %393, %394 in 0 : vector<13x32xf32>, vector<13x32xf32>, vector<13x32xf32>, vector<13x32xf32> -> vector<52x32xf32>
    %396 = vector.extract_strided_slice %365 {offsets = [6, 0], sizes = [13, 32], strides = [1, 1]} : vector<84x32xf32> to vector<13x32xf32>
    %397 = vector.extract_strided_slice %365 {offsets = [27, 0], sizes = [13, 32], strides = [1, 1]} : vector<84x32xf32> to vector<13x32xf32>
    %398 = vector.extract_strided_slice %365 {offsets = [48, 0], sizes = [13, 32], strides = [1, 1]} : vector<84x32xf32> to vector<13x32xf32>
    %399 = vector.extract_strided_slice %365 {offsets = [69, 0], sizes = [13, 32], strides = [1, 1]} : vector<84x32xf32> to vector<13x32xf32>
    %400 = tpu.concatenate %396, %397, %398, %399 in 0 : vector<13x32xf32>, vector<13x32xf32>, vector<13x32xf32>, vector<13x32xf32> -> vector<52x32xf32>
    %401 = vector.extract_strided_slice %365 {offsets = [7, 0], sizes = [13, 32], strides = [1, 1]} : vector<84x32xf32> to vector<13x32xf32>
    %402 = vector.extract_strided_slice %365 {offsets = [28, 0], sizes = [13, 32], strides = [1, 1]} : vector<84x32xf32> to vector<13x32xf32>
    %403 = vector.extract_strided_slice %365 {offsets = [49, 0], sizes = [13, 32], strides = [1, 1]} : vector<84x32xf32> to vector<13x32xf32>
    %404 = vector.extract_strided_slice %365 {offsets = [70, 0], sizes = [13, 32], strides = [1, 1]} : vector<84x32xf32> to vector<13x32xf32>
    %405 = tpu.concatenate %401, %402, %403, %404 in 0 : vector<13x32xf32>, vector<13x32xf32>, vector<13x32xf32>, vector<13x32xf32> -> vector<52x32xf32>
    %406 = vector.extract_strided_slice %365 {offsets = [8, 0], sizes = [13, 32], strides = [1, 1]} : vector<84x32xf32> to vector<13x32xf32>
    %407 = vector.extract_strided_slice %365 {offsets = [29, 0], sizes = [13, 32], strides = [1, 1]} : vector<84x32xf32> to vector<13x32xf32>
    %408 = vector.extract_strided_slice %365 {offsets = [50, 0], sizes = [13, 32], strides = [1, 1]} : vector<84x32xf32> to vector<13x32xf32>
    %409 = vector.extract_strided_slice %365 {offsets = [71, 0], sizes = [13, 32], strides = [1, 1]} : vector<84x32xf32> to vector<13x32xf32>
    %410 = tpu.concatenate %406, %407, %408, %409 in 0 : vector<13x32xf32>, vector<13x32xf32>, vector<13x32xf32>, vector<13x32xf32> -> vector<52x32xf32>
    %411 = arith.maximumf %370, %375 : vector<52x32xf32>
    %412 = arith.maximumf %380, %385 : vector<52x32xf32>
    %413 = arith.maximumf %390, %395 : vector<52x32xf32>
    %414 = arith.maximumf %400, %405 : vector<52x32xf32>
    %415 = arith.maximumf %411, %412 : vector<52x32xf32>
    %416 = arith.maximumf %413, %414 : vector<52x32xf32>
    %417 = arith.maximumf %415, %416 : vector<52x32xf32>
    %418 = arith.maximumf %417, %410 : vector<52x32xf32>
    %419 = vector.extract_strided_slice %256 {offsets = [0, 0], sizes = [1, 32], strides = [1, 1]} : vector<96x32xf32> to vector<1x32xf32>
    %420 = vector.extract_strided_slice %256 {offsets = [0, 0], sizes = [4, 32], strides = [1, 1]} : vector<96x32xf32> to vector<4x32xf32>
    %421 = vector.extract_strided_slice %256 {offsets = [3, 0], sizes = [4, 32], strides = [1, 1]} : vector<96x32xf32> to vector<4x32xf32>
    %422 = vector.extract_strided_slice %256 {offsets = [6, 0], sizes = [4, 32], strides = [1, 1]} : vector<96x32xf32> to vector<4x32xf32>
    %423 = vector.extract_strided_slice %256 {offsets = [9, 0], sizes = [4, 32], strides = [1, 1]} : vector<96x32xf32> to vector<4x32xf32>
    %424 = vector.extract_strided_slice %256 {offsets = [12, 0], sizes = [4, 32], strides = [1, 1]} : vector<96x32xf32> to vector<4x32xf32>
    %425 = vector.extract_strided_slice %256 {offsets = [15, 0], sizes = [4, 32], strides = [1, 1]} : vector<96x32xf32> to vector<4x32xf32>
    %426 = vector.extract_strided_slice %256 {offsets = [18, 0], sizes = [4, 32], strides = [1, 1]} : vector<96x32xf32> to vector<4x32xf32>
    %427 = vector.extract_strided_slice %256 {offsets = [21, 0], sizes = [3, 32], strides = [1, 1]} : vector<96x32xf32> to vector<3x32xf32>
    %428 = vector.extract_strided_slice %256 {offsets = [24, 0], sizes = [1, 32], strides = [1, 1]} : vector<96x32xf32> to vector<1x32xf32>
    %429 = vector.extract_strided_slice %256 {offsets = [24, 0], sizes = [4, 32], strides = [1, 1]} : vector<96x32xf32> to vector<4x32xf32>
    %430 = vector.extract_strided_slice %256 {offsets = [27, 0], sizes = [4, 32], strides = [1, 1]} : vector<96x32xf32> to vector<4x32xf32>
    %431 = vector.extract_strided_slice %256 {offsets = [30, 0], sizes = [4, 32], strides = [1, 1]} : vector<96x32xf32> to vector<4x32xf32>
    %432 = vector.extract_strided_slice %256 {offsets = [33, 0], sizes = [4, 32], strides = [1, 1]} : vector<96x32xf32> to vector<4x32xf32>
    %433 = vector.extract_strided_slice %256 {offsets = [36, 0], sizes = [4, 32], strides = [1, 1]} : vector<96x32xf32> to vector<4x32xf32>
    %434 = vector.extract_strided_slice %256 {offsets = [39, 0], sizes = [4, 32], strides = [1, 1]} : vector<96x32xf32> to vector<4x32xf32>
    %435 = vector.extract_strided_slice %256 {offsets = [42, 0], sizes = [4, 32], strides = [1, 1]} : vector<96x32xf32> to vector<4x32xf32>
    %436 = vector.extract_strided_slice %256 {offsets = [45, 0], sizes = [3, 32], strides = [1, 1]} : vector<96x32xf32> to vector<3x32xf32>
    %437 = vector.extract_strided_slice %256 {offsets = [48, 0], sizes = [1, 32], strides = [1, 1]} : vector<96x32xf32> to vector<1x32xf32>
    %438 = vector.extract_strided_slice %256 {offsets = [48, 0], sizes = [4, 32], strides = [1, 1]} : vector<96x32xf32> to vector<4x32xf32>
    %439 = vector.extract_strided_slice %256 {offsets = [51, 0], sizes = [4, 32], strides = [1, 1]} : vector<96x32xf32> to vector<4x32xf32>
    %440 = vector.extract_strided_slice %256 {offsets = [54, 0], sizes = [4, 32], strides = [1, 1]} : vector<96x32xf32> to vector<4x32xf32>
    %441 = vector.extract_strided_slice %256 {offsets = [57, 0], sizes = [4, 32], strides = [1, 1]} : vector<96x32xf32> to vector<4x32xf32>
    %442 = vector.extract_strided_slice %256 {offsets = [60, 0], sizes = [4, 32], strides = [1, 1]} : vector<96x32xf32> to vector<4x32xf32>
    %443 = vector.extract_strided_slice %256 {offsets = [63, 0], sizes = [4, 32], strides = [1, 1]} : vector<96x32xf32> to vector<4x32xf32>
    %444 = vector.extract_strided_slice %256 {offsets = [66, 0], sizes = [4, 32], strides = [1, 1]} : vector<96x32xf32> to vector<4x32xf32>
    %445 = vector.extract_strided_slice %256 {offsets = [69, 0], sizes = [3, 32], strides = [1, 1]} : vector<96x32xf32> to vector<3x32xf32>
    %446 = vector.extract_strided_slice %256 {offsets = [72, 0], sizes = [1, 32], strides = [1, 1]} : vector<96x32xf32> to vector<1x32xf32>
    %447 = vector.extract_strided_slice %256 {offsets = [72, 0], sizes = [4, 32], strides = [1, 1]} : vector<96x32xf32> to vector<4x32xf32>
    %448 = vector.extract_strided_slice %256 {offsets = [75, 0], sizes = [4, 32], strides = [1, 1]} : vector<96x32xf32> to vector<4x32xf32>
    %449 = vector.extract_strided_slice %256 {offsets = [78, 0], sizes = [4, 32], strides = [1, 1]} : vector<96x32xf32> to vector<4x32xf32>
    %450 = vector.extract_strided_slice %256 {offsets = [81, 0], sizes = [4, 32], strides = [1, 1]} : vector<96x32xf32> to vector<4x32xf32>
    %451 = vector.extract_strided_slice %256 {offsets = [84, 0], sizes = [4, 32], strides = [1, 1]} : vector<96x32xf32> to vector<4x32xf32>
    %452 = vector.extract_strided_slice %256 {offsets = [87, 0], sizes = [4, 32], strides = [1, 1]} : vector<96x32xf32> to vector<4x32xf32>
    %453 = vector.extract_strided_slice %256 {offsets = [90, 0], sizes = [4, 32], strides = [1, 1]} : vector<96x32xf32> to vector<4x32xf32>
    %454 = vector.extract_strided_slice %256 {offsets = [93, 0], sizes = [3, 32], strides = [1, 1]} : vector<96x32xf32> to vector<3x32xf32>
    %455 = tpu.concatenate %419, %420, %421, %422, %423, %424, %425, %426, %427, %428, %429, %430, %431, %432, %433, %434 in 0 : vector<1x32xf32>, vector<4x32xf32>, vector<4x32xf32>, vector<4x32xf32>, vector<4x32xf32>, vector<4x32xf32>, vector<4x32xf32>, vector<4x32xf32>, vector<3x32xf32>, vector<1x32xf32>, vector<4x32xf32>, vector<4x32xf32>, vector<4x32xf32>, vector<4x32xf32>, vector<4x32xf32>, vector<4x32xf32> -> vector<57x32xf32>
    %456 = tpu.concatenate %435, %436, %437, %438, %439, %440, %441, %442, %443, %444, %445, %446, %447, %448, %449, %450 in 0 : vector<4x32xf32>, vector<3x32xf32>, vector<1x32xf32>, vector<4x32xf32>, vector<4x32xf32>, vector<4x32xf32>, vector<4x32xf32>, vector<4x32xf32>, vector<4x32xf32>, vector<4x32xf32>, vector<3x32xf32>, vector<1x32xf32>, vector<4x32xf32>, vector<4x32xf32>, vector<4x32xf32>, vector<4x32xf32> -> vector<56x32xf32>
    %457 = tpu.concatenate %451, %452, %453, %454 in 0 : vector<4x32xf32>, vector<4x32xf32>, vector<4x32xf32>, vector<3x32xf32> -> vector<15x32xf32>
    %458 = tpu.concatenate %455, %456, %457 in 0 : vector<57x32xf32>, vector<56x32xf32>, vector<15x32xf32> -> vector<128x32xf32>
    %459 = vector.extract_strided_slice %418 {offsets = [0, 0], sizes = [1, 32], strides = [1, 1]} : vector<52x32xf32> to vector<1x32xf32>
    %460 = vector.extract_strided_slice %418 {offsets = [0, 0], sizes = [1, 32], strides = [1, 1]} : vector<52x32xf32> to vector<1x32xf32>
    %461 = vector.extract_strided_slice %418 {offsets = [0, 0], sizes = [2, 32], strides = [1, 1]} : vector<52x32xf32> to vector<2x32xf32>
    %462 = vector.extract_strided_slice %418 {offsets = [1, 0], sizes = [2, 32], strides = [1, 1]} : vector<52x32xf32> to vector<2x32xf32>
    %463 = vector.extract_strided_slice %418 {offsets = [2, 0], sizes = [1, 32], strides = [1, 1]} : vector<52x32xf32> to vector<1x32xf32>
    %464 = vector.extract_strided_slice %418 {offsets = [2, 0], sizes = [2, 32], strides = [1, 1]} : vector<52x32xf32> to vector<2x32xf32>
    %465 = vector.extract_strided_slice %418 {offsets = [3, 0], sizes = [2, 32], strides = [1, 1]} : vector<52x32xf32> to vector<2x32xf32>
    %466 = vector.extract_strided_slice %418 {offsets = [4, 0], sizes = [1, 32], strides = [1, 1]} : vector<52x32xf32> to vector<1x32xf32>
    %467 = vector.extract_strided_slice %418 {offsets = [4, 0], sizes = [2, 32], strides = [1, 1]} : vector<52x32xf32> to vector<2x32xf32>
    %468 = vector.extract_strided_slice %418 {offsets = [5, 0], sizes = [2, 32], strides = [1, 1]} : vector<52x32xf32> to vector<2x32xf32>
    %469 = vector.extract_strided_slice %418 {offsets = [6, 0], sizes = [1, 32], strides = [1, 1]} : vector<52x32xf32> to vector<1x32xf32>
    %470 = vector.extract_strided_slice %418 {offsets = [6, 0], sizes = [2, 32], strides = [1, 1]} : vector<52x32xf32> to vector<2x32xf32>
    %471 = vector.extract_strided_slice %418 {offsets = [7, 0], sizes = [2, 32], strides = [1, 1]} : vector<52x32xf32> to vector<2x32xf32>
    %472 = vector.extract_strided_slice %418 {offsets = [8, 0], sizes = [1, 32], strides = [1, 1]} : vector<52x32xf32> to vector<1x32xf32>
    %473 = vector.extract_strided_slice %418 {offsets = [8, 0], sizes = [2, 32], strides = [1, 1]} : vector<52x32xf32> to vector<2x32xf32>
    %474 = vector.extract_strided_slice %418 {offsets = [9, 0], sizes = [2, 32], strides = [1, 1]} : vector<52x32xf32> to vector<2x32xf32>
    %475 = vector.extract_strided_slice %418 {offsets = [10, 0], sizes = [1, 32], strides = [1, 1]} : vector<52x32xf32> to vector<1x32xf32>
    %476 = vector.extract_strided_slice %418 {offsets = [10, 0], sizes = [2, 32], strides = [1, 1]} : vector<52x32xf32> to vector<2x32xf32>
    %477 = vector.extract_strided_slice %418 {offsets = [11, 0], sizes = [2, 32], strides = [1, 1]} : vector<52x32xf32> to vector<2x32xf32>
    %478 = vector.extract_strided_slice %418 {offsets = [12, 0], sizes = [1, 32], strides = [1, 1]} : vector<52x32xf32> to vector<1x32xf32>
    %479 = vector.extract_strided_slice %418 {offsets = [13, 0], sizes = [1, 32], strides = [1, 1]} : vector<52x32xf32> to vector<1x32xf32>
    %480 = vector.extract_strided_slice %418 {offsets = [13, 0], sizes = [1, 32], strides = [1, 1]} : vector<52x32xf32> to vector<1x32xf32>
    %481 = vector.extract_strided_slice %418 {offsets = [13, 0], sizes = [2, 32], strides = [1, 1]} : vector<52x32xf32> to vector<2x32xf32>
    %482 = vector.extract_strided_slice %418 {offsets = [14, 0], sizes = [2, 32], strides = [1, 1]} : vector<52x32xf32> to vector<2x32xf32>
    %483 = vector.extract_strided_slice %418 {offsets = [15, 0], sizes = [1, 32], strides = [1, 1]} : vector<52x32xf32> to vector<1x32xf32>
    %484 = vector.extract_strided_slice %418 {offsets = [15, 0], sizes = [2, 32], strides = [1, 1]} : vector<52x32xf32> to vector<2x32xf32>
    %485 = vector.extract_strided_slice %418 {offsets = [16, 0], sizes = [2, 32], strides = [1, 1]} : vector<52x32xf32> to vector<2x32xf32>
    %486 = vector.extract_strided_slice %418 {offsets = [17, 0], sizes = [1, 32], strides = [1, 1]} : vector<52x32xf32> to vector<1x32xf32>
    %487 = vector.extract_strided_slice %418 {offsets = [17, 0], sizes = [2, 32], strides = [1, 1]} : vector<52x32xf32> to vector<2x32xf32>
    %488 = vector.extract_strided_slice %418 {offsets = [18, 0], sizes = [2, 32], strides = [1, 1]} : vector<52x32xf32> to vector<2x32xf32>
    %489 = vector.extract_strided_slice %418 {offsets = [19, 0], sizes = [1, 32], strides = [1, 1]} : vector<52x32xf32> to vector<1x32xf32>
    %490 = vector.extract_strided_slice %418 {offsets = [19, 0], sizes = [2, 32], strides = [1, 1]} : vector<52x32xf32> to vector<2x32xf32>
    %491 = vector.extract_strided_slice %418 {offsets = [20, 0], sizes = [2, 32], strides = [1, 1]} : vector<52x32xf32> to vector<2x32xf32>
    %492 = vector.extract_strided_slice %418 {offsets = [21, 0], sizes = [1, 32], strides = [1, 1]} : vector<52x32xf32> to vector<1x32xf32>
    %493 = vector.extract_strided_slice %418 {offsets = [21, 0], sizes = [2, 32], strides = [1, 1]} : vector<52x32xf32> to vector<2x32xf32>
    %494 = vector.extract_strided_slice %418 {offsets = [22, 0], sizes = [2, 32], strides = [1, 1]} : vector<52x32xf32> to vector<2x32xf32>
    %495 = vector.extract_strided_slice %418 {offsets = [23, 0], sizes = [1, 32], strides = [1, 1]} : vector<52x32xf32> to vector<1x32xf32>
    %496 = vector.extract_strided_slice %418 {offsets = [23, 0], sizes = [2, 32], strides = [1, 1]} : vector<52x32xf32> to vector<2x32xf32>
    %497 = vector.extract_strided_slice %418 {offsets = [24, 0], sizes = [2, 32], strides = [1, 1]} : vector<52x32xf32> to vector<2x32xf32>
    %498 = vector.extract_strided_slice %418 {offsets = [25, 0], sizes = [1, 32], strides = [1, 1]} : vector<52x32xf32> to vector<1x32xf32>
    %499 = vector.extract_strided_slice %418 {offsets = [26, 0], sizes = [1, 32], strides = [1, 1]} : vector<52x32xf32> to vector<1x32xf32>
    %500 = vector.extract_strided_slice %418 {offsets = [26, 0], sizes = [1, 32], strides = [1, 1]} : vector<52x32xf32> to vector<1x32xf32>
    %501 = vector.extract_strided_slice %418 {offsets = [26, 0], sizes = [2, 32], strides = [1, 1]} : vector<52x32xf32> to vector<2x32xf32>
    %502 = vector.extract_strided_slice %418 {offsets = [27, 0], sizes = [2, 32], strides = [1, 1]} : vector<52x32xf32> to vector<2x32xf32>
    %503 = vector.extract_strided_slice %418 {offsets = [28, 0], sizes = [1, 32], strides = [1, 1]} : vector<52x32xf32> to vector<1x32xf32>
    %504 = vector.extract_strided_slice %418 {offsets = [28, 0], sizes = [2, 32], strides = [1, 1]} : vector<52x32xf32> to vector<2x32xf32>
    %505 = vector.extract_strided_slice %418 {offsets = [29, 0], sizes = [2, 32], strides = [1, 1]} : vector<52x32xf32> to vector<2x32xf32>
    %506 = vector.extract_strided_slice %418 {offsets = [30, 0], sizes = [1, 32], strides = [1, 1]} : vector<52x32xf32> to vector<1x32xf32>
    %507 = vector.extract_strided_slice %418 {offsets = [30, 0], sizes = [2, 32], strides = [1, 1]} : vector<52x32xf32> to vector<2x32xf32>
    %508 = vector.extract_strided_slice %418 {offsets = [31, 0], sizes = [2, 32], strides = [1, 1]} : vector<52x32xf32> to vector<2x32xf32>
    %509 = vector.extract_strided_slice %418 {offsets = [32, 0], sizes = [1, 32], strides = [1, 1]} : vector<52x32xf32> to vector<1x32xf32>
    %510 = vector.extract_strided_slice %418 {offsets = [32, 0], sizes = [2, 32], strides = [1, 1]} : vector<52x32xf32> to vector<2x32xf32>
    %511 = vector.extract_strided_slice %418 {offsets = [33, 0], sizes = [2, 32], strides = [1, 1]} : vector<52x32xf32> to vector<2x32xf32>
    %512 = vector.extract_strided_slice %418 {offsets = [34, 0], sizes = [1, 32], strides = [1, 1]} : vector<52x32xf32> to vector<1x32xf32>
    %513 = vector.extract_strided_slice %418 {offsets = [34, 0], sizes = [2, 32], strides = [1, 1]} : vector<52x32xf32> to vector<2x32xf32>
    %514 = vector.extract_strided_slice %418 {offsets = [35, 0], sizes = [2, 32], strides = [1, 1]} : vector<52x32xf32> to vector<2x32xf32>
    %515 = vector.extract_strided_slice %418 {offsets = [36, 0], sizes = [1, 32], strides = [1, 1]} : vector<52x32xf32> to vector<1x32xf32>
    %516 = vector.extract_strided_slice %418 {offsets = [36, 0], sizes = [2, 32], strides = [1, 1]} : vector<52x32xf32> to vector<2x32xf32>
    %517 = vector.extract_strided_slice %418 {offsets = [37, 0], sizes = [2, 32], strides = [1, 1]} : vector<52x32xf32> to vector<2x32xf32>
    %518 = vector.extract_strided_slice %418 {offsets = [38, 0], sizes = [1, 32], strides = [1, 1]} : vector<52x32xf32> to vector<1x32xf32>
    %519 = vector.extract_strided_slice %418 {offsets = [39, 0], sizes = [1, 32], strides = [1, 1]} : vector<52x32xf32> to vector<1x32xf32>
    %520 = vector.extract_strided_slice %418 {offsets = [39, 0], sizes = [1, 32], strides = [1, 1]} : vector<52x32xf32> to vector<1x32xf32>
    %521 = vector.extract_strided_slice %418 {offsets = [39, 0], sizes = [2, 32], strides = [1, 1]} : vector<52x32xf32> to vector<2x32xf32>
    %522 = vector.extract_strided_slice %418 {offsets = [40, 0], sizes = [2, 32], strides = [1, 1]} : vector<52x32xf32> to vector<2x32xf32>
    %523 = vector.extract_strided_slice %418 {offsets = [41, 0], sizes = [1, 32], strides = [1, 1]} : vector<52x32xf32> to vector<1x32xf32>
    %524 = vector.extract_strided_slice %418 {offsets = [41, 0], sizes = [2, 32], strides = [1, 1]} : vector<52x32xf32> to vector<2x32xf32>
    %525 = vector.extract_strided_slice %418 {offsets = [42, 0], sizes = [2, 32], strides = [1, 1]} : vector<52x32xf32> to vector<2x32xf32>
    %526 = vector.extract_strided_slice %418 {offsets = [43, 0], sizes = [1, 32], strides = [1, 1]} : vector<52x32xf32> to vector<1x32xf32>
    %527 = vector.extract_strided_slice %418 {offsets = [43, 0], sizes = [2, 32], strides = [1, 1]} : vector<52x32xf32> to vector<2x32xf32>
    %528 = vector.extract_strided_slice %418 {offsets = [44, 0], sizes = [2, 32], strides = [1, 1]} : vector<52x32xf32> to vector<2x32xf32>
    %529 = vector.extract_strided_slice %418 {offsets = [45, 0], sizes = [1, 32], strides = [1, 1]} : vector<52x32xf32> to vector<1x32xf32>
    %530 = vector.extract_strided_slice %418 {offsets = [45, 0], sizes = [2, 32], strides = [1, 1]} : vector<52x32xf32> to vector<2x32xf32>
    %531 = vector.extract_strided_slice %418 {offsets = [46, 0], sizes = [2, 32], strides = [1, 1]} : vector<52x32xf32> to vector<2x32xf32>
    %532 = vector.extract_strided_slice %418 {offsets = [47, 0], sizes = [1, 32], strides = [1, 1]} : vector<52x32xf32> to vector<1x32xf32>
    %533 = vector.extract_strided_slice %418 {offsets = [47, 0], sizes = [2, 32], strides = [1, 1]} : vector<52x32xf32> to vector<2x32xf32>
    %534 = vector.extract_strided_slice %418 {offsets = [48, 0], sizes = [2, 32], strides = [1, 1]} : vector<52x32xf32> to vector<2x32xf32>
    %535 = vector.extract_strided_slice %418 {offsets = [49, 0], sizes = [1, 32], strides = [1, 1]} : vector<52x32xf32> to vector<1x32xf32>
    %536 = vector.extract_strided_slice %418 {offsets = [49, 0], sizes = [2, 32], strides = [1, 1]} : vector<52x32xf32> to vector<2x32xf32>
    %537 = vector.extract_strided_slice %418 {offsets = [50, 0], sizes = [2, 32], strides = [1, 1]} : vector<52x32xf32> to vector<2x32xf32>
    %538 = vector.extract_strided_slice %418 {offsets = [51, 0], sizes = [1, 32], strides = [1, 1]} : vector<52x32xf32> to vector<1x32xf32>
    %539 = tpu.concatenate %459, %460, %461, %462, %463, %464, %465, %466, %467, %468, %469, %470, %471, %472, %473, %474 in 0 : vector<1x32xf32>, vector<1x32xf32>, vector<2x32xf32>, vector<2x32xf32>, vector<1x32xf32>, vector<2x32xf32>, vector<2x32xf32>, vector<1x32xf32>, vector<2x32xf32>, vector<2x32xf32>, vector<1x32xf32>, vector<2x32xf32>, vector<2x32xf32>, vector<1x32xf32>, vector<2x32xf32>, vector<2x32xf32> -> vector<26x32xf32>
    %540 = tpu.concatenate %475, %476, %477, %478, %479, %480, %481, %482, %483, %484, %485, %486, %487, %488, %489, %490 in 0 : vector<1x32xf32>, vector<2x32xf32>, vector<2x32xf32>, vector<1x32xf32>, vector<1x32xf32>, vector<1x32xf32>, vector<2x32xf32>, vector<2x32xf32>, vector<1x32xf32>, vector<2x32xf32>, vector<2x32xf32>, vector<1x32xf32>, vector<2x32xf32>, vector<2x32xf32>, vector<1x32xf32>, vector<2x32xf32> -> vector<25x32xf32>
    %541 = tpu.concatenate %491, %492, %493, %494, %495, %496, %497, %498, %499, %500, %501, %502, %503, %504, %505, %506 in 0 : vector<2x32xf32>, vector<1x32xf32>, vector<2x32xf32>, vector<2x32xf32>, vector<1x32xf32>, vector<2x32xf32>, vector<2x32xf32>, vector<1x32xf32>, vector<1x32xf32>, vector<1x32xf32>, vector<2x32xf32>, vector<2x32xf32>, vector<1x32xf32>, vector<2x32xf32>, vector<2x32xf32>, vector<1x32xf32> -> vector<25x32xf32>
    %542 = tpu.concatenate %507, %508, %509, %510, %511, %512, %513, %514, %515, %516, %517, %518, %519, %520, %521, %522 in 0 : vector<2x32xf32>, vector<2x32xf32>, vector<1x32xf32>, vector<2x32xf32>, vector<2x32xf32>, vector<1x32xf32>, vector<2x32xf32>, vector<2x32xf32>, vector<1x32xf32>, vector<2x32xf32>, vector<2x32xf32>, vector<1x32xf32>, vector<1x32xf32>, vector<1x32xf32>, vector<2x32xf32>, vector<2x32xf32> -> vector<26x32xf32>
    %543 = tpu.concatenate %523, %524, %525, %526, %527, %528, %529, %530, %531, %532, %533, %534, %535, %536, %537, %538 in 0 : vector<1x32xf32>, vector<2x32xf32>, vector<2x32xf32>, vector<1x32xf32>, vector<2x32xf32>, vector<2x32xf32>, vector<1x32xf32>, vector<2x32xf32>, vector<2x32xf32>, vector<1x32xf32>, vector<2x32xf32>, vector<2x32xf32>, vector<1x32xf32>, vector<2x32xf32>, vector<2x32xf32>, vector<1x32xf32> -> vector<26x32xf32>
    %544 = tpu.concatenate %539, %540, %541, %542, %543 in 0 : vector<26x32xf32>, vector<25x32xf32>, vector<25x32xf32>, vector<26x32xf32>, vector<26x32xf32> -> vector<128x32xf32>
    %545 = tpu.concatenate %145, %458, %544 in 1 : vector<128x16xf32>, vector<128x32xf32>, vector<128x32xf32> -> vector<128x80xf32>
    %546 = arith.truncf %545 : vector<128x80xf32> to vector<128x80xbf16>
    %547 = arith.truncf %10 : vector<80x16xf32> to vector<80x16xbf16>
    %cst_77 = arith.constant dense<0.000000e+00> : vector<128x16xf32>
    %548 = tpu.matmul %546, %547, %cst_77 {dimension_numbers = #tpu.dot_dimension_numbers<[1], [0], [0], [1], [0, 0, 1, 1], [], []>} : vector<128x80xbf16>, vector<80x16xbf16>, vector<128x16xf32> -> vector<128x16xf32>
    %549 = vector.broadcast %11 : vector<1x16xf32> to vector<128x16xf32>
    %550 = arith.addf %548, %549 : vector<128x16xf32>
    %551 = arith.truncf %550 : vector<128x16xf32> to vector<128x16xbf16>
    %552 = arith.truncf %12 : vector<16x16xf32> to vector<16x16xbf16>
    %cst_78 = arith.constant dense<0.000000e+00> : vector<128x16xf32>
    %553 = tpu.matmul %551, %552, %cst_78 {dimension_numbers = #tpu.dot_dimension_numbers<[1], [0], [0], [1], [0, 0, 1, 1], [], []>} : vector<128x16xbf16>, vector<16x16xbf16>, vector<128x16xf32> -> vector<128x16xf32>
    %554 = vector.broadcast %13 : vector<1x16xf32> to vector<128x16xf32>
    %555 = arith.addf %553, %554 : vector<128x16xf32>
    %556 = arith.truncf %555 : vector<128x16xf32> to vector<128x16xbf16>
    %557 = arith.truncf %14 : vector<16x64xf32> to vector<16x64xbf16>
    %cst_79 = arith.constant dense<0.000000e+00> : vector<128x64xf32>
    %558 = tpu.matmul %556, %557, %cst_79 {dimension_numbers = #tpu.dot_dimension_numbers<[1], [0], [0], [1], [0, 0, 1, 1], [], []>} : vector<128x16xbf16>, vector<16x64xbf16>, vector<128x64xf32> -> vector<128x64xf32>
    %559 = vector.extract_strided_slice %15 {offsets = [0, 0], sizes = [1, 64], strides = [1, 1]} : vector<3x64xf32> to vector<1x64xf32>
    %560 = vector.broadcast %559 : vector<1x64xf32> to vector<128x64xf32>
    %561 = arith.addf %558, %560 : vector<128x64xf32>
    %562 = vector.extract_strided_slice %15 {offsets = [1, 0], sizes = [1, 64], strides = [1, 1]} : vector<3x64xf32> to vector<1x64xf32>
    %563 = vector.broadcast %562 : vector<1x64xf32> to vector<128x64xf32>
    %564 = arith.mulf %561, %563 : vector<128x64xf32>
    %565 = vector.extract_strided_slice %15 {offsets = [2, 0], sizes = [1, 64], strides = [1, 1]} : vector<3x64xf32> to vector<1x64xf32>
    %566 = vector.broadcast %565 : vector<1x64xf32> to vector<128x64xf32>
    %567 = arith.addf %564, %566 : vector<128x64xf32>
    %cst_80 = arith.constant 5.000000e-01 : f32
    %568 = vector.broadcast %cst_80 : f32 to vector<128x64xf32>
    %569 = arith.mulf %568, %567 : vector<128x64xf32>
    %570 = arith.mulf %567, %567 : vector<128x64xf32>
    %571 = arith.mulf %570, %567 : vector<128x64xf32>
    %cst_81 = arith.constant 4.471500e-02 : f32
    %572 = vector.broadcast %cst_81 : f32 to vector<128x64xf32>
    %573 = arith.mulf %572, %571 : vector<128x64xf32>
    %574 = arith.addf %567, %573 : vector<128x64xf32>
    %cst_82 = arith.constant 0.797884583 : f32
    %575 = vector.broadcast %cst_82 : f32 to vector<128x64xf32>
    %576 = arith.mulf %575, %574 : vector<128x64xf32>
    %577 = math.tanh %576 : vector<128x64xf32>
    %cst_83 = arith.constant 1.000000e+00 : f32
    %578 = vector.broadcast %cst_83 : f32 to vector<128x64xf32>
    %579 = arith.addf %578, %577 : vector<128x64xf32>
    %580 = arith.mulf %569, %579 : vector<128x64xf32>
    %cst_84 = arith.constant 0.000000e+00 : f32
    %581 = vector.broadcast %cst_84 : f32 to vector<1x64xf32>
    %582 = vector.extract_strided_slice %580 {offsets = [0, 0], sizes = [32, 64], strides = [1, 1]} : vector<128x64xf32> to vector<32x64xf32>
    %583 = vector.extract_strided_slice %580 {offsets = [32, 0], sizes = [32, 64], strides = [1, 1]} : vector<128x64xf32> to vector<32x64xf32>
    %584 = vector.extract_strided_slice %580 {offsets = [64, 0], sizes = [32, 64], strides = [1, 1]} : vector<128x64xf32> to vector<32x64xf32>
    %585 = vector.extract_strided_slice %580 {offsets = [96, 0], sizes = [32, 64], strides = [1, 1]} : vector<128x64xf32> to vector<32x64xf32>
    %586 = tpu.concatenate %581, %582, %581, %581, %583, %581, %581, %584, %581, %581, %585, %581 in 0 : vector<1x64xf32>, vector<32x64xf32>, vector<1x64xf32>, vector<1x64xf32>, vector<32x64xf32>, vector<1x64xf32>, vector<1x64xf32>, vector<32x64xf32>, vector<1x64xf32>, vector<1x64xf32>, vector<32x64xf32>, vector<1x64xf32> -> vector<136x64xf32>
    %587 = vector.extract_strided_slice %586 {offsets = [0, 0], sizes = [32, 64], strides = [1, 1]} : vector<136x64xf32> to vector<32x64xf32>
    %588 = vector.extract_strided_slice %586 {offsets = [34, 0], sizes = [32, 64], strides = [1, 1]} : vector<136x64xf32> to vector<32x64xf32>
    %589 = vector.extract_strided_slice %586 {offsets = [68, 0], sizes = [32, 64], strides = [1, 1]} : vector<136x64xf32> to vector<32x64xf32>
    %590 = vector.extract_strided_slice %586 {offsets = [102, 0], sizes = [32, 64], strides = [1, 1]} : vector<136x64xf32> to vector<32x64xf32>
    %591 = tpu.concatenate %587, %588, %589, %590 in 0 : vector<32x64xf32>, vector<32x64xf32>, vector<32x64xf32>, vector<32x64xf32> -> vector<128x64xf32>
    %592 = vector.extract_strided_slice %16 {offsets = [0, 0], sizes = [1, 64], strides = [1, 1]} : vector<3x64xf32> to vector<1x64xf32>
    %593 = vector.broadcast %592 : vector<1x64xf32> to vector<128x64xf32>
    %594 = arith.mulf %591, %593 : vector<128x64xf32>
    %595 = vector.extract_strided_slice %586 {offsets = [1, 0], sizes = [32, 64], strides = [1, 1]} : vector<136x64xf32> to vector<32x64xf32>
    %596 = vector.extract_strided_slice %586 {offsets = [35, 0], sizes = [32, 64], strides = [1, 1]} : vector<136x64xf32> to vector<32x64xf32>
    %597 = vector.extract_strided_slice %586 {offsets = [69, 0], sizes = [32, 64], strides = [1, 1]} : vector<136x64xf32> to vector<32x64xf32>
    %598 = vector.extract_strided_slice %586 {offsets = [103, 0], sizes = [32, 64], strides = [1, 1]} : vector<136x64xf32> to vector<32x64xf32>
    %599 = tpu.concatenate %595, %596, %597, %598 in 0 : vector<32x64xf32>, vector<32x64xf32>, vector<32x64xf32>, vector<32x64xf32> -> vector<128x64xf32>
    %600 = vector.extract_strided_slice %16 {offsets = [1, 0], sizes = [1, 64], strides = [1, 1]} : vector<3x64xf32> to vector<1x64xf32>
    %601 = vector.broadcast %600 : vector<1x64xf32> to vector<128x64xf32>
    %602 = arith.mulf %599, %601 : vector<128x64xf32>
    %603 = arith.addf %594, %602 : vector<128x64xf32>
    %604 = vector.extract_strided_slice %586 {offsets = [2, 0], sizes = [32, 64], strides = [1, 1]} : vector<136x64xf32> to vector<32x64xf32>
    %605 = vector.extract_strided_slice %586 {offsets = [36, 0], sizes = [32, 64], strides = [1, 1]} : vector<136x64xf32> to vector<32x64xf32>
    %606 = vector.extract_strided_slice %586 {offsets = [70, 0], sizes = [32, 64], strides = [1, 1]} : vector<136x64xf32> to vector<32x64xf32>
    %607 = vector.extract_strided_slice %586 {offsets = [104, 0], sizes = [32, 64], strides = [1, 1]} : vector<136x64xf32> to vector<32x64xf32>
    %608 = tpu.concatenate %604, %605, %606, %607 in 0 : vector<32x64xf32>, vector<32x64xf32>, vector<32x64xf32>, vector<32x64xf32> -> vector<128x64xf32>
    %609 = vector.extract_strided_slice %16 {offsets = [2, 0], sizes = [1, 64], strides = [1, 1]} : vector<3x64xf32> to vector<1x64xf32>
    %610 = vector.broadcast %609 : vector<1x64xf32> to vector<128x64xf32>
    %611 = arith.mulf %608, %610 : vector<128x64xf32>
    %612 = arith.addf %603, %611 : vector<128x64xf32>
    %613 = vector.extract_strided_slice %17 {offsets = [0, 0], sizes = [1, 64], strides = [1, 1]} : vector<3x64xf32> to vector<1x64xf32>
    %614 = vector.broadcast %613 : vector<1x64xf32> to vector<128x64xf32>
    %615 = arith.addf %612, %614 : vector<128x64xf32>
    %616 = vector.extract_strided_slice %17 {offsets = [1, 0], sizes = [1, 64], strides = [1, 1]} : vector<3x64xf32> to vector<1x64xf32>
    %617 = vector.broadcast %616 : vector<1x64xf32> to vector<128x64xf32>
    %618 = arith.mulf %615, %617 : vector<128x64xf32>
    %619 = vector.extract_strided_slice %17 {offsets = [2, 0], sizes = [1, 64], strides = [1, 1]} : vector<3x64xf32> to vector<1x64xf32>
    %620 = vector.broadcast %619 : vector<1x64xf32> to vector<128x64xf32>
    %621 = arith.addf %618, %620 : vector<128x64xf32>
    %cst_85 = arith.constant 5.000000e-01 : f32
    %622 = vector.broadcast %cst_85 : f32 to vector<128x64xf32>
    %623 = arith.mulf %622, %621 : vector<128x64xf32>
    %624 = arith.mulf %621, %621 : vector<128x64xf32>
    %625 = arith.mulf %624, %621 : vector<128x64xf32>
    %cst_86 = arith.constant 4.471500e-02 : f32
    %626 = vector.broadcast %cst_86 : f32 to vector<128x64xf32>
    %627 = arith.mulf %626, %625 : vector<128x64xf32>
    %628 = arith.addf %621, %627 : vector<128x64xf32>
    %cst_87 = arith.constant 0.797884583 : f32
    %629 = vector.broadcast %cst_87 : f32 to vector<128x64xf32>
    %630 = arith.mulf %629, %628 : vector<128x64xf32>
    %631 = math.tanh %630 : vector<128x64xf32>
    %cst_88 = arith.constant 1.000000e+00 : f32
    %632 = vector.broadcast %cst_88 : f32 to vector<128x64xf32>
    %633 = arith.addf %632, %631 : vector<128x64xf32>
    %634 = arith.mulf %623, %633 : vector<128x64xf32>
    %635 = arith.truncf %634 : vector<128x64xf32> to vector<128x64xbf16>
    %636 = arith.truncf %18 : vector<64x16xf32> to vector<64x16xbf16>
    %cst_89 = arith.constant dense<0.000000e+00> : vector<128x16xf32>
    %637 = tpu.matmul %635, %636, %cst_89 {dimension_numbers = #tpu.dot_dimension_numbers<[1], [0], [0], [1], [0, 0, 1, 1], [], []>} : vector<128x64xbf16>, vector<64x16xbf16>, vector<128x16xf32> -> vector<128x16xf32>
    %638 = vector.extract_strided_slice %19 {offsets = [0, 0], sizes = [1, 16], strides = [1, 1]} : vector<3x16xf32> to vector<1x16xf32>
    %639 = vector.broadcast %638 : vector<1x16xf32> to vector<128x16xf32>
    %640 = arith.addf %637, %639 : vector<128x16xf32>
    %641 = vector.extract_strided_slice %19 {offsets = [1, 0], sizes = [1, 16], strides = [1, 1]} : vector<3x16xf32> to vector<1x16xf32>
    %642 = vector.broadcast %641 : vector<1x16xf32> to vector<128x16xf32>
    %643 = arith.mulf %640, %642 : vector<128x16xf32>
    %644 = vector.extract_strided_slice %19 {offsets = [2, 0], sizes = [1, 16], strides = [1, 1]} : vector<3x16xf32> to vector<1x16xf32>
    %645 = vector.broadcast %644 : vector<1x16xf32> to vector<128x16xf32>
    %646 = arith.addf %643, %645 : vector<128x16xf32>
    %647 = arith.addf %555, %646 : vector<128x16xf32>
    %648 = tpu.transpose %647, [1, 0] : vector<128x16xf32> -> vector<16x128xf32>
    %649 = vector.extract_strided_slice %648 {offsets = [0, 0], sizes = [16, 32], strides = [1, 1]} : vector<16x128xf32> to vector<16x32xf32>
    %c0_90 = arith.constant 0 : index
    %c0_91 = arith.constant 0 : index
    %c0_92 = arith.constant 0 : index
    %650 = vector.load %arg22[%c0_90, %c0_91, %c0_92] : memref<4x16x32xf32, #tpu.memory_space<vmem>>, vector<1x16x32xf32>
    %651 = vector.shape_cast %650 : vector<1x16x32xf32> to vector<16x32xf32>
    %652 = vector.shape_cast %649 : vector<16x32xf32> to vector<1x16x32xf32>
    tpu.vector_store %arg22[%c0_90, %c0_91, %c0_92], %652 {strides = array<i32>} : memref<4x16x32xf32, #tpu.memory_space<vmem>>, vector<1x16x32xf32>,
    %653 = vector.extract_strided_slice %648 {offsets = [0, 32], sizes = [16, 32], strides = [1, 1]} : vector<16x128xf32> to vector<16x32xf32>
    %c1 = arith.constant 1 : index
    %c0_93 = arith.constant 0 : index
    %c0_94 = arith.constant 0 : index
    %654 = vector.load %arg22[%c1, %c0_93, %c0_94] : memref<4x16x32xf32, #tpu.memory_space<vmem>>, vector<1x16x32xf32>
    %655 = vector.shape_cast %654 : vector<1x16x32xf32> to vector<16x32xf32>
    %656 = vector.shape_cast %653 : vector<16x32xf32> to vector<1x16x32xf32>
    tpu.vector_store %arg22[%c1, %c0_93, %c0_94], %656 {strides = array<i32>} : memref<4x16x32xf32, #tpu.memory_space<vmem>>, vector<1x16x32xf32>,
    %657 = vector.extract_strided_slice %648 {offsets = [0, 64], sizes = [16, 32], strides = [1, 1]} : vector<16x128xf32> to vector<16x32xf32>
    %c2 = arith.constant 2 : index
    %c0_95 = arith.constant 0 : index
    %c0_96 = arith.constant 0 : index
    %658 = vector.load %arg22[%c2, %c0_95, %c0_96] : memref<4x16x32xf32, #tpu.memory_space<vmem>>, vector<1x16x32xf32>
    %659 = vector.shape_cast %658 : vector<1x16x32xf32> to vector<16x32xf32>
    %660 = vector.shape_cast %657 : vector<16x32xf32> to vector<1x16x32xf32>
    tpu.vector_store %arg22[%c2, %c0_95, %c0_96], %660 {strides = array<i32>} : memref<4x16x32xf32, #tpu.memory_space<vmem>>, vector<1x16x32xf32>,
    %661 = vector.extract_strided_slice %648 {offsets = [0, 96], sizes = [16, 32], strides = [1, 1]} : vector<16x128xf32> to vector<16x32xf32>
    %c3 = arith.constant 3 : index
    %c0_97 = arith.constant 0 : index
    %c0_98 = arith.constant 0 : index
    %662 = vector.load %arg22[%c3, %c0_97, %c0_98] : memref<4x16x32xf32, #tpu.memory_space<vmem>>, vector<1x16x32xf32>
    %663 = vector.shape_cast %662 : vector<1x16x32xf32> to vector<16x32xf32>
    %664 = vector.shape_cast %661 : vector<16x32xf32> to vector<1x16x32xf32>
    tpu.vector_store %arg22[%c3, %c0_97, %c0_98], %664 {strides = array<i32>} : memref<4x16x32xf32, #tpu.memory_space<vmem>>, vector<1x16x32xf32>,
    return
  }
  func.func @transform_0(%arg0: i32) -> (i32, i32, i32) {
    %c0_i32 = arith.constant 0 : i32
    %c0_i32_0 = arith.constant 0 : i32
    %c0_i32_1 = arith.constant 0 : i32
    return %arg0, %c0_i32, %c0_i32_0 : i32, i32, i32
  }
  func.func @transform_1(%arg0: i32) -> (i32, i32) {
    %c0_i32 = arith.constant 0 : i32
    %c0_i32_0 = arith.constant 0 : i32
    %c0_i32_1 = arith.constant 0 : i32
    return %c0_i32, %c0_i32_0 : i32, i32
  }
  func.func @transform_2(%arg0: i32) -> (i32, i32) {
    %c0_i32 = arith.constant 0 : i32
    %c0_i32_0 = arith.constant 0 : i32
    %c0_i32_1 = arith.constant 0 : i32
    return %c0_i32, %c0_i32_0 : i32, i32
  }
  func.func @transform_3(%arg0: i32) -> (i32, i32) {
    %c0_i32 = arith.constant 0 : i32
    %c0_i32_0 = arith.constant 0 : i32
    %c0_i32_1 = arith.constant 0 : i32
    return %c0_i32, %c0_i32_0 : i32, i32
  }
  func.func @transform_4(%arg0: i32) -> (i32, i32) {
    %c0_i32 = arith.constant 0 : i32
    %c0_i32_0 = arith.constant 0 : i32
    %c0_i32_1 = arith.constant 0 : i32
    return %c0_i32, %c0_i32_0 : i32, i32
  }
  func.func @transform_5(%arg0: i32) -> (i32, i32, i32) {
    %c0_i32 = arith.constant 0 : i32
    %c0_i32_0 = arith.constant 0 : i32
    %c0_i32_1 = arith.constant 0 : i32
    %c0_i32_2 = arith.constant 0 : i32
    return %c0_i32, %c0_i32_0, %c0_i32_1 : i32, i32, i32
  }
  func.func @transform_6(%arg0: i32) -> (i32, i32) {
    %c0_i32 = arith.constant 0 : i32
    %c0_i32_0 = arith.constant 0 : i32
    %c0_i32_1 = arith.constant 0 : i32
    return %c0_i32, %c0_i32_0 : i32, i32
  }
  func.func @transform_7(%arg0: i32) -> (i32, i32, i32) {
    %c0_i32 = arith.constant 0 : i32
    %c0_i32_0 = arith.constant 0 : i32
    %c0_i32_1 = arith.constant 0 : i32
    %c0_i32_2 = arith.constant 0 : i32
    return %c0_i32, %c0_i32_0, %c0_i32_1 : i32, i32, i32
  }
  func.func @transform_8(%arg0: i32) -> (i32, i32) {
    %c0_i32 = arith.constant 0 : i32
    %c0_i32_0 = arith.constant 0 : i32
    %c0_i32_1 = arith.constant 0 : i32
    return %c0_i32, %c0_i32_0 : i32, i32
  }
  func.func @transform_9(%arg0: i32) -> (i32, i32, i32) {
    %c0_i32 = arith.constant 0 : i32
    %c0_i32_0 = arith.constant 0 : i32
    %c0_i32_1 = arith.constant 0 : i32
    %c0_i32_2 = arith.constant 0 : i32
    return %c0_i32, %c0_i32_0, %c0_i32_1 : i32, i32, i32
  }
  func.func @transform_10(%arg0: i32) -> (i32, i32) {
    %c0_i32 = arith.constant 0 : i32
    %c0_i32_0 = arith.constant 0 : i32
    %c0_i32_1 = arith.constant 0 : i32
    return %c0_i32, %c0_i32_0 : i32, i32
  }
  func.func @transform_11(%arg0: i32) -> (i32, i32) {
    %c0_i32 = arith.constant 0 : i32
    %c0_i32_0 = arith.constant 0 : i32
    %c0_i32_1 = arith.constant 0 : i32
    return %c0_i32, %c0_i32_0 : i32, i32
  }
  func.func @transform_12(%arg0: i32) -> (i32, i32) {
    %c0_i32 = arith.constant 0 : i32
    %c0_i32_0 = arith.constant 0 : i32
    %c0_i32_1 = arith.constant 0 : i32
    return %c0_i32, %c0_i32_0 : i32, i32
  }
  func.func @transform_13(%arg0: i32) -> (i32, i32) {
    %c0_i32 = arith.constant 0 : i32
    %c0_i32_0 = arith.constant 0 : i32
    %c0_i32_1 = arith.constant 0 : i32
    return %c0_i32, %c0_i32_0 : i32, i32
  }
  func.func @transform_14(%arg0: i32) -> (i32, i32) {
    %c0_i32 = arith.constant 0 : i32
    %c0_i32_0 = arith.constant 0 : i32
    %c0_i32_1 = arith.constant 0 : i32
    return %c0_i32, %c0_i32_0 : i32, i32
  }
  func.func @transform_15(%arg0: i32) -> (i32, i32) {
    %c0_i32 = arith.constant 0 : i32
    %c0_i32_0 = arith.constant 0 : i32
    %c0_i32_1 = arith.constant 0 : i32
    return %c0_i32, %c0_i32_0 : i32, i32
  }
  func.func @transform_16(%arg0: i32) -> (i32, i32) {
    %c0_i32 = arith.constant 0 : i32
    %c0_i32_0 = arith.constant 0 : i32
    %c0_i32_1 = arith.constant 0 : i32
    return %c0_i32, %c0_i32_0 : i32, i32
  }
  func.func @transform_17(%arg0: i32) -> (i32, i32) {
    %c0_i32 = arith.constant 0 : i32
    %c0_i32_0 = arith.constant 0 : i32
    %c0_i32_1 = arith.constant 0 : i32
    return %c0_i32, %c0_i32_0 : i32, i32
  }
  func.func @transform_18(%arg0: i32) -> (i32, i32) {
    %c0_i32 = arith.constant 0 : i32
    %c0_i32_0 = arith.constant 0 : i32
    %c0_i32_1 = arith.constant 0 : i32
    return %c0_i32, %c0_i32_0 : i32, i32
  }
  func.func @transform_19(%arg0: i32) -> (i32, i32) {
    %c0_i32 = arith.constant 0 : i32
    %c0_i32_0 = arith.constant 0 : i32
    %c0_i32_1 = arith.constant 0 : i32
    return %c0_i32, %c0_i32_0 : i32, i32
  }
  func.func @transform_20(%arg0: i32) -> (i32, i32) {
    %c0_i32 = arith.constant 0 : i32
    %c0_i32_0 = arith.constant 0 : i32
    %c0_i32_1 = arith.constant 0 : i32
    return %c0_i32, %c0_i32_0 : i32, i32
  }
  func.func @transform_21(%arg0: i32) -> (i32, i32, i32) {
    %c0_i32 = arith.constant 0 : i32
    %c0_i32_0 = arith.constant 0 : i32
    %c0_i32_1 = arith.constant 0 : i32
    return %arg0, %c0_i32, %c0_i32_0 : i32, i32, i32
  }
}

</mosaic_0001>

<bundles_post_ra>
// kernel: tpu_custom_call.1
= control target key start
LH: loop header
LB: loop body
LE: loop exit
PB: predicated region body
PF: predicated region fallthrough
CT: control target
= control target key end

     0   :  { %s13346_s0 = inlined_call_operand.vmem [shape: f32[8,32,8], index: 0, kind: input, shape index: {}]   ;;  %s13347_s1 = inlined_call_operand.vmem [shape: f32[8,16], index: 1, kind: input, shape index: {}]   ;;  %s13348_s2 = inlined_call_operand.hbm [shape: f32[2,16], index: 2, kind: input, shape index: {}]   ;;  %s13349_s3 = inlined_call_operand.vmem [shape: f32[16,16], index: 3, kind: input, shape index: {}]   ;;  %s13350_s4 = inlined_call_operand.hbm [shape: f32[2,16], index: 4, kind: input, shape index: {}]   ;;  %s13351_s5 = inlined_call_operand.vmem [shape: f32[3,16,16], index: 5, kind: input, shape index: {}]   ;;  %s13352_s6 = inlined_call_operand.vmem [shape: f32[3,16], index: 6, kind: input, shape index: {}]   ;;  %s13353_s7 = inlined_call_operand.vmem [shape: f32[6,16,32], index: 7, kind: input, shape index: {}]   ;;  %s13354_s8 = inlined_call_operand.vmem [shape: f32[3,32], index: 8, kind: input, shape index: {}]   ;;  %s13355_s9 = inlined_call_operand.vmem [shape: f32[9,32,32], index: 9, kind: input, shape index: {}]   ;;  %s13356_s10 = inlined_call_operand.vmem [shape: f32[3,32], index: 10, kind: input, shape index: {}]   ;;  %s13357_s11 = inlined_call_operand.vmem [shape: f32[80,16], index: 11, kind: input, shape index: {}]   ;;  %s13358_s12 = inlined_call_operand.vmem [shape: f32[1,16], index: 12, kind: input, shape index: {}]   ;;  %s13359_s13 = inlined_call_operand.vmem [shape: f32[16,16], index: 13, kind: input, shape index: {}]   ;;  %s13360_s14 = inlined_call_operand.hbm [shape: f32[1,16], index: 14, kind: input, shape index: {}]   ;;  %s13361_s15 = inlined_call_operand.vmem [shape: f32[16,64], index: 15, kind: input, shape index: {}]   ;;  %s13362_s16 = inlined_call_operand.vmem [shape: f32[3,64], index: 16, kind: input, shape index: {}]   ;;  %s13363_s17 = inlined_call_operand.vmem [shape: f32[3,64], index: 17, kind: input, shape index: {}]   ;;  %s13364_s18 = inlined_call_operand.vmem [shape: f32[3,64], index: 18, kind: input, shape index: {}]   ;;  %s13365_s19 = inlined_call_operand.vmem [shape: f32[64,16], index: 19, kind: input, shape index: {}]   ;;  %s13366_s20 = inlined_call_operand.vmem [shape: f32[3,16], index: 20, kind: input, shape index: {}]   ;;  %s13367_s21 = inlined_call_operand.hbm [shape: f32[8,16,32], index: 21, kind: output, shape index: {}]  }
   0x1   :  { %13523 = sst [smem:[#allocation75_spill]] %s13346_s0 }
   0x2   :  { %13524 = sst [smem:[#allocation76_spill]] %s13347_s1 }
   0x3   :  { %13525 = sst [smem:[#allocation77_spill]] %s13348_s2 }
   0x4   :  { %13526 = sst [smem:[#allocation78_spill]] %s13349_s3 }
   0x5   :  { %13527 = sst [smem:[#allocation79_spill]] %s13350_s4 }
   0x6   :  { %13528 = sst [smem:[#allocation80_spill]] %s13351_s5 }
   0x7   :  { %13529 = sst [smem:[#allocation81_spill]] %s13364_s18 }
   0x8   :  { %13530 = sst [smem:[#allocation82_spill]] %s13366_s20 }
   0x9   :  { %13531 = sst [smem:[#allocation83_spill]] %s13367_s21 }
   0xa   :  { %26 = vsyncpa [#allocation3], 0 }
   0xb   :  { %27 = vsyncpa [#allocation6], 0 }
   0xc   :  { %28 = vsyncpa [#allocation4], 0 }
   0xd   :  { %30 = vsyncpa [#allocation4 + $0x1], 0  ;;  %s8985_s2 = smov 0   ;;  %s8987_s25 = smov 0  }
   0xe   :  { %s8989_s26 = smov 0   ;;  %s8991_s27 = smov 0  }
   0xf LB: > { %13532 = sst [smem:[#allocation12_spill]] %s8848_s2  ;;  %s9006_s3 = sadd.s32 4294967295, %s8860_s27   ;;  %s8860_s27 = sphi %s8991_s27, %s13928_s27   ;;  %s8856_s26 = sphi %s8989_s26, %s13931_s26   ;;  %s8852_s25 = sphi %s8987_s25, %s13930_s25   ;;  %s8848_s2 = sphi %s8985_s2, %s13929_s2  }
  0x10   : > { %13533 = sst [smem:[#allocation13_spill]] %s8852_s25  ;;  %s7353_s28 = sadd.s32 4294967294, %s8860_s27  }
  0x11   : > { %13534 = sst [smem:[#allocation14_spill]] %s8856_s26  ;;  %s9010_s29 = sadd.s32 1, %s8860_s27  }
  0x12   : > { %13535 = sst [smem:[#allocation15_spill]] %s8860_s27  ;;  %s489_s0 = sadd.s32 1, %s8856_s26 }
  0x13   : > { %13536 = sst [smem:[#allocation16_spill]] %s9010_s29  ;;  %s486_s4 = ssub.s32 %s8860_s27, %s9010_s29 }
  0x14   : > { %p499_p0 = scmp.ne.s32.totalorder %s8856_s26, %s8852_s25  ;;  %p487_p1 = scmp.eq.s32.totalorder %s486_s4, 0 }
  0x15   : > { %p500_p2 = scmp.eq.s32.totalorder %s9006_s3, 1  ;;  %p505_p3 = scmp.ne.s32.totalorder %s8852_s25, %s8848_s2 }
  0x16   : > { %p506_p4 = scmp.eq.s32.totalorder %s7353_s28, 1  ;;  %p7354_p7 = scmp.ge.s32.totalorder %s8860_s27, 1 }
  0x17   : > { %s9021_s30 = scalar_select %p487_p1, %s8856_s26, %s489_s0  }
  0x18   : > { %p9023_p5 = por %p500_p2, %p499_p0  ;;  %p9027_p6 = por %p506_p4, %p505_p3 }
  0x19   : > { %13537 = sst [smem:[#allocation17_spill]] %s9021_s30  ;;  %p513_p8 = scmp.lt.s32.totalorder %s8860_s27, 3 }
  0x1a   : > { %s13538_s5 = scalar_select %p9023_p5, 1, 0 }
  0x1b   : > { %s13540_s22 = scalar_select %p9027_p6, 1, 0 }
  0x1c   : > { %13539 = sst [smem:[#allocation18_spill]] %s13538_s5  ;;  %p13381_p9 = scmp.eq.s32.totalorder %s9006_s3, 0 }
  0x1d   : > { %13541 = sst [smem:[#allocation19_spill]] %s13540_s22  ;;  %p9034_p10 = pnand %p7354_p7, %p513_p8 }
  0x1e   : > { %s8862_s1 = smov [#allocation5]   ;;  %s8863_s28 = smov [#allocation2]  }
  0x1f   : > { %s13542_s23 = scalar_select %p9034_p10, 1, 0 }
  0x20   : > { %s543_s24 = sshll.u32 %s8862_s1, 4  ;;  %p8427_p11 = pneg %p9034_p10  ;;  %s544_s24 = int_to_ptr.vmem [resolvable:$true] %s543_s24 }
  0x21   : > { %s529_s0 = sshll.u32 %s8863_s28, 4  ;;  %s8864_s30 = smov [#allocation7]   ;;  %s9046_s0 = int_to_ptr.vmem [resolvable:$true] %s529_s0 }
  0x22   : > { %p9042_p12 = pnand %p13381_p9, %p8427_p11  ;;  %s581_s26 = sshll.u32 %s8864_s30, 4  ;;  %s9048_s26 = int_to_ptr.vmem [resolvable:$true] %s581_s26 }
  0x23   : > { %s13544_s1 = sld [smem:[#allocation79_spill]] }
  0x24   : > { %p9058_p0 = pneg %p9042_p12 }
  0x29   : > { %s8706_s2 = scalar_lea.hbm %s13544_s1, 32 }
  0x2a   : > { %p8707_p13 = scmp.ne.s32.totalorder %s13544_s1, %s8706_s2  ;;  %p8713_p3 = scmp.lt.u32.totalorder %s8706_s2, %s13544_s1 }
  0x2c   : > { %p8709_p1 = pnand %p9058_p0, %p8707_p13 }
  0x2e   : > { %p8710_p2 = pneg %p8709_p1 }
  0x30   : > { %p8715_p4 = pnand %p8713_p3, %p8710_p2 }
  0x32   : > { %8718 = shalt.err (!%p8715_p4)
}
  0x33   : > { %s8719_s29 = scalar_lea.vmem %s544_s24, 32  ;;  %p8727_p9 = scmp.lt.s32.totalorder %s544_s24, %s544_s24 }
  0x34   : > { %p8720_p7 = scmp.ne.s32.totalorder %s544_s24, %s8719_s29  ;;  %p8728_p6 = scmp.lt.s32.totalorder %s8719_s29, %s8719_s29 }
  0x36   : > { %p8722_p8 = pnand %p8720_p7, %p9058_p0  ;;  %p8729_p5 = por %p8728_p6, %p8727_p9 }
  0x38   : > { %p8723_p11 = pneg %p8722_p8 }
  0x3a   : > { %p8730_p10 = pnand %p8729_p5, %p8723_p11 }
  0x3c   : > { %8733 = shalt.err (!%p8730_p10)
}
  0x3d   : > { %8433 = dma.hbm_to_vmem [thread:$0]  (!%p9042_p12), %s13544_s1, 32, %s544_s24, [#allocation6]  }
  0x3e   : > { %s13546_s22 = sld [smem:[#allocation77_spill]] }
  0x44   : > { %s8734_s30 = scalar_lea.hbm %s13546_s22, 32 }
  0x45   : > { %p8735_p13 = scmp.ne.s32.totalorder %s13546_s22, %s8734_s30  ;;  %p8741_p5 = scmp.lt.u32.totalorder %s8734_s30, %s13546_s22 }
  0x47   : > { %p8737_p1 = pnand %p8735_p13, %p9058_p0 }
  0x49   : > { %p8738_p6 = pneg %p8737_p1 }
  0x4b   : > { %p8743_p9 = pnand %p8741_p5, %p8738_p6 }
  0x4d   : > { %8746 = shalt.err (!%p8743_p9)
}
  0x4e   : > { %s8747_s24 = scalar_lea.vmem %s9046_s0, 32  ;;  %p8755_p4 = scmp.lt.s32.totalorder %s9046_s0, %s9046_s0 }
  0x4f   : > { %p8748_p10 = scmp.ne.s32.totalorder %s9046_s0, %s8747_s24  ;;  %p8756_p7 = scmp.lt.s32.totalorder %s8747_s24, %s8747_s24 }
  0x51   : > { %p8750_p2 = pnand %p8748_p10, %p9058_p0  ;;  %p8757_p8 = por %p8756_p7, %p8755_p4 }
  0x53   : > { %p8751_p3 = pneg %p8750_p2 }
  0x55   : > { %p8758_p11 = pnand %p8757_p8, %p8751_p3 }
  0x57   : > { %8761 = shalt.err (!%p8758_p11)
}
  0x58   : > { %8430 = dma.hbm_to_vmem [thread:$0]  (!%p9042_p12), %s13546_s22, 32, %s9046_s0, [#allocation3]  }
  0x59   : > { %s8762_s27 = scalar_lea.hbm %s13360_s14, 16 }
  0x5a   : > { %p8763_p13 = scmp.ne.s32.totalorder %s13360_s14, %s8762_s27  ;;  %p8769_p5 = scmp.lt.u32.totalorder %s8762_s27, %s13360_s14 }
  0x5c   : > { %p8765_p1 = pnand %p8763_p13, %p9058_p0 }
  0x5e   : > { %p8766_p6 = pneg %p8765_p1 }
  0x60   : > { %p8771_p9 = pnand %p8769_p5, %p8766_p6 }
  0x62   : > { %8774 = shalt.err (!%p8771_p9)
}
  0x63   : > { %s8775_s0 = scalar_lea.vmem %s9048_s26, 16  ;;  %s8782_s24 = scalar_lea.vmem %s9048_s26, 32 }
  0x64   : > { %p8776_p10 = scmp.ne.s32.totalorder %s9048_s26, %s8775_s0  ;;  %p8783_p4 = scmp.lt.s32.totalorder %s9048_s26, %s9048_s26 }
  0x65   : > { %p8784_p7 = scmp.lt.s32.totalorder %s8782_s24, %s8775_s0 }
  0x66   : > { %p8778_p2 = pnand %p8776_p10, %p9058_p0 }
  0x67   : > { %p8785_p8 = por %p8784_p7, %p8783_p4 }
  0x68   : > { %p8779_p3 = pneg %p8778_p2 }
  0x6a   : > { %p8786_p11 = pnand %p8785_p8, %p8779_p3 }
  0x6c   : > { %8789 = shalt.err (!%p8786_p11)
}
  0x6d   : > { %8436 = dma.hbm_to_vmem [thread:$0]  (!%p9042_p12), %s13360_s14, 16, %s9048_s26, [#allocation6]  }
  0x6e   : > { %p13547_p13 = scmp.ne.s32.totalorder %s13542_s23, 0 }
  0x70   : > { %622 = sbr.rel (%p13547_p13) target bundleno = 3324 (0xcfc), region = 104 }
  0x77   : > { %p13548_p0 = scmp.eq.s32.totalorder %s9006_s3, 0 }
  0x79   : > { %8835 = dma.done.wait (%p13548_p0), [#allocation3], 32   ;;  %p13549_p1 = pmov %p13548_p0 }
  0x7a   : > { %p13550_p6 = pmov %p13548_p0 }
  0x7b   : > { %8837 = vsyncadd (%p13549_p1), [#allocation3], 4294967264 }
  0x7c   : > { %8839 = dma.done.wait (%p13550_p6), [#allocation6], 48   ;;  %p13551_p5 = pmov %p13548_p0 }
  0x7d   : > { %s7364_s4 = sshll.u32 %s9006_s3, 2  ;;  %s13552_s25 = sld [smem:[#allocation75_spill]]  ;;  %vm840_vm0 = vcmask 1043456   ;;  %vm815_vm1 = vcmask 64512   ;;  %v8865_v30 = vmov 0.0   ;;  %vm8866_vm2 = vmmov 0  }
  0x7e   : > { %8841 = vsyncadd (%p13551_p5), [#allocation6], 4294967248  ;;  %p692_p9 = scmp.lt.s32.totalorder %s7364_s4, 7  ;;  %s13553_s5 = sld [smem:[#allocation76_spill]]  ;;  %7798 = vmatprep.subr.bf16.mxu1 %v8865_v30  ;;  %7800 = vmatprep.mubr.msk.bf16.mxu1 %vm8866_vm2, %v8865_v30  ;;  %vm945_vm3 = vcmask 1040384   ;;  %v1175_v33 = vlaneseq  ;;  %vm1011_vm4 = vcmask 1041408  }
  0x7f   : > { %s13554_s0 = sld [smem:[#allocation78_spill]]  ;;  %v701_v53 = vld [vmem:[#allocation2] sm:$0x3]  ;;  %vm962_vm5 = vcmask 1042432   ;;  %vm979_vm6 = vcmask 1044480   ;;  %vm1018_vm7 = vcmask 1045504  }
  0x80   : > { %s13933_s4 = smov (!%p692_p9, %s7364_s4), 7  ;;  %v9180_v42 = vshrl.u32 %v1175_v33, 7  ;;  %vm996_vm8 = vcmask 1046528   ;;  %vm1227_vm9 = vcmask 130048   ;;  %vm3923_vm10 = vcmask 261120   ;;  %s8867_s30 = smov 16  }
  0x81   : > { %s7559_s26 = sshll.u32 %s13933_s4, 5  ;;  %s8868_s2 = smov 48   ;;  %vm5879_vm11 = vcmask 392192   ;;  %vm5915_vm12 = vcmask 654336   ;;  %vm7004_vm13 = vcmask 523264  }
  0x82   : > { %v9195_v55 = vsub.s32 0, %v9180_v42  ;;  %s13914_s29 = sld [smem:[#allocation13_spill]]  ;;  %s8870_s4 = smov 64  }
  0x83   : > { %s9135_s21 = scalar_lea.vmem %s13552_s25, %s7559_s26  ;;  %s13557_s26 = sld [smem:[#allocation80_spill]] }
  0x84   : > { %v700_v0 = vld [vmem:[%s13553_s5] sm:$0xff]  ;;  %v791_v2 = vld [vmem:[%s9135_s21 + $0x8] sm:$0xff]  ;;  %v792_v5 = vld [vmem:[%s9135_s21 + $0x10] sm:$0xff]  ;;  %13555 = vst [vmem:[#allocation20_spill] sm:$0xff] %v9195_v55  ;;  %s13903_s5 = sld [smem:[#allocation82_spill]] }
  0x85   : > { %v790_v1 = vld [vmem:[%s9135_s21] sm:$0xff]  ;;  %v814_v3 = vpack.c.bf16 %v700_v0, %v700_v0  ;;  %v793_v6 = vld [vmem:[%s9135_s21 + $0x18] sm:$0xff]  ;;  %v795_v8 = vld [vmem:[%s9135_s21 + $0x28] sm:$0xff]  ;;  %s13921_s23 = sld [smem:[#allocation18_spill]] }
  0x86   : > { %v806_v4 = vpack.c.bf16 %v791_v2, %v790_v1  ;;  %v794_v7 = vld [vmem:[%s9135_s21 + $0x20] sm:$0xff]  ;;  %v807_v10 = vpack.c.bf16 %v793_v6, %v792_v5  ;;  %v796_v12 = vld [vmem:[%s9135_s21 + $0x30] sm:$0xff]  ;;  %v797_v13 = vld [vmem:[%s9135_s21 + $0x38] sm:$0xff] }
  0x87   : > { %8412 = vmatprep.subr.msk.bf16.mxu0 %vm840_vm0, %v814_v3  ;;  %v842_v9 = vsel %vm840_vm0, %v814_v3, 0  ;;  %v808_v11 = vpack.c.bf16 %v795_v8, %v794_v7  ;;  %v798_v14 = vld [vmem:[%s9135_s21 + $0x40] sm:$0xff]  ;;  %v799_v15 = vld [vmem:[%s9135_s21 + $0x48] sm:$0xff]  ;;  %v809_v16 = vpack.c.bf16 %v797_v13, %v796_v12  ;;  %v800_v18 = vld [vmem:[%s9135_s21 + $0x50] sm:$0xff]  ;;  %v9202_v7 = vsub.s32 1, %v9180_v42 }
  0x88   : > { %7782 = vmatprep.mubr.msk.bf16.mxu0 %vm815_vm1, %v806_v4  ;;  %7781 = vmatpush3.bf16.msra.mxu0 %v842_v9  ;;  %v810_v17 = vpack.c.bf16 %v799_v15, %v798_v14  ;;  %v801_v19 = vld [vmem:[%s9135_s21 + $0x58] sm:$0xff]  ;;  %v802_v20 = vld [vmem:[%s9135_s21 + $0x60] sm:$0xff]  ;;  %v803_v21 = vld [vmem:[%s9135_s21 + $0x68] sm:$0xff]  ;;  %v9206_v12 = vrot.slane %v701_v53, %v9195_v55  ;;  %s688_s24 = sand.u32 1, %s13914_s29  }
  0x89   : > { %v811_v22 = vpack.c.bf16 %v801_v19, %v800_v18  ;;  %v812_v23 = vpack.c.bf16 %v803_v21, %v802_v20  ;;  %v804_v24 = vld [vmem:[%s9135_s21 + $0x70] sm:$0xff]  ;;  %v805_v25 = vld [vmem:[%s9135_s21 + $0x78] sm:$0xff]  ;;  %v702_v27 = vld [vmem:[%s13554_s0] sm:$0xff]  ;;  %7836 = vmatprep.subr.bf16.mxu0 %v8865_v30  ;;  %13556 = vst [vmem:[#allocation21_spill] sm:$0xff] %v9202_v7  ;;  %s13558_s28 = smov %s13557_s26  ;;  %s13894_s21 = sld [smem:[#allocation81_spill]] }
  0x8a   : > { %v813_v26 = vpack.c.bf16 %v805_v25, %v804_v24  ;;  %v703_v28 = vld [vmem:[%s13554_s0 + $0x8] sm:$0xff]  ;;  %s7363_s18 = sshll.u32 %s688_s24, 6 }
  0x8b   : > { %7783 = vmatmul.mubr.msk.bf16.vlgmr.msra.gmra.mrb[0].mxu0 %vm815_vm1, %v807_v10  ;;  %v1226_v29 = vpack.c.bf16 %v703_v28, %v702_v27  ;;  %s690_s20 = scalar_lea.vmem [#allocation8], %s7363_s18  ;;  %p13923_p10 = scmp.ne.s32.totalorder %s13921_s23, 0 }
  0x8c   : > { %7786 = vmatprep.mubr.msk.bf16.mxu0 %vm815_vm1, %v808_v11  ;;  %s7260_s25 = sshll.u32 %s690_s20, 4  ;;  %s13295_s25 = int_to_ptr.vmem [resolvable:$true] %s7260_s25 }
  0x8d   : > { %7799 = vmatpush3.bf16.msra.mxu1 %v1226_v29 }
  0x8e   : > { %7874 = vmatprep.subr.bf16.mxu1 %v8865_v30 }
  0x93   : > { %7787 = vmatmul.mubr.msk.bf16.gmra.mrb[4].mxu0 %vm815_vm1, %v809_v16 }
  0x94   : > { %7790 = vmatprep.mubr.msk.bf16.mxu0 %vm815_vm1, %v810_v17 }
  0x9b   : > { %7791 = vmatmul.mubr.msk.bf16.gmra.mrb[8].mxu0 %vm815_vm1, %v811_v22 }
  0x9c   : > { %7794 = vmatprep.mubr.msk.bf16.mxu0 %vm815_vm1, %v812_v23  ;;  %v9214_v23 = vrot.slane %v701_v53, %v9202_v7 }
  0xa3   : > { %7795 = vmatmul.mubr.msk.bf16.gmra.mrb[12].mxu0 %vm815_vm1, %v813_v26 }
  0xa4   : > { %7838 = vmatprep.mubr.msk.bf16.mxu0 %vm8866_vm2, %v8865_v30 }
 0x15e   : > { %v7784_v31 = vpop.f32.mrb[0].mxu0 }
 0x15f   : > { %v878_v32 = vpop.f32.mrb[1].mxu0  ;;  %v949_v36 = vrot.slane %v7784_v31, 7 }
 0x160   : > { %v946_v34 = vrot.slane %v878_v32, 7  ;;  %v7785_v35 = vpop.f32.mrb[2].mxu0 }
 0x161   : > { %v951_v37 = vrot.slane %v7785_v35, 7  ;;  %v881_v38 = vpop.f32.mrb[3].mxu0 }
 0x162   : > { %v1009_v39 = vsel %vm945_vm3, 0.0, %v946_v34  ;;  %v947_v40 = vrot.slane %v881_v38, 7 }
 0x163   : > { %v1039_v41 = vmul.f32 %v1009_v39, %v1009_v39  ;;  %v952_v43 = vsel %vm945_vm3, %v949_v36, %v951_v37  ;;  %v1010_v49 = vsel %vm945_vm3, %v951_v37, 0.0  ;;  %v9211_v19 = vmul.f32 0.5, %v1009_v39 }
 0x164   : > { %v1042_v44 = vmul.f32 %v952_v43, %v952_v43  ;;  %v9184_v45 = vsel %vm945_vm3, %v946_v34, %v947_v40  ;;  %v9187_v47 = vsel %vm945_vm3, %v947_v40, %v949_v36  ;;  %v1012_v0 = vsel %vm1011_vm4, %v1010_v49, 0.0 }
 0x165   : > { %v1056_v46 = vmul.f32 %v1039_v41, %v1009_v39  ;;  %v1040_v48 = vmul.f32 %v9184_v45, %v9184_v45  ;;  %v1041_v51 = vmul.f32 %v9187_v47, %v9187_v47  ;;  %v9218_v28 = vmul.f32 0.5, %v952_v43 }
 0x166   : > { %v1059_v50 = vmul.f32 %v1042_v44, %v952_v43  ;;  %v7788_v52 = vpop.f32.mrb[4].mxu0 }
 0x167   : > { %v1073_v54 = vmul.f32 0.044715, %v1056_v46  ;;  %v1057_v56 = vmul.f32 %v1040_v48, %v9184_v45  ;;  %v894_v57 = vpop.f32.mrb[5].mxu0  ;;  %v1058_v59 = vmul.f32 %v1041_v51, %v9187_v47  ;;  %v966_v60 = vrot.slane %v7788_v52, 5 }
 0x168   : > { %v1076_v58 = vmul.f32 0.044715, %v1059_v50  ;;  %v963_v61 = vrot.slane %v894_v57, 5  ;;  %v7789_v62 = vpop.f32.mrb[6].mxu0  ;;  %v9222_v48 = vmul.f32 0.5, %v9184_v45  ;;  %v9227_v52 = vmul.f32 0.5, %v9187_v47 }
 0x169   : > { %v1090_v63 = vadd.f32 %v1073_v54, %v1009_v39  ;;  %v1074_v1 = vmul.f32 0.044715, %v1057_v56  ;;  %v968_v2 = vrot.slane %v7789_v62, 5  ;;  %v897_v3 = vpop.f32.mrb[7].mxu0  ;;  %v1075_v5 = vmul.f32 0.044715, %v1058_v59 }
 0x16a   : > { %v1093_v4 = vadd.f32 %v1076_v58, %v952_v43  ;;  %v1013_v6 = vsel %vm962_vm5, %v1012_v0, %v963_v61  ;;  %v964_v11 = vrot.slane %v897_v3, 5 }
 0x16b   : > { %v1107_v8 = vmul.f32 0.7978846, %v1090_v63  ;;  %v1091_v9 = vadd.f32 %v1074_v1, %v9184_v45  ;;  %v1043_v10 = vmul.f32 %v1013_v6, %v1013_v6  ;;  %v1092_v14 = vadd.f32 %v1075_v5, %v9187_v47 }
 0x16c   : > { %v1110_v13 = vmul.f32 0.7978846, %v1093_v4  ;;  %v969_v15 = vsel %vm962_vm5, %v966_v60, %v968_v2  ;;  %v1014_v18 = vsel %vm962_vm5, %v968_v2, 0.0  ;;  %v965_v25 = vsel %vm962_vm5, %v963_v61, %v964_v11 }
 0x16d   : > { %8572 = vtanh.f32 %v1107_v8  ;;  %v1108_v16 = vmul.f32 0.7978846, %v1091_v9  ;;  %v1060_v17 = vmul.f32 %v1043_v10, %v1013_v6  ;;  %v1109_v20 = vmul.f32 0.7978846, %v1092_v14 }
 0x16e   : > { %v1046_v21 = vmul.f32 %v969_v15, %v969_v15  ;;  %v7792_v22 = vpop.f32.mrb[8].mxu0  ;;  %8574 = vtanh.f32 %v1110_v13  ;;  %v967_v26 = vsel %vm962_vm5, %v964_v11, %v966_v60  ;;  %v1015_v29 = vsel %vm840_vm0, %v1014_v18, 0.0 }
 0x16f   : > { %v1077_v24 = vmul.f32 0.044715, %v1060_v17  ;;  %v910_v27 = vpop.f32.mrb[9].mxu0  ;;  %8576 = vtanh.f32 %v1108_v16  ;;  %v1044_v34 = vmul.f32 %v965_v25, %v965_v25  ;;  %v1045_v35 = vmul.f32 %v967_v26, %v967_v26 }
 0x170   : > { %v1063_v31 = vmul.f32 %v1046_v21, %v969_v15  ;;  %v7793_v32 = vpop.f32.mrb[10].mxu0  ;;  %v983_v36 = vrot.slane %v7792_v22, 3  ;;  %8578 = vtanh.f32 %v1109_v20  ;;  %v980_v39 = vrot.slane %v910_v27, 3 }
 0x171   : > { %v1094_v33 = vadd.f32 %v1077_v24, %v1013_v6  ;;  %v913_v37 = vpop.f32.mrb[11].mxu0  ;;  %v985_v40 = vrot.slane %v7793_v32, 3  ;;  %v1061_v44 = vmul.f32 %v1044_v34, %v965_v25  ;;  %v1062_v46 = vmul.f32 %v1045_v35, %v967_v26 }
 0x172   : > { %v1080_v38 = vmul.f32 0.044715, %v1063_v31  ;;  %v981_v43 = vrot.slane %v913_v37, 3  ;;  %v1016_v50 = vsel %vm979_vm6, %v1015_v29, %v980_v39  ;;  %v9229_v53 = vmul.f32 0.5, %v1013_v6 }
 0x173   : > { %v1111_v41 = vmul.f32 0.7978846, %v1094_v33  ;;  %v986_v51 = vsel %vm979_vm6, %v983_v36, %v985_v40  ;;  %v1078_v54 = vmul.f32 0.044715, %v1061_v44  ;;  %v1079_v56 = vmul.f32 0.044715, %v1062_v46 }
 0x174   : > { %v1097_v49 = vadd.f32 %v1080_v38, %v969_v15  ;;  %v1047_v58 = vmul.f32 %v1016_v50, %v1016_v50  ;;  %v1017_v59 = vsel %vm979_vm6, %v985_v40, 0.0  ;;  %v1050_v63 = vmul.f32 %v986_v51, %v986_v51 }
 0x175   : > { %8580 = vtanh.f32 %v1111_v41  ;;  %v1095_v61 = vadd.f32 %v1078_v54, %v965_v25  ;;  %v1096_v62 = vadd.f32 %v1079_v56, %v967_v26  ;;  %v982_v0 = vsel %vm979_vm6, %v980_v39, %v981_v43 }
 0x176   : > { %v1114_v57 = vmul.f32 0.7978846, %v1097_v49  ;;  %v9232_v45 = vpop.f32.mrb[12].mxu0  ;;  %v1064_v2 = vmul.f32 %v1047_v58, %v1016_v50  ;;  %v9238_v3 = vsel %vm979_vm6, %v981_v43, %v983_v36  ;;  %v9240_v6 = vmul.f32 0.5, %v969_v15 }
 0x177   : > { %v8573_v60 = vpop.eup %8572  ;;  %v9235_v47 = vpop.f32.mrb[13].mxu0  ;;  %v1112_v8 = vmul.f32 0.7978846, %v1095_v61  ;;  %v1113_v9 = vmul.f32 0.7978846, %v1096_v62  ;;  %v1067_v10 = vmul.f32 %v1050_v63, %v986_v51  ;;  %v9244_v14 = vmul.f32 0.5, %v965_v25 }
 0x178   : > { %v1141_v1 = vadd.f32 1.0, %v8573_v60  ;;  %8582 = vtanh.f32 %v1114_v57  ;;  %v7797_v4 = vpop.f32.mrb[14].mxu0  ;;  %v8575_v5 = vpop.eup %8574  ;;  %v9246_v16 = vmul.f32 0.5, %v967_v26  ;;  %v9248_v17 = vmul.f32 0.5, %v1016_v50 }
 0x179   : > { %v9242_v11 = vpop.f32.mrb[15].mxu0  ;;  %v8577_v13 = vpop.eup %8576  ;;  %v1081_v18 = vmul.f32 0.044715, %v1064_v2  ;;  %8584 = vtanh.f32 %v1112_v8  ;;  %v1019_v20 = vsel %vm1018_vm7, %v1017_v59, 0.0  ;;  %v9251_v21 = vmul.f32 0.5, %v986_v51 }
 0x17a   : > { %v1084_v15 = vmul.f32 0.044715, %v1067_v10  ;;  %v8579_v22 = vpop.eup %8578  ;;  %v1158_v24 = vmul.f32 %v1141_v1, %v9211_v19  ;;  %v1144_v27 = vadd.f32 1.0, %v8575_v5  ;;  %8586 = vtanh.f32 %v1113_v9 }
 0x17b   : > { %v1098_v29 = vadd.f32 %v1081_v18, %v1016_v50  ;;  %v1142_v31 = vadd.f32 1.0, %v8577_v13  ;;  %v9254_v32 = vmul.f32 0.5, %v982_v0  ;;  %v1048_v26 = vmul.f32 %v982_v0, %v982_v0 }
 0x17c   : > { %v1101_v25 = vadd.f32 %v1084_v15, %v986_v51  ;;  %v1049_v34 = vmul.f32 %v9238_v3, %v9238_v3  ;;  %v1000_v35 = vrot.slane %v9232_v45, 1  ;;  %v997_v36 = vrot.slane %v9235_v47, 1 }
 0x17d   : > { %v1115_v33 = vmul.f32 0.7978846, %v1098_v29  ;;  %v1143_v37 = vadd.f32 1.0, %v8579_v22  ;;  %v1065_v39 = vmul.f32 %v1048_v26, %v982_v0  ;;  %v1002_v19 = vrot.slane %v7797_v4, 1 }
 0x17e   : > { %v1118_v38 = vmul.f32 0.7978846, %v1101_v25  ;;  %v9261_v41 = vmul.f32 %v1144_v27, %v9218_v28  ;;  %v1066_v44 = vmul.f32 %v1049_v34, %v9238_v3  ;;  %v9265_v46 = vsel %vm996_vm8, %v1019_v20, %v997_v36 }
 0x17f   : > { %v8581_v40 = vpop.eup %8580  ;;  %8588 = vtanh.f32 %v1115_v33  ;;  %v1082_v43 = vmul.f32 0.044715, %v1065_v39  ;;  %v1051_v49 = vmul.f32 %v9265_v46, %v9265_v46  ;;  %v998_v50 = vrot.slane %v9242_v11, 1 }
 0x180   : > { %8590 = vtanh.f32 %v1118_v38  ;;  %v1179_v54 = vmul.f32 %v9206_v12, %v1158_v24  ;;  %v1083_v56 = vmul.f32 0.044715, %v1066_v44  ;;  %v9272_v28 = vsel %vm996_vm8, %v1000_v35, %v1002_v19 }
 0x181   : > { %v9275_v57 = vsel %vm996_vm8, %v1002_v19, 0.0  ;;  %v1159_v58 = vmul.f32 %v1142_v31, %v9222_v48  ;;  %v1160_v59 = vmul.f32 %v1143_v37, %v9227_v52  ;;  %v1099_v45 = vadd.f32 %v1082_v43, %v982_v0 }
 0x182   : > { %v8583_v51 = vpop.eup %8582  ;;  %v1068_v60 = vmul.f32 %v1051_v49, %v9265_v46  ;;  %v1145_v61 = vadd.f32 1.0, %v8581_v40  ;;  %v1100_v62 = vadd.f32 %v1083_v56, %v9238_v3  ;;  %v1054_v63 = vmul.f32 %v9272_v28, %v9272_v28 }
 0x183   : > { %v1055_v47 = vmul.f32 %v9275_v57, %v9275_v57  ;;  %v8585_v1 = vpop.eup %8584  ;;  %v1148_v2 = vadd.f32 1.0, %v8583_v51  ;;  %v1116_v4 = vmul.f32 0.7978846, %v1099_v45  ;;  %v9286_v48 = vsel %vm996_vm8, %v997_v36, %v998_v50 }
 0x184   : > { %v1085_v5 = vmul.f32 0.044715, %v1068_v60  ;;  %v8587_v52 = vpop.eup %8586  ;;  %v1146_v0 = vadd.f32 1.0, %v8585_v1  ;;  %v1117_v8 = vmul.f32 0.7978846, %v1100_v62  ;;  %v1071_v9 = vmul.f32 %v1054_v63, %v9272_v28 }
 0x185   : > { %v1072_v10 = vmul.f32 %v1055_v47, %v9275_v57  ;;  %v1147_v11 = vadd.f32 1.0, %v8587_v52  ;;  %8592 = vtanh.f32 %v1116_v4  ;;  %v9292_v18 = vsel %vm996_vm8, %v998_v50, %v1000_v35 }
 0x186   : > { %v1102_v13 = vadd.f32 %v1085_v5, %v9265_v46  ;;  %v1032_v20 = vmul.f32 0.5, %v9238_v3  ;;  %8594 = vtanh.f32 %v1117_v8  ;;  %v1088_v15 = vmul.f32 0.044715, %v1071_v9 }
 0x187   : > { %v1089_v22 = vmul.f32 0.044715, %v1072_v10  ;;  %v1162_v24 = vmul.f32 %v1145_v61, %v9229_v53  ;;  %v1165_v27 = vmul.f32 %v1148_v2, %v9240_v6  ;;  %v1163_v29 = vmul.f32 %v1146_v0, %v9244_v14 }
 0x188   : > { %v1119_v31 = vmul.f32 0.7978846, %v1102_v13  ;;  %v1105_v26 = vadd.f32 %v1088_v15, %v9272_v28  ;;  %v1052_v34 = vmul.f32 %v9286_v48, %v9286_v48  ;;  %v1053_v3 = vmul.f32 %v9292_v18, %v9292_v18 }
 0x189   : > { %v8589_v25 = vpop.eup %8588  ;;  %v1106_v33 = vadd.f32 %v1089_v22, %v9275_v57  ;;  %v1164_v36 = vmul.f32 %v1147_v11, %v9246_v16  ;;  %v1180_v6 = vmul.f32 %v9206_v12, %v1159_v58  ;;  %v1200_v39 = vadd.f32 %v9214_v23, %v1179_v54 }
 0x18a   : > { %v8591_v35 = vpop.eup %8590  ;;  %v1149_v53 = vadd.f32 1.0, %v8589_v25  ;;  %8596 = vtanh.f32 %v1119_v31  ;;  %v1122_v14 = vmul.f32 0.7978846, %v1105_v26  ;;  %v1069_v38 = vmul.f32 %v1052_v34, %v9286_v48 }
 0x18b   : > { %v1123_v37 = vmul.f32 0.7978846, %v1106_v33  ;;  %v1152_v19 = vadd.f32 1.0, %v8591_v35  ;;  %v1070_v40 = vmul.f32 %v1053_v3, %v9292_v18  ;;  %v1201_v44 = vadd.f32 %v9214_v23, %v1180_v6 }
 0x18c   : > { %v1181_v43 = vmul.f32 %v9206_v12, %v1160_v59  ;;  %v1166_v49 = vmul.f32 %v1149_v53, %v9248_v17  ;;  %8598 = vtanh.f32 %v1122_v14  ;;  %v1086_v16 = vmul.f32 0.044715, %v1069_v38 }
 0x18d   : > { %v1182_v50 = vmul.f32 %v9206_v12, %v9261_v41  ;;  %8600 = vtanh.f32 %v1123_v37  ;;  %v1087_v51 = vmul.f32 0.044715, %v1070_v40  ;;  %v1217_v56 = vpack.c.bf16 %v1201_v44, %v1200_v39 }
 0x18e   : > { %v1202_v58 = vadd.f32 %v9214_v23, %v1181_v43  ;;  %v1103_v54 = vadd.f32 %v1086_v16, %v9286_v48  ;;  %v1183_v60 = vmul.f32 %v9206_v12, %v1162_v24  ;;  %v1184_v59 = vmul.f32 %v9206_v12, %v1163_v29 }
 0x18f   : > { %v1203_v45 = vadd.f32 %v9214_v23, %v1182_v50  ;;  %v8593_v61 = vpop.eup %8592  ;;  %v1169_v17 = vmul.f32 %v1152_v19, %v9251_v21  ;;  %v1104_v62 = vadd.f32 %v1087_v51, %v9292_v18  ;;  %7801 = vmatmul.mubr.msk.bf16.vlgmr.msra.gmra.mrb[0].mxu1 %vm1227_vm9, %v1217_v56  ;;  %v1185_v41 = vmul.f32 %v9206_v12, %v1164_v36 }
 0x190   : > { %v1186_v63 = vmul.f32 %v9206_v12, %v1165_v27  ;;  %v8595_v47 = vpop.eup %8594  ;;  %v1150_v1 = vadd.f32 1.0, %v8593_v61  ;;  %v1120_v2 = vmul.f32 0.7978846, %v1103_v54  ;;  %7804 = vmatprep.mubr.msk.bf16.mxu1 %vm8866_vm2, %v8865_v30  ;;  %v1204_v5 = vadd.f32 %v9214_v23, %v1183_v60 }
 0x191   : > { %v1218_v4 = vpack.c.bf16 %v1203_v45, %v1202_v58  ;;  %v1151_v52 = vadd.f32 1.0, %v8595_v47  ;;  %v1121_v0 = vmul.f32 0.7978846, %v1104_v62  ;;  %v1205_v21 = vadd.f32 %v9214_v23, %v1184_v59  ;;  %v707_v47 = vld [vmem:[%s13558_s28 + $0x10] sm:$0xff] }
 0x192   : > { %v1206_v8 = vadd.f32 %v9214_v23, %v1185_v41  ;;  %v1167_v9 = vmul.f32 %v1150_v1, %v9254_v32  ;;  %8602 = vtanh.f32 %v1120_v2  ;;  %v1207_v10 = vadd.f32 %v9214_v23, %v1186_v63  ;;  %v706_v41 = vld [vmem:[%s13558_s28 + $0x8] sm:$0xff]  ;;  %v708_v1 = vld [vmem:[%s13558_s28 + $0x18] sm:$0xff] }
 0x193   : > { %v1187_v11 = vmul.f32 %v9206_v12, %v1166_v49  ;;  %v1168_v15 = vmul.f32 %v1151_v52, %v1032_v20  ;;  %8604 = vtanh.f32 %v1121_v0  ;;  %v1219_v22 = vpack.c.bf16 %v1205_v21, %v1204_v5 }
 0x194   : > { %v8597_v13 = vpop.eup %8596  ;;  %v1190_v24 = vmul.f32 %v9206_v12, %v1169_v17  ;;  %v1220_v27 = vpack.c.bf16 %v1207_v10, %v1206_v8  ;;  %v1188_v29 = vmul.f32 %v9206_v12, %v1167_v9  ;;  %v1037_v32 = vmul.f32 0.5, %v9272_v28 }
 0x195   : > { %v1189_v31 = vmul.f32 %v9206_v12, %v1168_v15  ;;  %v1038_v33 = vmul.f32 0.5, %v9275_v57  ;;  %v1208_v34 = vadd.f32 %v9214_v23, %v1187_v11  ;;  %v1153_v35 = vadd.f32 1.0, %v8597_v13 }
 0x196   : > { %v1211_v25 = vadd.f32 %v9214_v23, %v1190_v24  ;;  %v8599_v26 = vpop.eup %8598  ;;  %v1209_v20 = vadd.f32 %v9214_v23, %v1188_v29  ;;  %v1034_v28 = vmul.f32 0.5, %v9265_v46  ;;  %v1035_v19 = vmul.f32 0.5, %v9286_v48 }
 0x197   : > { %v8601_v3 = vpop.eup %8600  ;;  %v1156_v36 = vadd.f32 1.0, %v8599_v26  ;;  %7805 = vmatmul.mubr.msk.bf16.gmra.mrb[4].mxu1 %vm1227_vm9, %v1218_v4  ;;  %v1210_v53 = vadd.f32 %v9214_v23, %v1189_v31  ;;  %v1036_v44 = vmul.f32 0.5, %v9292_v18  ;;  %v1789_v2 = vpack.c.bf16 %v708_v1, %v707_v47 }
 0x198   : > { %v1157_v6 = vadd.f32 1.0, %v8601_v3  ;;  %7808 = vmatprep.mubr.msk.bf16.mxu1 %vm8866_vm2, %v8865_v30  ;;  %v1221_v14 = vpack.c.bf16 %v1209_v20, %v1208_v34  ;;  %v1170_v39 = vmul.f32 %v1153_v35, %v1034_v28 }
 0x199   : > { %v1222_v37 = vpack.c.bf16 %v1211_v25, %v1210_v53  ;;  %v1173_v57 = vmul.f32 %v1156_v36, %v1037_v32  ;;  %7837 = vmatpush3.bf16.msra.mxu0 %v1789_v2 }
 0x19a   : > { %v1174_v38 = vmul.f32 %v1157_v6, %v1038_v33  ;;  %v1191_v46 = vmul.f32 %v9206_v12, %v1170_v39  ;;  %7912 = vmatprep.subr.bf16.mxu0 %v8865_v30 }
 0x19b   : > { %v1194_v51 = vmul.f32 %v9206_v12, %v1173_v57 }
 0x19c   : > { %v8603_v40 = vpop.eup %8602  ;;  %v1195_v43 = vmul.f32 %v9206_v12, %v1174_v38  ;;  %v1212_v60 = vadd.f32 %v9214_v23, %v1191_v46  ;;  %v704_v46 = vld [vmem:[#allocation5] sm:$0x3] }
 0x19d   : > { %v8605_v49 = vpop.eup %8604  ;;  %v1154_v16 = vadd.f32 1.0, %v8603_v40  ;;  %v1215_v45 = vadd.f32 %v9214_v23, %v1194_v51 }
 0x19e   : > { %v1155_v50 = vadd.f32 1.0, %v8605_v49  ;;  %v1216_v56 = vadd.f32 %v9214_v23, %v1195_v43 }
 0x19f   : > { %v1171_v58 = vmul.f32 %v1154_v16, %v1035_v19  ;;  %7809 = vmatmul.mubr.msk.bf16.gmra.mrb[8].mxu1 %vm1227_vm9, %v1219_v22 }
 0x1a0   : > { %v1172_v54 = vmul.f32 %v1155_v50, %v1036_v44  ;;  %7812 = vmatprep.mubr.msk.bf16.mxu1 %vm8866_vm2, %v8865_v30 }
 0x1a1   : > { %v1192_v48 = vmul.f32 %v9206_v12, %v1171_v58 }
 0x1a2   : > { %v1193_v18 = vmul.f32 %v9206_v12, %v1172_v54  ;;  %v1225_v12 = vpack.c.bf16 %v1216_v56, %v1216_v56 }
 0x1a3   : > { %v1213_v59 = vadd.f32 %v9214_v23, %v1192_v48 }
 0x1a4   : > { %v1214_v61 = vadd.f32 %v9214_v23, %v1193_v18  ;;  %v705_v23 = vld [vmem:[%s13557_s26] sm:$0xff]  ;;  %s8871_s26 = smov 32  }
 0x1a5   : > { %v1223_v17 = vpack.c.bf16 %v1213_v59, %v1212_v60  ;;  %v1716_v63 = vpack.c.bf16 %v706_v41, %v705_v23  ;;  %v9411_v41 = vrot.slane %v704_v46, %v9195_v55 }
 0x1a6   : > { %v1224_v62 = vpack.c.bf16 %v1215_v45, %v1214_v61 }
 0x1a7   : > { %7813 = vmatmul.mubr.msk.bf16.gmra.mrb[12].mxu1 %vm1227_vm9, %v1220_v27 }
 0x1a8   : > { %7816 = vmatprep.mubr.msk.bf16.mxu1 %vm8866_vm2, %v8865_v30  ;;  %7875 = vmatpush3.bf16.msra.mxu1 %v1716_v63  ;;  %v9414_v63 = vrot.slane %v704_v46, %v9202_v7 }
 0x1af   : > { %7817 = vmatmul.mubr.msk.bf16.gmra.mrb[16].mxu1 %vm1227_vm9, %v1221_v14 }
 0x1b0   : > { %7820 = vmatprep.mubr.msk.bf16.mxu1 %vm8866_vm2, %v8865_v30 }
 0x1b7   : > { %7821 = vmatmul.mubr.msk.bf16.gmra.mrb[20].mxu1 %vm1227_vm9, %v1222_v37 }
 0x1b8   : > { %7824 = vmatprep.mubr.msk.bf16.mxu1 %vm8866_vm2, %v8865_v30 }
 0x1bf   : > { %7825 = vmatmul.mubr.msk.bf16.gmra.mrb[24].mxu1 %vm1227_vm9, %v1223_v17  ;;  %v9403_v17 = vld [vmem:[%s13558_s28 + $0x20] sm:$0xff] }
 0x1c0   : > { %7828 = vmatprep.mubr.msk.bf16.mxu1 %vm8866_vm2, %v8865_v30 }
 0x1c7   : > { %7829 = vmatmul.mubr.msk.bf16.gmra.mrb[28].mxu1 %vm1227_vm9, %v1224_v62  ;;  %v9408_v62 = vld [vmem:[%s13558_s28 + $0x28] sm:$0xff] }
 0x1c8   : > { %7832 = vmatprep.mubr.msk.bf16.mxu1 %vm8866_vm2, %v8865_v30 }
 0x1cf   : > { %7833 = vmatmul.mubr.msk.bf16.gmra.mrb[32].mxu1 %vm1227_vm9, %v1225_v12 }
 0x1d0   : > { %7876 = vmatprep.mubr.msk.bf16.mxu1 %vm8866_vm2, %v8865_v30 }
 0x262   : > { %v1289_v4 = vpop.f32.mrb[0].mxu1 }
 0x263   : > { %v1364_v5 = vrot.slane %v1289_v4, 7  ;;  %v7802_v52 = vpop.f32.mrb[1].mxu1 }
 0x264   : > { %v1292_v0 = vpop.f32.mrb[2].mxu1 }
 0x265   : > { %v1432_v21 = vsel %vm945_vm3, 0.0, %v1364_v5  ;;  %v1365_v8 = vrot.slane %v1292_v0, 7  ;;  %v7803_v9 = vpop.f32.mrb[3].mxu1 }
 0x266   : > { %v1460_v10 = vmul.f32 %v1432_v21, %v1432_v21  ;;  %v1442_v23 = vmul.f32 0.5, %v1432_v21 }
 0x267   : > { %v1366_v11 = vsel %vm945_vm3, %v1364_v5, %v1365_v8 }
 0x268   : > { %v1478_v13 = vmul.f32 %v1460_v10, %v1432_v21  ;;  %v1461_v15 = vmul.f32 %v1366_v11, %v1366_v11 }
 0x26a   : > { %v1496_v22 = vmul.f32 0.044715, %v1478_v13  ;;  %v1479_v24 = vmul.f32 %v1461_v15, %v1366_v11  ;;  %v1297_v27 = vpop.f32.mrb[4].mxu1 }
 0x26b   : > { %v1367_v29 = vrot.slane %v1297_v27, 7  ;;  %v7806_v31 = vpop.f32.mrb[5].mxu1 }
 0x26c   : > { %v1514_v25 = vadd.f32 %v1496_v22, %v1432_v21  ;;  %v1497_v26 = vmul.f32 0.044715, %v1479_v24  ;;  %v1300_v32 = vpop.f32.mrb[6].mxu1  ;;  %v2104_v21 = vpack.c.bf16 %v9408_v62, %v9403_v17 }
 0x26d   : > { %v1368_v33 = vsel %vm945_vm3, %v1365_v8, %v1367_v29  ;;  %v1369_v34 = vrot.slane %v1300_v32, 7  ;;  %v7807_v20 = vpop.f32.mrb[7].mxu1  ;;  %v1443_v8 = vmul.f32 0.5, %v1366_v11 }
 0x26e   : > { %v1532_v3 = vmul.f32 0.7978846, %v1514_v25  ;;  %v1515_v35 = vadd.f32 %v1497_v26, %v1366_v11  ;;  %v1462_v36 = vmul.f32 %v1368_v33, %v1368_v33  ;;  %v1444_v9 = vmul.f32 0.5, %v1368_v33 }
 0x26f   : > { %v1370_v53 = vsel %vm945_vm3, %v1367_v29, %v1369_v34 }
 0x270   : > { %8606 = vtanh.f32 %v1532_v3  ;;  %v1533_v6 = vmul.f32 0.7978846, %v1515_v35  ;;  %v1480_v14 = vmul.f32 %v1462_v36, %v1368_v33  ;;  %v1463_v28 = vmul.f32 %v1370_v53, %v1370_v53 }
 0x271   : > { %v1445_v31 = vmul.f32 0.5, %v1370_v53 }
 0x272   : > { %8608 = vtanh.f32 %v1533_v6  ;;  %v1498_v37 = vmul.f32 0.044715, %v1480_v14  ;;  %v1305_v57 = vpop.f32.mrb[8].mxu1  ;;  %v1481_v38 = vmul.f32 %v1463_v28, %v1370_v53 }
 0x273   : > { %v1371_v39 = vrot.slane %v1305_v57, 7  ;;  %v7810_v19 = vpop.f32.mrb[9].mxu1  ;;  %v1382_v16 = vrot.slane %v1305_v57, 5 }
 0x274   : > { %v1516_v40 = vadd.f32 %v1498_v37, %v1368_v33  ;;  %v1308_v44 = vpop.f32.mrb[10].mxu1  ;;  %v1499_v43 = vmul.f32 0.044715, %v1481_v38 }
 0x275   : > { %v1372_v49 = vsel %vm945_vm3, %v1369_v34, %v1371_v39  ;;  %v1383_v50 = vrot.slane %v1308_v44, 5  ;;  %v7811_v51 = vpop.f32.mrb[11].mxu1 }
 0x276   : > { %v1534_v56 = vmul.f32 0.7978846, %v1516_v40  ;;  %v1433_v58 = vsel %vm962_vm5, %v1372_v49, 0.0  ;;  %v1517_v54 = vadd.f32 %v1499_v43, %v1370_v53 }
 0x277   : > { %v1434_v48 = vsel %vm840_vm0, %v1433_v58, 0.0  ;;  %v1384_v18 = vsel %vm962_vm5, %v1382_v16, %v1383_v50 }
 0x278   : > { %8610 = vtanh.f32 %v1534_v56  ;;  %v1435_v45 = vsel %vm979_vm6, %v1434_v48, %v1382_v16  ;;  %v1465_v60 = vmul.f32 %v1384_v18, %v1384_v18  ;;  %v1535_v59 = vmul.f32 0.7978846, %v1517_v54 }
 0x279   : > { %v1464_v61 = vmul.f32 %v1435_v45, %v1435_v45  ;;  %v9420_v33 = vmul.f32 0.5, %v1384_v18  ;;  %v9422_v3 = vmul.f32 0.5, %v1435_v45 }
 0x27a   : > { %v8607_v12 = vpop.eup %8606  ;;  %v1483_v47 = vmul.f32 %v1465_v60, %v1384_v18  ;;  %v1313_v1 = vpop.f32.mrb[12].mxu1  ;;  %8612 = vtanh.f32 %v1535_v59 }
 0x27b   : > { %v1568_v2 = vadd.f32 1.0, %v8607_v12  ;;  %v1482_v4 = vmul.f32 %v1464_v61, %v1435_v45  ;;  %v1385_v5 = vrot.slane %v1313_v1, 5  ;;  %v7814_v52 = vpop.f32.mrb[13].mxu1 }
 0x27c   : > { %v8609_v0 = vpop.eup %8608  ;;  %v1501_v10 = vmul.f32 0.044715, %v1483_v47  ;;  %v1316_v13 = vpop.f32.mrb[14].mxu1 }
 0x27d   : > { %v1586_v15 = vmul.f32 %v1568_v2, %v1442_v23  ;;  %v1569_v22 = vadd.f32 1.0, %v8609_v0  ;;  %v1500_v24 = vmul.f32 0.044715, %v1482_v4  ;;  %v1386_v27 = vsel %vm962_vm5, %v1383_v50, %v1385_v5  ;;  %v7815_v29 = vpop.f32.mrb[15].mxu1 }
 0x27e   : > { %v1519_v25 = vadd.f32 %v1501_v10, %v1384_v18  ;;  %v1466_v26 = vmul.f32 %v1386_v27, %v1386_v27  ;;  %v1387_v32 = vrot.slane %v1316_v13, 5  ;;  %v9427_v37 = vmul.f32 0.5, %v1386_v27 }
 0x27f   : > { %v1608_v34 = vmul.f32 %v9411_v41, %v1586_v15  ;;  %v1587_v20 = vmul.f32 %v1569_v22, %v1443_v8  ;;  %v1518_v11 = vadd.f32 %v1500_v24, %v1435_v45 }
 0x280   : > { %v1537_v35 = vmul.f32 0.7978846, %v1519_v25  ;;  %v1484_v36 = vmul.f32 %v1466_v26, %v1386_v27  ;;  %v1388_v6 = vsel %vm962_vm5, %v1385_v5, %v1387_v32 }
 0x281   : > { %v1630_v14 = vadd.f32 %v9414_v63, %v1608_v34  ;;  %v1609_v28 = vmul.f32 %v9411_v41, %v1587_v20  ;;  %v1536_v53 = vmul.f32 0.7978846, %v1518_v11  ;;  %v9429_v39 = vmul.f32 0.5, %v1388_v6 }
 0x282   : > { %v8611_v57 = vpop.eup %8610  ;;  %8614 = vtanh.f32 %v1537_v35  ;;  %v1502_v38 = vmul.f32 0.044715, %v1484_v36  ;;  %v1467_v19 = vmul.f32 %v1388_v6, %v1388_v6  ;;  %v1321_v40 = vpop.f32.mrb[16].mxu1 }
 0x283   : > { %v1721_v44 = vrot.slane %v1630_v14, 1  ;;  %v2052_v43 = vrot.slane %v1630_v14, 2  ;;  %v9432_v49 = vadd.f32 %v9414_v63, %v1609_v28  ;;  %v1570_v16 = vadd.f32 1.0, %v8611_v57  ;;  %v7818_v50 = vpop.f32.mrb[17].mxu1 }
 0x284   : > { %8616 = vtanh.f32 %v1536_v53  ;;  %v1520_v51 = vadd.f32 %v1502_v38, %v1386_v27  ;;  %v1485_v56 = vmul.f32 %v1467_v19, %v1388_v6  ;;  %v1389_v58 = vrot.slane %v1321_v40, 5  ;;  %v1324_v46 = vpop.f32.mrb[18].mxu1  ;;  %v8613_v54 = vpop.eup %8612 }
 0x285   : > { %v1722_v48 = vrot.slane %v9432_v49, 1  ;;  %v2053_v18 = vrot.slane %v9432_v49, 2  ;;  %v1588_v45 = vmul.f32 %v1570_v16, %v1444_v9  ;;  %v1400_v60 = vrot.slane %v1321_v40, 3  ;;  %v7819_v59 = vpop.f32.mrb[19].mxu1 }
 0x286   : > { %v1571_v61 = vadd.f32 1.0, %v8613_v54  ;;  %v1538_v12 = vmul.f32 0.7978846, %v1520_v51  ;;  %v1503_v23 = vmul.f32 0.044715, %v1485_v56  ;;  %v1390_v47 = vsel %vm962_vm5, %v1387_v32, %v1389_v58 }
 0x287   : > { %v1610_v1 = vmul.f32 %v9411_v41, %v1588_v45  ;;  %v1436_v2 = vsel %vm996_vm8, %v1390_v47, 0.0  ;;  %v1401_v4 = vrot.slane %v1324_v46, 3  ;;  %v1707_v5 = vpack.c.bf16 %v9432_v49, %v1630_v14 }
 0x288   : > { %v1589_v52 = vmul.f32 %v1571_v61, %v1445_v31  ;;  %8618 = vtanh.f32 %v1538_v12  ;;  %v1521_v0 = vadd.f32 %v1503_v23, %v1388_v6  ;;  %v9440_v8 = vmul.f32 0.5, %v1436_v2 }
 0x289   : > { %v1468_v9 = vmul.f32 %v1436_v2, %v1436_v2  ;;  %v1402_v10 = vsel %vm979_vm6, %v1400_v60, %v1401_v4  ;;  %7877 = vmatmul.mubr.msk.bf16.vlgmr.msra.gmra.mrb[36].mxu1 %vm1227_vm9, %v1707_v5  ;;  %v9445_v13 = vadd.f32 %v9414_v63, %v1610_v1  ;;  %v1723_v15 = vsel %vm996_vm8, %v1721_v44, %v1722_v48 }
 0x28a   : > { %v1611_v22 = vmul.f32 %v9411_v41, %v1589_v52  ;;  %v1539_v24 = vmul.f32 0.7978846, %v1521_v0  ;;  %v1437_v27 = vsel %vm945_vm3, 0.0, %v1402_v10  ;;  %v1329_v29 = vpop.f32.mrb[20].mxu1  ;;  %7880 = vmatprep.mubr.msk.bf16.mxu1 %vm8866_vm2, %v8865_v30  ;;  %v9455_v31 = vsel %vm1018_vm7, %v2052_v43, %v2053_v18 }
 0x28b   : > { %v1486_v25 = vmul.f32 %v1468_v9, %v1436_v2  ;;  %v9457_v26 = vmul.f32 0.5, %v1437_v27  ;;  %v1469_v32 = vmul.f32 %v1437_v27, %v1437_v27  ;;  %v1403_v34 = vrot.slane %v1329_v29, 3  ;;  %v7822_v20 = vpop.f32.mrb[21].mxu1 }
 0x28c   : > { %v8615_v11 = vpop.eup %8614  ;;  %8620 = vtanh.f32 %v1539_v24  ;;  %v1332_v35 = vpop.f32.mrb[22].mxu1  ;;  %v9460_v36 = vadd.f32 %v9414_v63, %v1611_v22  ;;  %v1724_v6 = vrot.slane %v9445_v13, 1  ;;  %v2055_v14 = vrot.slane %v9445_v13, 2 }
 0x28d   : > { %v1573_v28 = vadd.f32 1.0, %v8615_v11  ;;  %v1504_v53 = vmul.f32 0.044715, %v1486_v25  ;;  %v1487_v57 = vmul.f32 %v1469_v32, %v1437_v27  ;;  %v1404_v38 = vsel %vm979_vm6, %v1401_v4, %v1403_v34  ;;  %v7823_v19 = vpop.f32.mrb[23].mxu1 }
 0x28e   : > { %v8617_v40 = vpop.eup %8616  ;;  %v9465_v44 = vmul.f32 0.5, %v1404_v38  ;;  %v1470_v43 = vmul.f32 %v1404_v38, %v1404_v38  ;;  %v1405_v16 = vrot.slane %v1332_v35, 3  ;;  %v1708_v50 = vpack.c.bf16 %v9460_v36, %v9445_v13 }
 0x28f   : > { %v1572_v51 = vadd.f32 1.0, %v8617_v40  ;;  %v1591_v56 = vmul.f32 %v1573_v28, %v9420_v33  ;;  %v1522_v58 = vadd.f32 %v1504_v53, %v1436_v2  ;;  %v1505_v46 = vmul.f32 0.044715, %v1487_v57 }
 0x290   : > { %v1488_v54 = vmul.f32 %v1470_v43, %v1404_v38  ;;  %v1406_v45 = vsel %vm979_vm6, %v1403_v34, %v1405_v16  ;;  %v1725_v60 = vsel %vm996_vm8, %v1722_v48, %v1724_v6  ;;  %v1726_v59 = vrot.slane %v9460_v36, 1 }
 0x291   : > { %v1590_v61 = vmul.f32 %v1572_v51, %v9422_v3  ;;  %v1613_v12 = vmul.f32 %v9411_v41, %v1591_v56  ;;  %v1540_v23 = vmul.f32 0.7978846, %v1522_v58  ;;  %v1523_v47 = vadd.f32 %v1505_v46, %v1437_v27  ;;  %7881 = vmatmul.mubr.msk.bf16.gmra.mrb[40].mxu1 %vm1227_vm9, %v1708_v50 }
 0x292   : > { %v8619_v33 = vpop.eup %8618  ;;  %v1506_v1 = vmul.f32 0.044715, %v1488_v54  ;;  %v9478_v2 = vmul.f32 0.5, %v1406_v45  ;;  %v1471_v4 = vmul.f32 %v1406_v45, %v1406_v45  ;;  %v1780_v5 = vpack.c.bf16 %v1725_v60, %v1723_v15  ;;  %v1337_v52 = vpop.f32.mrb[24].mxu1  ;;  %7884 = vmatprep.mubr.msk.bf16.mxu1 %vm8866_vm2, %v8865_v30 }
 0x293   : > { %v1612_v48 = vmul.f32 %v9411_v41, %v1590_v61  ;;  %v9484_v3 = vadd.f32 %v9414_v63, %v1613_v12  ;;  %v1574_v0 = vadd.f32 1.0, %v8619_v33  ;;  %8622 = vtanh.f32 %v1540_v23  ;;  %v7826_v9 = vpop.f32.mrb[25].mxu1 }
 0x294   : > { %v1541_v10 = vmul.f32 0.7978846, %v1523_v47  ;;  %v1524_v22 = vadd.f32 %v1506_v1, %v1404_v38  ;;  %v1489_v24 = vmul.f32 %v1471_v4, %v1406_v45  ;;  %7839 = vmatmul.mubr.msk.bf16.vlgmr.msra.gmra.mrb[16].mxu0 %vm1227_vm9, %v1780_v5  ;;  %v1407_v27 = vrot.slane %v1337_v52, 3  ;;  %v1340_v29 = vpop.f32.mrb[26].mxu1 }
 0x295   : > { %v9488_v15 = vadd.f32 %v9414_v63, %v1612_v48  ;;  %v1592_v25 = vmul.f32 %v1574_v0, %v9427_v37  ;;  %v1418_v32 = vrot.slane %v1337_v52, 1  ;;  %7913 = vmatpush3.bf16.msra.mxu0 %v2104_v21  ;;  %v1419_v34 = vrot.slane %v1340_v29, 1  ;;  %v7827_v20 = vpop.f32.mrb[27].mxu1  ;;  %7842 = vmatprep.mubr.msk.bf16.mxu0 %vm8866_vm2, %v8865_v30 }
 0x296   : > { %v8621_v11 = vpop.eup %8620  ;;  %8624 = vtanh.f32 %v1541_v10  ;;  %v1542_v35 = vmul.f32 0.7978846, %v1524_v22  ;;  %v1507_v28 = vmul.f32 0.044715, %v1489_v24  ;;  %v1408_v53 = vsel %vm979_vm6, %v1405_v16, %v1407_v27 }
 0x297   : > { %v1614_v57 = vmul.f32 %v9411_v41, %v1592_v25  ;;  %v1575_v38 = vadd.f32 1.0, %v8621_v11  ;;  %v1438_v37 = vsel %vm962_vm5, %v1407_v27, 0.0  ;;  %v9499_v19 = vmul.f32 0.5, %v1408_v53 }
 0x298   : > { %8626 = vtanh.f32 %v1542_v35  ;;  %v1525_v17 = vadd.f32 %v1507_v28, %v1406_v45  ;;  %v1439_v62 = vsel %vm840_vm0, %v1438_v37, 0.0  ;;  %v1472_v21 = vmul.f32 %v1408_v53, %v1408_v53 }
 0x299   : > { %v9503_v40 = vadd.f32 %v9414_v63, %v1614_v57  ;;  %v1593_v43 = vmul.f32 %v1575_v38, %v9429_v39  ;;  %v1420_v50 = vsel %vm996_vm8, %v1418_v32, %v1419_v34  ;;  %v1727_v16 = vsel %vm996_vm8, %v1724_v6, %v1726_v59 }
 0x29a   : > { %v1543_v51 = vmul.f32 0.7978846, %v1525_v17  ;;  %v1490_v56 = vmul.f32 %v1472_v21, %v1408_v53  ;;  %v1440_v58 = vsel %vm979_vm6, %v1439_v62, %v1420_v50  ;;  %v1345_v46 = vpop.f32.mrb[28].mxu1  ;;  %v1728_v54 = vrot.slane %v9488_v15, 1 }
 0x29b   : > { %v1615_v45 = vmul.f32 %v9411_v41, %v1593_v43  ;;  %v9513_v60 = vmul.f32 0.5, %v1440_v58  ;;  %v1473_v61 = vmul.f32 %v1440_v58, %v1440_v58  ;;  %v1421_v12 = vrot.slane %v1345_v46, 1  ;;  %v7830_v39 = vpop.f32.mrb[29].mxu1 }
 0x29c   : > { %8628 = vtanh.f32 %v1543_v51  ;;  %v1508_v23 = vmul.f32 0.044715, %v1490_v56  ;;  %v1729_v6 = vsel %vm996_vm8, %v1726_v59, %v1728_v54  ;;  %v1348_v47 = vpop.f32.mrb[30].mxu1  ;;  %v9519_v33 = vrot.slane %v9488_v15, 2 }
 0x29d   : > { %v8623_v1 = vpop.eup %8622  ;;  %v9522_v4 = vadd.f32 %v9414_v63, %v1615_v45  ;;  %v1491_v5 = vmul.f32 %v1473_v61, %v1440_v58  ;;  %v1422_v52 = vsel %vm996_vm8, %v1419_v34, %v1421_v12  ;;  %v1781_v48 = vpack.c.bf16 %v1729_v6, %v1727_v16  ;;  %v7831_v0 = vpop.f32.mrb[31].mxu1 }
 0x29e   : > { %v1576_v9 = vadd.f32 1.0, %v8623_v1  ;;  %v1526_v10 = vadd.f32 %v1508_v23, %v1408_v53  ;;  %v9525_v22 = vmul.f32 0.5, %v1422_v52  ;;  %v1474_v24 = vmul.f32 %v1422_v52, %v1422_v52 }
 0x29f   : > { %v1509_v27 = vmul.f32 0.044715, %v1491_v5  ;;  %7843 = vmatmul.mubr.msk.bf16.gmra.mrb[20].mxu0 %vm1227_vm9, %v1781_v48  ;;  %v1423_v59 = vrot.slane %v1348_v47, 1  ;;  %v1654_v29 = vrot.slane %v9484_v3, 2  ;;  %v1656_v25 = vrot.slane %v9503_v40, 2 }
 0x2a0   : > { %v8625_v32 = vpop.eup %8624  ;;  %v1594_v20 = vmul.f32 %v1576_v9, %v9440_v8  ;;  %v1544_v11 = vmul.f32 0.7978846, %v1526_v10  ;;  %v1492_v34 = vmul.f32 %v1474_v24, %v1422_v52  ;;  %7846 = vmatprep.mubr.msk.bf16.mxu0 %vm8866_vm2, %v8865_v30  ;;  %v1735_v35 = vrot.slane %v9488_v15, 3 }
 0x2a1   : > { %v1577_v28 = vadd.f32 1.0, %v8625_v32  ;;  %v1527_v53 = vadd.f32 %v1509_v27, %v1440_v58  ;;  %v1424_v57 = vsel %vm996_vm8, %v1421_v12, %v1423_v59  ;;  %v1655_v38 = vsel %vm1018_vm7, %v9519_v33, %v1654_v29 }
 0x2a2   : > { %v8627_v37 = vpop.eup %8626  ;;  %v1616_v17 = vmul.f32 %v9411_v41, %v1594_v20  ;;  %8630 = vtanh.f32 %v1544_v11  ;;  %v1510_v62 = vmul.f32 0.044715, %v1492_v34  ;;  %v9538_v8 = vmul.f32 0.5, %v1424_v57  ;;  %v1353_v21 = vpop.f32.mrb[32].mxu1 }
 0x2a3   : > { %v1595_v43 = vmul.f32 %v1577_v28, %v9457_v26  ;;  %v1578_v50 = vadd.f32 1.0, %v8627_v37  ;;  %v1545_v16 = vmul.f32 0.7978846, %v1527_v53  ;;  %v1475_v51 = vmul.f32 %v1424_v57, %v1424_v57  ;;  %v7834_v56 = vpop.f32.mrb[33].mxu1 }
 0x2a4   : > { %v9542_v58 = vadd.f32 %v9414_v63, %v1616_v17  ;;  %v1528_v46 = vadd.f32 %v1510_v62, %v1422_v52  ;;  %v1657_v45 = vsel %vm1018_vm7, %v1654_v29, %v1656_v25  ;;  %v1704_v61 = vsel %vm1011_vm4, %v9488_v15, %v1655_v38  ;;  %v1356_v12 = vpop.f32.mrb[34].mxu1 }
 0x2a5   : > { %v1617_v39 = vmul.f32 %v9411_v41, %v1595_v43  ;;  %v1596_v26 = vmul.f32 %v1578_v50, %v9465_v44  ;;  %8632 = vtanh.f32 %v1545_v16  ;;  %v1493_v23 = vmul.f32 %v1475_v51, %v1424_v57  ;;  %v7835_v6 = vpop.f32.mrb[35].mxu1 }
 0x2a6   : > { %v8629_v47 = vpop.eup %8628  ;;  %v1546_v1 = vmul.f32 0.7978846, %v1528_v46  ;;  %v1709_v5 = vpack.c.bf16 %v1657_v45, %v1704_v61  ;;  %v1425_v48 = vrot.slane %v1353_v21, 1  ;;  %v1736_v52 = vrot.slane %v9484_v3, 3 }
 0x2a7   : > { %v9553_v0 = vadd.f32 %v9414_v63, %v1617_v39  ;;  %v1618_v9 = vmul.f32 %v9411_v41, %v1596_v26  ;;  %v1579_v10 = vadd.f32 1.0, %v8629_v47  ;;  %v1511_v24 = vmul.f32 0.044715, %v1493_v23 }
 0x2a8   : > { %8634 = vtanh.f32 %v1546_v1  ;;  %7885 = vmatmul.mubr.msk.bf16.gmra.mrb[44].mxu1 %vm1227_vm9, %v1709_v5  ;;  %v1426_v44 = vsel %vm996_vm8, %v1423_v59, %v1425_v48  ;;  %v1441_v27 = vsel %vm996_vm8, %v1425_v48, 0.0  ;;  %v1737_v29 = vsel %vm979_vm6, %v1735_v35, %v1736_v52 }
 0x2a9   : > { %v9561_v32 = vadd.f32 %v9414_v63, %v1618_v9  ;;  %v1597_v20 = vmul.f32 %v1579_v10, %v9478_v2  ;;  %v1529_v11 = vadd.f32 %v1511_v24, %v1424_v57  ;;  %v9564_v34 = vmul.f32 0.5, %v1426_v44  ;;  %7888 = vmatprep.mubr.msk.bf16.mxu1 %vm8866_vm2, %v8865_v30 }
 0x2aa   : > { %v9568_v28 = vmul.f32 0.5, %v1441_v27  ;;  %v1476_v53 = vmul.f32 %v1426_v44, %v1426_v44  ;;  %v1477_v38 = vmul.f32 %v1441_v27, %v1441_v27  ;;  %v1738_v59 = vrot.slane %v9503_v40, 3 }
 0x2ab   : > { %v1619_v37 = vmul.f32 %v9411_v41, %v1597_v20  ;;  %v1547_v35 = vmul.f32 0.7978846, %v1529_v11  ;;  %v1777_v17 = vsel %vm1011_vm4, %v1728_v54, %v1737_v29  ;;  %v1658_v2 = vrot.slane %v9522_v4, 2 }
 0x2ac   : > { %v8631_v57 = vpop.eup %8630  ;;  %v1494_v62 = vmul.f32 %v1476_v53, %v1426_v44  ;;  %v1495_v21 = vmul.f32 %v1477_v38, %v1441_v27  ;;  %v1739_v43 = vsel %vm979_vm6, %v1736_v52, %v1738_v59  ;;  %v1660_v50 = vrot.slane %v9542_v58, 2 }
 0x2ad   : > { %v9579_v16 = vadd.f32 %v9414_v63, %v1619_v37  ;;  %v1580_v51 = vadd.f32 1.0, %v8631_v57  ;;  %8636 = vtanh.f32 %v1547_v35  ;;  %v1782_v56 = vpack.c.bf16 %v1739_v43, %v1777_v17 }
 0x2ae   : > { %v1512_v46 = vmul.f32 0.044715, %v1494_v62  ;;  %v1513_v45 = vmul.f32 0.044715, %v1495_v21  ;;  %v1659_v54 = vsel %vm1018_vm7, %v1656_v25, %v1658_v2  ;;  %v1661_v61 = vsel %vm1018_vm7, %v1658_v2, %v1660_v50 }
 0x2af   : > { %v8633_v12 = vpop.eup %8632  ;;  %v1598_v39 = vmul.f32 %v1580_v51, %v9499_v19  ;;  %7847 = vmatmul.mubr.msk.bf16.gmra.mrb[24].mxu0 %vm1227_vm9, %v1782_v56  ;;  %v1710_v26 = vpack.c.bf16 %v1661_v61, %v1659_v54  ;;  %v1740_v23 = vrot.slane %v9522_v4, 3  ;;  %v1742_v6 = vrot.slane %v9542_v58, 3 }
 0x2b0   : > { %v1581_v47 = vadd.f32 1.0, %v8633_v12  ;;  %v1530_v1 = vadd.f32 %v1512_v46, %v1426_v44  ;;  %v1531_v5 = vadd.f32 %v1513_v45, %v1441_v27  ;;  %7850 = vmatprep.mubr.msk.bf16.mxu0 %vm8866_vm2, %v8865_v30  ;;  %v1672_v25 = vrot.slane %v9553_v0, 4 }
 0x2b1   : > { %v1620_v48 = vmul.f32 %v9411_v41, %v1598_v39  ;;  %7889 = vmatmul.mubr.msk.bf16.gmra.mrb[48].mxu1 %vm1227_vm9, %v1710_v26  ;;  %v1741_v19 = vsel %vm979_vm6, %v1738_v59, %v1740_v23  ;;  %v1743_v52 = vsel %vm979_vm6, %v1740_v23, %v1742_v6  ;;  %v1673_v9 = vrot.slane %v9561_v32, 4 }
 0x2b2   : > { %v8635_v10 = vpop.eup %8634  ;;  %v1599_v24 = vmul.f32 %v1581_v47, %v9513_v60  ;;  %v1548_v44 = vmul.f32 0.7978846, %v1530_v1  ;;  %v1549_v27 = vmul.f32 0.7978846, %v1531_v5  ;;  %v1783_v29 = vpack.c.bf16 %v1743_v52, %v1741_v19  ;;  %7892 = vmatprep.mubr.msk.bf16.mxu1 %vm8866_vm2, %v8865_v30 }
 0x2b3   : > { %v9601_v20 = vadd.f32 %v9414_v63, %v1620_v48  ;;  %v1582_v11 = vadd.f32 1.0, %v8635_v10  ;;  %v1674_v53 = vsel %vm840_vm0, %v1672_v25, %v1673_v9  ;;  %v1705_v38 = vsel %vm840_vm0, %v1660_v50, %v1672_v25 }
 0x2b4   : > { %v1621_v59 = vmul.f32 %v9411_v41, %v1599_v24  ;;  %8638 = vtanh.f32 %v1548_v44  ;;  %v1711_v37 = vpack.c.bf16 %v1674_v53, %v1705_v38  ;;  %v1749_v60 = vrot.slane %v9553_v0, 5 }
 0x2b5   : > { %v1600_v35 = vmul.f32 %v1582_v11, %v9525_v22  ;;  %8640 = vtanh.f32 %v1549_v27  ;;  %v1750_v17 = vrot.slane %v9561_v32, 5  ;;  %v1675_v2 = vrot.slane %v9579_v16, 4 }
 0x2b6   : > { %v9611_v57 = vadd.f32 %v9414_v63, %v1621_v59  ;;  %v1778_v62 = vsel %vm840_vm0, %v1742_v6, %v1749_v60  ;;  %v1677_v21 = vrot.slane %v9601_v20, 4  ;;  %v1752_v43 = vrot.slane %v9579_v16, 5 }
 0x2b7   : > { %v8637_v50 = vpop.eup %8636  ;;  %v1622_v51 = vmul.f32 %v9411_v41, %v1600_v35  ;;  %7851 = vmatmul.mubr.msk.bf16.gmra.mrb[28].mxu0 %vm1227_vm9, %v1783_v29  ;;  %v1751_v22 = vsel %vm962_vm5, %v1749_v60, %v1750_v17  ;;  %v1676_v56 = vsel %vm840_vm0, %v1673_v9, %v1675_v2  ;;  %v1754_v46 = vrot.slane %v9601_v20, 5 }
 0x2b8   : > { %v1583_v45 = vadd.f32 1.0, %v8637_v50  ;;  %7854 = vmatprep.mubr.msk.bf16.mxu0 %vm8866_vm2, %v8865_v30  ;;  %v1784_v54 = vpack.c.bf16 %v1751_v22, %v1778_v62  ;;  %v1678_v61 = vsel %vm840_vm0, %v1675_v2, %v1677_v21  ;;  %v9625_v12 = vsel %vm962_vm5, %v1750_v17, %v1752_v43 }
 0x2b9   : > { %v9628_v39 = vadd.f32 %v9414_v63, %v1622_v51  ;;  %7893 = vmatmul.mubr.msk.bf16.gmra.mrb[52].mxu1 %vm1227_vm9, %v1711_v37  ;;  %v1712_v26 = vpack.c.bf16 %v1678_v61, %v1676_v56  ;;  %v1755_v23 = vsel %vm962_vm5, %v1752_v43, %v1754_v46  ;;  %v1679_v6 = vrot.slane %v9611_v57, 4 }
 0x2ba   : > { %v1601_v47 = vmul.f32 %v1583_v45, %v9538_v8  ;;  %7896 = vmatprep.mubr.msk.bf16.mxu1 %vm8866_vm2, %v8865_v30  ;;  %v1785_v1 = vpack.c.bf16 %v1755_v23, %v9625_v12  ;;  %v9638_v5 = vrot.slane %v9611_v57, 6  ;;  %v1756_v25 = vrot.slane %v9611_v57, 5 }
 0x2bb   : > { %v1680_v48 = vsel %vm840_vm0, %v1677_v21, %v1679_v6  ;;  %v1691_v19 = vrot.slane %v9628_v39, 6  ;;  %v1763_v52 = vrot.slane %v9611_v57, 7  ;;  %v1764_v9 = vrot.slane %v9628_v39, 7 }
 0x2bc   : > { %v1623_v8 = vmul.f32 %v9411_v41, %v1601_v47  ;;  %v1706_v10 = vsel %vm1018_vm7, %v1680_v48, %v9638_v5  ;;  %v1757_v24 = vsel %vm962_vm5, %v1754_v46, %v1756_v25  ;;  %v9654_v44 = vsel %vm1018_vm7, %v2053_v18, %v2055_v14 }
 0x2bd   : > { %v1692_v27 = vsel %vm1011_vm4, %v9638_v5, %v1691_v19  ;;  %v9659_v29 = vsel %vm945_vm3, %v1763_v52, %v1764_v9  ;;  %v9662_v11 = vsel %vm1018_vm7, %v1757_v24, %v1763_v52  ;;  %v2095_v53 = vpack.c.bf16 %v9654_v44, %v9455_v31 }
 0x2be   : > { %v8639_v38 = vpop.eup %8638  ;;  %v9667_v59 = vadd.f32 %v9414_v63, %v1623_v8  ;;  %v1713_v49 = vpack.c.bf16 %v1692_v27, %v1706_v10  ;;  %v1786_v18 = vpack.c.bf16 %v9659_v29, %v9662_v11  ;;  %v2057_v37 = vrot.slane %v9460_v36, 2 }
 0x2bf   : > { %v8641_v60 = vpop.eup %8640  ;;  %v1584_v35 = vadd.f32 1.0, %v8639_v38  ;;  %7855 = vmatmul.mubr.msk.bf16.gmra.mrb[32].mxu0 %vm1227_vm9, %v1784_v54  ;;  %v2065_v17 = vrot.slane %v9488_v15, 4  ;;  %v2066_v2 = vrot.slane %v9484_v3, 4  ;;  %v2068_v62 = vrot.slane %v9503_v40, 4 }
 0x2c0   : > { %v1585_v21 = vadd.f32 1.0, %v8641_v60  ;;  %7858 = vmatprep.mubr.msk.bf16.mxu0 %vm8866_vm2, %v8865_v30  ;;  %v1693_v43 = vrot.slane %v9667_v59, 6  ;;  %v1766_v50 = vrot.slane %v9667_v59, 7  ;;  %v9683_v36 = vsel %vm1018_vm7, %v2055_v14, %v2057_v37 }
 0x2c1   : > { %v1602_v51 = vmul.f32 %v1584_v35, %v9564_v34  ;;  %7897 = vmatmul.mubr.msk.bf16.gmra.mrb[56].mxu1 %vm1227_vm9, %v1712_v26  ;;  %v2059_v3 = vsel %vm1018_vm7, %v2057_v37, %v9519_v33  ;;  %v2067_v15 = vsel %vm840_vm0, %v2065_v17, %v2066_v2  ;;  %v2069_v40 = vsel %vm840_vm0, %v2066_v2, %v2068_v62 }
 0x2c2   : > { %v1603_v22 = vmul.f32 %v1585_v21, %v9568_v28  ;;  %7900 = vmatprep.mubr.msk.bf16.mxu1 %vm8866_vm2, %v8865_v30  ;;  %v1694_v13 = vsel %vm1011_vm4, %v1691_v19, %v1693_v43  ;;  %v1767_v14 = vsel %vm945_vm3, %v1764_v9, %v1766_v50  ;;  %v2096_v34 = vpack.c.bf16 %v2059_v3, %v9683_v36 }
 0x2c3   : > { %v1624_v56 = vmul.f32 %v9411_v41, %v1602_v51  ;;  %v2092_v46 = vsel %vm1011_vm4, %v9519_v33, %v2067_v15  ;;  %v2070_v45 = vrot.slane %v9522_v4, 4  ;;  %v2072_v54 = vrot.slane %v9542_v58, 4 }
 0x2c4   : > { %v1625_v28 = vmul.f32 %v9411_v41, %v1603_v22  ;;  %v2097_v61 = vpack.c.bf16 %v2069_v40, %v2092_v46  ;;  %v2079_v12 = vrot.slane %v9553_v0, 6  ;;  %v2080_v26 = vrot.slane %v9561_v32, 6  ;;  %v713_v46 = vld [vmem:[%s13353_s7 + $0x8] sm:$0xff] }
 0x2c5   : > { %v1646_v23 = vadd.f32 %v9414_v63, %v1624_v56  ;;  %v2071_v6 = vsel %vm840_vm0, %v2068_v62, %v2070_v45  ;;  %v2073_v47 = vsel %vm840_vm0, %v2070_v45, %v2072_v54  ;;  %v2082_v25 = vrot.slane %v9579_v16, 6  ;;  %v712_v56 = vld [vmem:[%s13353_s7] sm:$0xff] }
 0x2c6   : > { %v1647_v33 = vadd.f32 %v9414_v63, %v1625_v28  ;;  %v2098_v4 = vpack.c.bf16 %v2073_v47, %v2071_v6  ;;  %v2081_v58 = vsel %vm1011_vm4, %v2079_v12, %v2080_v26  ;;  %v2093_v41 = vsel %vm840_vm0, %v2072_v54, %v2079_v12 }
 0x2c7   : > { %7859 = vmatmul.mubr.msk.bf16.gmra.mrb[36].mxu0 %vm1227_vm9, %v1785_v1  ;;  %v1695_v0 = vrot.slane %v1646_v23, 6  ;;  %v1768_v48 = vrot.slane %v1646_v23, 7  ;;  %v2099_v32 = vpack.c.bf16 %v2081_v58, %v2093_v41  ;;  %v2083_v19 = vsel %vm1011_vm4, %v2080_v26, %v2082_v25 }
 0x2c8   : > { %7862 = vmatprep.mubr.msk.bf16.mxu0 %vm8866_vm2, %v8865_v30  ;;  %v1697_v52 = vrot.slane %v1647_v33, 6  ;;  %v1770_v9 = vrot.slane %v1647_v33, 7  ;;  %v2084_v16 = vrot.slane %v9601_v20, 6  ;;  %v2102_v63 = vpack.c.bf16 %v1646_v23, %v9667_v59 }
 0x2c9   : > { %7901 = vmatmul.mubr.msk.bf16.gmra.mrb[60].mxu1 %vm1227_vm9, %v1713_v49  ;;  %v1696_v8 = vsel %vm1011_vm4, %v1693_v43, %v1695_v0  ;;  %v1769_v1 = vsel %vm945_vm3, %v1766_v50, %v1768_v48  ;;  %v2103_v31 = vpack.c.bf16 %v1647_v33, %v1647_v33  ;;  %v9792_v45 = vpack.c.bf16 %v713_v46, %v712_v56 }
 0x2ca   : > { %7904 = vmatprep.mubr.msk.bf16.mxu1 %vm8866_vm2, %v8865_v30  ;;  %v1714_v10 = vpack.c.bf16 %v1696_v8, %v1694_v13  ;;  %v1787_v24 = vpack.c.bf16 %v1769_v1, %v1767_v14  ;;  %v1698_v27 = vsel %vm1011_vm4, %v1695_v0, %v1697_v52  ;;  %v1771_v29 = vsel %vm945_vm3, %v1768_v48, %v1770_v9 }
 0x2cb   : > { %v2085_v11 = vsel %vm1011_vm4, %v2082_v25, %v2084_v16  ;;  %v2086_v20 = vsel %vm1011_vm4, %v2084_v16, %v9638_v5  ;;  %v1715_v37 = vpack.c.bf16 %v1698_v27, %v1698_v27  ;;  %v715_v5 = vld [vmem:[%s13353_s7 + $0x18] sm:$0xff] }
 0x2cc   : > { %v2100_v38 = vpack.c.bf16 %v2085_v11, %v2083_v19  ;;  %v2094_v59 = vsel %vm1018_vm7, %v2086_v20, %v9611_v57  ;;  %v1788_v57 = vpack.c.bf16 %v1771_v29, %v1771_v29 }
 0x2cd   : > { %v2101_v49 = vpack.c.bf16 %v9628_v39, %v2094_v59  ;;  %v714_v39 = vld [vmem:[%s13353_s7 + $0x10] sm:$0xff] }
 0x2ce   : > { %v2582_v44 = vpack.c.bf16 %v715_v5, %v714_v39 }
 0x2cf   : > { %7863 = vmatmul.mubr.msk.bf16.gmra.mrb[40].mxu0 %vm1227_vm9, %v1786_v18 }
 0x2d0   : > { %7866 = vmatprep.mubr.msk.bf16.mxu0 %vm8866_vm2, %v8865_v30  ;;  %7950 = vmatprep.subr.bf16.mxu1 %v2582_v44 }
 0x2d1   : > { %7905 = vmatmul.mubr.msk.bf16.gmra.mrb[64].mxu1 %vm1227_vm9, %v1714_v10 }
 0x2d2   : > { %7908 = vmatprep.mubr.msk.bf16.mxu1 %vm8866_vm2, %v8865_v30  ;;  %7951 = vmatpush3.bf16.msra.mxu1 %v2582_v44 }
 0x2d3   : > { %7968 = vmatprep.subr.bf16.mxu1 %v9792_v45 }
 0x2d7   : > { %7867 = vmatmul.mubr.msk.bf16.gmra.mrb[44].mxu0 %vm1227_vm9, %v1787_v24 }
 0x2d8   : > { %7870 = vmatprep.mubr.msk.bf16.mxu0 %vm8866_vm2, %v8865_v30 }
 0x2d9   : > { %7909 = vmatmul.mubr.msk.bf16.gmra.mrb[68].mxu1 %vm1227_vm9, %v1715_v37 }
 0x2df   : > { %7871 = vmatmul.mubr.msk.bf16.gmra.mrb[48].mxu0 %vm1227_vm9, %v1788_v57 }
 0x2e0   : > { %7914 = vmatprep.mubr.msk.bf16.mxu0 %vm8866_vm2, %v8865_v30 }
 0x2e7   : > { %7915 = vmatmul.mubr.msk.bf16.vlgmr.msra.gmra.mrb[52].mxu0 %vm1227_vm9, %v2095_v53 }
 0x2e8   : > { %7918 = vmatprep.mubr.msk.bf16.mxu0 %vm8866_vm2, %v8865_v30 }
 0x2ef   : > { %7919 = vmatmul.mubr.msk.bf16.gmra.mrb[56].mxu0 %vm1227_vm9, %v2096_v34 }
 0x2f0   : > { %7922 = vmatprep.mubr.msk.bf16.mxu0 %vm8866_vm2, %v8865_v30 }
 0x2f7   : > { %7923 = vmatmul.mubr.msk.bf16.gmra.mrb[60].mxu0 %vm1227_vm9, %v2097_v61 }
 0x2f8   : > { %7926 = vmatprep.mubr.msk.bf16.mxu0 %vm8866_vm2, %v8865_v30 }
 0x2ff   : > { %7927 = vmatmul.mubr.msk.bf16.gmra.mrb[64].mxu0 %vm1227_vm9, %v2098_v4 }
 0x300   : > { %7930 = vmatprep.mubr.msk.bf16.mxu0 %vm8866_vm2, %v8865_v30 }
 0x307   : > { %7931 = vmatmul.mubr.msk.bf16.gmra.mrb[68].mxu0 %vm1227_vm9, %v2099_v32 }
 0x308   : > { %7934 = vmatprep.mubr.msk.bf16.mxu0 %vm8866_vm2, %v8865_v30 }
 0x30f   : > { %7935 = vmatmul.mubr.msk.bf16.gmra.mrb[72].mxu0 %vm1227_vm9, %v2100_v38 }
 0x310   : > { %7938 = vmatprep.mubr.msk.bf16.mxu0 %vm8866_vm2, %v8865_v30 }
 0x317   : > { %7939 = vmatmul.mubr.msk.bf16.gmra.mrb[76].mxu0 %vm1227_vm9, %v2101_v49 }
 0x318   : > { %7942 = vmatprep.mubr.msk.bf16.mxu0 %vm8866_vm2, %v8865_v30 }
 0x31f   : > { %7943 = vmatmul.mubr.msk.bf16.gmra.mrb[80].mxu0 %vm1227_vm9, %v2102_v63 }
 0x320   : > { %7946 = vmatprep.mubr.msk.bf16.mxu0 %vm8866_vm2, %v8865_v30 }
 0x327   : > { %7947 = vmatmul.mubr.msk.bf16.gmra.mrb[84].mxu0 %vm1227_vm9, %v2103_v31 }
 0x35c   : > { %v1982_v53 = vpop.f32.mrb[36].mxu1 }
 0x35d   : > { %v7878_v18 = vpop.f32.mrb[37].mxu1 }
 0x35e   : > { %v1985_v60 = vpop.f32.mrb[38].mxu1 }
 0x35f   : > { %v7879_v35 = vpop.f32.mrb[39].mxu1 }
 0x364   : > { %v1990_v17 = vpop.f32.mrb[40].mxu1 }
 0x365   : > { %v7882_v30 = vpop.f32.mrb[41].mxu1 }
 0x366   : > { %v1993_v2 = vpop.f32.mrb[42].mxu1 }
 0x367   : > { %v1851_v62 = vpop.f32.mrb[16].mxu0  ;;  %v7883_v21 = vpop.f32.mrb[43].mxu1 }
 0x368   : > { %v9778_v43 = vadd.f32 %v1982_v53, %v1851_v62  ;;  %v7840_v50 = vpop.f32.mrb[17].mxu0 }
 0x369   : > { %v1854_v36 = vpop.f32.mrb[18].mxu0 }
 0x36a   : > { %v9780_v51 = vadd.f32 %v1985_v60, %v1854_v36  ;;  %v7841_v3 = vpop.f32.mrb[19].mxu0 }
 0x372   : > { %v1859_v15 = vpop.f32.mrb[20].mxu0 }
 0x373   : > { %v9782_v40 = vadd.f32 %v1990_v17, %v1859_v15  ;;  %v7844_v22 = vpop.f32.mrb[21].mxu0 }
 0x374   : > { %v1862_v13 = vpop.f32.mrb[22].mxu0 }
 0x375   : > { %v9784_v14 = vadd.f32 %v1993_v2, %v1862_v13  ;;  %v7845_v34 = vpop.f32.mrb[23].mxu0 }
 0x37b   : > { %v1998_v54 = vpop.f32.mrb[44].mxu1 }
 0x37c   : > { %v7886_v28 = vpop.f32.mrb[45].mxu1 }
 0x37d   : > { %v2001_v61 = vpop.f32.mrb[46].mxu1 }
 0x37e   : > { %v7887_v12 = vpop.f32.mrb[47].mxu1 }
 0x382   : > { %v1867_v26 = vpop.f32.mrb[24].mxu0 }
 0x383   : > { %v9795_v23 = vadd.f32 %v1998_v54, %v1867_v26  ;;  %v7848_v6 = vpop.f32.mrb[25].mxu0 }
 0x384   : > { %v1870_v47 = vpop.f32.mrb[26].mxu0  ;;  %v2006_v25 = vpop.f32.mrb[48].mxu1 }
 0x385   : > { %v9797_v33 = vadd.f32 %v2001_v61, %v1870_v47  ;;  %v7849_v4 = vpop.f32.mrb[27].mxu0  ;;  %v7890_v58 = vpop.f32.mrb[49].mxu1 }
 0x386   : > { %v2009_v41 = vpop.f32.mrb[50].mxu1 }
 0x387   : > { %v7891_v0 = vpop.f32.mrb[51].mxu1 }
 0x38a   : > { %v1875_v48 = vpop.f32.mrb[28].mxu0 }
 0x38b   : > { %v9799_v32 = vadd.f32 %v2006_v25, %v1875_v48  ;;  %v7852_v19 = vpop.f32.mrb[29].mxu0 }
 0x38c   : > { %v1878_v52 = vpop.f32.mrb[30].mxu0  ;;  %v2014_v9 = vpop.f32.mrb[52].mxu1  ;;  %v711_v19 = vld [vmem:[%s13352_s6] sm:$0x7] }
 0x38d   : > { %v9801_v16 = vadd.f32 %v2009_v41, %v1878_v52  ;;  %v7853_v63 = vpop.f32.mrb[31].mxu0  ;;  %v7894_v8 = vpop.f32.mrb[53].mxu1  ;;  %v9825_v52 = vrot.slane %v711_v19, %v9195_v55 }
 0x38e   : > { %v2017_v1 = vpop.f32.mrb[54].mxu1  ;;  %v9829_v8 = vsub.s32 2, %v9180_v42 }
 0x38f   : > { %v7895_v10 = vpop.f32.mrb[55].mxu1 }
 0x390   : > { %13559 = vst [vmem:[#allocation22_spill] sm:$0xff] %v9829_v8 }
 0x392   : > { %v1883_v24 = vpop.f32.mrb[32].mxu0 }
 0x393   : > { %v9803_v27 = vadd.f32 %v2014_v9, %v1883_v24  ;;  %v7856_v29 = vpop.f32.mrb[33].mxu0 }
 0x394   : > { %v1886_v11 = vpop.f32.mrb[34].mxu0  ;;  %v2022_v20 = vpop.f32.mrb[56].mxu1  ;;  %v9833_v29 = vrot.slane %v711_v19, %v9202_v7 }
 0x395   : > { %v9805_v38 = vadd.f32 %v2017_v1, %v1886_v11  ;;  %v7857_v59 = vpop.f32.mrb[35].mxu0  ;;  %v7898_v49 = vpop.f32.mrb[57].mxu1 }
 0x396   : > { %v2025_v37 = vpop.f32.mrb[58].mxu1  ;;  %v9837_v49 = vrot.slane %v711_v19, %v9829_v8 }
 0x397   : > { %v7899_v57 = vpop.f32.mrb[59].mxu1 }
 0x39a   : > { %v1891_v31 = vpop.f32.mrb[36].mxu0 }
 0x39b   : > { %v9807_v39 = vadd.f32 %v2022_v20, %v1891_v31  ;;  %v7860_v5 = vpop.f32.mrb[37].mxu0 }
 0x39c   : > { %v1894_v44 = vpop.f32.mrb[38].mxu0  ;;  %v2030_v53 = vpop.f32.mrb[60].mxu1 }
 0x39d   : > { %v9809_v18 = vadd.f32 %v2025_v37, %v1894_v44  ;;  %v7861_v60 = vpop.f32.mrb[39].mxu0  ;;  %v7902_v35 = vpop.f32.mrb[61].mxu1 }
 0x39e   : > { %v2033_v17 = vpop.f32.mrb[62].mxu1 }
 0x39f   : > { %v7903_v30 = vpop.f32.mrb[63].mxu1 }
 0x3a2   : > { %v1899_v2 = vpop.f32.mrb[40].mxu0 }
 0x3a3   : > { %v9811_v62 = vadd.f32 %v2030_v53, %v1899_v2  ;;  %v7864_v21 = vpop.f32.mrb[41].mxu0 }
 0x3a4   : > { %v1902_v50 = vpop.f32.mrb[42].mxu0  ;;  %v2038_v36 = vpop.f32.mrb[64].mxu1 }
 0x3a5   : > { %v9813_v3 = vadd.f32 %v2033_v17, %v1902_v50  ;;  %v7865_v15 = vpop.f32.mrb[43].mxu0  ;;  %v7906_v22 = vpop.f32.mrb[65].mxu1 }
 0x3a6   : > { %v2041_v13 = vpop.f32.mrb[66].mxu1 }
 0x3a7   : > { %v7907_v34 = vpop.f32.mrb[67].mxu1 }
 0x3aa   : > { %v1907_v56 = vpop.f32.mrb[44].mxu0 }
 0x3ab   : > { %v9815_v46 = vadd.f32 %v2038_v36, %v1907_v56  ;;  %v7868_v54 = vpop.f32.mrb[45].mxu0 }
 0x3ac   : > { %v1910_v28 = vpop.f32.mrb[46].mxu0  ;;  %v2046_v61 = vpop.f32.mrb[68].mxu1 }
 0x3ad   : > { %v9817_v12 = vadd.f32 %v2041_v13, %v1910_v28  ;;  %v7869_v26 = vpop.f32.mrb[47].mxu0  ;;  %v7910_v6 = vpop.f32.mrb[69].mxu1 }
 0x3ae   : > { %v2049_v47 = vpop.f32.mrb[70].mxu1 }
 0x3af   : > { %v7911_v25 = vpop.f32.mrb[71].mxu1 }
 0x3b2   : > { %v1915_v4 = vpop.f32.mrb[48].mxu0 }
 0x3b3   : > { %v9819_v58 = vadd.f32 %v2046_v61, %v1915_v4  ;;  %v7872_v41 = vpop.f32.mrb[49].mxu0 }
 0x3b4   : > { %v1918_v0 = vpop.f32.mrb[50].mxu0 }
 0x3b5   : > { %v7873_v48 = vpop.f32.mrb[51].mxu0 }
 0x3ba   : > { %v2166_v9 = vpop.f32.mrb[52].mxu0 }
 0x3bb   : > { %v2236_v63 = vadd.f32 %v2166_v9, %v9778_v43  ;;  %v7916_v1 = vpop.f32.mrb[53].mxu0 }
 0x3bc   : > { %v2169_v10 = vpop.f32.mrb[54].mxu0 }
 0x3bd   : > { %v2257_v24 = vadd.f32 %v9825_v52, %v2236_v63  ;;  %v2237_v11 = vadd.f32 %v2169_v10, %v9780_v51  ;;  %v7917_v20 = vpop.f32.mrb[55].mxu0 }
 0x3bf   : > { %v2274_v59 = vmax.f32 %v2257_v24, 0.0  ;;  %v2258_v37 = vadd.f32 %v9825_v52, %v2237_v11 }
 0x3c1   : > { %v2295_v43 = vmul.f32 %v9833_v29, %v2274_v59  ;;  %v2275_v42 = vmax.f32 %v2258_v37, 0.0 }
 0x3c2   : > { %v2174_v57 = vpop.f32.mrb[56].mxu0 }
 0x3c3   : > { %v9842_v31 = vadd.f32 %v9837_v49, %v2295_v43  ;;  %v2296_v5 = vmul.f32 %v9833_v29, %v2275_v42  ;;  %v2238_v44 = vadd.f32 %v2174_v57, %v9782_v40  ;;  %v7920_v53 = vpop.f32.mrb[57].mxu0 }
 0x3c4   : > { %v2177_v51 = vpop.f32.mrb[58].mxu0 }
 0x3c5   : > { %v9847_v60 = vadd.f32 %v9837_v49, %v2296_v5  ;;  %v2259_v35 = vadd.f32 %v9825_v52, %v2238_v44  ;;  %v2239_v17 = vadd.f32 %v2177_v51, %v9784_v14  ;;  %v7921_v30 = vpop.f32.mrb[59].mxu0  ;;  %v2389_v2 = vrot.slane %v9842_v31, 1 }
 0x3c6   : > { %v2441_v21 = vrot.slane %v9842_v31, 2  ;;  %v2997_v50 = vrot.slane %v9842_v31, 3  ;;  %v3167_v36 = vrot.slane %v9842_v31, 4  ;;  %v3352_v6 = vrot.slane %v9842_v31, 5 }
 0x3c7   : > { %v2276_v15 = vmax.f32 %v2259_v35, 0.0  ;;  %v2260_v40 = vadd.f32 %v9825_v52, %v2239_v17  ;;  %v2390_v22 = vrot.slane %v9847_v60, 1  ;;  %v2442_v34 = vrot.slane %v9847_v60, 2 }
 0x3c8   : > { %v2998_v14 = vrot.slane %v9847_v60, 3  ;;  %v3168_v56 = vrot.slane %v9847_v60, 4  ;;  %v3353_v54 = vrot.slane %v9847_v60, 5 }
 0x3c9   : > { %v2297_v28 = vmul.f32 %v9833_v29, %v2276_v15  ;;  %v2277_v61 = vmax.f32 %v2260_v40, 0.0  ;;  %v2391_v26 = vsel %vm996_vm8, %v2389_v2, %v2390_v22  ;;  %v9868_v4 = vsel %vm1018_vm7, %v2441_v21, %v2442_v34 }
 0x3ca   : > { %v2182_v47 = vpop.f32.mrb[60].mxu0  ;;  %v2477_v25 = vmax.f32 %v9842_v31, %v2391_v26  ;;  %13560 = vst [vmem:[#allocation23_spill] sm:$0xff] %v9868_v4  ;;  %v9871_v41 = vsel %vm979_vm6, %v2997_v50, %v2998_v14  ;;  %v9874_v0 = vsel %vm840_vm0, %v3167_v36, %v3168_v56  ;;  %v9884_v1 = vsel %vm962_vm5, %v3352_v6, %v3353_v54 }
 0x3cb   : > { %13561 = vst [vmem:[#allocation24_spill] sm:$0xff] %v9871_v41  ;;  %13562 = vst [vmem:[#allocation25_spill] sm:$0xff] %v9874_v0  ;;  %v9877_v48 = vadd.f32 %v9837_v49, %v2297_v28  ;;  %v2298_v19 = vmul.f32 %v9833_v29, %v2277_v61  ;;  %v2240_v9 = vadd.f32 %v2182_v47, %v9795_v23  ;;  %v7924_v63 = vpop.f32.mrb[61].mxu0 }
 0x3cc   : > { %13564 = vst [vmem:[#allocation27_spill] sm:$0xff] %v9884_v1  ;;  %v2185_v10 = vpop.f32.mrb[62].mxu0  ;;  %v9887_v24 = vmax.f32 %v2477_v25, %v9868_v4 }
 0x3cd   : > { %13563 = vst [vmem:[#allocation26_spill] sm:$0xff] %v9877_v48  ;;  %v2261_v11 = vadd.f32 %v9825_v52, %v2240_v9  ;;  %v2241_v20 = vadd.f32 %v2185_v10, %v9797_v33  ;;  %v7925_v59 = vpop.f32.mrb[63].mxu0  ;;  %v2392_v37 = vrot.slane %v9877_v48, 1  ;;  %v9893_v43 = vadd.f32 %v9837_v49, %v2298_v19  ;;  %v716_v19 = vld [vmem:[%s13353_s7 + $0x20] sm:$0xff] }
 0x3ce   : > { %13565 = vst [vmem:[#allocation28_spill] sm:$0xff] %v9887_v24  ;;  %v13389_v23 = vrot.slane %v9877_v48, 2  ;;  %v13388_v42 = vrot.slane %v9877_v48, 3 }
 0x3cf   : > { %v2278_v57 = vmax.f32 %v2261_v11, 0.0  ;;  %v2262_v5 = vadd.f32 %v9825_v52, %v2241_v20  ;;  %v2393_v44 = vsel %vm996_vm8, %v2390_v22, %v2392_v37  ;;  %v9909_v21 = vrot.slane %v9893_v43, 1 }
 0x3d0   : > { %v2478_v53 = vmax.f32 %v9847_v60, %v2393_v44  ;;  %v2574_v51 = vpack.c.bf16 %v2393_v44, %v2391_v26  ;;  %v9903_v33 = vsel %vm1018_vm7, %v2442_v34, %v13389_v23  ;;  %v9918_v36 = vsel %vm979_vm6, %v2998_v14, %v13388_v42 }
 0x3d1   : > { %13566 = vst [vmem:[#allocation29_spill] sm:$0xff] %v9903_v33  ;;  %v2299_v35 = vmul.f32 %v9833_v29, %v2278_v57  ;;  %v2279_v17 = vmax.f32 %v2262_v5, 0.0  ;;  %13568 = vst [vmem:[#allocation31_spill] sm:$0xff] %v9918_v36  ;;  %v13387_v26 = vrot.slane %v9877_v48, 4  ;;  %v9942_v10 = vsel %vm996_vm8, %v2392_v37, %v9909_v21 }
 0x3d2   : > { %v2190_v2 = vpop.f32.mrb[64].mxu0  ;;  %7952 = vmatprep.mubr.msk.bf16.mxu1 %vm1227_vm9, %v2574_v51  ;;  %v9913_v50 = vmax.f32 %v2478_v53, %v9903_v33  ;;  %13569 = vst [vmem:[#allocation32_spill] sm:$0xff] %v9942_v10 }
 0x3d3   : > { %v9921_v15 = vadd.f32 %v9837_v49, %v2299_v35  ;;  %v2300_v40 = vmul.f32 %v9833_v29, %v2279_v17  ;;  %v2242_v22 = vadd.f32 %v2190_v2, %v9799_v32  ;;  %v7928_v34 = vpop.f32.mrb[65].mxu0  ;;  %v717_v32 = vld [vmem:[%s13353_s7 + $0x28] sm:$0xff]  ;;  %v9953_v57 = vsel %vm840_vm0, %v3168_v56, %v13387_v26 }
 0x3d4   : > { %13567 = vst [vmem:[#allocation30_spill] sm:$0xff] %v9913_v50  ;;  %v2193_v61 = vpop.f32.mrb[66].mxu0  ;;  %v9948_v59 = vpack.c.bf16 %v717_v32, %v716_v19  ;;  %13570 = vst [vmem:[#allocation33_spill] sm:$0xff] %v9953_v57 }
 0x3d5   : > { %v2263_v6 = vadd.f32 %v9825_v52, %v2242_v22  ;;  %v2243_v47 = vadd.f32 %v2193_v61, %v9801_v16  ;;  %v7929_v14 = vpop.f32.mrb[67].mxu0  ;;  %v2547_v25 = vrot.slane %v9921_v15, 6  ;;  %v9938_v9 = vadd.f32 %v9837_v49, %v2300_v40 }
 0x3d6   : > { %v9968_v22 = vrot.slane %v9921_v15, 5  ;;  %v13386_v14 = vrot.slane %v9877_v48, 5 }
 0x3d7   : > { %v2280_v63 = vmax.f32 %v2263_v6, 0.0  ;;  %v2264_v16 = vadd.f32 %v9825_v52, %v2243_v47  ;;  %v2571_v11 = vsel %vm979_vm6, %v9909_v21, %v2547_v25  ;;  %v2548_v37 = vrot.slane %v9938_v9, 6 }
 0x3d8   : > { %v2575_v20 = vpack.c.bf16 %v2571_v11, %v9942_v10  ;;  %13571 = vst [vmem:[#allocation34_spill] sm:$0xff] %v9968_v22  ;;  %v718_v11 = vld [vmem:[%s13353_s7 + $0x30] sm:$0xff] }
 0x3d9   : > { %v2301_v5 = vmul.f32 %v9833_v29, %v2280_v63  ;;  %v2281_v44 = vmax.f32 %v2264_v16, 0.0 }
 0x3da   : > { %v2198_v53 = vpop.f32.mrb[68].mxu0  ;;  %7953 = vmatmul.mubr.msk.bf16.vlgmr.msra.gmra.mrb[72].mxu1 %vm1227_vm9, %v2575_v20 }
 0x3db   : > { %v9959_v51 = vadd.f32 %v9837_v49, %v2301_v5  ;;  %v2302_v35 = vmul.f32 %v9833_v29, %v2281_v44  ;;  %v2244_v17 = vadd.f32 %v2198_v53, %v9803_v27  ;;  %v7932_v2 = vpop.f32.mrb[69].mxu0  ;;  %7969 = vmatpush3.bf16.msra.mxu1 %v9792_v45  ;;  %v2549_v45 = vsel %vm1011_vm4, %v2547_v25, %v2548_v37 }
 0x3dc   : > { %v2201_v40 = vpop.f32.mrb[70].mxu0  ;;  %7986 = vmatprep.subr.bf16.mxu1 %v9948_v59 }
 0x3dd   : > { %v9971_v34 = vadd.f32 %v9837_v49, %v2302_v35  ;;  %v2265_v61 = vadd.f32 %v9825_v52, %v2244_v17  ;;  %v2245_v6 = vadd.f32 %v2201_v40, %v9805_v38  ;;  %v7933_v27 = vpop.f32.mrb[71].mxu0  ;;  %v2550_v47 = vrot.slane %v9959_v51, 6  ;;  %v719_v38 = vld [vmem:[%s13353_s7 + $0x38] sm:$0xff] }
 0x3de   : > { %v13391_v25 = vrot.slane %v9959_v51, 5  ;;  %v9994_v35 = vsel %vm979_vm6, %v9893_v43, %v9968_v22  ;;  %v10002_v40 = vpack.c.bf16 %v719_v38, %v718_v11 }
 0x3df   : > { %v2282_v19 = vmax.f32 %v2265_v61, 0.0  ;;  %v2266_v32 = vadd.f32 %v9825_v52, %v2245_v6  ;;  %v2551_v63 = vsel %vm1011_vm4, %v2548_v37, %v2550_v47  ;;  %v2552_v16 = vrot.slane %v9971_v34, 6 }
 0x3e0   : > { %v2576_v20 = vpack.c.bf16 %v2551_v63, %v2549_v45  ;;  %v2514_v5 = vrot.slane %v9971_v34, 5  ;;  %v13390_v61 = vrot.slane %v9959_v51, 7  ;;  %v2829_v6 = vrot.slane %v9971_v34, 7 }
 0x3e1   : > { %v2303_v44 = vmul.f32 %v9833_v29, %v2282_v19  ;;  %v2283_v53 = vmax.f32 %v2266_v32, 0.0  ;;  %v2553_v37 = vsel %vm1011_vm4, %v2550_v47, %v2552_v16  ;;  %v10016_v32 = vsel %vm962_vm5, %v3353_v54, %v13386_v14 }
 0x3e2   : > { %v2206_v17 = vpop.f32.mrb[72].mxu0  ;;  %7956 = vmatprep.mubr.msk.bf16.mxu1 %vm1227_vm9, %v2576_v20  ;;  %v10000_v2 = vsel %vm962_vm5, %v13391_v25, %v2514_v5  ;;  %13572 = vst [vmem:[#allocation35_spill] sm:$0xff] %v10016_v32  ;;  %v10024_v20 = vsel %vm945_vm3, %v13390_v61, %v2829_v6  ;;  %v2338_v32 = vrot.slane %v9921_v15, 2 }
 0x3e3   : > { %v10007_v27 = vadd.f32 %v9837_v49, %v2303_v44  ;;  %v2304_v47 = vmul.f32 %v9833_v29, %v2283_v53  ;;  %v2246_v45 = vadd.f32 %v2206_v17, %v9807_v39  ;;  %v7936_v19 = vpop.f32.mrb[73].mxu0  ;;  %13573 = vst [vmem:[#allocation36_spill] sm:$0xff] %v10024_v20 }
 0x3e4   : > { %v2209_v63 = vpop.f32.mrb[74].mxu0 }
 0x3e5   : > { %v10028_v44 = vadd.f32 %v9837_v49, %v2304_v47  ;;  %v2267_v53 = vadd.f32 %v9825_v52, %v2246_v45  ;;  %v2247_v54 = vadd.f32 %v2209_v63, %v9809_v18  ;;  %v7937_v17 = vpop.f32.mrb[75].mxu0  ;;  %v13392_v14 = vrot.slane %v10007_v27, 3 }
 0x3e6   : > { %v10035_v26 = vrot.slane %v10007_v27, 2  ;;  %v13393_v56 = vrot.slane %v10007_v27, 4  ;;  %v2831_v42 = vrot.slane %v10007_v27, 7  ;;  %v2415_v17 = vrot.slane %v10007_v27, 5 }
 0x3e7   : > { %v2284_v28 = vmax.f32 %v2267_v53, 0.0  ;;  %v2268_v47 = vadd.f32 %v9825_v52, %v2247_v54  ;;  %v2559_v23 = vrot.slane %v10028_v44, 3  ;;  %v2521_v45 = vrot.slane %v10028_v44, 2 }
 0x3e8   : > { %v2356_v18 = vrot.slane %v10028_v44, 4  ;;  %v2832_v63 = vsel %vm945_vm3, %v2829_v6, %v2831_v42  ;;  %v2416_v61 = vrot.slane %v10028_v44, 5 }
 0x3e9   : > { %v2305_v30 = vmul.f32 %v9833_v29, %v2284_v28  ;;  %v2285_v11 = vmax.f32 %v2268_v47, 0.0  ;;  %v2560_v53 = vsel %vm979_vm6, %v13392_v14, %v2559_v23  ;;  %v2522_v54 = vsel %vm1018_vm7, %v10035_v26, %v2521_v45 }
 0x3ea   : > { %v2214_v25 = vpop.f32.mrb[76].mxu0  ;;  %v2572_v38 = vsel %vm1011_vm4, %v2552_v16, %v2560_v53  ;;  %v10054_v13 = vsel %vm1011_vm4, %v2514_v5, %v2522_v54  ;;  %v10059_v42 = vsel %vm840_vm0, %v13393_v56, %v2356_v18  ;;  %v10062_v28 = vsel %vm962_vm5, %v2415_v17, %v2416_v61 }
 0x3eb   : > { %v10065_v6 = vadd.f32 %v9837_v49, %v2305_v30  ;;  %v2306_v47 = vmul.f32 %v9833_v29, %v2285_v11  ;;  %v2248_v14 = vadd.f32 %v2214_v25, %v9811_v62  ;;  %v7940_v39 = vpop.f32.mrb[77].mxu0  ;;  %v2577_v16 = vpack.c.bf16 %v2572_v38, %v2553_v37 }
 0x3ec   : > { %v2217_v53 = vpop.f32.mrb[78].mxu0  ;;  %v10073_v54 = vsel %vm1011_vm4, %v2832_v63, %v10059_v42  ;;  %v10080_v30 = vsel %vm1011_vm4, %v10007_v27, %v10062_v28 }
 0x3ed   : > { %13574 = vst [vmem:[#allocation37_spill] sm:$0xff] %v10073_v54  ;;  %13575 = vst [vmem:[#allocation38_spill] sm:$0xff] %v10080_v30  ;;  %v10083_v62 = vadd.f32 %v9837_v49, %v2306_v47  ;;  %v2269_v25 = vadd.f32 %v9825_v52, %v2248_v14  ;;  %v2249_v37 = vadd.f32 %v2217_v53, %v9813_v3  ;;  %v7941_v11 = vpop.f32.mrb[79].mxu0  ;;  %7957 = vmatmul.mubr.msk.bf16.gmra.mrb[76].mxu1 %vm1227_vm9, %v2577_v16 }
 0x3ee   : > { %v2561_v38 = vrot.slane %v10065_v6, 3  ;;  %v2523_v39 = vrot.slane %v10065_v6, 2  ;;  %v2358_v17 = vrot.slane %v10065_v6, 4 }
 0x3ef   : > { %v2286_v56 = vmax.f32 %v2269_v25, 0.0  ;;  %v2270_v14 = vadd.f32 %v9825_v52, %v2249_v37  ;;  %v2563_v53 = vrot.slane %v10083_v62, 3  ;;  %v2525_v11 = vrot.slane %v10083_v62, 2 }
 0x3f0   : > { %v2562_v3 = vsel %vm979_vm6, %v2559_v23, %v2561_v38  ;;  %v10099_v16 = vsel %vm1018_vm7, %v2521_v45, %v2523_v39  ;;  %v10103_v5 = vsel %vm840_vm0, %v2356_v18, %v2358_v17  ;;  %v2360_v63 = vrot.slane %v10083_v62, 4 }
 0x3f1   : > { %v2307_v19 = vmul.f32 %v9833_v29, %v2286_v56  ;;  %v2287_v47 = vmax.f32 %v2270_v14, 0.0  ;;  %v2564_v25 = vsel %vm979_vm6, %v2561_v38, %v2563_v53  ;;  %v2418_v37 = vrot.slane %v10065_v6, 5 }
 0x3f2   : > { %v2222_v23 = vpop.f32.mrb[80].mxu0  ;;  %v2578_v10 = vpack.c.bf16 %v2564_v25, %v2562_v3  ;;  %v10110_v24 = vsel %vm1018_vm7, %v2523_v39, %v2525_v11  ;;  %v10113_v45 = vsel %vm840_vm0, %v2358_v17, %v2360_v63  ;;  %v13397_v18 = vrot.slane %v10083_v62, 5 }
 0x3f3   : > { %v10117_v50 = vadd.f32 %v9837_v49, %v2307_v19  ;;  %v2308_v56 = vmul.f32 %v9833_v29, %v2287_v47  ;;  %v2250_v14 = vadd.f32 %v2222_v23, %v9815_v46  ;;  %v7944_v38 = vpop.f32.mrb[81].mxu0  ;;  %v10127_v39 = vsel %vm962_vm5, %v2416_v61, %v2418_v37 }
 0x3f4   : > { %v2225_v3 = vpop.f32.mrb[82].mxu0  ;;  %7960 = vmatprep.mubr.msk.bf16.mxu1 %vm1227_vm9, %v2578_v10  ;;  %v10132_v19 = vsel %vm962_vm5, %v2418_v37, %v13397_v18  ;;  %v13581_v4 = vrot.slane %v10083_v62, 5 }
 0x3f5   : > { %v10136_v47 = vadd.f32 %v9837_v49, %v2308_v56  ;;  %v2271_v25 = vadd.f32 %v9825_v52, %v2250_v14  ;;  %v2251_v10 = vadd.f32 %v2225_v3, %v9817_v12  ;;  %v7945_v23 = vpop.f32.mrb[83].mxu0  ;;  %v2565_v38 = vrot.slane %v10117_v50, 3 }
 0x3f6   : > { %v10143_v17 = vrot.slane %v10117_v50, 7  ;;  %v2527_v37 = vrot.slane %v10117_v50, 2  ;;  %v2362_v8 = vrot.slane %v10117_v50, 4  ;;  %v2422_v0 = vrot.slane %v10117_v50, 5 }
 0x3f7   : > { %v2288_v46 = vmax.f32 %v2271_v25, 0.0  ;;  %v2272_v56 = vadd.f32 %v9825_v52, %v2251_v10  ;;  %v2566_v18 = vsel %vm979_vm6, %v2563_v53, %v2565_v38  ;;  %v2373_v14 = vrot.slane %v10136_v47, 6 }
 0x3f8   : > { %v2573_v12 = vsel %vm996_vm8, %v2566_v18, %v10117_v50  ;;  %v2429_v3 = vrot.slane %v10136_v47, 7  ;;  %v2528_v23 = vsel %vm1018_vm7, %v2525_v11, %v2527_v37  ;;  %v10155_v61 = vsel %vm840_vm0, %v2360_v63, %v2362_v8 }
 0x3f9   : > { %v2309_v7 = vmul.f32 %v9833_v29, %v2288_v46  ;;  %v2289_v55 = vmax.f32 %v2272_v56, 0.0  ;;  %v2579_v25 = vpack.c.bf16 %v10136_v47, %v2573_v12  ;;  %v13576_v10 = vrot.slane %v10117_v50, 6 }
 0x3fa   : > { %v2230_v38 = vpop.f32.mrb[84].mxu0  ;;  %v10166_v18 = vsel %vm945_vm3, %v10143_v17, %v2429_v3  ;;  %v10170_v11 = vsel %vm996_vm8, %v2528_v23, %v10143_v17  ;;  %v2838_v8 = vrot.slane %v10136_v47, 1  ;;  %v3008_v57 = vrot.slane %v10136_v47, 2 }
 0x3fb   : > { %v10162_v53 = vsel %vm1011_vm4, %v13576_v10, %v2373_v14  ;;  %v10176_v46 = vadd.f32 %v9837_v49, %v2309_v7  ;;  %v2310_v37 = vmul.f32 %v9833_v29, %v2289_v55  ;;  %v2252_v56 = vadd.f32 %v2230_v38, %v9819_v58  ;;  %v7948_v12 = vpop.f32.mrb[85].mxu0  ;;  %7961 = vmatmul.mubr.msk.bf16.gmra.mrb[80].mxu1 %vm1227_vm9, %v2579_v25 }
 0x3fc   : > { %v2233_v23 = vpop.f32.mrb[86].mxu0  ;;  %v10187_v63 = vsel %vm996_vm8, %v10155_v61, %v2838_v8  ;;  %v3375_v1 = vrot.slane %v10136_v47, 4 }
 0x3fd   : > { %13577 = vst [vmem:[#allocation39_spill] sm:$0xff] %v10187_v63  ;;  %v10194_v58 = vadd.f32 %v9837_v49, %v2310_v37  ;;  %v2273_v25 = vadd.f32 %v9825_v52, %v2252_v56  ;;  %v7949_v38 = vpop.f32.mrb[87].mxu0  ;;  %v2375_v12 = vrot.slane %v10176_v46, 6  ;;  %v2431_v23 = vrot.slane %v10176_v46, 7 }
 0x3fe   : > { %v2839_v10 = vrot.slane %v10176_v46, 1  ;;  %v3009_v7 = vrot.slane %v10176_v46, 2 }
 0x3ff   : > { %v2290_v30 = vmax.f32 %v2273_v25, 0.0  ;;  %v2580_v37 = vpack.c.bf16 %v10194_v58, %v10176_v46  ;;  %v10206_v55 = vsel %vm1011_vm4, %v2373_v14, %v2375_v12  ;;  %v2377_v52 = vrot.slane %v10194_v58, 6 }
 0x400   : > { %v10210_v56 = vsel %vm945_vm3, %v2429_v3, %v2431_v23  ;;  %v2433_v38 = vrot.slane %v10194_v58, 7  ;;  %v10214_v41 = vsel %vm996_vm8, %v2838_v8, %v2839_v10  ;;  %v2841_v36 = vrot.slane %v10194_v58, 1 }
 0x401   : > { %13578 = vst [vmem:[#allocation40_spill] sm:$0xff] %v10214_v41  ;;  %v2311_v25 = vmul.f32 %v9833_v29, %v2290_v30  ;;  %7964 = vmatprep.mubr.msk.bf16.mxu1 %vm1227_vm9, %v2580_v37  ;;  %v10220_v20 = vsel %vm1011_vm4, %v2375_v12, %v2377_v52  ;;  %v10235_v29 = vsel %vm962_vm5, %v13581_v4, %v2422_v0  ;;  %v3011_v4 = vrot.slane %v10194_v58, 2 }
 0x402   : > { %13579 = vst [vmem:[#allocation41_spill] sm:$0xff] %v10220_v20  ;;  %v10227_v54 = vsel %vm945_vm3, %v2431_v23, %v2433_v38  ;;  %v10230_v8 = vsel %vm996_vm8, %v2839_v10, %v2841_v36  ;;  %v10238_v30 = vsel %vm1018_vm7, %v3008_v57, %v3009_v7  ;;  %v10251_v3 = vsel %vm996_vm8, %v10235_v29, %v3008_v57 }
 0x403   : > { %13580 = vst [vmem:[#allocation42_spill] sm:$0xff] %v10230_v8  ;;  %13582 = vst [vmem:[#allocation43_spill] sm:$0xff] %v10238_v30  ;;  %v10241_v12 = vadd.f32 %v9837_v49, %v2311_v25  ;;  %v13584_v0 = vrot.slane %v9959_v51, 1  ;;  %v13585_v49 = vrot.slane %v9938_v9, 1  ;;  %v13587_v37 = vrot.slane %v9971_v34, 1 }
 0x404   : > { %13583 = vst [vmem:[#allocation44_spill] sm:$0xff] %v10251_v3  ;;  %v13593_v3 = vpack.c.bf16 %v9847_v60, %v9842_v31 }
 0x405   : > { %v10259_v25 = vsel %vm996_vm8, %v13585_v49, %v13584_v0  ;;  %v13588_v14 = vmov %v13584_v0  ;;  %v2581_v57 = vpack.c.bf16 %v10241_v12, %v10241_v12  ;;  %v2379_v10 = vrot.slane %v10241_v12, 6 }
 0x406   : > { %13586 = vst [vmem:[#allocation45_spill] sm:$0xff] %v10259_v25  ;;  %v10266_v23 = vsel %vm996_vm8, %v13588_v14, %v13587_v37  ;;  %v2435_v63 = vrot.slane %v10241_v12, 7  ;;  %v10273_v41 = vrot.slane %v10241_v12, 1  ;;  %v10278_v49 = vsel %vm1018_vm7, %v3009_v7, %v3011_v4 }
 0x407   : > { %13589 = vst [vmem:[#allocation46_spill] sm:$0xff] %v10266_v23  ;;  %13591 = vst [vmem:[#allocation48_spill] sm:$0xff] %v10278_v49  ;;  %v10281_v33 = vrot.slane %v10241_v12, 2  ;;  %7965 = vmatmul.mubr.msk.bf16.gmra.mrb[84].mxu1 %vm1227_vm9, %v2581_v57  ;;  %v10287_v37 = vsel %vm1011_vm4, %v2377_v52, %v2379_v10  ;;  %v10297_v7 = vrot.slane %v10028_v44, 6  ;;  %v13594_v57 = vrot.slane %v9938_v9, 5 }
 0x408   : > { %13590 = vst [vmem:[#allocation47_spill] sm:$0xff] %v10273_v41  ;;  %v10290_v20 = vsel %vm945_vm3, %v2433_v38, %v2435_v63  ;;  %v10294_v0 = vsel %vm996_vm8, %v2841_v36, %v10273_v41  ;;  %7970 = vmatprep.mubr.msk.bf16.mxu1 %vm1227_vm9, %v13593_v3  ;;  %v13596_v10 = vrot.slane %v9959_v51, 5  ;;  %v2468_v14 = vrot.slane %v10065_v6, 6 }
 0x409   : > { %13592 = vst [vmem:[#allocation49_spill] sm:$0xff] %v10281_v33  ;;  %v2511_v52 = vsel %vm962_vm5, %v9968_v22, %v13594_v57  ;;  %v10313_v38 = vsel %vm1018_vm7, %v3011_v4, %v10281_v33  ;;  %v13597_v31 = vmov %v13594_v57  ;;  %v3185_v57 = vrot.slane %v10007_v27, 1 }
 0x40a   : > { %13595 = vst [vmem:[#allocation50_spill] sm:$0xff] %v10313_v38  ;;  %v2513_v60 = vsel %vm962_vm5, %v13597_v31, %v13596_v10  ;;  %v2470_v63 = vrot.slane %v10083_v62, 6  ;;  %v3193_v36 = vrot.slane %v10136_v47, 3  ;;  %v3194_v4 = vrot.slane %v10176_v46, 3 }
 0x40b   : > { %v3196_v22 = vrot.slane %v10194_v58, 3  ;;  %v13598_v25 = vrot.slane %v9971_v34, 1  ;;  %v10335_v10 = vsel %vm1011_vm4, %v3185_v57, %v10297_v7  ;;  %v10339_v31 = vsel %vm1011_vm4, %v10297_v7, %v2468_v14 }
 0x40c   : > { %v10342_v3 = vrot.slane %v10241_v12, 3  ;;  %v10347_v49 = vsel %vm1011_vm4, %v2468_v14, %v2470_v63  ;;  %v13603_v41 = vmax.f32 %v10113_v45, %v10132_v19  ;;  %v10369_v33 = vsel %vm979_vm6, %v3193_v36, %v3194_v4 }
 0x40d   : > { %v10331_v23 = vsel %vm996_vm8, %v13598_v25, %v3185_v57  ;;  %v13600_v25 = vmax.f32 %v10103_v5, %v10127_v39  ;;  %v13602_v57 = vrot.slane %v10117_v50, 6  ;;  %13605 = vst [vmem:[#allocation54_spill] sm:$0xff] %v10369_v33  ;;  %v2539_v50 = vpack.c.bf16 %v2513_v60, %v2511_v52 }
 0x40e   : > { %13599 = vst [vmem:[#allocation51_spill] sm:$0xff] %v10342_v3  ;;  %v10364_v8 = vmax.f32 %v13603_v41, %v10347_v49  ;;  %v10382_v41 = vsel %vm979_vm6, %v3196_v22, %v10342_v3  ;;  %v13609_v14 = vpack.c.bf16 %v9994_v35, %v9877_v48  ;;  %v2339_v60 = vrot.slane %v9938_v9, 2 }
 0x40f   : > { %v10353_v38 = vmax.f32 %v13600_v25, %v10339_v31  ;;  %v10358_v30 = vsel %vm1011_vm4, %v2470_v63, %v13602_v57  ;;  %v10378_v57 = vsel %vm979_vm6, %v3194_v4, %v3196_v22  ;;  %13608 = vst [vmem:[#allocation57_spill] sm:$0xff] %v10382_v41  ;;  %v2341_v22 = vrot.slane %v9959_v51, 2 }
 0x410   : > { %13604 = vst [vmem:[#allocation53_spill] sm:$0xff] %v10364_v8  ;;  %v10373_v25 = vsel %vm996_vm8, %v10358_v30, %v3193_v36  ;;  %13607 = vst [vmem:[#allocation56_spill] sm:$0xff] %v10378_v57  ;;  %7971 = vmatmul.mubr.msk.bf16.vlgmr.msra.gmra.mrb[72].mxu1 %vm1227_vm9, %v13609_v14  ;;  %v2343_v4 = vrot.slane %v9971_v34, 2  ;;  %v2403_v35 = vrot.slane %v9938_v9, 3  ;;  %v2405_v14 = vrot.slane %v9959_v51, 3 }
 0x411   : > { %13601 = vst [vmem:[#allocation52_spill] sm:$0xff] %v10353_v38  ;;  %13606 = vst [vmem:[#allocation55_spill] sm:$0xff] %v10373_v25  ;;  %7987 = vmatpush3.bf16.msra.mxu1 %v9948_v59  ;;  %7974 = vmatprep.mubr.msk.bf16.mxu1 %vm1227_vm9, %v2539_v50  ;;  %v2407_v36 = vrot.slane %v9971_v34, 3  ;;  %v10402_v52 = vsel %vm1018_vm7, %v2339_v60, %v2341_v22  ;;  %v13610_v57 = vrot.slane %v10007_v27, 3  ;;  %v3365_v63 = vrot.slane %v10028_v44, 7 }
 0x412   : > { %8004 = vmatprep.subr.bf16.mxu1 %v10002_v40  ;;  %v10405_v59 = vsel %vm1018_vm7, %v2341_v22, %v2343_v4  ;;  %v10409_v50 = vsel %vm1018_vm7, %v2343_v4, %v10035_v26  ;;  %v2406_v8 = vsel %vm979_vm6, %v2403_v35, %v2405_v14  ;;  %v3366_v25 = vrot.slane %v10065_v6, 7 }
 0x413   : > { %v2408_v38 = vsel %vm979_vm6, %v2405_v14, %v2407_v36  ;;  %v2482_v3 = vmax.f32 %v10402_v52, %v2406_v8  ;;  %v2410_v4 = vsel %vm979_vm6, %v2407_v36, %v13610_v57  ;;  %v3368_v14 = vrot.slane %v10083_v62, 7 }
 0x414   : > { %v2483_v22 = vmax.f32 %v10405_v59, %v2408_v38  ;;  %v2484_v41 = vmax.f32 %v10409_v50, %v2410_v4  ;;  %v3376_v33 = vrot.slane %v10176_v46, 4  ;;  %v3378_v8 = vrot.slane %v10194_v58, 4 }
 0x415   : > { %v10430_v38 = vrot.slane %v10241_v12, 4  ;;  %v13612_v57 = vpack.c.bf16 %v10054_v13, %v10000_v2  ;;  %v10438_v44 = vsel %vm1011_vm4, %v10035_v26, %v3365_v63  ;;  %v10441_v6 = vsel %vm945_vm3, %v3365_v63, %v3366_v25 }
 0x416   : > { %v10444_v62 = vsel %vm945_vm3, %v3366_v25, %v3368_v14  ;;  %v3370_v36 = vsel %vm945_vm3, %v3368_v14, %v10143_v17  ;;  %v13613_v4 = vpack.c.bf16 %v10110_v24, %v10099_v16  ;;  %v10457_v2 = vsel %vm840_vm0, %v3375_v1, %v3376_v33 }
 0x417   : > { %13611 = vst [vmem:[#allocation58_spill] sm:$0xff] %v10430_v38  ;;  %13614 = vst [vmem:[#allocation59_spill] sm:$0xff] %v10457_v2  ;;  %v10460_v25 = vsel %vm996_vm8, %v3370_v36, %v3375_v1  ;;  %v2446_v63 = vrot.slane %v9893_v43, 2  ;;  %v10466_v24 = vsel %vm840_vm0, %v3376_v33, %v3378_v8  ;;  %v10470_v16 = vsel %vm840_vm0, %v3378_v8, %v10430_v38 }
 0x418   : > { %7975 = vmatmul.mubr.msk.bf16.gmra.mrb[76].mxu1 %vm1227_vm9, %v13612_v57  ;;  %13615 = vst [vmem:[#allocation60_spill] sm:$0xff] %v10460_v25  ;;  %13616 = vst [vmem:[#allocation61_spill] sm:$0xff] %v10466_v24  ;;  %v10474_v57 = vsel %vm1018_vm7, %v2338_v32, %v2339_v60  ;;  %v13618_v36 = vrot.slane %v9921_v15, 1  ;;  %v2402_v17 = vrot.slane %v9921_v15, 3  ;;  %v2454_v8 = vrot.slane %v9938_v9, 4 }
 0x419   : > { %7978 = vmatprep.mubr.msk.bf16.mxu1 %vm1227_vm9, %v13613_v4  ;;  %13617 = vst [vmem:[#allocation62_spill] sm:$0xff] %v10470_v16  ;;  %v2456_v26 = vrot.slane %v9959_v51, 4  ;;  %v2448_v13 = vsel %vm1018_vm7, %v2446_v63, %v2338_v32  ;;  %v2458_v60 = vrot.slane %v9971_v34, 4  ;;  %v2465_v14 = vrot.slane %v10007_v27, 6 }
 0x41a   : > { %v2397_v4 = vsel %vm996_vm8, %v9909_v21, %v13618_v36  ;;  %v13619_v1 = vmax.f32 %v10155_v61, %v10235_v29  ;;  %v2404_v36 = vsel %vm979_vm6, %v2402_v17, %v2403_v35  ;;  %v13624_v61 = vrot.slane %v10007_v27, 4 }
 0x41b   : > { %v2480_v33 = vmax.f32 %v9893_v43, %v2397_v4  ;;  %v13622_v4 = vrot.slane %v9921_v15, 4  ;;  %v2457_v32 = vsel %vm840_vm0, %v2454_v8, %v2456_v26  ;;  %v2481_v16 = vmax.f32 %v10474_v57, %v2404_v36 }
 0x41c   : > { %v10493_v38 = vmax.f32 %v13619_v1, %v10358_v30  ;;  %v10503_v25 = vmax.f32 %v2482_v3, %v2457_v32  ;;  %v2459_v2 = vsel %vm840_vm0, %v2456_v26, %v2458_v60  ;;  %v2460_v29 = vsel %vm840_vm0, %v2458_v60, %v13624_v61  ;;  %v13647_v32 = vld [vmem:[#allocation37_spill] sm:$0xff]  ;;  %v13648_v61 = vld [vmem:[#allocation36_spill] sm:$0xff] }
 0x41d   : > { %v10495_v21 = vmax.f32 %v2480_v33, %v2448_v13  ;;  %v2455_v24 = vsel %vm840_vm0, %v13622_v4, %v2454_v8  ;;  %v13625_v30 = vpack.c.bf16 %v10166_v18, %v10170_v11  ;;  %v10513_v35 = vmax.f32 %v2483_v22, %v2459_v2 }
 0x41e   : > { %13620 = vst [vmem:[#allocation63_spill] sm:$0xff] %v10493_v38  ;;  %13623 = vst [vmem:[#allocation65_spill] sm:$0xff] %v10503_v25  ;;  %v10515_v13 = vmax.f32 %v2484_v41, %v2460_v29  ;;  %v2467_v17 = vsel %vm1011_vm4, %v2465_v14, %v10297_v7  ;;  %v13628_v3 = vmax.f32 %v10162_v53, %v10166_v18  ;;  %v13645_v1 = vrot.slane %v9877_v48, 2 }
 0x41f   : > { %13621 = vst [vmem:[#allocation64_spill] sm:$0xff] %v10495_v21  ;;  %13626 = vst [vmem:[#allocation66_spill] sm:$0xff] %v10513_v35  ;;  %v13630_v27 = vpack.c.bf16 %v10227_v54, %v10210_v56  ;;  %v10529_v11 = vmax.f32 %v2481_v16, %v2455_v24  ;;  %v13632_v41 = vmax.f32 %v10059_v42, %v10062_v28  ;;  %v2824_v28 = vrot.slane %v9921_v15, 7 }
 0x420   : > { %7979 = vmatmul.mubr.msk.bf16.gmra.mrb[80].mxu1 %vm1227_vm9, %v13625_v30  ;;  %13627 = vst [vmem:[#allocation67_spill] sm:$0xff] %v10515_v13  ;;  %v10523_v26 = vmax.f32 %v13628_v3, %v10136_v47  ;;  %v13634_v7 = vmax.f32 %v10206_v55, %v10210_v56  ;;  %v13636_v47 = vld [vmem:[#allocation41_spill] sm:$0xff]  ;;  %v13639_v24 = vmax.f32 %v10287_v37, %v10290_v20  ;;  %v13642_v55 = vld [vmem:[#allocation23_spill] sm:$0xff]  ;;  %v13644_v37 = vrot.slane %v9959_v51, 7  ;;  %v13651_v30 = vld [vmem:[#allocation40_spill] sm:$0xff] }
 0x421   : > { %7982 = vmatprep.mubr.msk.bf16.mxu1 %vm1227_vm9, %v13630_v27  ;;  %13631 = vst [vmem:[#allocation69_spill] sm:$0xff] %v10529_v11  ;;  %v10534_v22 = vmax.f32 %v13632_v41, %v2467_v17  ;;  %v13637_v53 = vmax.f32 %v13636_v47, %v10227_v54  ;;  %v2544_v42 = vpack.c.bf16 %v10290_v20, %v10290_v20  ;;  %v2825_v54 = vrot.slane %v9938_v9, 7  ;;  %v721_v20 = vld [vmem:[%s13353_s7 + $0x48] sm:$0xff]  ;;  %v13652_v17 = vld [vmem:[#allocation39_spill] sm:$0xff] }
 0x422   : > { %13629 = vst [vmem:[#allocation68_spill] sm:$0xff] %v10523_v26  ;;  %v10540_v2 = vmax.f32 %v13634_v7, %v10176_v46  ;;  %v10552_v16 = vmax.f32 %v13639_v24, %v10241_v12  ;;  %v13641_v46 = vld [vmem:[#allocation29_spill] sm:$0xff]  ;;  %v720_v12 = vld [vmem:[%s13353_s7 + $0x40] sm:$0xff]  ;;  %v10576_v33 = vsel %vm1018_vm7, %v13645_v1, %v2446_v63  ;;  %v13649_v29 = vpack.c.bf16 %v13647_v32, %v13648_v61 }
 0x423   : > { %13633 = vst [vmem:[#allocation70_spill] sm:$0xff] %v10534_v22  ;;  %v10546_v18 = vmax.f32 %v13637_v53, %v10194_v58  ;;  %v13643_v56 = vpack.c.bf16 %v13641_v46, %v13642_v55  ;;  %v2850_v58 = vsel %vm979_vm6, %v2446_v63, %v2824_v28  ;;  %v2828_v14 = vsel %vm945_vm3, %v2825_v54, %v13644_v37  ;;  %v13656_v41 = vld [vmem:[#allocation47_spill] sm:$0xff]  ;;  %v13673_v61 = vld [vmem:[#allocation33_spill] sm:$0xff] }
 0x424   : > { %13635 = vst [vmem:[#allocation71_spill] sm:$0xff] %v10540_v2  ;;  %13640 = vst [vmem:[#allocation72_spill] sm:$0xff] %v10552_v16  ;;  %v2854_v8 = vpack.c.bf16 %v2850_v58, %v10576_v33  ;;  %v2826_v60 = vsel %vm945_vm3, %v2824_v28, %v2825_v54  ;;  %v3216_v36 = vpack.c.bf16 %v721_v20, %v720_v12  ;;  %v3002_v47 = vrot.slane %v9893_v43, 3  ;;  %v13661_v58 = vld [vmem:[#allocation38_spill] sm:$0xff]  ;;  %v13664_v37 = vld [vmem:[#allocation43_spill] sm:$0xff] }
 0x425   : > { %13638 = vst [vmem:[#allocation41_spill] sm:$0xff] %v10546_v18  ;;  %13646 = vst [vmem:[#allocation29_spill] sm:$0xff] %v10576_v33  ;;  %v2855_v4 = vpack.c.bf16 %v2828_v14, %v2826_v60  ;;  %v13650_v63 = vpack.c.bf16 %v10113_v45, %v10103_v5  ;;  %v13653_v3 = vpack.c.bf16 %v13651_v30, %v13652_v17  ;;  %v13657_v5 = vld [vmem:[#allocation31_spill] sm:$0xff]  ;;  %v13658_v45 = vld [vmem:[#allocation24_spill] sm:$0xff]  ;;  %v13660_v28 = vrot.slane %v9877_v48, 3 }
 0x426   : > { %v2860_v7 = vpack.c.bf16 %v13656_v41, %v13656_v41  ;;  %v13659_v53 = vpack.c.bf16 %v13657_v5, %v13658_v45  ;;  %v3020_v24 = vsel %vm979_vm6, %v3002_v47, %v9921_v15  ;;  %v3025_v54 = vpack.c.bf16 %v9959_v51, %v9938_v9  ;;  %v13665_v14 = vld [vmem:[#allocation44_spill] sm:$0xff]  ;;  %v13667_v51 = vld [vmem:[#allocation50_spill] sm:$0xff] }
 0x427   : > { %v3003_v46 = vsel %vm979_vm6, %v13660_v28, %v3002_v47  ;;  %v13662_v12 = vpack.c.bf16 %v13661_v58, %v9971_v34  ;;  %v13663_v20 = vpack.c.bf16 %v10132_v19, %v10127_v39  ;;  %v13666_v1 = vpack.c.bf16 %v13664_v37, %v13665_v14  ;;  %v13678_v41 = vld [vmem:[#allocation46_spill] sm:$0xff] }
 0x428   : > { %7983 = vmatmul.mubr.msk.bf16.gmra.mrb[88].mxu1 %vm1227_vm9, %v2544_v42  ;;  %v723_v42 = vld [vmem:[%s13353_s7 + $0x58] sm:$0xff]  ;;  %v3024_v55 = vpack.c.bf16 %v3020_v24, %v3003_v46  ;;  %v13671_v39 = vrot.slane %v9938_v9, 1  ;;  %v13672_v19 = vrot.slane %v9921_v15, 1  ;;  %v13676_v30 = vrot.slane %v9921_v15, 4 }
 0x429   : > { %7988 = vmatprep.mubr.msk.bf16.mxu1 %vm1227_vm9, %v13643_v56  ;;  %v13681_v15 = vpack.c.bf16 %v10335_v10, %v10331_v23  ;;  %v13682_v5 = vpack.c.bf16 %v10347_v49, %v10339_v31  ;;  %v13683_v45 = vld [vmem:[#allocation54_spill] sm:$0xff]  ;;  %v13689_v46 = vld [vmem:[#allocation51_spill] sm:$0xff]  ;;  %v3357_v10 = vrot.slane %v9893_v43, 5  ;;  %v13696_v14 = vpack.c.bf16 %v10438_v44, %v10409_v50 }
 0x42a   : > { %v3180_v32 = vsel %vm996_vm8, %v13672_v19, %v13671_v39  ;;  %v3215_v23 = vpack.c.bf16 %v13689_v46, %v13689_v46  ;;  %v13690_v49 = vld [vmem:[#allocation35_spill] sm:$0xff]  ;;  %v13701_v44 = vld [vmem:[#allocation62_spill] sm:$0xff] }
 0x42b   : > { %v13691_v31 = vld [vmem:[#allocation27_spill] sm:$0xff] }
 0x430   : > { %7989 = vmatmul.mubr.msk.bf16.vlgmr.msra.gmra.mrb[72].mxu1 %vm1227_vm9, %v2854_v8  ;;  %v13668_v8 = vld [vmem:[#allocation48_spill] sm:$0xff] }
 0x431   : > { %8005 = vmatpush3.bf16.msra.mxu1 %v10002_v40  ;;  %7992 = vmatprep.mubr.msk.bf16.mxu1 %vm1227_vm9, %v2855_v4  ;;  %v13654_v40 = vld [vmem:[#allocation42_spill] sm:$0xff]  ;;  %v13669_v60 = vpack.c.bf16 %v13667_v51, %v13668_v8  ;;  %v3172_v4 = vrot.slane %v9893_v43, 4  ;;  %v13695_v43 = vpack.c.bf16 %v10405_v59, %v10402_v52  ;;  %v730_v52 = vld [vmem:[%s13355_s9 + $0x28] sm:$0xff]  ;;  %v13698_v59 = vld [vmem:[#allocation59_spill] sm:$0xff] }
 0x432   : > { %8022 = vmatprep.subr.bf16.mxu1 %v3216_v36  ;;  %v13655_v27 = vpack.c.bf16 %v10294_v0, %v13654_v40  ;;  %v722_v0 = vld [vmem:[%s13353_s7 + $0x50] sm:$0xff]  ;;  %v13677_v40 = vrot.slane %v9877_v48, 4  ;;  %v13699_v51 = vld [vmem:[#allocation60_spill] sm:$0xff] }
 0x433   : > { %v3398_v56 = vpack.c.bf16 %v723_v42, %v722_v0  ;;  %v3174_v17 = vsel %vm840_vm0, %v3172_v4, %v13676_v30  ;;  %v13686_v0 = vld [vmem:[#allocation57_spill] sm:$0xff]  ;;  %v13687_v42 = vld [vmem:[#allocation56_spill] sm:$0xff]  ;;  %v13700_v8 = vpack.c.bf16 %v13698_v59, %v13699_v51 }
 0x434   : > { %v13688_v28 = vpack.c.bf16 %v13686_v0, %v13687_v42  ;;  %v13706_v51 = vld [vmem:[#allocation21_spill] sm:$0xff] }
 0x438   : > { %7993 = vmatmul.mubr.msk.bf16.gmra.mrb[76].mxu1 %vm1227_vm9, %v13649_v29  ;;  %v13674_v29 = vld [vmem:[#allocation25_spill] sm:$0xff] }
 0x439   : > { %7996 = vmatprep.mubr.msk.bf16.mxu1 %vm1227_vm9, %v13650_v63  ;;  %v13675_v63 = vpack.c.bf16 %v13673_v61, %v13674_v29 }
 0x440   : > { %7997 = vmatmul.mubr.msk.bf16.gmra.mrb[80].mxu1 %vm1227_vm9, %v13653_v3  ;;  %v3205_v3 = vsel %vm979_vm6, %v3174_v17, %v3180_v32 }
 0x441   : > { %8000 = vmatprep.mubr.msk.bf16.mxu1 %vm1227_vm9, %v13655_v27  ;;  %v3173_v27 = vsel %vm840_vm0, %v13677_v40, %v3172_v4  ;;  %v732_v4 = vld [vmem:[%s13355_s9 + $0x38] sm:$0xff] }
 0x442   : > { %v3209_v9 = vpack.c.bf16 %v3205_v3, %v3173_v27 }
 0x448   : > { %8001 = vmatmul.mubr.msk.bf16.gmra.mrb[92].mxu1 %vm1227_vm9, %v2860_v7  ;;  %v13679_v7 = vld [vmem:[#allocation45_spill] sm:$0xff] }
 0x449   : > { %8006 = vmatprep.mubr.msk.bf16.mxu1 %vm1227_vm9, %v13659_v53  ;;  %v13680_v47 = vpack.c.bf16 %v13678_v41, %v13679_v7  ;;  %v13684_v53 = vld [vmem:[#allocation55_spill] sm:$0xff]  ;;  %v726_v7 = vld [vmem:[%s13355_s9 + $0x8] sm:$0xff] }
 0x44a   : > { %v13685_v24 = vpack.c.bf16 %v13683_v45, %v13684_v53  ;;  %v725_v41 = vld [vmem:[%s13355_s9] sm:$0xff] }
 0x450   : > { %8007 = vmatmul.mubr.msk.bf16.vlgmr.msra.gmra.mrb[72].mxu1 %vm1227_vm9, %v3024_v55  ;;  %v13692_v55 = vpack.c.bf16 %v13690_v49, %v13691_v31 }
 0x451   : > { %8023 = vmatpush3.bf16.msra.mxu1 %v3216_v36  ;;  %8010 = vmatprep.mubr.msk.bf16.mxu1 %vm1227_vm9, %v3025_v54  ;;  %v13670_v36 = vld [vmem:[#allocation49_spill] sm:$0xff] }
 0x452   : > { %8040 = vmatprep.subr.bf16.mxu1 %v3398_v56  ;;  %v3030_v34 = vpack.c.bf16 %v13670_v36, %v13670_v36 }
 0x458   : > { %8011 = vmatmul.mubr.msk.bf16.gmra.mrb[76].mxu1 %vm1227_vm9, %v13662_v12  ;;  %v13694_v12 = vrot.slane %v9877_v48, 5 }
 0x459   : > { %8014 = vmatprep.mubr.msk.bf16.mxu1 %vm1227_vm9, %v13663_v20 }
 0x45a   : > { %v3358_v20 = vsel %vm962_vm5, %v13694_v12, %v3357_v10 }
 0x460   : > { %8015 = vmatmul.mubr.msk.bf16.gmra.mrb[80].mxu1 %vm1227_vm9, %v13666_v1  ;;  %v729_v1 = vld [vmem:[%s13355_s9 + $0x20] sm:$0xff] }
 0x461   : > { %8018 = vmatprep.mubr.msk.bf16.mxu1 %vm1227_vm9, %v13669_v60  ;;  %v3921_v50 = vpack.c.bf16 %v730_v52, %v729_v1  ;;  %v13702_v60 = vld [vmem:[#allocation61_spill] sm:$0xff] }
 0x462   : > { %v13703_v36 = vpack.c.bf16 %v13701_v44, %v13702_v60 }
 0x463   : > { %8058 = vmatprep.subr.bf16.mxu0 %v3921_v50 }
 0x464   : > { %8059 = vmatpush3.bf16.msra.mxu0 %v3921_v50 }
 0x468   : > { %8019 = vmatmul.mubr.msk.bf16.gmra.mrb[96].mxu1 %vm1227_vm9, %v3030_v34  ;;  %v731_v34 = vld [vmem:[%s13355_s9 + $0x30] sm:$0xff] }
 0x469   : > { %8024 = vmatprep.mubr.msk.bf16.mxu1 %vm1227_vm9, %v13675_v63  ;;  %v3922_v39 = vpack.c.bf16 %v732_v4, %v731_v34 }
 0x46b   : > { %8060 = vmatprep.subr.bf16.mxu0 %v3922_v39 }
 0x46c   : > { %8061 = vmatpush3.bf16.msra.mxu0 %v3922_v39 }
 0x470   : > { %8025 = vmatmul.mubr.msk.bf16.vlgmr.msra.gmra.mrb[72].mxu1 %vm1227_vm9, %v3209_v9 }
 0x471   : > { %8041 = vmatpush3.bf16.msra.mxu1 %v3398_v56  ;;  %8028 = vmatprep.mubr.msk.bf16.mxu1 %vm1227_vm9, %v13680_v47  ;;  %v13693_v56 = vld [vmem:[#allocation34_spill] sm:$0xff]  ;;  %v10736_v47 = vpack.c.bf16 %v726_v7, %v725_v41  ;;  %v734_v41 = vld [vmem:[%s13355_s9 + $0x48] sm:$0xff] }
 0x472   : > { %v3359_v54 = vsel %vm962_vm5, %v3357_v10, %v13693_v56 }
 0x473   : > { %v3387_v58 = vsel %vm979_vm6, %v3359_v54, %v10474_v57  ;;  %v13697_v57 = vpack.c.bf16 %v10444_v62, %v10441_v6  ;;  %v13704_v6 = vld [vmem:[#allocation58_spill] sm:$0xff]  ;;  %8074 = vmatprep.subr.bf16.mxu0 %v10736_v47 }
 0x474   : > { %v3391_v37 = vpack.c.bf16 %v3387_v58, %v3358_v20  ;;  %v3397_v62 = vpack.c.bf16 %v13704_v6, %v13704_v6 }
 0x478   : > { %8029 = vmatmul.mubr.msk.bf16.gmra.mrb[76].mxu1 %vm1227_vm9, %v13681_v15 }
 0x479   : > { %8032 = vmatprep.mubr.msk.bf16.mxu1 %vm1227_vm9, %v13682_v5 }
 0x480   : > { %8033 = vmatmul.mubr.msk.bf16.gmra.mrb[80].mxu1 %vm1227_vm9, %v13685_v24 }
 0x481   : > { %8036 = vmatprep.mubr.msk.bf16.mxu1 %vm1227_vm9, %v13688_v28 }
 0x488   : > { %8037 = vmatmul.mubr.msk.bf16.gmra.mrb[100].mxu1 %vm1227_vm9, %v3215_v23 }
 0x489   : > { %8042 = vmatprep.mubr.msk.bf16.mxu1 %vm1227_vm9, %v13692_v55 }
 0x490   : > { %8043 = vmatmul.mubr.msk.bf16.vlgmr.msra.gmra.mrb[72].mxu1 %vm1227_vm9, %v3391_v37  ;;  %v724_v37 = vld [vmem:[%s13354_s8] sm:$0x7] }
 0x491   : > { %8046 = vmatprep.mubr.msk.bf16.mxu1 %vm1227_vm9, %v13695_v43 }
 0x498   : > { %8047 = vmatmul.mubr.msk.bf16.gmra.mrb[76].mxu1 %vm1227_vm9, %v13696_v14 }
 0x499   : > { %8050 = vmatprep.mubr.msk.bf16.mxu1 %vm1227_vm9, %v13697_v57  ;;  %v13705_v57 = vld [vmem:[#allocation20_spill] sm:$0xff] }
 0x49a   : > { %v10749_v1 = vrot.slane %v724_v37, %v13705_v57 }
 0x4a0   : > { %8051 = vmatmul.mubr.msk.bf16.gmra.mrb[80].mxu1 %vm1227_vm9, %v13700_v8  ;;  %v10753_v8 = vrot.slane %v724_v37, %v13706_v51 }
 0x4a1   : > { %8054 = vmatprep.mubr.msk.bf16.mxu1 %vm1227_vm9, %v13703_v36 }
 0x4a8   : > { %8055 = vmatmul.mubr.msk.bf16.gmra.mrb[104].mxu1 %vm1227_vm9, %v3397_v62 }
 0x4da   : > { %v7966_v19 = vpop.f32.mrb[84].mxu1 }
 0x4db   : > { %v2689_v32 = vpop.f32.mrb[85].mxu1 }
 0x4dc   : > { %v7967_v61 = vpop.f32.mrb[86].mxu1 }
 0x4dd   : > { %v2692_v29 = vpop.f32.mrb[87].mxu1 }
 0x4fb   : > { %v7984_v63 = vpop.f32.mrb[88].mxu1 }
 0x4fc   : > { %v2818_v30 = vadd.f32 %v7984_v63, %v7966_v19  ;;  %v2809_v17 = vpop.f32.mrb[89].mxu1  ;;  %v13707_v19 = vld [vmem:[#allocation22_spill] sm:$0xff] }
 0x4fd   : > { %v2810_v3 = vadd.f32 %v2809_v17, %v2689_v32  ;;  %v7985_v40 = vpop.f32.mrb[90].mxu1  ;;  %v10760_v32 = vrot.slane %v724_v37, %v13707_v19  ;;  %v727_v17 = vld [vmem:[%s13355_s9 + $0x10] sm:$0xff] }
 0x4fe   : > { %v2812_v27 = vpop.f32.mrb[91].mxu1 }
 0x4ff   : > { %v2813_v9 = vadd.f32 %v2812_v27, %v2692_v29  ;;  %v728_v27 = vld [vmem:[%s13355_s9 + $0x18] sm:$0xff] }
 0x51b   : > { %v8002_v15 = vpop.f32.mrb[92].mxu1 }
 0x51c   : > { %v2996_v5 = vadd.f32 %v8002_v15, %v2818_v30  ;;  %v2968_v45 = vpop.f32.mrb[93].mxu1 }
 0x51d   : > { %v2994_v53 = vadd.f32 %v2968_v45, %v2810_v3  ;;  %v8003_v24 = vpop.f32.mrb[94].mxu1 }
 0x51e   : > { %v2971_v0 = vpop.f32.mrb[95].mxu1 }
 0x51f   : > { %v2995_v42 = vadd.f32 %v2971_v0, %v2813_v9  ;;  %v733_v9 = vld [vmem:[%s13355_s9 + $0x40] sm:$0xff] }
 0x53b   : > { %v8020_v28 = vpop.f32.mrb[96].mxu1 }
 0x53c   : > { %v3166_v46 = vadd.f32 %v8020_v28, %v2996_v5  ;;  %v3138_v23 = vpop.f32.mrb[97].mxu1 }
 0x53d   : > { %v3164_v10 = vadd.f32 %v3138_v23, %v2994_v53  ;;  %v8021_v49 = vpop.f32.mrb[98].mxu1  ;;  %v10791_v23 = vpack.c.bf16 %v728_v27, %v727_v17 }
 0x53e   : > { %v3141_v31 = vpop.f32.mrb[99].mxu1 }
 0x53f   : > { %v3165_v55 = vadd.f32 %v3141_v31, %v2995_v42 }
 0x55b   : > { %v8038_v56 = vpop.f32.mrb[100].mxu1 }
 0x55c   : > { %v10739_v54 = vadd.f32 %v8038_v56, %v3166_v46  ;;  %v3323_v58 = vpop.f32.mrb[101].mxu1 }
 0x55d   : > { %v10741_v12 = vadd.f32 %v3323_v58, %v3164_v10  ;;  %v8039_v20 = vpop.f32.mrb[102].mxu1  ;;  %v10793_v10 = vpack.c.bf16 %v734_v41, %v733_v9 }
 0x55e   : > { %v3326_v43 = vpop.f32.mrb[103].mxu1 }
 0x55f   : > { %v10746_v14 = vadd.f32 %v3326_v43, %v3165_v55 }
 0x563   : > { %v8044_v52 = vpop.f32.mrb[72].mxu1 }
 0x564   : > { %v3540_v59 = vadd.f32 %v8044_v52, %v10749_v1  ;;  %v3457_v50 = vpop.f32.mrb[73].mxu1 }
 0x565   : > { %v3538_v44 = vadd.f32 %v10749_v1, %v3457_v50  ;;  %v8045_v60 = vpop.f32.mrb[74].mxu1 }
 0x566   : > { %v3555_v36 = vmax.f32 %v3540_v59, 0.0  ;;  %v3541_v6 = vadd.f32 %v8045_v60, %v10749_v1  ;;  %v3460_v62 = vpop.f32.mrb[75].mxu1 }
 0x567   : > { %v3553_v34 = vmax.f32 %v3538_v44, 0.0  ;;  %v3539_v4 = vadd.f32 %v10749_v1, %v3460_v62 }
 0x568   : > { %v3574_v39 = vmul.f32 %v10753_v8, %v3555_v36  ;;  %v3556_v61 = vmax.f32 %v3541_v6, 0.0 }
 0x569   : > { %v3572_v29 = vmul.f32 %v10753_v8, %v3553_v34  ;;  %v3554_v63 = vmax.f32 %v3539_v4, 0.0 }
 0x56a   : > { %v3575_v30 = vmul.f32 %v10753_v8, %v3556_v61  ;;  %v10778_v7 = vadd.f32 %v10760_v32, %v3574_v39 }
 0x56b   : > { %v3573_v3 = vmul.f32 %v10753_v8, %v3554_v63  ;;  %v8048_v40 = vpop.f32.mrb[76].mxu1  ;;  %v10782_v45 = vadd.f32 %v10760_v32, %v3572_v29 }
 0x56c   : > { %v3544_v15 = vadd.f32 %v8048_v40, %v10749_v1  ;;  %v3473_v5 = vpop.f32.mrb[77].mxu1  ;;  %v10789_v42 = vadd.f32 %v10760_v32, %v3575_v30  ;;  %v10799_v58 = vrot.slane %v10778_v7, 1  ;;  %v10803_v37 = vrot.slane %v10778_v7, 2 }
 0x56d   : > { %13708 = vst [vmem:[#allocation23_spill] sm:$0xff] %v10782_v45  ;;  %v10785_v53 = vadd.f32 %v10760_v32, %v3573_v3  ;;  %v3542_v24 = vadd.f32 %v10749_v1, %v3473_v5  ;;  %v8049_v0 = vpop.f32.mrb[78].mxu1  ;;  %v3650_v50 = vrot.slane %v10782_v45, 1  ;;  %v3680_v44 = vrot.slane %v10782_v45, 2 }
 0x56e   : > { %13710 = vst [vmem:[#allocation36_spill] sm:$0xff] %v10789_v42  ;;  %v3559_v28 = vmax.f32 %v3544_v15, 0.0  ;;  %v3476_v46 = vpop.f32.mrb[79].mxu1  ;;  %v3545_v31 = vadd.f32 %v8049_v0, %v10749_v1  ;;  %v13438_v36 = vrot.slane %v10789_v42, 1  ;;  %v3721_v6 = vrot.slane %v10782_v45, 3 }
 0x56f   : > { %13709 = vst [vmem:[#allocation37_spill] sm:$0xff] %v10785_v53  ;;  %v3557_v49 = vmax.f32 %v3542_v24, 0.0  ;;  %v3543_v55 = vadd.f32 %v10749_v1, %v3476_v46  ;;  %v3651_v56 = vrot.slane %v10785_v53, 1  ;;  %v3681_v20 = vrot.slane %v10785_v53, 2 }
 0x570   : > { %v3722_v43 = vrot.slane %v10785_v53, 3  ;;  %v3578_v60 = vmul.f32 %v10753_v8, %v3559_v28  ;;  %v10813_v62 = vrot.slane %v10778_v7, 3  ;;  %v3560_v4 = vmax.f32 %v3545_v31, 0.0 }
 0x571   : > { %v3576_v52 = vmul.f32 %v10753_v8, %v3557_v49  ;;  %v3558_v59 = vmax.f32 %v3543_v55, 0.0  ;;  %v3652_v29 = vsel %vm996_vm8, %v3650_v50, %v3651_v56  ;;  %v3654_v30 = vsel %vm996_vm8, %v3651_v56, %v10799_v58 }
 0x572   : > { %v10824_v17 = vsel %vm1018_vm7, %v3681_v20, %v10803_v37  ;;  %v10828_v3 = vsel %vm979_vm6, %v3722_v43, %v10813_v62  ;;  %v3752_v40 = vrot.slane %v10785_v53, 4  ;;  %v13436_v9 = vrot.slane %v10778_v7, 4 }
 0x573   : > { %v10816_v34 = vadd.f32 %v10760_v32, %v3576_v52  ;;  %v3577_v39 = vmul.f32 %v10753_v8, %v3558_v59  ;;  %v8052_v61 = vpop.f32.mrb[80].mxu1  ;;  %v3792_v15 = vrot.slane %v10785_v53, 5  ;;  %v10839_v0 = vsel %vm1018_vm7, %v3680_v44, %v3681_v20 }
 0x574   : > { %v3489_v63 = vpop.f32.mrb[81].mxu1  ;;  %v3548_v27 = vadd.f32 %v8052_v61, %v10749_v1  ;;  %v10842_v28 = vsel %vm979_vm6, %v3721_v6, %v3722_v43  ;;  %v13437_v46 = vrot.slane %v10778_v7, 5  ;;  %v10849_v55 = vsel %vm840_vm0, %v3752_v40, %v13436_v9 }
 0x575   : > { %v3761_v41 = vrot.slane %v10816_v34, 1  ;;  %v8053_v5 = vpop.f32.mrb[82].mxu1  ;;  %v10836_v24 = vadd.f32 %v10760_v32, %v3577_v39  ;;  %v3546_v31 = vadd.f32 %v10749_v1, %v3489_v63  ;;  %13711 = vst [vmem:[#allocation40_spill] sm:$0xff] %v10849_v55  ;;  %v3829_v56 = vmax.f32 %v10785_v53, %v3654_v30 }
 0x576   : > { %v3492_v49 = vpop.f32.mrb[83].mxu1  ;;  %v3841_v52 = vmax.f32 %v10824_v17, %v10828_v3  ;;  %v10855_v20 = vadd.f32 %v10760_v32, %v3578_v60  ;;  %v10860_v43 = vsel %vm962_vm5, %v3792_v15, %v13437_v46  ;;  %v3915_v50 = vpack.c.bf16 %v3654_v30, %v3652_v29 }
 0x577   : > { %13712 = vst [vmem:[#allocation39_spill] sm:$0xff] %v10860_v43  ;;  %v3900_v59 = vsel %vm996_vm8, %v13438_v36, %v3761_v41  ;;  %v3579_v44 = vmul.f32 %v10753_v8, %v3560_v4  ;;  %v3563_v6 = vmax.f32 %v3548_v27, 0.0  ;;  %v3828_v39 = vmax.f32 %v10782_v45, %v3652_v29 }
 0x578   : > { %v3865_v61 = vmax.f32 %v3829_v56, %v3841_v52  ;;  %v3840_v60 = vmax.f32 %v10839_v0, %v10842_v28  ;;  %v3853_v63 = vmax.f32 %v10849_v55, %v10860_v43  ;;  %8062 = vmatprep.mubr.msk.bf16.mxu0 %vm3923_vm10, %v3915_v50  ;;  %v3549_v9 = vadd.f32 %v8053_v5, %v10749_v1 }
 0x579   : > { %v3547_v46 = vadd.f32 %v10749_v1, %v3492_v49  ;;  %v3561_v36 = vmax.f32 %v3546_v31, 0.0  ;;  %v3912_v4 = vsel %vm979_vm6, %v10799_v58, %v3900_v59  ;;  %v13440_v29 = vrot.slane %v10836_v24, 1 }
 0x57a   : > { %v3751_v27 = vrot.slane %v10782_v45, 4  ;;  %v10878_v56 = vmax.f32 %v3865_v61, %v3853_v63  ;;  %v3564_v52 = vmax.f32 %v3549_v9, 0.0  ;;  %v3791_v26 = vrot.slane %v10782_v45, 5 }
 0x57b   : > { %v8056_v30 = vpop.f32.mrb[104].mxu1  ;;  %v3562_v18 = vmax.f32 %v3547_v46, 0.0  ;;  %v10885_v49 = vsel %vm996_vm8, %v3761_v41, %v13440_v29  ;;  %v10892_v61 = vadd.f32 %v10760_v32, %v3579_v44  ;;  %v3864_v9 = vmax.f32 %v3828_v39, %v3840_v60 }
 0x57c   : > { %v3533_v16 = vadd.f32 %v8056_v30, %v10739_v54  ;;  %v3505_v50 = vpop.f32.mrb[105].mxu1  ;;  %v10888_v59 = vsel %vm840_vm0, %v3751_v27, %v3752_v40  ;;  %v3916_v46 = vpack.c.bf16 %v10885_v49, %v3912_v4  ;;  %v10897_v63 = vmul.f32 %v10753_v8, %v3563_v6 }
 0x57d   : > { %v3531_v5 = vadd.f32 %v3505_v50, %v10741_v12  ;;  %v8057_v31 = vpop.f32.mrb[106].mxu1  ;;  %13713 = vst [vmem:[#allocation42_spill] sm:$0xff] %v10888_v59  ;;  %v10902_v40 = vsel %vm962_vm5, %v3791_v26, %v3792_v15  ;;  %v3580_v27 = vmul.f32 %v10753_v8, %v3561_v36  ;;  %v5381_v39 = vrot.slane %v10878_v56, 5 }
 0x57e   : > { %v3552_v54 = vadd.f32 %v10749_v1, %v3533_v16  ;;  %v3508_v12 = vpop.f32.mrb[107].mxu1  ;;  %13714 = vst [vmem:[#allocation47_spill] sm:$0xff] %v10902_v40  ;;  %8063 = vmatmul.mubr.msk.bf16.vlgmr.msra.gmra.mrb[88].mxu0 %vm3923_vm10, %v3916_v46  ;;  %v3852_v16 = vmax.f32 %v10888_v59, %v10902_v40  ;;  %v3583_v6 = vmul.f32 %v10753_v8, %v3564_v52  ;;  %v13441_v26 = vrot.slane %v10789_v42, 5 }
 0x57f   : > { %v3550_v41 = vadd.f32 %v10749_v1, %v3531_v5  ;;  %v3532_v30 = vadd.f32 %v3508_v12, %v10746_v14  ;;  %v3581_v60 = vmul.f32 %v10753_v8, %v3562_v18  ;;  %8075 = vmatpush3.bf16.msra.mxu0 %v10736_v47  ;;  %v13439_v15 = vrot.slane %v10789_v42, 2 }
 0x580   : > { %v3567_v44 = vmax.f32 %v3552_v54, 0.0  ;;  %v3876_v36 = vmax.f32 %v3864_v9, %v3852_v16  ;;  %v3726_v50 = vrot.slane %v10789_v42, 3  ;;  %8076 = vmatprep.subr.bf16.mxu0 %v10791_v23  ;;  %v13715_v52 = vrot.slane %v10789_v42, 1 }
 0x581   : > { %v3551_v4 = vadd.f32 %v10749_v1, %v3532_v30  ;;  %v3565_v5 = vmax.f32 %v3550_v41, 0.0  ;;  %v3756_v47 = vrot.slane %v10789_v42, 4  ;;  %v5384_v12 = vrot.slane %v10878_v56, 4 }
 0x582   : > { %v3586_v14 = vmul.f32 %v10753_v8, %v3567_v44  ;;  %v3656_v18 = vsel %vm996_vm8, %v10799_v58, %v13715_v52  ;;  %v5375_v54 = vrot.slane %v3876_v36, 7  ;;  %v5377_v9 = vrot.slane %v3876_v36, 6 }
 0x583   : > { %v3566_v31 = vmax.f32 %v3551_v4, 0.0  ;;  %v5380_v46 = vrot.slane %v3876_v36, 5  ;;  %v3686_v41 = vsel %vm1018_vm7, %v10803_v37, %v13439_v15  ;;  %v3727_v30 = vsel %vm979_vm6, %v10813_v62, %v3726_v50  ;;  %8077 = vmatpush3.bf16.msra.mxu0 %v10791_v23 }
 0x584   : > { %v10924_v1 = vadd.f32 %v10760_v32, %v3586_v14  ;;  %v13717_v58 = vrot.slane %v10778_v7, 5  ;;  %v5416_v4 = vsel %vm945_vm3, %v3876_v36, %v5375_v54  ;;  %v13718_v14 = vrot.slane %v10778_v7, 4  ;;  %8090 = vmatprep.subr.bf16.mxu0 %v10793_v10 }
 0x585   : > { %v5382_v16 = vsel %vm962_vm5, %v5380_v46, %v5381_v39  ;;  %v3830_v15 = vmax.f32 %v10778_v7, %v3656_v18  ;;  %v3584_v50 = vmul.f32 %v10753_v8, %v3565_v5  ;;  %v5417_v29 = vsel %vm979_vm6, %v5416_v4, %v5377_v9 }
 0x586   : > { %13716 = vst [vmem:[#allocation31_spill] sm:$0xff] %v10924_v1  ;;  %v3796_v44 = vsel %vm962_vm5, %v13717_v58, %v13441_v26  ;;  %v10944_v52 = vsel %vm840_vm0, %v13718_v14, %v3756_v47  ;;  %v5418_v58 = vsel %vm945_vm3, %v5377_v9, %v5382_v16  ;;  %v3842_v23 = vmax.f32 %v3686_v41, %v3727_v30 }
 0x587   : > { %13719 = vst [vmem:[#allocation24_spill] sm:$0xff] %v10944_v52  ;;  %v3585_v39 = vmul.f32 %v10753_v8, %v3566_v31  ;;  %v5419_v36 = vsel %vm979_vm6, %v5418_v58, %v5384_v12  ;;  %v3854_v54 = vmax.f32 %v10944_v52, %v3796_v44  ;;  %v5386_v47 = vrot.slane %v10878_v56, 3 }
 0x588   : > { %v8492_v46 = vpack.i.bf16 %v5419_v36, %v5417_v29  ;;  %v3866_v14 = vmax.f32 %v3830_v15, %v3842_v23  ;;  %v3611_v18 = vrot.slane %v10816_v34, 5  ;;  %v13443_v26 = vrot.slane %v10836_v24, 5 }
 0x589   : > { %v10958_v5 = vadd.f32 %v10760_v32, %v3580_v27  ;;  %v10961_v9 = vadd.f32 %v10760_v32, %v3583_v6  ;;  %v5389_v8 = vrot.slane %v10878_v56, 2  ;;  %v10965_v31 = vrot.slane %v10816_v34, 6 }
 0x58a   : > { %8493 = vrot.lane.b32.xlu0 %v8492_v46, %s8867_s30  ;;  %v3878_v29 = vmax.f32 %v3866_v14, %v3854_v54  ;;  %v10971_v15 = vsel %vm962_vm5, %v3611_v18, %v13443_v26  ;;  %v10974_v27 = vsel %vm979_vm6, %v3796_v44, %v3611_v18  ;;  %v13442_v6 = vrot.slane %v10836_v24, 6 }
 0x58b   : > { %13720 = vst [vmem:[#allocation38_spill] sm:$0xff] %v10958_v5  ;;  %13721 = vst [vmem:[#allocation43_spill] sm:$0xff] %v10971_v15  ;;  %v10978_v41 = vadd.f32 %v10760_v32, %v3581_v60  ;;  %v10981_v56 = vadd.f32 %v10760_v32, %v3584_v50  ;;  %v10984_v30 = vadd.f32 %v10760_v32, %v3585_v39  ;;  %v10996_v60 = vrot.slane %v10816_v34, 7 }
 0x58c   : > { %13722 = vst [vmem:[#allocation44_spill] sm:$0xff] %v10974_v27  ;;  %v5390_v4 = vrot.slane %v3878_v29, 2  ;;  %v5394_v58 = vrot.slane %v3878_v29, 1  ;;  %v5420_v23 = vsel %vm945_vm3, %v5384_v12, %v5386_v47  ;;  %v10993_v44 = vsel %vm1011_vm4, %v10965_v31, %v13442_v6 }
 0x58d   : > { %13723 = vst [vmem:[#allocation50_spill] sm:$0xff] %v10978_v41  ;;  %v13444_v50 = vrot.slane %v10836_v24, 7  ;;  %v11000_v39 = vrot.slane %v10855_v20, 1  ;;  %v3801_v36 = vrot.slane %v10836_v24, 2  ;;  %v13445_v47 = vrot.slane %v10892_v61, 1 }
 0x58e   : > { %v5391_v54 = vsel %vm1018_vm7, %v5389_v8, %v5390_v4  ;;  %v5422_v12 = vsel %vm945_vm3, %v5390_v4, %v5394_v58  ;;  %v3832_v46 = vmax.f32 %v10971_v15, %v10993_v44  ;;  %v11017_v26 = vrot.slane %v10855_v20, 2 }
 0x58f   : > { %13724 = vst [vmem:[#allocation48_spill] sm:$0xff] %v11000_v39  ;;  %v5421_v14 = vsel %vm979_vm6, %v5420_v23, %v5391_v54  ;;  %v5423_v16 = vsel %vm979_vm6, %v5422_v12, %v3878_v29  ;;  %v11014_v6 = vsel %vm945_vm3, %v10996_v60, %v13444_v50  ;;  %v13726_v4 = vrot.slane %v10836_v24, 1 }
 0x590   : > { %13725 = vst [vmem:[#allocation49_spill] sm:$0xff] %v11014_v6  ;;  %v8497_v8 = vpack.i.bf16 %v5423_v16, %v5421_v14  ;;  %v3844_v23 = vmax.f32 %v11014_v6, %v10836_v24  ;;  %v3903_v29 = vrot.slane %v10958_v5, 1  ;;  %v11028_v54 = vsel %vm1018_vm7, %v3801_v36, %v11017_v26 }
 0x591   : > { %v3765_v58 = vsel %vm996_vm8, %v13726_v4, %v11000_v39  ;;  %v3711_v12 = vrot.slane %v10961_v9, 1  ;;  %v3905_v50 = vrot.slane %v10978_v41, 1  ;;  %v13727_v16 = vrot.slane %v10789_v42, 5 }
 0x592   : > { %8498 = vrot.lane.b32.xlu0 %v8497_v8, %s8867_s30  ;;  %v3868_v4 = vmax.f32 %v3832_v46, %v3844_v23  ;;  %v3904_v2 = vsel %vm996_vm8, %v13445_v47, %v3903_v29  ;;  %v13447_v38 = vrot.slane %v10789_v42, 6  ;;  %v13446_v22 = vrot.slane %v10789_v42, 7 }
 0x593   : > { %v3612_v14 = vsel %vm962_vm5, %v13727_v16, %v3611_v18  ;;  %v3913_v35 = vsel %vm1011_vm4, %v11000_v39, %v3904_v2  ;;  %v3906_v13 = vsel %vm996_vm8, %v3903_v29, %v3905_v50  ;;  %v3914_v11 = vsel %vm996_vm8, %v3905_v50, %v3711_v12 }
 0x594   : > { %v13448_v18 = vrot.slane %v10816_v34, 2  ;;  %v3856_v8 = vmax.f32 %v3765_v58, %v11028_v54  ;;  %v3917_v46 = vpack.c.bf16 %v3913_v35, %v3765_v58  ;;  %v3918_v23 = vpack.c.bf16 %v3914_v11, %v3906_v13 }
 0x595   : > { %v3662_v16 = vsel %vm1011_vm4, %v13447_v38, %v10965_v31  ;;  %v3692_v2 = vsel %vm945_vm3, %v13446_v22, %v10996_v60  ;;  %v3712_v47 = vrot.slane %v10981_v56, 1  ;;  %v11063_v35 = vadd.f32 %v10760_v32, %v10897_v63 }
 0x596   : > { %v11058_v50 = vsel %vm1018_vm7, %v13448_v18, %v3801_v36  ;;  %v3831_v29 = vmax.f32 %v3612_v14, %v3662_v16  ;;  %v11065_v13 = vmax.f32 %v3868_v4, %v3856_v8  ;;  %8066 = vmatprep.mubr.msk.bf16.mxu0 %vm3923_vm10, %v3917_v46  ;;  %v3843_v11 = vmax.f32 %v3692_v2, %v10816_v34  ;;  %v736_v4 = vld [vmem:[%s13355_s9 + $0x58] sm:$0xff] }
 0x597   : > { %v3855_v58 = vmax.f32 %v10885_v49, %v11058_v50  ;;  %8067 = vmatmul.mubr.msk.bf16.gmra.mrb[92].mxu0 %vm3923_vm10, %v3918_v23  ;;  %v3713_v36 = vsel %vm996_vm8, %v3711_v12, %v3712_v47  ;;  %v11074_v14 = vrot.slane %v10984_v30, 1  ;;  %v11079_v32 = vsel %vm996_vm8, %v10978_v41, %v11063_v35  ;;  %v735_v12 = vld [vmem:[%s13355_s9 + $0x50] sm:$0xff] }
 0x598   : > { %13728 = vst [vmem:[#allocation33_spill] sm:$0xff] %v11065_v13  ;;  %v3867_v16 = vmax.f32 %v3831_v29, %v3843_v11  ;;  %v5403_v46 = vrot.slane %v11065_v13, 5  ;;  %v11098_v22 = vpack.c.bf16 %v736_v4, %v735_v12  ;;  %v3891_v25 = vpack.c.bf16 %v10785_v53, %v10782_v45 }
 0x599   : > { %v11083_v63 = vsel %vm996_vm8, %v3712_v47, %v11074_v14  ;;  %v3920_v18 = vpack.c.bf16 %v11074_v14, %v11074_v14  ;;  %v3741_v21 = vrot.slane %v10961_v9, 2  ;;  %v11134_v33 = vrot.slane %v10984_v30, 2 }
 0x59a   : > { %v3879_v8 = vmax.f32 %v3867_v16, %v3855_v58  ;;  %v3919_v23 = vpack.c.bf16 %v11083_v63, %v3713_v36  ;;  %v3625_v58 = vrot.slane %v10958_v5, 2  ;;  %v3627_v16 = vrot.slane %v10978_v41, 2 }
 0x59b   : > { %v3671_v19 = vrot.slane %v10958_v5, 3  ;;  %v3896_v53 = vpack.c.bf16 %v10984_v30, %v10984_v30  ;;  %v13735_v59 = vpack.c.bf16 %v10981_v56, %v10961_v9  ;;  %v3734_v55 = vrot.slane %v10978_v41, 5 }
 0x59c   : > { %v5397_v2 = vrot.slane %v3879_v8, 7  ;;  %v5399_v29 = vrot.slane %v3879_v8, 6  ;;  %v5402_v11 = vrot.slane %v3879_v8, 5  ;;  %8070 = vmatprep.mubr.msk.bf16.mxu0 %vm3923_vm10, %v3919_v23  ;;  %v3629_v23 = vrot.slane %v11063_v35, 2 }
 0x59d   : > { %v11114_v38 = vsel %vm1018_vm7, %v3625_v58, %v3627_v16  ;;  %v13740_v40 = vrot.slane %v10836_v24, 5 }
 0x59e   : > { %v5404_v49 = vsel %vm962_vm5, %v5402_v11, %v5403_v46  ;;  %v5424_v47 = vsel %vm945_vm3, %v3879_v8, %v5397_v2  ;;  %v13729_v46 = vrot.slane %v11065_v13, 4  ;;  %v11122_v2 = vsel %vm1018_vm7, %v3627_v16, %v3629_v23 }
 0x59f   : > { %v5425_v12 = vsel %vm979_vm6, %v5424_v47, %v5399_v29  ;;  %v5426_v4 = vsel %vm945_vm3, %v5399_v29, %v5404_v49  ;;  %8071 = vmatmul.mubr.msk.bf16.gmra.mrb[96].mxu0 %vm3923_vm10, %v3920_v18  ;;  %v13450_v47 = vrot.slane %v11063_v35, 7  ;;  %v11126_v49 = vrot.slane %v10961_v9, 7 }
 0x5a0   : > { %v5427_v8 = vsel %vm979_vm6, %v5426_v4, %v13729_v46  ;;  %8078 = vmatprep.mubr.msk.bf16.mxu0 %vm3923_vm10, %v3891_v25  ;;  %v11130_v29 = vsel %vm996_vm8, %v11122_v2, %v3741_v21  ;;  %v3742_v11 = vrot.slane %v10981_v56, 2  ;;  %v3889_v25 = vsel %vm1011_vm4, %v10855_v20, %v10892_v61 }
 0x5a1   : > { %v8502_v18 = vpack.i.bf16 %v5427_v8, %v5425_v12  ;;  %v3639_v23 = vsel %vm945_vm3, %v13450_v47, %v11126_v49  ;;  %v13452_v4 = vrot.slane %v10892_v61, 2  ;;  %v3888_v47 = vsel %vm979_vm6, %v10778_v7, %v10789_v42 }
 0x5a2   : > { %v11150_v46 = vsel %vm1018_vm7, %v3741_v21, %v3742_v11  ;;  %v11154_v8 = vsel %vm1018_vm7, %v3742_v11, %v11134_v33  ;;  %v3837_v16 = vmax.f32 %v3639_v23, %v10961_v9  ;;  %v3892_v21 = vpack.c.bf16 %v10816_v34, %v3888_v47 }
 0x5a3   : > { %8503 = vrot.lane.b32.xlu0 %v8502_v18, %s8867_s30  ;;  %v3849_v48 = vmax.f32 %v3713_v36, %v11150_v46  ;;  %v11169_v11 = vsel %vm1018_vm7, %v13452_v4, %v3625_v58  ;;  %v3670_v23 = vrot.slane %v10892_v61, 3  ;;  %v3893_v51 = vpack.c.bf16 %v3889_v25, %v10836_v24  ;;  %v737_v36 = vld [vmem:[%s13355_s9 + $0x60] sm:$0xff]  ;;  %v738_v18 = vld [vmem:[%s13355_s9 + $0x68] sm:$0xff] }
 0x5a4   : > { %v3673_v12 = vrot.slane %v10978_v41, 3  ;;  %v3675_v4 = vrot.slane %v11063_v35, 3 }
 0x5a5   : > { %v3873_v47 = vmax.f32 %v3837_v16, %v3849_v48  ;;  %v11183_v58 = vsel %vm979_vm6, %v3670_v23, %v3671_v19  ;;  %v3781_v48 = vrot.slane %v10961_v9, 3  ;;  %v3782_v16 = vrot.slane %v10981_v56, 3 }
 0x5a6   : > { %v11191_v57 = vsel %vm979_vm6, %v3671_v19, %v3673_v12  ;;  %v3676_v23 = vsel %vm979_vm6, %v3673_v12, %v3675_v4  ;;  %v3819_v12 = vrot.slane %v10981_v56, 4 }
 0x5a7   : > { %8079 = vmatmul.mubr.msk.bf16.vlgmr.msra.gmra.mrb[88].mxu0 %vm3923_vm10, %v3892_v21  ;;  %13730 = vst [vmem:[#allocation25_spill] sm:$0xff] %v11191_v57  ;;  %v11196_v21 = vpack.c.bf16 %v738_v18, %v737_v36  ;;  %v3836_v25 = vmax.f32 %v11122_v2, %v3676_v23  ;;  %v11206_v19 = vsel %vm996_vm8, %v3676_v23, %v3781_v48  ;;  %v3701_v36 = vrot.slane %v10958_v5, 4 }
 0x5a8   : > { %8091 = vmatpush3.bf16.msra.mxu0 %v10793_v10  ;;  %8082 = vmatprep.mubr.msk.bf16.mxu0 %vm3923_vm10, %v3893_v51  ;;  %v3835_v10 = vmax.f32 %v11114_v38, %v11191_v57  ;;  %v11202_v51 = vrot.slane %v10984_v30, 3  ;;  %13731 = vst [vmem:[#allocation46_spill] sm:$0xff] %v11206_v19  ;;  %v11209_v45 = vsel %vm979_vm6, %v3781_v48, %v3782_v16  ;;  %v3703_v48 = vrot.slane %v10978_v41, 4 }
 0x5a9   : > { %8092 = vmatprep.subr.bf16.mxu0 %v11098_v22  ;;  %13732 = vst [vmem:[#allocation45_spill] sm:$0xff] %v11209_v45  ;;  %v3705_v23 = vrot.slane %v11063_v35, 4  ;;  %v3818_v18 = vrot.slane %v10961_v9, 4  ;;  %v13733_v2 = vpack.c.bf16 %v11079_v32, %v10958_v5  ;;  %v3700_v32 = vrot.slane %v10892_v61, 4 }
 0x5aa   : > { %v11217_v4 = vsel %vm979_vm6, %v3782_v16, %v11202_v51  ;;  %v11229_v16 = vrot.slane %v10984_v30, 4  ;;  %v13738_v19 = vrot.slane %v10789_v42, 2  ;;  %v3736_v57 = vrot.slane %v11063_v35, 5 }
 0x5ab   : > { %v3706_v27 = vsel %vm840_vm0, %v3703_v48, %v3705_v23  ;;  %v11242_v15 = vsel %vm840_vm0, %v3818_v18, %v3819_v12  ;;  %v11274_v23 = vsel %vm840_vm0, %v3700_v32, %v3701_v36 }
 0x5ac   : > { %8093 = vmatpush3.bf16.msra.mxu0 %v11098_v22  ;;  %v11232_v22 = vsel %vm840_vm0, %v3701_v36, %v3703_v48  ;;  %13734 = vst [vmem:[#allocation54_spill] sm:$0xff] %v11242_v15  ;;  %v11246_v52 = vsel %vm840_vm0, %v3819_v12, %v11229_v16  ;;  %v3861_v48 = vmax.f32 %v11209_v45, %v11242_v15  ;;  %v4514_v36 = vrot.slane %v10984_v30, 5 }
 0x5ad   : > { %8106 = vmatprep.subr.bf16.mxu0 %v11196_v21  ;;  %v4129_v12 = vpack.c.bf16 %v10824_v17, %v10839_v0  ;;  %v3615_v17 = vrot.slane %v10855_v20, 5  ;;  %v3731_v0 = vrot.slane %v10892_v61, 5  ;;  %v4516_v15 = vrot.slane %v10924_v1, 5 }
 0x5ae   : > { %v11276_v13 = vmax.f32 %v3873_v47, %v3861_v48  ;;  %v4512_v47 = vrot.slane %v10981_v56, 5 }
 0x5af   : > { %8083 = vmatmul.mubr.msk.bf16.gmra.mrb[92].mxu0 %vm3923_vm10, %v13733_v2  ;;  %v11254_v2 = vsel %vm996_vm8, %v3706_v27, %v3818_v18  ;;  %v13737_v18 = vrot.slane %v10816_v34, 2  ;;  %v11286_v43 = vsel %vm962_vm5, %v13740_v40, %v3615_v17 }
 0x5b0   : > { %8086 = vmatprep.mubr.msk.bf16.mxu0 %vm3923_vm10, %v13735_v59  ;;  %13736 = vst [vmem:[#allocation55_spill] sm:$0xff] %v11254_v2  ;;  %13739 = vst [vmem:[#allocation57_spill] sm:$0xff] %v11276_v13  ;;  %v3732_v59 = vrot.slane %v10958_v5, 5 }
 0x5b1   : > { %v4121_v45 = vsel %vm1018_vm7, %v13738_v19, %v13737_v18  ;;  %v4511_v19 = vrot.slane %v10961_v9, 5  ;;  %v3737_v18 = vsel %vm962_vm5, %v3734_v55, %v3736_v57 }
 0x5b2   : > { %v3733_v32 = vsel %vm962_vm5, %v3731_v0, %v3732_v59  ;;  %v11293_v48 = vsel %vm962_vm5, %v3732_v59, %v3734_v55  ;;  %v3848_v39 = vmax.f32 %v3706_v27, %v3737_v18  ;;  %v11313_v55 = vsel %vm962_vm5, %v4512_v47, %v4514_v36 }
 0x5b3   : > { %v3846_v2 = vmax.f32 %v11274_v23, %v3733_v32  ;;  %v11299_v40 = vsel %vm1011_vm4, %v3615_v17, %v3733_v32  ;;  %v3847_v13 = vmax.f32 %v11232_v22, %v11293_v48  ;;  %v11307_v59 = vsel %vm996_vm8, %v3737_v18, %v4511_v19 }
 0x5b4   : > { %v11310_v57 = vsel %vm962_vm5, %v4511_v19, %v4512_v47  ;;  %v13742_v17 = vmax.f32 %v11169_v11, %v11183_v58  ;;  %v11323_v32 = vmax.f32 %v3836_v25, %v3848_v39  ;;  %v739_v19 = vld [vmem:[%s13355_s9 + $0x70] sm:$0xff]  ;;  %v4126_v39 = vsel %vm979_vm6, %v10803_v37, %v4121_v45 }
 0x5b5   : > { %13741 = vst [vmem:[#allocation56_spill] sm:$0xff] %v11310_v57  ;;  %v13473_v25 = vrot.slane %v10778_v7, 6  ;;  %v3774_v18 = vrot.slane %v10978_v41, 6  ;;  %v13744_v47 = vrot.slane %v10789_v42, 6  ;;  %v13745_v45 = vrot.slane %v10836_v24, 6 }
 0x5b6   : > { %v11319_v27 = vmax.f32 %v13742_v17, %v3846_v2  ;;  %v11336_v2 = vsel %vm962_vm5, %v4514_v36, %v4516_v15  ;;  %v3772_v17 = vrot.slane %v10958_v5, 6  ;;  %v4130_v36 = vpack.c.bf16 %v11058_v50, %v4126_v39 }
 0x5b7   : > { %8087 = vmatmul.mubr.msk.bf16.gmra.mrb[100].mxu0 %vm3923_vm10, %v3896_v53  ;;  %v11321_v53 = vmax.f32 %v3835_v10, %v3847_v13  ;;  %13743 = vst [vmem:[#allocation51_spill] sm:$0xff] %v11336_v2  ;;  %v4127_v13 = vsel %vm1011_vm4, %v11017_v26, %v11169_v11  ;;  %v3665_v10 = vrot.slane %v10855_v20, 6  ;;  %v4647_v15 = vsel %vm1011_vm4, %v13473_v25, %v13744_v47 }
 0x5b8   : > { %8094 = vmatprep.mubr.msk.bf16.mxu0 %vm3923_vm10, %v4129_v12  ;;  %v740_v12 = vld [vmem:[%s13355_s9 + $0x78] sm:$0xff]  ;;  %v3776_v11 = vrot.slane %v11063_v35, 6  ;;  %v4131_v2 = vpack.c.bf16 %v4127_v13, %v11028_v54  ;;  %v11368_v47 = vsel %vm979_vm6, %v4647_v15, %v10965_v31  ;;  %v11378_v39 = vsel %vm1011_vm4, %v3772_v17, %v3774_v18 }
 0x5b9   : > { %v4268_v0 = vpack.c.bf16 %v740_v12, %v739_v19  ;;  %v11355_v37 = vsel %vm1011_vm4, %v13745_v45, %v3665_v10  ;;  %v741_v19 = vld [vmem:[%s13355_s9 + $0x80] sm:$0xff]  ;;  %v742_v12 = vld [vmem:[%s13355_s9 + $0x88] sm:$0xff]  ;;  %13747 = vst [vmem:[#allocation27_spill] sm:$0xff] %v11368_v47  ;;  %v11375_v54 = vsel %vm1011_vm4, %v3665_v10, %v3772_v17  ;;  %v4654_v15 = vrot.slane %v10961_v9, 6 }
 0x5ba   : > { %13746 = vst [vmem:[#allocation35_spill] sm:$0xff] %v11355_v37  ;;  %v3833_v45 = vmax.f32 %v11286_v43, %v11355_v37  ;;  %13748 = vst [vmem:[#allocation34_spill] sm:$0xff] %v11375_v54  ;;  %v3777_v13 = vsel %vm1011_vm4, %v3774_v18, %v3776_v11  ;;  %v4655_v25 = vrot.slane %v10981_v56, 6  ;;  %v4657_v57 = vrot.slane %v10984_v30, 6 }
 0x5bb   : > { %v11389_v10 = vpack.c.bf16 %v742_v12, %v741_v19  ;;  %v4659_v50 = vrot.slane %v10924_v1, 6  ;;  %v11393_v18 = vsel %vm996_vm8, %v3777_v13, %v4654_v15  ;;  %v4247_v37 = vrot.slane %v10816_v34, 3 }
 0x5bc   : > { %v11396_v11 = vsel %vm1011_vm4, %v4654_v15, %v4655_v25  ;;  %v4134_v15 = vpack.c.bf16 %v11134_v33, %v11134_v33  ;;  %v13750_v31 = vrot.slane %v10789_v42, 7  ;;  %v13751_v54 = vrot.slane %v10778_v7, 7 }
 0x5bd   : > { %v11408_v12 = vsel %vm1011_vm4, %v4657_v57, %v4659_v50  ;;  %v3695_v50 = vrot.slane %v10855_v20, 7  ;;  %v3809_v19 = vrot.slane %v10892_v61, 7  ;;  %v3810_v42 = vrot.slane %v10958_v5, 7 }
 0x5be   : > { %13749 = vst [vmem:[#allocation59_spill] sm:$0xff] %v11408_v12  ;;  %v4790_v47 = vsel %vm945_vm3, %v13751_v54, %v13750_v31  ;;  %v3812_v54 = vrot.slane %v10978_v41, 7  ;;  %v3642_v31 = vrot.slane %v10984_v30, 7 }
 0x5bf   : > { %8095 = vmatmul.mubr.msk.bf16.vlgmr.msra.gmra.mrb[88].mxu0 %vm3923_vm10, %v4130_v36  ;;  %v11399_v36 = vsel %vm1011_vm4, %v4655_v25, %v4657_v57  ;;  %v11422_v57 = vsel %vm979_vm6, %v4790_v47, %v10996_v60  ;;  %v4794_v47 = vsel %vm945_vm3, %v3695_v50, %v3809_v19  ;;  %v13754_v25 = vpack.c.bf16 %v11130_v29, %v11114_v38 }
 0x5c0   : > { %8107 = vmatpush3.bf16.msra.mxu0 %v11196_v21  ;;  %8098 = vmatprep.mubr.msk.bf16.mxu0 %vm3923_vm10, %v4131_v2  ;;  %v3771_v21 = vrot.slane %v10892_v61, 6  ;;  %13752 = vst [vmem:[#allocation60_spill] sm:$0xff] %v11422_v57  ;;  %v3811_v41 = vsel %vm945_vm3, %v3809_v19, %v3810_v42  ;;  %v11448_v57 = vsel %vm1011_vm4, %v4794_v47, %v3810_v42  ;;  %v13757_v29 = vrot.slane %v11063_v35, 7 }
 0x5c1   : > { %8108 = vmatprep.subr.bf16.mxu0 %v4268_v0 }
 0x5c2   : > { %v3773_v2 = vsel %vm1011_vm4, %v3771_v21, %v3772_v17  ;;  %v13753_v17 = vrot.slane %v10836_v24, 7  ;;  %v3716_v21 = vrot.slane %v10924_v1, 1  ;;  %v3814_v19 = vsel %vm945_vm3, %v3812_v54, %v13757_v29  ;;  %v746_v29 = vld [vmem:[%s13355_s9 + $0xa8] sm:$0xff] }
 0x5c3   : > { %v3858_v6 = vmax.f32 %v3773_v2, %v3811_v41  ;;  %v3860_v12 = vmax.f32 %v3777_v13, %v3814_v19 }
 0x5c4   : > { %8109 = vmatpush3.bf16.msra.mxu0 %v4268_v0  ;;  %v3640_v0 = vrot.slane %v10981_v56, 7  ;;  %v11435_v60 = vsel %vm945_vm3, %v13753_v17, %v3695_v50  ;;  %v11451_v17 = vsel %vm945_vm3, %v3810_v42, %v3812_v54  ;;  %v13756_v50 = vpack.c.bf16 %v11154_v8, %v11150_v46 }
 0x5c5   : > { %8122 = vmatprep.subr.bf16.mxu0 %v11389_v10  ;;  %v3845_v5 = vmax.f32 %v11435_v60, %v10855_v20  ;;  %13755 = vst [vmem:[#allocation62_spill] sm:$0xff] %v11451_v17  ;;  %v11466_v42 = vsel %vm996_vm8, %v3814_v19, %v11126_v49  ;;  %v11473_v41 = vmax.f32 %v11319_v27, %v3858_v6  ;;  %v3786_v6 = vrot.slane %v10924_v1, 3  ;;  %v743_v27 = vld [vmem:[%s13355_s9 + $0x90] sm:$0xff] }
 0x5c6   : > { %13758 = vst [vmem:[#allocation61_spill] sm:$0xff] %v11466_v42  ;;  %v11470_v46 = vsel %vm945_vm3, %v11126_v49, %v3640_v0  ;;  %v3717_v13 = vsel %vm996_vm8, %v11074_v14, %v3716_v21  ;;  %v3746_v49 = vrot.slane %v10924_v1, 2  ;;  %v4250_v21 = vrot.slane %v10855_v20, 3 }
 0x5c7   : > { %8099 = vmatmul.mubr.msk.bf16.gmra.mrb[92].mxu0 %vm3923_vm10, %v13754_v25  ;;  %v3859_v25 = vmax.f32 %v11378_v39, %v11451_v17  ;;  %v3869_v47 = vmax.f32 %v3833_v45, %v3845_v5  ;;  %13759 = vst [vmem:[#allocation58_spill] sm:$0xff] %v11470_v46  ;;  %v11481_v5 = vsel %vm945_vm3, %v3640_v0, %v3642_v31  ;;  %v3823_v0 = vrot.slane %v10924_v1, 4 }
 0x5c8   : > { %8102 = vmatprep.mubr.msk.bf16.mxu0 %vm3923_vm10, %v13756_v50  ;;  %13760 = vst [vmem:[#allocation73_spill] sm:$0xff] %v11481_v5  ;;  %v11484_v45 = vmax.f32 %v11323_v32, %v3860_v12  ;;  %v3838_v32 = vmax.f32 %v11470_v46, %v10981_v56  ;;  %v3839_v14 = vmax.f32 %v11481_v5, %v10984_v30  ;;  %v745_v50 = vld [vmem:[%s13355_s9 + $0xa0] sm:$0xff]  ;;  %v4798_v54 = vrot.slane %v10924_v1, 7 }
 0x5c9   : > { %v11476_v2 = vmax.f32 %v11321_v53, %v3859_v25  ;;  %v744_v53 = vld [vmem:[%s13355_s9 + $0x98] sm:$0xff]  ;;  %v3747_v19 = vsel %vm1018_vm7, %v11134_v33, %v3746_v49  ;;  %v3787_v25 = vsel %vm979_vm6, %v11202_v51, %v3786_v6  ;;  %v13761_v12 = vrot.slane %v10836_v24, 3 }
 0x5ca   : > { %v3824_v46 = vsel %vm840_vm0, %v11229_v16, %v3823_v0  ;;  %v3851_v5 = vmax.f32 %v3717_v13, %v3747_v19  ;;  %v13762_v17 = vmax.f32 %v11083_v63, %v11154_v8  ;;  %v4259_v33 = vsel %vm1011_vm4, %v4250_v21, %v11183_v58  ;;  %v13769_v0 = vld [vmem:[#allocation33_spill] sm:$0xff] }
 0x5cb   : > { %v4249_v38 = vsel %vm979_vm6, %v4247_v37, %v13761_v12  ;;  %v4399_v49 = vpack.c.bf16 %v744_v53, %v743_v27  ;;  %v3863_v6 = vmax.f32 %v3787_v25, %v3824_v46  ;;  %v11527_v1 = vsel %vm945_vm3, %v3642_v31, %v4798_v54 }
 0x5cc   : > { %v3874_v42 = vmax.f32 %v3838_v32, %v13762_v17  ;;  %v13763_v12 = vpack.c.bf16 %v10828_v3, %v10842_v28  ;;  %v4258_v13 = vsel %vm979_vm6, %v10813_v62, %v4247_v37  ;;  %v11535_v63 = vpack.c.bf16 %v746_v29, %v745_v50 }
 0x5cd   : > { %v3875_v8 = vmax.f32 %v3839_v14, %v3851_v5  ;;  %v4262_v17 = vpack.c.bf16 %v4249_v38, %v4258_v13  ;;  %v13765_v31 = vrot.slane %v10836_v24, 3  ;;  %v11548_v3 = vsel %vm996_vm8, %v11063_v35, %v10961_v9 }
 0x5ce   : > { %v4929_v62 = vpack.c.bf16 %v10984_v30, %v10981_v56  ;;  %v13766_v54 = vrot.slane %v10892_v61, 1  ;;  %v13768_v5 = vrot.slane %v10892_v61, 2  ;;  %v5408_v9 = vrot.slane %v13769_v0, 3 }
 0x5cf   : > { %8103 = vmatmul.mubr.msk.bf16.gmra.mrb[104].mxu0 %vm3923_vm10, %v4134_v15  ;;  %v13764_v15 = vmax.f32 %v11217_v4, %v11246_v52  ;;  %v4251_v46 = vsel %vm979_vm6, %v13765_v31, %v4250_v21  ;;  %v11552_v37 = vmax.f32 %v3875_v8, %v3863_v6  ;;  %v5411_v35 = vrot.slane %v13769_v0, 2 }
 0x5d0   : > { %8110 = vmatprep.mubr.msk.bf16.mxu0 %vm3923_vm10, %v13763_v12  ;;  %v4263_v28 = vpack.c.bf16 %v4259_v33, %v4251_v46  ;;  %v3805_v27 = vsel %vm1018_vm7, %v11017_v26, %v13768_v5  ;;  %v5433_v32 = vrot.slane %v11473_v41, 1  ;;  %v5435_v14 = vrot.slane %v11473_v41, 7 }
 0x5d1   : > { %v11540_v58 = vmax.f32 %v3874_v42, %v13764_v15  ;;  %v13767_v42 = vld [vmem:[#allocation48_spill] sm:$0xff]  ;;  %v5438_v21 = vrot.slane %v11473_v41, 6  ;;  %v5439_v50 = vrot.slane %v11476_v2, 6  ;;  %v5442_v29 = vrot.slane %v11476_v2, 5 }
 0x5d2   : > { %v3767_v38 = vsel %vm996_vm8, %v13767_v42, %v13766_v54  ;;  %v13770_v25 = vrot.slane %v13769_v0, 4  ;;  %v5444_v33 = vrot.slane %v11476_v2, 4  ;;  %v5447_v6 = vrot.slane %v11476_v2, 3 }
 0x5d3   : > { %v3857_v53 = vmax.f32 %v3767_v38, %v3805_v27  ;;  %v5440_v12 = vsel %vm1011_vm4, %v5438_v21, %v5439_v50  ;;  %v5469_v13 = vsel %vm840_vm0, %v11473_v41, %v5435_v14  ;;  %v5448_v8 = vrot.slane %v11484_v45, 3  ;;  %v13771_v38 = vld [vmem:[#allocation57_spill] sm:$0xff] }
 0x5d4   : > { %v5428_v26 = vsel %vm945_vm3, %v13770_v25, %v5408_v9  ;;  %v5451_v15 = vrot.slane %v11484_v45, 2  ;;  %v5470_v46 = vsel %vm840_vm0, %v5440_v12, %v5442_v29  ;;  %v5497_v54 = vrot.slane %v5469_v13, 7 }
 0x5d5   : > { %v3881_v19 = vmax.f32 %v3869_v47, %v3857_v53  ;;  %v5499_v2 = vrot.slane %v5470_v46, 7  ;;  %v5449_v42 = vsel %vm979_vm6, %v5447_v6, %v5448_v8  ;;  %v5453_v41 = vrot.slane %v11484_v45, 1 }
 0x5d6   : > { %v5456_v5 = vrot.slane %v13771_v38, 1  ;;  %v5471_v53 = vsel %vm840_vm0, %v5444_v33, %v5449_v42  ;;  %v5458_v0 = vrot.slane %v13771_v38, 7  ;;  %v5461_v50 = vrot.slane %v13771_v38, 6 }
 0x5d7   : > { %8111 = vmatmul.mubr.msk.bf16.vlgmr.msra.gmra.mrb[88].mxu0 %vm3923_vm10, %v4262_v17  ;;  %v5412_v47 = vrot.slane %v3881_v19, 2  ;;  %v5430_v31 = vrot.slane %v3881_v19, 1  ;;  %v11595_v9 = vsel %vm945_vm3, %v5497_v54, %v5499_v2  ;;  %v5472_v45 = vsel %vm840_vm0, %v5451_v15, %v5453_v41 }
 0x5d8   : > { %8123 = vmatpush3.bf16.msra.mxu0 %v11389_v10  ;;  %8114 = vmatprep.mubr.msk.bf16.mxu0 %vm3923_vm10, %v4263_v28  ;;  %v5473_v21 = vsel %vm996_vm8, %v5472_v45, %v5456_v5  ;;  %v5462_v19 = vrot.slane %v11540_v58, 6  ;;  %v5465_v25 = vrot.slane %v11540_v58, 5  ;;  %v5476_v41 = vrot.slane %v11540_v58, 4 }
 0x5d9   : > { %8124 = vmatprep.subr.bf16.mxu0 %v4399_v49  ;;  %v5413_v27 = vsel %vm1018_vm7, %v5411_v35, %v5412_v47  ;;  %v5467_v17 = vsel %vm840_vm0, %v5412_v47, %v5430_v31  ;;  %v5501_v35 = vrot.slane %v5471_v53, 7  ;;  %v5503_v29 = vrot.slane %v5473_v21, 7  ;;  %v13776_v31 = vld [vmem:[#allocation25_spill] sm:$0xff] }
 0x5da   : > { %v11591_v10 = vsel %vm979_vm6, %v5428_v26, %v5413_v27  ;;  %v5468_v28 = vsel %vm996_vm8, %v5467_v17, %v5433_v32  ;;  %v5474_v32 = vsel %vm840_vm0, %v13771_v38, %v5458_v0  ;;  %v5463_v15 = vsel %vm1011_vm4, %v5461_v50, %v5462_v19  ;;  %v13779_v38 = vld [vmem:[#allocation45_spill] sm:$0xff] }
 0x5db   : > { %v5496_v14 = vrot.slane %v5468_v28, 7  ;;  %v11612_v6 = vsel %vm945_vm3, %v5499_v2, %v5501_v35  ;;  %v11619_v8 = vsel %vm945_vm3, %v5501_v35, %v5503_v29  ;;  %v5475_v2 = vsel %vm840_vm0, %v5463_v15, %v5465_v25  ;;  %v13784_v15 = vld [vmem:[#allocation40_spill] sm:$0xff] }
 0x5dc   : > { %8125 = vmatpush3.bf16.msra.mxu0 %v4399_v49  ;;  %13773 = vst [vmem:[#allocation33_spill] sm:$0xff] %v11612_v6  ;;  %v5505_v49 = vrot.slane %v5474_v32, 7  ;;  %13774 = vst [vmem:[#allocation57_spill] sm:$0xff] %v11619_v8  ;;  %v13780_v5 = vpack.c.bf16 %v11217_v4, %v13779_v38  ;;  %v5507_v27 = vrot.slane %v5475_v2, 7  ;;  %v5479_v17 = vrot.slane %v11540_v58, 3  ;;  %v747_v2 = vld [vmem:[%s13355_s9 + $0xb0] sm:$0xff] }
 0x5dd   : > { %8138 = vmatprep.subr.bf16.mxu0 %v11535_v63  ;;  %v11606_v26 = vsel %vm945_vm3, %v5412_v47, %v5496_v14  ;;  %v11609_v33 = vsel %vm945_vm3, %v5496_v14, %v5497_v54  ;;  %v13775_v47 = vld [vmem:[#allocation46_spill] sm:$0xff]  ;;  %v5480_v53 = vrot.slane %v11552_v37, 3  ;;  %v5483_v0 = vrot.slane %v11552_v37, 2 }
 0x5de   : > { %13772 = vst [vmem:[#allocation48_spill] sm:$0xff] %v11609_v33  ;;  %v13777_v46 = vpack.c.bf16 %v13775_v47, %v13776_v31  ;;  %v11630_v42 = vsel %vm945_vm3, %v5503_v29, %v5505_v49  ;;  %v5485_v28 = vrot.slane %v11552_v37, 1  ;;  %v11642_v45 = vsel %vm945_vm3, %v5505_v49, %v5507_v27  ;;  %v13785_v47 = vld [vmem:[#allocation42_spill] sm:$0xff] }
 0x5df   : > { %13778 = vst [vmem:[#allocation46_spill] sm:$0xff] %v11630_v42  ;;  %13781 = vst [vmem:[#allocation25_spill] sm:$0xff] %v11642_v45  ;;  %v5481_v14 = vsel %vm979_vm6, %v5479_v17, %v5480_v53  ;;  %v4266_v29 = vpack.c.bf16 %v11202_v51, %v11202_v51  ;;  %v4379_v19 = vrot.slane %v10836_v24, 4  ;;  %v4378_v49 = vrot.slane %v10816_v34, 4 }
 0x5e0   : > { %8115 = vmatmul.mubr.msk.bf16.gmra.mrb[92].mxu0 %vm3923_vm10, %v13777_v46  ;;  %v5487_v4 = vsel %vm840_vm0, %v5476_v41, %v5481_v14  ;;  %v5488_v35 = vsel %vm840_vm0, %v5483_v0, %v5485_v28  ;;  %v13786_v31 = vpack.c.bf16 %v13784_v15, %v13785_v47  ;;  %v4381_v51 = vrot.slane %v10855_v20, 4  ;;  %v748_v41 = vld [vmem:[%s13355_s9 + $0xb8] sm:$0xff]  ;;  %v749_v14 = vld [vmem:[%s13355_s9 + $0xc0] sm:$0xff] }
 0x5e1   : > { %8118 = vmatprep.mubr.msk.bf16.mxu0 %vm3923_vm10, %v13780_v5  ;;  %v5513_v50 = vrot.slane %v5487_v4, 7  ;;  %v5514_v58 = vrot.slane %v5488_v35, 7  ;;  %v4380_v46 = vsel %vm840_vm0, %v4378_v49, %v4379_v19  ;;  %v13787_v5 = vld [vmem:[#allocation24_spill] sm:$0xff]  ;;  %v4532_v0 = vpack.c.bf16 %v748_v41, %v747_v2  ;;  %v13788_v35 = vld [vmem:[#allocation55_spill] sm:$0xff] }
 0x5e2   : > { %v4390_v38 = vsel %vm1011_vm4, %v4381_v51, %v11274_v23  ;;  %v4382_v53 = vsel %vm840_vm0, %v4379_v19, %v4381_v51  ;;  %v750_v4 = vld [vmem:[%s13355_s9 + $0xc8] sm:$0xff]  ;;  %v4397_v19 = vpack.c.bf16 %v11229_v16, %v11229_v16  ;;  %v753_v16 = vld [vmem:[%s13355_s9 + $0xe0] sm:$0xff]  ;;  %v13798_v41 = vpack.c.bf16 %v11299_v40, %v11286_v43 }
 0x5e3   : > { %v11653_v37 = vsel %vm945_vm3, %v5513_v50, %v5514_v58  ;;  %v11656_v25 = vsel %vm945_vm3, %v5507_v27, %v5513_v50  ;;  %v4389_v27 = vsel %vm979_vm6, %v13787_v5, %v4378_v49  ;;  %v4394_v28 = vpack.c.bf16 %v4390_v38, %v4382_v53  ;;  %v13790_v58 = vld [vmem:[#allocation54_spill] sm:$0xff]  ;;  %v13793_v49 = vld [vmem:[#allocation47_spill] sm:$0xff]  ;;  %v13801_v53 = vld [vmem:[#allocation56_spill] sm:$0xff] }
 0x5e4   : > { %13782 = vst [vmem:[#allocation45_spill] sm:$0xff] %v11653_v37  ;;  %13783 = vst [vmem:[#allocation74_spill] sm:$0xff] %v11656_v25  ;;  %v4393_v17 = vpack.c.bf16 %v4380_v46, %v4389_v27  ;;  %v4674_v23 = vpack.c.bf16 %v750_v4, %v749_v14  ;;  %v13789_v50 = vpack.c.bf16 %v13788_v35, %v11232_v22  ;;  %v751_v22 = vld [vmem:[%s13355_s9 + $0xd0] sm:$0xff]  ;;  %v13795_v51 = vld [vmem:[#allocation43_spill] sm:$0xff]  ;;  %v13804_v14 = vrot.slane %v10778_v7, 6 }
 0x5e5   : > { %v13796_v46 = vld [vmem:[#allocation44_spill] sm:$0xff]  ;;  %v13799_v5 = vpack.c.bf16 %v11307_v59, %v11293_v48  ;;  %v13800_v27 = vld [vmem:[#allocation37_spill] sm:$0xff]  ;;  %v756_v35 = vld [vmem:[%s13355_s9 + $0xf8] sm:$0xff] }
 0x5e6   : > { %v13797_v2 = vpack.c.bf16 %v13795_v51, %v13796_v46  ;;  %v13813_v46 = vrot.slane %v10778_v7, 7 }
 0x5e8   : > { %8119 = vmatmul.mubr.msk.bf16.gmra.mrb[108].mxu0 %vm3923_vm10, %v4266_v29  ;;  %v13791_v29 = vpack.c.bf16 %v11246_v52, %v13790_v58  ;;  %v752_v52 = vld [vmem:[%s13355_s9 + $0xd8] sm:$0xff]  ;;  %v757_v58 = vld [vmem:[%s13355_s9 + $0x100] sm:$0xff] }
 0x5e9   : > { %8126 = vmatprep.mubr.msk.bf16.mxu0 %vm3923_vm10, %v13786_v31  ;;  %v4675_v47 = vpack.c.bf16 %v752_v52, %v751_v22  ;;  %v754_v31 = vld [vmem:[%s13355_s9 + $0xe8] sm:$0xff] }
 0x5ea   : > { %v4811_v38 = vpack.c.bf16 %v754_v31, %v753_v16  ;;  %v4786_v16 = vrot.slane %v13800_v27, 7 }
 0x5f0   : > { %8127 = vmatmul.mubr.msk.bf16.vlgmr.msra.gmra.mrb[88].mxu0 %vm3923_vm10, %v4393_v17  ;;  %v4643_v17 = vrot.slane %v13800_v27, 6 }
 0x5f1   : > { %8139 = vmatpush3.bf16.msra.mxu0 %v11535_v63  ;;  %8130 = vmatprep.mubr.msk.bf16.mxu0 %vm3923_vm10, %v4394_v28  ;;  %v13792_v63 = vld [vmem:[#allocation39_spill] sm:$0xff] }
 0x5f2   : > { %8140 = vmatprep.subr.bf16.mxu0 %v4532_v0  ;;  %v13794_v15 = vpack.c.bf16 %v13792_v63, %v13793_v49  ;;  %v13803_v28 = vld [vmem:[#allocation23_spill] sm:$0xff]  ;;  %v4646_v4 = vsel %vm1011_vm4, %v4643_v17, %v13804_v14  ;;  %v13808_v49 = vld [vmem:[#allocation34_spill] sm:$0xff]  ;;  %v13822_v14 = vld [vmem:[#allocation73_spill] sm:$0xff] }
 0x5f3   : > { %v4642_v43 = vrot.slane %v13803_v28, 6  ;;  %v4785_v31 = vrot.slane %v13803_v28, 7  ;;  %v13819_v28 = vld [vmem:[#allocation61_spill] sm:$0xff] }
 0x5f5   : > { %8141 = vmatpush3.bf16.msra.mxu0 %v4532_v0  ;;  %v13802_v0 = vpack.c.bf16 %v11313_v55, %v13801_v53  ;;  %v4644_v40 = vsel %vm1011_vm4, %v4642_v43, %v4643_v17  ;;  %v755_v55 = vld [vmem:[%s13355_s9 + $0xf0] sm:$0xff]  ;;  %v4787_v51 = vsel %vm945_vm3, %v4785_v31, %v4786_v16  ;;  %v13816_v17 = vld [vmem:[#allocation60_spill] sm:$0xff] }
 0x5f6   : > { %8154 = vmatprep.subr.bf16.mxu0 %v4674_v23  ;;  %v4668_v59 = vpack.c.bf16 %v4646_v4, %v4644_v40  ;;  %v13820_v43 = vld [vmem:[#allocation62_spill] sm:$0xff] }
 0x5f7   : > { %v13821_v40 = vpack.c.bf16 %v13819_v28, %v13820_v43  ;;  %v13823_v4 = vld [vmem:[#allocation58_spill] sm:$0xff] }
 0x5f8   : > { %8131 = vmatmul.mubr.msk.bf16.gmra.mrb[92].mxu0 %vm3923_vm10, %v13789_v50  ;;  %v4812_v50 = vpack.c.bf16 %v756_v35, %v755_v55  ;;  %v13826_v55 = vld [vmem:[#allocation38_spill] sm:$0xff] }
 0x5f9   : > { %8134 = vmatprep.mubr.msk.bf16.mxu0 %vm3923_vm10, %v13791_v29  ;;  %v758_v29 = vld [vmem:[%s13355_s9 + $0x108] sm:$0xff]  ;;  %v4923_v35 = vsel %vm1011_vm4, %v10892_v61, %v13826_v55 }
 0x5fa   : > { %v4931_v52 = vpack.c.bf16 %v758_v29, %v757_v58  ;;  %v4927_v58 = vpack.c.bf16 %v4923_v35, %v10855_v20 }
 0x600   : > { %8135 = vmatmul.mubr.msk.bf16.gmra.mrb[112].mxu0 %vm3923_vm10, %v4397_v19  ;;  %v13806_v19 = vld [vmem:[#allocation27_spill] sm:$0xff] }
 0x601   : > { %8142 = vmatprep.mubr.msk.bf16.mxu0 %vm3923_vm10, %v13794_v15  ;;  %v13807_v63 = vpack.c.bf16 %v10993_v44, %v13806_v19  ;;  %v13809_v15 = vld [vmem:[#allocation35_spill] sm:$0xff]  ;;  %v13812_v44 = vpack.c.bf16 %v11399_v36, %v11396_v11  ;;  %v759_v11 = vld [vmem:[%s13355_s9 + $0x110] sm:$0xff] }
 0x602   : > { %v13810_v22 = vpack.c.bf16 %v13808_v49, %v13809_v15  ;;  %v760_v36 = vld [vmem:[%s13355_s9 + $0x118] sm:$0xff] }
 0x608   : > { %8143 = vmatmul.mubr.msk.bf16.vlgmr.msra.gmra.mrb[88].mxu0 %vm3923_vm10, %v13797_v2  ;;  %v4789_v2 = vsel %vm945_vm3, %v4786_v16, %v13813_v46 }
 0x609   : > { %8155 = vmatpush3.bf16.msra.mxu0 %v4674_v23  ;;  %8146 = vmatprep.mubr.msk.bf16.mxu0 %vm3923_vm10, %v13798_v41  ;;  %v13805_v23 = vld [vmem:[#allocation51_spill] sm:$0xff] }
 0x60a   : > { %8156 = vmatprep.subr.bf16.mxu0 %v4675_v47  ;;  %v4530_v48 = vpack.c.bf16 %v13805_v23, %v13805_v23  ;;  %v13814_v41 = vld [vmem:[#allocation59_spill] sm:$0xff]  ;;  %v13824_v23 = vpack.c.bf16 %v13822_v14, %v13823_v4 }
 0x60d   : > { %8157 = vmatpush3.bf16.msra.mxu0 %v4675_v47  ;;  %v13811_v47 = vpack.c.bf16 %v11393_v18, %v11378_v39  ;;  %v4673_v39 = vpack.c.bf16 %v13814_v41, %v13814_v41  ;;  %v4805_v18 = vpack.c.bf16 %v4789_v2, %v4787_v51 }
 0x60e   : > { %8170 = vmatprep.subr.bf16.mxu0 %v4811_v38 }
 0x610   : > { %8147 = vmatmul.mubr.msk.bf16.gmra.mrb[92].mxu0 %vm3923_vm10, %v13799_v5  ;;  %v13815_v5 = vld [vmem:[#allocation49_spill] sm:$0xff] }
 0x611   : > { %8150 = vmatprep.mubr.msk.bf16.mxu0 %vm3923_vm10, %v13802_v0  ;;  %v13817_v53 = vpack.c.bf16 %v13815_v5, %v13816_v17  ;;  %v13818_v0 = vpack.c.bf16 %v11448_v57, %v11435_v60  ;;  %v4925_v57 = vpack.c.bf16 %v10778_v7, %v13800_v27  ;;  %v13825_v60 = vld [vmem:[#allocation36_spill] sm:$0xff]  ;;  %v13827_v7 = vld [vmem:[#allocation50_spill] sm:$0xff] }
 0x618   : > { %8151 = vmatmul.mubr.msk.bf16.gmra.mrb[116].mxu0 %vm3923_vm10, %v4530_v48  ;;  %v4810_v48 = vpack.c.bf16 %v11527_v1, %v11527_v1  ;;  %v4928_v1 = vpack.c.bf16 %v11548_v3, %v13827_v7 }
 0x619   : > { %8158 = vmatprep.mubr.msk.bf16.mxu0 %vm3923_vm10, %v4668_v59  ;;  %v4922_v59 = vsel %vm979_vm6, %v13825_v60, %v10816_v34  ;;  %v13828_v34 = vld [vmem:[#allocation31_spill] sm:$0xff] }
 0x61a   : > { %v4930_v61 = vpack.c.bf16 %v13828_v34, %v13828_v34  ;;  %v763_v34 = vld [vmem:[%s13357_s11 + $0x8] sm:$0xff] }
 0x620   : > { %8159 = vmatmul.mubr.msk.bf16.vlgmr.msra.gmra.mrb[88].mxu0 %vm3923_vm10, %v13807_v63 }
 0x621   : > { %8171 = vmatpush3.bf16.msra.mxu0 %v4811_v38  ;;  %8162 = vmatprep.mubr.msk.bf16.mxu0 %vm3923_vm10, %v13810_v22  ;;  %v4932_v38 = vpack.c.bf16 %v760_v36, %v759_v11 }
 0x622   : > { %8172 = vmatprep.subr.bf16.mxu0 %v4812_v50 }
 0x625   : > { %8173 = vmatpush3.bf16.msra.mxu0 %v4812_v50  ;;  %v4926_v50 = vpack.c.bf16 %v10836_v24, %v4922_v59 }
 0x626   : > { %8186 = vmatprep.subr.bf16.mxu0 %v4931_v52 }
 0x628   : > { %8163 = vmatmul.mubr.msk.bf16.gmra.mrb[92].mxu0 %vm3923_vm10, %v13811_v47 }
 0x629   : > { %8166 = vmatprep.mubr.msk.bf16.mxu0 %vm3923_vm10, %v13812_v44 }
 0x630   : > { %8167 = vmatmul.mubr.msk.bf16.gmra.mrb[120].mxu0 %vm3923_vm10, %v4673_v39 }
 0x631   : > { %8174 = vmatprep.mubr.msk.bf16.mxu0 %vm3923_vm10, %v4805_v18 }
 0x638   : > { %8175 = vmatmul.mubr.msk.bf16.vlgmr.msra.gmra.mrb[88].mxu0 %vm3923_vm10, %v13817_v53 }
 0x639   : > { %8187 = vmatpush3.bf16.msra.mxu0 %v4931_v52  ;;  %8178 = vmatprep.mubr.msk.bf16.mxu0 %vm3923_vm10, %v13818_v0 }
 0x63a   : > { %8188 = vmatprep.subr.bf16.mxu0 %v4932_v38 }
 0x63d   : > { %8189 = vmatpush3.bf16.msra.mxu0 %v4932_v38 }
 0x640   : > { %8179 = vmatmul.mubr.msk.bf16.gmra.mrb[92].mxu0 %vm3923_vm10, %v13821_v40 }
 0x641   : > { %8182 = vmatprep.mubr.msk.bf16.mxu0 %vm3923_vm10, %v13824_v23 }
 0x648   : > { %8183 = vmatmul.mubr.msk.bf16.gmra.mrb[124].mxu0 %vm3923_vm10, %v4810_v48 }
 0x649   : > { %8190 = vmatprep.mubr.msk.bf16.mxu0 %vm3923_vm10, %v4925_v57 }
 0x650   : > { %8191 = vmatmul.mubr.msk.bf16.vlgmr.msra.gmra.mrb[88].mxu0 %vm3923_vm10, %v4926_v50 }
 0x651   : > { %8194 = vmatprep.mubr.msk.bf16.mxu0 %vm3923_vm10, %v4927_v58 }
 0x658   : > { %8195 = vmatmul.mubr.msk.bf16.gmra.mrb[92].mxu0 %vm3923_vm10, %v4928_v1  ;;  %v762_v1 = vld [vmem:[%s13357_s11] sm:$0xff] }
 0x659   : > { %8198 = vmatprep.mubr.msk.bf16.mxu0 %vm3923_vm10, %v4929_v62 }
 0x660   : > { %8199 = vmatmul.mubr.msk.bf16.gmra.mrb[128].mxu0 %vm3923_vm10, %v4930_v61  ;;  %v764_v61 = vld [vmem:[%s13357_s11 + $0x10] sm:$0xff] }
 0x672   : > { %v8072_v24 = vpop.f32.mrb[96].mxu0 }
 0x673   : > { %v4008_v20 = vpop.f32.mrb[97].mxu0 }
 0x674   : > { %v8073_v27 = vpop.f32.mrb[98].mxu0 }
 0x675   : > { %v4011_v29 = vpop.f32.mrb[99].mxu0  ;;  %v765_v27 = vld [vmem:[%s13357_s11 + $0x18] sm:$0xff] }
 0x68a   : > { %v8088_v19 = vpop.f32.mrb[100].mxu0 }
 0x68b   : > { %v4115_v63 = vadd.f32 %v8088_v19, %v8072_v24  ;;  %v4106_v49 = vpop.f32.mrb[101].mxu0 }
 0x68c   : > { %v4107_v3 = vadd.f32 %v4106_v49, %v4008_v20  ;;  %v8089_v15 = vpop.f32.mrb[102].mxu0  ;;  %v5904_v20 = vpack.c.bf16 %v763_v34, %v762_v1  ;;  %v766_v49 = vld [vmem:[%s13357_s11 + $0x20] sm:$0xff] }
 0x68d   : > { %v4109_v22 = vpop.f32.mrb[103].mxu0 }
 0x68e   : > { %v4110_v52 = vadd.f32 %v4109_v22, %v4011_v29  ;;  %8202 = vmatprep.subr.bf16.mxu1 %v5904_v20 }
 0x68f   : > { %8203 = vmatpush3.bf16.msra.mxu1 %v5904_v20 }
 0x6a2   : > { %v8104_v47 = vpop.f32.mrb[104].mxu0 }
 0x6a3   : > { %v4245_v56 = vadd.f32 %v8104_v47, %v4115_v63  ;;  %v4221_v30 = vpop.f32.mrb[105].mxu0  ;;  %v5905_v63 = vpack.c.bf16 %v765_v27, %v764_v61 }
 0x6a4   : > { %v4243_v62 = vadd.f32 %v4221_v30, %v4107_v3  ;;  %v8105_v16 = vpop.f32.mrb[106].mxu0  ;;  %v767_v3 = vld [vmem:[%s13357_s11 + $0x28] sm:$0xff] }
 0x6a5   : > { %v4224_v44 = vpop.f32.mrb[107].mxu0  ;;  %8204 = vmatprep.subr.bf16.mxu1 %v5905_v63  ;;  %v5906_v30 = vpack.c.bf16 %v767_v3, %v766_v49 }
 0x6a6   : > { %v4244_v31 = vadd.f32 %v4224_v44, %v4110_v52  ;;  %v761_v52 = vld [vmem:[%s13356_s10] sm:$0x7]  ;;  %v768_v44 = vld [vmem:[%s13357_s11 + $0x30] sm:$0xff]  ;;  %8205 = vmatpush3.bf16.msra.mxu1 %v5905_v63 }
 0x6a7   : > { %8206 = vmatprep.subr.bf16.mxu1 %v5906_v30 }
 0x6aa   : > { %8207 = vmatpush3.bf16.msra.mxu1 %v5906_v30 }
 0x6bb   : > { %v8120_v51 = vpop.f32.mrb[108].mxu0 }
 0x6bc   : > { %v4377_v46 = vadd.f32 %v8120_v51, %v4245_v56  ;;  %v4353_v2 = vpop.f32.mrb[109].mxu0 }
 0x6bd   : > { %v4375_v41 = vadd.f32 %v4353_v2, %v4243_v62  ;;  %v8121_v39 = vpop.f32.mrb[110].mxu0  ;;  %v13829_v62 = vld [vmem:[#allocation20_spill] sm:$0xff] }
 0x6be   : > { %v4356_v18 = vpop.f32.mrb[111].mxu0  ;;  %v11855_v16 = vrot.slane %v761_v52, %v13829_v62 }
 0x6bf   : > { %v4376_v11 = vadd.f32 %v4356_v18, %v4244_v31  ;;  %v769_v31 = vld [vmem:[%s13357_s11 + $0x38] sm:$0xff] }
 0x6d3   : > { %v8136_v36 = vpop.f32.mrb[112].mxu0 }
 0x6d4   : > { %v4508_v38 = vadd.f32 %v8136_v36, %v4377_v46  ;;  %v4484_v5 = vpop.f32.mrb[113].mxu0  ;;  %v5907_v46 = vpack.c.bf16 %v769_v31, %v768_v44 }
 0x6d5   : > { %v4506_v17 = vadd.f32 %v4484_v5, %v4375_v41  ;;  %v8137_v53 = vpop.f32.mrb[114].mxu0  ;;  %v13830_v41 = vld [vmem:[#allocation21_spill] sm:$0xff]  ;;  %v13831_v5 = vld [vmem:[#allocation22_spill] sm:$0xff] }
 0x6d6   : > { %v4487_v0 = vpop.f32.mrb[115].mxu0  ;;  %v11865_v39 = vrot.slane %v761_v52, %v13830_v41  ;;  %8208 = vmatprep.subr.bf16.mxu1 %v5907_v46 }
 0x6d7   : > { %v4507_v28 = vadd.f32 %v4487_v0, %v4376_v11  ;;  %8209 = vmatpush3.bf16.msra.mxu1 %v5907_v46 }
 0x6eb   : > { %v8152_v43 = vpop.f32.mrb[116].mxu0 }
 0x6ec   : > { %v4641_v40 = vadd.f32 %v8152_v43, %v4508_v38  ;;  %v4617_v14 = vpop.f32.mrb[117].mxu0 }
 0x6ed   : > { %v4639_v4 = vadd.f32 %v4617_v14, %v4506_v17  ;;  %v8153_v23 = vpop.f32.mrb[118].mxu0  ;;  %v11869_v17 = vrot.slane %v761_v52, %v13831_v5 }
 0x6ee   : > { %v4620_v48 = vpop.f32.mrb[119].mxu0 }
 0x6ef   : > { %v4640_v57 = vadd.f32 %v4620_v48, %v4507_v28 }
 0x703   : > { %v8168_v60 = vpop.f32.mrb[120].mxu0 }
 0x704   : > { %v4784_v59 = vadd.f32 %v8168_v60, %v4641_v40  ;;  %v4760_v55 = vpop.f32.mrb[121].mxu0 }
 0x705   : > { %v4782_v35 = vadd.f32 %v4760_v55, %v4639_v4  ;;  %v8169_v50 = vpop.f32.mrb[122].mxu0 }
 0x706   : > { %v4763_v58 = vpop.f32.mrb[123].mxu0 }
 0x707   : > { %v4783_v7 = vadd.f32 %v4763_v58, %v4640_v57 }
 0x71b   : > { %v8184_v24 = vpop.f32.mrb[124].mxu0 }
 0x71c   : > { %v11839_v29 = vadd.f32 %v8184_v24, %v4784_v59  ;;  %v4897_v19 = vpop.f32.mrb[125].mxu0 }
 0x71d   : > { %v11847_v15 = vadd.f32 %v4897_v19, %v4782_v35  ;;  %v8185_v22 = vpop.f32.mrb[126].mxu0 }
 0x71e   : > { %v4900_v47 = vpop.f32.mrb[127].mxu0 }
 0x71f   : > { %v11852_v56 = vadd.f32 %v4900_v47, %v4783_v7 }
 0x723   : > { %v8192_v51 = vpop.f32.mrb[88].mxu0 }
 0x724   : > { %v5048_v2 = vadd.f32 %v8192_v51, %v11855_v16  ;;  %v4985_v18 = vpop.f32.mrb[89].mxu0 }
 0x725   : > { %v5046_v11 = vadd.f32 %v11855_v16, %v4985_v18  ;;  %v8193_v36 = vpop.f32.mrb[90].mxu0 }
 0x726   : > { %v5059_v38 = vmax.f32 %v5048_v2, 0.0  ;;  %v5049_v53 = vadd.f32 %v8193_v36, %v11855_v16  ;;  %v4988_v0 = vpop.f32.mrb[91].mxu0 }
 0x727   : > { %v5057_v28 = vmax.f32 %v5046_v11, 0.0  ;;  %v5047_v43 = vadd.f32 %v11855_v16, %v4988_v0 }
 0x728   : > { %v5074_v40 = vmul.f32 %v11865_v39, %v5059_v38  ;;  %v5060_v14 = vmax.f32 %v5049_v53, 0.0 }
 0x729   : > { %v5072_v4 = vmul.f32 %v11865_v39, %v5057_v28  ;;  %v5058_v23 = vmax.f32 %v5047_v43, 0.0 }
 0x72a   : > { %v11876_v48 = vadd.f32 %v11869_v17, %v5074_v40  ;;  %v5075_v60 = vmul.f32 %v11865_v39, %v5060_v14 }
 0x72b   : > { %v11879_v57 = vadd.f32 %v11869_v17, %v5072_v4  ;;  %v5073_v59 = vmul.f32 %v11865_v39, %v5058_v23  ;;  %v8196_v55 = vpop.f32.mrb[92].mxu0 }
 0x72c   : > { %v5111_v35 = vrot.slane %v11876_v48, 1  ;;  %v5142_v50 = vrot.slane %v11876_v48, 2  ;;  %v5197_v58 = vrot.slane %v11876_v48, 4  ;;  %v5001_v7 = vpop.f32.mrb[93].mxu0  ;;  %v5226_v1 = vrot.slane %v11876_v48, 5 }
 0x72d   : > { %v5258_v34 = vrot.slane %v11876_v48, 6  ;;  %v5287_v61 = vrot.slane %v11876_v48, 7  ;;  %v5103_v24 = vrot.slane %v11879_v57, 1  ;;  %v8197_v20 = vpop.f32.mrb[94].mxu0  ;;  %v5137_v27 = vrot.slane %v11879_v57, 2 }
 0x72e   : > { %v5167_v19 = vrot.slane %v11879_v57, 3  ;;  %v5194_v63 = vrot.slane %v11879_v57, 4  ;;  %v5223_v49 = vrot.slane %v11879_v57, 5  ;;  %v5004_v3 = vpop.f32.mrb[95].mxu0  ;;  %v5255_v22 = vrot.slane %v11879_v57, 6 }
 0x72f   : > { %v5284_v52 = vrot.slane %v11879_v57, 7  ;;  %v11897_v47 = vadd.f32 %v11869_v17, %v5075_v60  ;;  %v11900_v30 = vadd.f32 %v11869_v17, %v5073_v59  ;;  %v5052_v44 = vadd.f32 %v8196_v55, %v11855_v16 }
 0x730   : > { %v5050_v31 = vadd.f32 %v11855_v16, %v5001_v7  ;;  %v5053_v51 = vadd.f32 %v8197_v20, %v11855_v16  ;;  %v5051_v46 = vadd.f32 %v11855_v16, %v5004_v3 }
 0x731   : > { %v13490_v2 = vrot.slane %v11897_v47, 1  ;;  %v5143_v18 = vrot.slane %v11897_v47, 2  ;;  %v13491_v11 = vrot.slane %v11897_v47, 3  ;;  %v13492_v36 = vrot.slane %v11897_v47, 4 }
 0x732   : > { %v13493_v38 = vrot.slane %v11897_v47, 5  ;;  %v13494_v53 = vrot.slane %v11897_v47, 6  ;;  %v13495_v0 = vrot.slane %v11897_v47, 7  ;;  %v11916_v28 = vsel %vm979_vm6, %v11900_v30, %v11876_v48 }
 0x733   : > { %v11921_v43 = vsel %vm1018_vm7, %v5142_v50, %v5143_v18  ;;  %v5104_v40 = vrot.slane %v11900_v30, 1  ;;  %v5113_v14 = vsel %vm996_vm8, %v5111_v35, %v13490_v2  ;;  %v13488_v4 = vrot.slane %v11900_v30, 2  ;;  %v8200_v23 = vpop.f32.mrb[128].mxu0 }
 0x734   : > { %v13489_v60 = vrot.slane %v11900_v30, 3  ;;  %v5195_v59 = vrot.slane %v11900_v30, 4  ;;  %v5224_v55 = vrot.slane %v11900_v30, 5  ;;  %v5256_v7 = vrot.slane %v11900_v30, 6  ;;  %v5017_v20 = vpop.f32.mrb[129].mxu0 }
 0x735   : > { %v5105_v50 = vsel %vm996_vm8, %v5103_v24, %v5104_v40  ;;  %v11934_v3 = vsel %vm979_vm6, %v5104_v40, %v5113_v14  ;;  %v5139_v35 = vsel %vm1018_vm7, %v5137_v27, %v13488_v4  ;;  %v5285_v32 = vrot.slane %v11900_v30, 7  ;;  %v8201_v21 = vpop.f32.mrb[130].mxu0 }
 0x736   : > { %v5169_v54 = vsel %vm979_vm6, %v5167_v19, %v13489_v60  ;;  %v5196_v13 = vsel %vm840_vm0, %v5194_v63, %v5195_v59  ;;  %v11945_v12 = vsel %vm840_vm0, %v5195_v59, %v5197_v58  ;;  %v5225_v24 = vsel %vm962_vm5, %v5223_v49, %v5224_v55  ;;  %v5020_v40 = vpop.f32.mrb[131].mxu0 }
 0x737   : > { %v11949_v14 = vsel %vm962_vm5, %v5224_v55, %v5226_v1  ;;  %v5257_v27 = vsel %vm1011_vm4, %v5255_v22, %v5256_v7  ;;  %v11953_v4 = vsel %vm1011_vm4, %v5256_v7, %v5258_v34  ;;  %v5286_v21 = vsel %vm945_vm3, %v5284_v52, %v5285_v32 }
 0x738   : > { %v11957_v19 = vsel %vm945_vm3, %v5285_v32, %v5287_v61  ;;  %v5318_v63 = vmax.f32 %v11879_v57, %v5105_v50  ;;  %v5325_v49 = vmax.f32 %v5139_v35, %v5169_v54  ;;  %v5332_v59 = vmax.f32 %v5196_v13, %v5225_v24 }
 0x739   : > { %v5339_v60 = vmax.f32 %v5257_v27, %v5286_v21  ;;  %v5063_v1 = vmax.f32 %v5052_v44, 0.0  ;;  %v5061_v55 = vmax.f32 %v5050_v31, 0.0  ;;  %v5064_v2 = vmax.f32 %v5053_v51, 0.0 }
 0x73a   : > { %v5062_v22 = vmax.f32 %v5051_v46, 0.0  ;;  %v5041_v34 = vadd.f32 %v8200_v23, %v11839_v29  ;;  %v5039_v7 = vadd.f32 %v5017_v20, %v11847_v15  ;;  %v5040_v57 = vadd.f32 %v5020_v40, %v11852_v56 }
 0x73b   : > { %v5078_v52 = vmul.f32 %v11865_v39, %v5063_v1  ;;  %v5076_v32 = vmul.f32 %v11865_v39, %v5061_v55  ;;  %v11967_v61 = vmax.f32 %v5318_v63, %v5325_v49  ;;  %v5079_v54 = vmul.f32 %v11865_v39, %v5064_v2 }
 0x73c   : > { %v5077_v13 = vmul.f32 %v11865_v39, %v5062_v22  ;;  %v11972_v44 = vadd.f32 %v11855_v16, %v5041_v34  ;;  %v11975_v31 = vadd.f32 %v11855_v16, %v5039_v7  ;;  %v11984_v56 = vadd.f32 %v11855_v16, %v5040_v57 }
 0x73d   : > { %v11978_v29 = vadd.f32 %v11869_v17, %v5078_v52  ;;  %v11981_v15 = vadd.f32 %v11869_v17, %v5076_v32  ;;  %v11986_v51 = vmax.f32 %v5332_v59, %v5339_v60  ;;  %v11989_v46 = vadd.f32 %v11869_v17, %v5079_v54 }
 0x73e   : > { %v5092_v2 = vadd.f32 %v11869_v17, %v5077_v13 }
 0x73f   : > { %v5152_v35 = vrot.slane %v11978_v29, 2  ;;  %v5179_v24 = vrot.slane %v11978_v29, 3  ;;  %v5208_v16 = vrot.slane %v11978_v29, 4  ;;  %v5237_v60 = vrot.slane %v11978_v29, 5 }
 0x740   : > { %v5268_v40 = vrot.slane %v11978_v29, 6  ;;  %v5299_v27 = vrot.slane %v11978_v29, 7  ;;  %v5145_v21 = vrot.slane %v11981_v15, 2  ;;  %v5173_v63 = vrot.slane %v11981_v15, 3 }
 0x741   : > { %v5202_v49 = vrot.slane %v11981_v15, 4  ;;  %v5231_v59 = vrot.slane %v11981_v15, 5  ;;  %v5263_v1 = vrot.slane %v11981_v15, 6  ;;  %v5292_v22 = vrot.slane %v11981_v15, 7 }
 0x742   : > { %v5146_v55 = vsel %vm1018_vm7, %v5143_v18, %v5145_v21  ;;  %v12013_v34 = vsel %vm996_vm8, %v11978_v29, %v11989_v46  ;;  %v5154_v7 = vrot.slane %v11989_v46, 2  ;;  %v5174_v52 = vsel %vm979_vm6, %v13491_v11, %v5173_v63 }
 0x743   : > { %v5203_v32 = vsel %vm840_vm0, %v13492_v36, %v5202_v49  ;;  %v5232_v18 = vsel %vm962_vm5, %v13493_v38, %v5231_v59  ;;  %v5264_v57 = vsel %vm1011_vm4, %v13494_v53, %v5263_v1  ;;  %v5293_v54 = vsel %vm945_vm3, %v13495_v0, %v5292_v22 }
 0x744   : > { %v5327_v13 = vmax.f32 %v5146_v55, %v5174_v52  ;;  %v5334_v58 = vmax.f32 %v5203_v32, %v5232_v18  ;;  %v12032_v11 = vsel %vm1018_vm7, %v5152_v35, %v5154_v7  ;;  %v5341_v20 = vmax.f32 %v5264_v57, %v5293_v54 }
 0x745   : > { %v5181_v36 = vrot.slane %v11989_v46, 3  ;;  %v5210_v23 = vrot.slane %v11989_v46, 4  ;;  %v5239_v38 = vrot.slane %v11989_v46, 5  ;;  %v5269_v50 = vrot.slane %v11989_v46, 6 }
 0x746   : > { %v5300_v53 = vrot.slane %v11989_v46, 7  ;;  %v5099_v5 = vsel %vm1011_vm4, %v11981_v15, %v5092_v2  ;;  %v5114_v55 = vrot.slane %v11981_v15, 1  ;;  %v5355_v52 = vmax.f32 %v5334_v58, %v5341_v20 }
 0x747   : > { %v5182_v7 = vsel %vm979_vm6, %v5179_v24, %v5181_v36  ;;  %v5211_v32 = vsel %vm840_vm0, %v5208_v16, %v5210_v23  ;;  %v5240_v18 = vsel %vm962_vm5, %v5237_v60, %v5239_v38  ;;  %v5270_v57 = vsel %vm1011_vm4, %v5268_v40, %v5269_v50 }
 0x748   : > { %v5301_v54 = vsel %vm945_vm3, %v5299_v27, %v5300_v53  ;;  %v13832_v0 = vrot.slane %v11897_v47, 1  ;;  %v5121_v62 = vrot.slane %v5092_v2, 1  ;;  %v5151_v25 = vrot.slane %v5092_v2, 2 }
 0x749   : > { %v5178_v37 = vrot.slane %v5092_v2, 3  ;;  %v5207_v42 = vrot.slane %v5092_v2, 4  ;;  %v5236_v45 = vrot.slane %v5092_v2, 5  ;;  %v13833_v58 = vrot.slane %v11978_v29, 1 }
 0x74a   : > { %v5115_v41 = vsel %vm996_vm8, %v13832_v0, %v5114_v55  ;;  %v5282_v23 = vsel %vm1011_vm4, %v5263_v1, %v5268_v40  ;;  %v5294_v38 = vrot.slane %v5092_v2, 7  ;;  %v5316_v20 = vsel %vm1011_vm4, %v5092_v2, %v11978_v29 }
 0x74b   : > { %v5123_v36 = vsel %vm996_vm8, %v5121_v62, %v13833_v58  ;;  %v5153_v50 = vsel %vm1018_vm7, %v5151_v25, %v5152_v35  ;;  %v5180_v0 = vsel %vm979_vm6, %v5178_v37, %v5179_v24  ;;  %v5209_v6 = vsel %vm840_vm0, %v5207_v42, %v5208_v16 }
 0x74c   : > { %v5135_v53 = vsel %vm1011_vm4, %v5114_v55, %v5123_v36  ;;  %v5165_v8 = vsel %vm1011_vm4, %v5145_v21, %v5153_v50  ;;  %v5192_v33 = vsel %vm1011_vm4, %v5173_v63, %v5180_v0  ;;  %v5221_v62 = vsel %vm1011_vm4, %v5202_v49, %v5209_v6 }
 0x74d   : > { %v5238_v40 = vsel %vm962_vm5, %v5236_v45, %v5237_v60  ;;  %v5295_v2 = vsel %vm945_vm3, %v5292_v22, %v5294_v38  ;;  %v5320_v55 = vmax.f32 %v11897_v47, %v5115_v41  ;;  %v5321_v58 = vmax.f32 %v5099_v5, %v5135_v53 }
 0x74e   : > { %v5253_v1 = vsel %vm1011_vm4, %v5231_v59, %v5238_v40  ;;  %v5313_v25 = vsel %vm1011_vm4, %v5295_v2, %v5299_v27  ;;  %v5328_v37 = vmax.f32 %v5165_v8, %v5192_v33  ;;  %v13834_v42 = vmax.f32 %v11972_v44, 0.0 }
 0x74f   : > { %v5335_v35 = vmax.f32 %v5221_v62, %v5253_v1  ;;  %v5342_v16 = vmax.f32 %v5282_v23, %v5313_v25  ;;  %v5348_v21 = vmax.f32 %v5320_v55, %v5327_v13  ;;  %v13835_v6 = vmax.f32 %v11975_v31, 0.0 }
 0x750   : > { %v5082_v24 = vmul.f32 %v11865_v39, %v13834_v42  ;;  %v5066_v60 = vmax.f32 %v11984_v56, 0.0  ;;  %v5349_v63 = vmax.f32 %v5321_v58, %v5328_v37  ;;  %v5360_v33 = vmax.f32 %v11967_v61, %v11986_v51 }
 0x751   : > { %v5080_v45 = vmul.f32 %v11865_v39, %v13835_v6  ;;  %v13836_v8 = vrot.slane %v11900_v30, 2  ;;  %v5356_v44 = vmax.f32 %v5335_v35, %v5342_v16  ;;  %v5362_v27 = vmax.f32 %v5348_v21, %v5355_v52 }
 0x752   : > { %v12076_v41 = vadd.f32 %v11869_v17, %v5082_v24  ;;  %v5081_v59 = vmul.f32 %v11865_v39, %v5066_v60  ;;  %v12093_v22 = vmax.f32 %v5360_v33, %v11900_v30  ;;  %v13837_v53 = vrot.slane %v11978_v29, 1 }
 0x753   : > { %v12084_v5 = vsel %vm979_vm6, %v13836_v8, %v11921_v43  ;;  %v12087_v31 = vadd.f32 %v11869_v17, %v5080_v45  ;;  %v5363_v61 = vmax.f32 %v5349_v63, %v5356_v44  ;;  %v12096_v51 = vmax.f32 %v5362_v27, %v11981_v15 }
 0x754   : > { %v5247_v56 = vrot.slane %v12076_v41, 5  ;;  %v5276_v49 = vrot.slane %v12076_v41, 6  ;;  %v5520_v2 = vrot.slane %v12093_v22, 7  ;;  %v5524_v55 = vrot.slane %v12093_v22, 5 }
 0x755   : > { %v5128_v43 = vrot.slane %v12087_v31, 1  ;;  %v5158_v13 = vrot.slane %v12087_v31, 2  ;;  %v5185_v52 = vrot.slane %v12087_v31, 3  ;;  %v5214_v36 = vrot.slane %v12087_v31, 4 }
 0x756   : > { %v5244_v23 = vrot.slane %v12087_v31, 5  ;;  %v5273_v38 = vrot.slane %v12087_v31, 6  ;;  %v12104_v39 = vmax.f32 %v5363_v61, %v5316_v20  ;;  %v5304_v0 = vrot.slane %v12087_v31, 7 }
 0x757   : > { %v12109_v50 = vsel %vm996_vm8, %v13837_v53, %v5128_v43  ;;  %v12113_v15 = vsel %vm996_vm8, %v12032_v11, %v5158_v13  ;;  %v12117_v62 = vsel %vm996_vm8, %v5182_v7, %v5185_v52  ;;  %v12120_v40 = vsel %vm996_vm8, %v5211_v32, %v5214_v36 }
 0x758   : > { %v12123_v20 = vsel %vm996_vm8, %v5240_v18, %v5244_v23  ;;  %v12126_v29 = vsel %vm996_vm8, %v5270_v57, %v5273_v38  ;;  %v12129_v1 = vsel %vm996_vm8, %v5301_v54, %v5304_v0  ;;  %v12132_v11 = vadd.f32 %v11869_v17, %v5081_v59 }
 0x759   : > { %v5522_v7 = vrot.slane %v12093_v22, 6  ;;  %v5526_v32 = vrot.slane %v12093_v22, 4  ;;  %v5528_v18 = vrot.slane %v12093_v22, 3  ;;  %v5530_v58 = vrot.slane %v12093_v22, 2 }
 0x75a   : > { %v5129_v57 = vrot.slane %v12132_v11, 1  ;;  %v5159_v54 = vrot.slane %v12132_v11, 2  ;;  %v5186_v25 = vrot.slane %v12132_v11, 3  ;;  %v5215_v17 = vrot.slane %v12132_v11, 4 }
 0x75b   : > { %v5245_v37 = vrot.slane %v12132_v11, 5  ;;  %v5274_v35 = vrot.slane %v12132_v11, 6  ;;  %v5305_v42 = vrot.slane %v12132_v11, 7  ;;  %v5532_v24 = vrot.slane %v12093_v22, 1 }
 0x75c   : > { %v5130_v16 = vsel %vm996_vm8, %v5128_v43, %v5129_v57  ;;  %v5160_v21 = vsel %vm1018_vm7, %v5158_v13, %v5159_v54  ;;  %v5187_v6 = vsel %vm979_vm6, %v5185_v52, %v5186_v25  ;;  %v5216_v45 = vsel %vm840_vm0, %v5214_v36, %v5215_v17 }
 0x75d   : > { %v5246_v60 = vsel %vm962_vm5, %v5244_v23, %v5245_v37  ;;  %v5275_v63 = vsel %vm1011_vm4, %v5273_v38, %v5274_v35  ;;  %v5306_v33 = vsel %vm945_vm3, %v5304_v0, %v5305_v42  ;;  %v5323_v8 = vmax.f32 %v12087_v31, %v5130_v16 }
 0x75e   : > { %v5330_v44 = vmax.f32 %v5160_v21, %v5187_v6  ;;  %v5337_v27 = vmax.f32 %v5216_v45, %v5246_v60  ;;  %v5344_v59 = vmax.f32 %v5275_v63, %v5306_v33  ;;  %v5544_v61 = vsel %vm945_vm3, %v12093_v22, %v5520_v2 }
 0x75f   : > { %v5545_v43 = vsel %vm1011_vm4, %v5544_v61, %v5522_v7  ;;  %v5549_v13 = vsel %vm945_vm3, %v5528_v18, %v5530_v58  ;;  %v13838_v52 = vrot.slane %v11897_v47, 3  ;;  %v13839_v36 = vrot.slane %v11900_v30, 3 }
 0x760   : > { %v13840_v38 = vrot.slane %v11897_v47, 4  ;;  %v5351_v0 = vmax.f32 %v5323_v8, %v5330_v44  ;;  %v5358_v16 = vmax.f32 %v5337_v27, %v5344_v59  ;;  %v5546_v21 = vsel %vm840_vm0, %v5545_v43, %v5524_v55 }
 0x761   : > { %v5191_v23 = vsel %vm979_vm6, %v13839_v36, %v13838_v52  ;;  %v5550_v6 = vsel %vm962_vm5, %v5549_v13, %v5532_v24  ;;  %v5547_v58 = vsel %vm1018_vm7, %v5546_v21, %v5526_v32  ;;  %v13841_v45 = vrot.slane %v11897_v47, 5 }
 0x762   : > { %v5220_v53 = vsel %vm979_vm6, %v11945_v12, %v13840_v38  ;;  %v5551_v30 = vsel %vm840_vm0, %v5550_v6, %v12093_v22  ;;  %v13842_v12 = vrot.slane %v11897_v47, 6  ;;  %v5365_v33 = vmax.f32 %v5351_v0, %v5358_v16 }
 0x763   : > { %v5252_v60 = vsel %vm979_vm6, %v11949_v14, %v13841_v45  ;;  %v5548_v24 = vsel %vm996_vm8, %v5547_v58, %v5528_v18  ;;  %v5552_v8 = vsel %vm1018_vm7, %v5551_v30, %v5520_v2  ;;  %v13843_v44 = vrot.slane %v11897_v47, 7 }
 0x764   : > { %v5281_v63 = vsel %vm979_vm6, %v11953_v4, %v13842_v12  ;;  %v8507_v59 = vpack.i.bf16 %v5552_v8, %v5548_v24  ;;  %v5315_v14 = vsel %vm979_vm6, %v11876_v48, %v11897_v47  ;;  %v5326_v61 = vmax.f32 %v12084_v5, %v5191_v23 }
 0x765   : > { %v5312_v27 = vsel %vm979_vm6, %v11957_v19, %v13843_v44  ;;  %v5333_v43 = vmax.f32 %v5220_v53, %v5252_v60  ;;  %v12209_v4 = vmax.f32 %v5365_v33, %v12132_v11  ;;  %v5553_v18 = vsel %vm945_vm3, %v5522_v7, %v5524_v55 }
 0x766   : > { %v5340_v13 = vmax.f32 %v5281_v63, %v5312_v27  ;;  %v5565_v2 = vrot.slane %v12096_v51, 2  ;;  %8508 = vrot.lane.b32.xlu1 %v8507_v59, %s8868_s2  ;;  %v13844_v19 = vmax.f32 %v11916_v28, %v11934_v3  ;;  %v5568_v48 = vrot.slane %v12096_v51, 1 }
 0x767   : > { %v5570_v47 = vrot.slane %v12096_v51, 7  ;;  %v5572_v5 = vrot.slane %v12096_v51, 6  ;;  %v5574_v23 = vrot.slane %v12096_v51, 5  ;;  %v5576_v7 = vrot.slane %v12096_v51, 4 }
 0x768   : > { %v5347_v52 = vmax.f32 %v13844_v19, %v5326_v61  ;;  %v5354_v36 = vmax.f32 %v5333_v43, %v5340_v13  ;;  %v5592_v55 = vrot.slane %v12096_v51, 3  ;;  %v5587_v38 = vsel %vm945_vm3, %v5568_v48, %v12096_v51 }
 0x769   : > { %v5596_v53 = vrot.slane %v12104_v39, 7  ;;  %v12227_v28 = vrot.slane %v12104_v39, 6  ;;  %v12230_v3 = vrot.slane %v12104_v39, 5  ;;  %v5588_v16 = vsel %vm1011_vm4, %v5587_v38, %v5570_v47 }
 0x76a   : > { %v5361_v0 = vmax.f32 %v5347_v52, %v5354_v36  ;;  %v5603_v21 = vrot.slane %v12104_v39, 4  ;;  %v5605_v6 = vrot.slane %v12104_v39, 3  ;;  %v5589_v58 = vsel %vm840_vm0, %v5588_v16, %v5572_v5 }
 0x76b   : > { %v5597_v30 = vsel %vm945_vm3, %v5570_v47, %v5596_v53  ;;  %v5612_v45 = vsel %vm1011_vm4, %v5576_v7, %v5592_v55  ;;  %v5708_v60 = vrot.slane %v5576_v7, 6  ;;  %v5590_v63 = vsel %vm1018_vm7, %v5589_v58, %v5574_v23 }
 0x76c   : > { %v5368_v12 = vmax.f32 %v5361_v0, %v5315_v14  ;;  %v5613_v33 = vsel %vm962_vm5, %v5612_v45, %v5565_v2  ;;  %v5616_v24 = vsel %vm1011_vm4, %v5597_v30, %v12227_v28  ;;  %v5591_v8 = vsel %vm996_vm8, %v5590_v63, %v5576_v7 }
 0x76d   : > { %v5614_v44 = vsel %vm979_vm6, %v5613_v33, %v5568_v48  ;;  %v5617_v27 = vsel %vm840_vm0, %v5616_v24, %v12230_v3  ;;  %v12251_v59 = vsel %vm996_vm8, %v11989_v46, %v12087_v31  ;;  %v5706_v5 = vrot.slane %v5591_v8, 6 }
 0x76e   : > { %v5535_v14 = vrot.slane %v5368_v12, 4  ;;  %v5538_v61 = vrot.slane %v5368_v12, 3  ;;  %v5540_v43 = vrot.slane %v5368_v12, 2  ;;  %v5542_v13 = vrot.slane %v5368_v12, 1 }
 0x76f   : > { %v5557_v19 = vrot.slane %v5368_v12, 7  ;;  %v5559_v52 = vrot.slane %v5368_v12, 6  ;;  %v5561_v47 = vrot.slane %v5368_v12, 5  ;;  %v5615_v46 = vsel %vm996_vm8, %v5614_v44, %v12096_v51 }
 0x770   : > { %v5536_v36 = vsel %vm840_vm0, %v5526_v32, %v5535_v14  ;;  %v5578_v23 = vsel %vm945_vm3, %v5540_v43, %v5542_v13  ;;  %v5566_v7 = vsel %vm1018_vm7, %v5540_v43, %v5565_v2  ;;  %v5618_v0 = vsel %vm979_vm6, %v5617_v27, %v12230_v3 }
 0x771   : > { %v5554_v31 = vsel %vm962_vm5, %v5553_v18, %v5536_v36  ;;  %v5579_v55 = vsel %vm962_vm5, %v5578_v23, %v5368_v12  ;;  %v5583_v38 = vsel %vm1011_vm4, %v5561_v47, %v5535_v14  ;;  %v5619_v2 = vsel %vm1018_vm7, %v5618_v0, %v5603_v21 }
 0x772   : > { %v5555_v22 = vsel %vm979_vm6, %v5554_v31, %v5538_v61  ;;  %v5580_v32 = vsel %vm979_vm6, %v5579_v55, %v5557_v19  ;;  %v5584_v16 = vsel %vm840_vm0, %v5583_v38, %v5538_v61  ;;  %v12275_v30 = vsel %vm996_vm8, %v5619_v2, %v5605_v6 }
 0x773   : > { %v5556_v58 = vsel %vm1018_vm7, %v5555_v22, %v5540_v43  ;;  %v5581_v51 = vsel %vm1018_vm7, %v5580_v32, %v5557_v19  ;;  %v5585_v18 = vsel %vm979_vm6, %v5584_v16, %v5566_v7  ;;  %v5709_v63 = vsel %vm1011_vm4, %v5706_v5, %v5708_v60 }
 0x774   : > { %v5582_v45 = vsel %vm996_vm8, %v5581_v51, %v5559_v52  ;;  %v5586_v12 = vsel %vm996_vm8, %v5585_v18, %v5568_v48  ;;  %v5715_v33 = vrot.slane %v5615_v46, 5  ;;  %v5716_v8 = vrot.slane %v12275_v30, 5  ;;  %v13846_v51 = vld [vmem:[#allocation48_spill] sm:$0xff] }
 0x775   : > { %v5703_v24 = vrot.slane %v5582_v45, 6  ;;  %v5704_v21 = vrot.slane %v5586_v12, 6  ;;  %v5322_v44 = vmax.f32 %v12013_v34, %v12109_v50  ;;  %v5329_v14 = vmax.f32 %v12113_v15, %v12117_v62 }
 0x776   : > { %v5748_v27 = vsel %vm962_vm5, %v5709_v63, %v5715_v33  ;;  %v5336_v61 = vmax.f32 %v12120_v40, %v12123_v20  ;;  %v5343_v48 = vmax.f32 %v12126_v29, %v12129_v1  ;;  %v5717_v52 = vsel %vm962_vm5, %v5715_v33, %v5716_v8 }
 0x777   : > { %v5747_v60 = vsel %vm1011_vm4, %v5542_v13, %v5703_v24  ;;  %v5705_v43 = vsel %vm1011_vm4, %v5703_v24, %v5704_v21  ;;  %v5707_v19 = vsel %vm1011_vm4, %v5704_v21, %v5706_v5  ;;  %v8532_v47 = vpack.i.bf16 %v5717_v52, %v5748_v27 }
 0x778   : > { %v8512_v34 = vpack.i.bf16 %v5747_v60, %v5556_v58  ;;  %v8522_v50 = vpack.i.bf16 %v5707_v19, %v5705_v43  ;;  %v5350_v36 = vmax.f32 %v5322_v44, %v5329_v14  ;;  %v5307_v15 = vrot.slane %v12076_v41, 7 }
 0x779   : > { %v5357_v62 = vmax.f32 %v5336_v61, %v5343_v48  ;;  %v5607_v40 = vrot.slane %v12104_v39, 2  ;;  %v5609_v20 = vrot.slane %v12104_v39, 1  ;;  %v5720_v29 = vrot.slane %v12227_v28, 5 }
 0x77a   : > { %8513 = vrot.lane.b32.xlu1 %v8512_v34, %s8868_s2  ;;  %8523 = vrot.lane.b32.xlu0 %v8522_v50, %s8868_s2  ;;  %v5643_v1 = vrot.slane %v12209_v4, 1  ;;  %v5661_v13 = vrot.slane %v12209_v4, 7  ;;  %v5663_v5 = vrot.slane %v12209_v4, 6  ;;  %v5667_v46 = vrot.slane %v12209_v4, 4 }
 0x77b   : > { %v5364_v23 = vmax.f32 %v5350_v36, %v5357_v62  ;;  %v5621_v7 = vsel %vm945_vm3, %v5605_v6, %v5607_v40  ;;  %v5669_v31 = vrot.slane %v12209_v4, 3  ;;  %v5671_v38 = vrot.slane %v12209_v4, 2  ;;  %v13848_v40 = vld [vmem:[#allocation57_spill] sm:$0xff] }
 0x77c   : > { %v5622_v55 = vsel %vm962_vm5, %v5621_v7, %v5609_v20  ;;  %v5687_v0 = vsel %vm945_vm3, %v5643_v1, %v12209_v4  ;;  %v5248_v22 = vsel %vm962_vm5, %v5245_v37, %v5247_v56  ;;  %v13845_v58 = vpack.i.bf16 %v11606_v26, %v11591_v10  ;;  %v13849_v20 = vld [vmem:[#allocation33_spill] sm:$0xff] }
 0x77d   : > { %v5371_v32 = vmax.f32 %v5364_v23, %v12251_v59  ;;  %v5623_v6 = vsel %vm840_vm0, %v5622_v55, %v12104_v39  ;;  %v5688_v16 = vsel %vm962_vm5, %v5687_v0, %v5661_v13  ;;  %v5691_v2 = vsel %vm1011_vm4, %v5667_v46, %v5669_v31 }
 0x77e   : > { %8518 = vrot.lane.b32.xlu1 %v13845_v58, %s8867_s30  ;;  %v13847_v56 = vpack.i.bf16 %v11595_v9, %v13846_v51  ;;  %v5624_v37 = vsel %vm1018_vm7, %v5623_v6, %v5596_v53  ;;  %v5665_v59 = vrot.slane %v12209_v4, 5  ;;  %v5689_v18 = vsel %vm979_vm6, %v5688_v16, %v5663_v5 }
 0x77f   : > { %v5692_v30 = vsel %vm962_vm5, %v5691_v2, %v5671_v38  ;;  %v5626_v45 = vrot.slane %v5371_v32, 5  ;;  %v5629_v12 = vrot.slane %v5371_v32, 4  ;;  %v5631_v63 = vrot.slane %v5371_v32, 3 }
 0x780   : > { %8528 = vrot.lane.b32.xlu0 %v13847_v56, %s8867_s30  ;;  %v5633_v10 = vrot.slane %v5371_v32, 2  ;;  %v5718_v26 = vrot.slane %v5624_v37, 5  ;;  %v5635_v33 = vrot.slane %v5371_v32, 1  ;;  %v5637_v24 = vrot.slane %v5371_v32, 7 }
 0x781   : > { %v5639_v21 = vrot.slane %v5371_v32, 6  ;;  %v5627_v9 = vsel %vm962_vm5, %v12230_v3, %v5626_v45  ;;  %v5655_v39 = vsel %vm945_vm3, %v5626_v45, %v5629_v12  ;;  %v5690_v53 = vsel %vm1018_vm7, %v5689_v18, %v5665_v59 }
 0x782   : > { %v5693_v44 = vsel %vm979_vm6, %v5692_v30, %v5643_v1  ;;  %8533 = vrot.lane.b32.xlu1 %v8532_v47, %s8868_s2  ;;  %v5646_v27 = vsel %vm1011_vm4, %v12227_v28, %v5627_v9  ;;  %v5719_v14 = vsel %vm962_vm5, %v5716_v8, %v5718_v26  ;;  %v5721_v61 = vsel %vm962_vm5, %v5718_v26, %v5720_v29 }
 0x783   : > { %v5644_v48 = vsel %vm996_vm8, %v5635_v33, %v5643_v1  ;;  %v5647_v60 = vsel %vm840_vm0, %v5646_v27, %v5629_v12  ;;  %v5650_v3 = vsel %vm945_vm3, %v5633_v10, %v5635_v33  ;;  %v5656_v43 = vsel %vm962_vm5, %v5655_v39, %v5631_v63  ;;  %v13854_v12 = vld [vmem:[#allocation45_spill] sm:$0xff] }
 0x784   : > { %v12354_v19 = vsel %vm996_vm8, %v5693_v44, %v12209_v4  ;;  %v5648_v52 = vsel %vm979_vm6, %v5647_v60, %v5631_v63  ;;  %v5651_v28 = vsel %vm1011_vm4, %v5650_v3, %v5371_v32  ;;  %v5657_v8 = vsel %vm840_vm0, %v5656_v43, %v5631_v63  ;;  %v13855_v63 = vld [vmem:[#allocation74_spill] sm:$0xff] }
 0x785   : > { %v5739_v34 = vrot.slane %v5690_v53, 2  ;;  %v5649_v50 = vsel %vm996_vm8, %v5648_v52, %v5633_v10  ;;  %v5652_v47 = vsel %vm840_vm0, %v5651_v28, %v5637_v24  ;;  %v5658_v36 = vsel %vm979_vm6, %v5657_v8, %v5633_v10  ;;  %v8494_v28 = vpop.permute.xlu0 %8493 }
 0x786   : > { %v5740_v62 = vrot.slane %v12354_v19, 2  ;;  %v13850_v29 = vpack.i.bf16 %v13848_v40, %v13849_v20  ;;  %v5727_v1 = vrot.slane %v5649_v50, 4  ;;  %v5653_v5 = vsel %vm1018_vm7, %v5652_v47, %v5639_v21  ;;  %v13857_v40 = vld [vmem:[#allocation30_spill] sm:$0xff] }
 0x787   : > { %v5659_v23 = vsel %vm1018_vm7, %v5658_v36, %v5644_v48  ;;  %v5277_v7 = vsel %vm1011_vm4, %v5274_v35, %v5276_v49  ;;  %v5654_v31 = vsel %vm996_vm8, %v5653_v5, %v5626_v45  ;;  %v5308_v0 = vsel %vm945_vm3, %v5305_v42, %v5307_v15  ;;  %v770_v35 = vld [vmem:[%s13357_s11 + $0x40] sm:$0xff]  ;;  %v771_v42 = vld [vmem:[%s13357_s11 + $0x48] sm:$0xff] }
 0x788   : > { %8538 = vrot.lane.b32.xlu1 %v13850_v29, %s8867_s30  ;;  %v5730_v55 = vrot.slane %v5659_v23, 4  ;;  %v5741_v38 = vsel %vm1018_vm7, %v5739_v34, %v5740_v62  ;;  %v5749_v32 = vsel %vm840_vm0, %v5721_v61, %v5727_v1  ;;  %v5728_v6 = vrot.slane %v5654_v31, 4  ;;  %v774_v61 = vld [vmem:[%s13359_s13 + $0x8] sm:$0xff] }
 0x789   : > { %v5324_v16 = vmax.f32 %v12132_v11, %v5129_v57  ;;  %v5331_v49 = vmax.f32 %v5159_v54, %v5186_v25  ;;  %v8542_v15 = vpack.i.bf16 %v5749_v32, %v5719_v14  ;;  %v5338_v58 = vmax.f32 %v5215_v17, %v5248_v22  ;;  %v13851_v11 = vld [vmem:[#allocation25_spill] sm:$0xff]  ;;  %v13852_v17 = vld [vmem:[#allocation46_spill] sm:$0xff]  ;;  %v773_v14 = vld [vmem:[%s13359_s13] sm:$0xff] }
 0x78a   : > { %v5732_v2 = vsel %vm840_vm0, %v5730_v55, %v5667_v46  ;;  %v5345_v57 = vmax.f32 %v5277_v7, %v5308_v0  ;;  %v5729_v51 = vsel %vm840_vm0, %v5727_v1, %v5728_v6  ;;  %v5731_v56 = vsel %vm840_vm0, %v5728_v6, %v5730_v55  ;;  %v13858_v29 = vld [vmem:[#allocation28_spill] sm:$0xff]  ;;  %v8499_v7 = vpop.permute.xlu0 %8498 }
 0x78b   : > { %v5750_v54 = vsel %vm1018_vm7, %v5732_v2, %v5739_v34  ;;  %v5352_v25 = vmax.f32 %v5324_v16, %v5331_v49  ;;  %8543 = vrot.lane.b32.xlu0 %v8542_v15, %s8868_s2  ;;  %v8552_v37 = vpack.i.bf16 %v5731_v56, %v5729_v51  ;;  %v5908_v30 = vpack.c.bf16 %v771_v42, %v770_v35  ;;  %v13859_v55 = vld [vmem:[#allocation32_spill] sm:$0xff]  ;;  %v13861_v35 = vld [vmem:[#allocation29_spill] sm:$0xff] }
 0x78c   : > { %v8562_v59 = vpack.i.bf16 %v5741_v38, %v5750_v54  ;;  %v5359_v18 = vmax.f32 %v5338_v58, %v5345_v57  ;;  %v13853_v22 = vpack.i.bf16 %v13851_v11, %v13852_v17  ;;  %v13856_v10 = vpack.i.bf16 %v13854_v12, %v13855_v63  ;;  %v13860_v38 = vld [vmem:[#allocation26_spill] sm:$0xff]  ;;  %v13862_v54 = vld [vmem:[#allocation64_spill] sm:$0xff] }
 0x78d   : > { %8553 = vrot.lane.b32.xlu1 %v8552_v37, %s8868_s2  ;;  %8210 = vmatprep.subr.bf16.mxu1 %v5908_v30  ;;  %v6045_v48 = vpack.c.bf16 %v774_v61, %v773_v14  ;;  %v8496_v8 = vunpack.i.h.bf16 %v8494_v28  ;;  %v8495_v34 = vunpack.i.l.bf16 %v8494_v28  ;;  %v2479_v0 = vmax.f32 %v13860_v38, %v13859_v55 }
 0x78e   : > { %v5366_v46 = vmax.f32 %v5352_v25, %v5359_v18  ;;  %8211 = vmatpush3.bf16.msra.mxu1 %v5908_v30  ;;  %v8504_v31 = vpop.permute.xlu0 %8503  ;;  %v8501_v32 = vunpack.i.h.bf16 %v8499_v7  ;;  %v8500_v6 = vunpack.i.l.bf16 %v8499_v7  ;;  %v13864_v30 = vld [vmem:[#allocation69_spill] sm:$0xff] }
 0x78f   : > { %8548 = vrot.lane.b32.xlu0 %v13853_v22, %s8867_s30  ;;  %8228 = vmatprep.subr.bf16.mxu1 %v6045_v48  ;;  %v5864_v20 = vsel %vm1227_vm9, %v13857_v40, %v8496_v8  ;;  %v5863_v1 = vsel %vm1227_vm9, %v13858_v29, %v8495_v34  ;;  %v8506_v16 = vunpack.i.h.bf16 %v8504_v31  ;;  %v8505_v49 = vunpack.i.l.bf16 %v8504_v31  ;;  %v13867_v8 = vld [vmem:[#allocation52_spill] sm:$0xff] }
 0x790   : > { %v5373_v45 = vmax.f32 %v5366_v46, %v12076_v41  ;;  %v2495_v42 = vmax.f32 %v2479_v0, %v13861_v35  ;;  %v5866_v25 = vsel %vm1227_vm9, %v13862_v54, %v8501_v32 }
 0x791   : > { %8558 = vrot.lane.b32.xlu1 %v13856_v10, %s8867_s30  ;;  %v5867_v46 = vsel %vm1227_vm9, %v13864_v30, %v8505_v49  ;;  %s8869_s30 = smov 96  }
 0x792   : > { %v5674_v26 = vrot.slane %v5373_v45, 7  ;;  %v5677_v33 = vrot.slane %v5373_v45, 6  ;;  %v5683_v24 = vrot.slane %v5373_v45, 3  ;;  %v5685_v21 = vrot.slane %v5373_v45, 2 }
 0x793   : > { %8563 = vrot.lane.b32.xlu0 %v8562_v59, %s8868_s2  ;;  %v5679_v39 = vrot.slane %v5373_v45, 5  ;;  %v5681_v53 = vrot.slane %v5373_v45, 4  ;;  %v5865_v37 = vsel %vm1227_vm9, %v2495_v42, %v8500_v6  ;;  %v13863_v59 = vld [vmem:[#allocation65_spill] sm:$0xff] }
 0x794   : > { %v5675_v9 = vsel %vm945_vm3, %v5661_v13, %v5674_v26  ;;  %v5699_v27 = vsel %vm945_vm3, %v5683_v24, %v5685_v21  ;;  %v5868_v18 = vsel %vm1227_vm9, %v13863_v59, %v8506_v16 }
 0x795   : > { %v5695_v44 = vsel %vm1011_vm4, %v5675_v9, %v5677_v33  ;;  %v5744_v3 = vrot.slane %v5699_v27, 2 }
 0x796   : > { %v5696_v41 = vsel %vm840_vm0, %v5695_v44, %v5679_v39  ;;  %v13865_v39 = vld [vmem:[#allocation67_spill] sm:$0xff]  ;;  %v13866_v44 = vld [vmem:[#allocation66_spill] sm:$0xff] }
 0x797   : > { %v5697_v4 = vsel %vm979_vm6, %v5696_v41, %v5681_v53 }
 0x798   : > { %v5698_v13 = vsel %vm996_vm8, %v5697_v4, %v5683_v24 }
 0x799   : > { %v5742_v60 = vrot.slane %v5698_v13, 2 }
 0x79b   : > { %v5743_v43 = vsel %vm1018_vm7, %v5740_v62, %v5742_v60  ;;  %v5745_v19 = vsel %vm1018_vm7, %v5742_v60, %v5744_v3 }
 0x79c   : > { %v8567_v52 = vpack.i.bf16 %v5745_v19, %v5743_v43 }
 0x79e   : > { %8568 = vrot.lane.b32.xlu1 %v8567_v52, %s8868_s2 }
 0x7d8   : > { %v8509_v50 = vpop.permute.xlu1 %8508 }
 0x7d9   : > { %v8511_v47 = vunpack.i.h.bf16 %v8509_v50  ;;  %v8510_v36 = vunpack.i.l.bf16 %v8509_v50  ;;  %v13868_v50 = vld [vmem:[#allocation70_spill] sm:$0xff] }
 0x7db   : > { %v5881_v62 = vsel %vm5879_vm11, %v5864_v20, %v8511_v47  ;;  %v5880_v5 = vsel %vm5879_vm11, %v5863_v1, %v8510_v36 }
 0x7dc   : > { %v5896_v23 = vpack.c.bf16 %v5881_v62, %v5880_v5  ;;  %v13869_v62 = vld [vmem:[#allocation63_spill] sm:$0xff] }
 0x7de   : > { %8212 = vmatprep.mubr.msk.bf16.mxu1 %vm5915_vm12, %v5896_v23  ;;  %v13870_v23 = vld [vmem:[#allocation53_spill] sm:$0xff] }
 0x7ec   : > { %v8514_v15 = vpop.permute.xlu1 %8513  ;;  %v8524_v2 = vpop.permute.xlu0 %8523 }
 0x7ed   : > { %v8516_v58 = vunpack.i.h.bf16 %v8514_v15  ;;  %v8515_v57 = vunpack.i.l.bf16 %v8514_v15  ;;  %v8526_v51 = vunpack.i.h.bf16 %v8524_v2  ;;  %v8525_v56 = vunpack.i.l.bf16 %v8524_v2  ;;  %v13871_v15 = vld [vmem:[#allocation71_spill] sm:$0xff] }
 0x7ef   : > { %v5883_v11 = vsel %vm5879_vm11, %v5866_v25, %v8516_v58  ;;  %v5882_v17 = vsel %vm5879_vm11, %v5865_v37, %v8515_v57  ;;  %v5885_v22 = vsel %vm5879_vm11, %v5868_v18, %v8526_v51  ;;  %v5884_v45 = vsel %vm5879_vm11, %v5867_v46, %v8525_v56  ;;  %v13872_v58 = vld [vmem:[#allocation68_spill] sm:$0xff] }
 0x7f0   : > { %v5897_v12 = vpack.c.bf16 %v5883_v11, %v5882_v17  ;;  %v8519_v63 = vpop.permute.xlu1 %8518  ;;  %v5898_v10 = vpack.c.bf16 %v5885_v22, %v5884_v45  ;;  %v13873_v11 = vld [vmem:[#allocation72_spill] sm:$0xff]  ;;  %v13874_v22 = vld [vmem:[#allocation41_spill] sm:$0xff] }
 0x7f1   : > { %v8521_v26 = vunpack.i.h.bf16 %v8519_v63  ;;  %v8520_v33 = vunpack.i.l.bf16 %v8519_v63 }
 0x7f2   : > { %8213 = vmatmul.mubr.msk.bf16.vlgmr.msra.gmra.mrb[108].mxu1 %vm5915_vm12, %v5897_v12  ;;  %v8529_v61 = vpop.permute.xlu0 %8528 }
 0x7f3   : > { %8216 = vmatprep.mubr.msk.bf16.mxu1 %vm5915_vm12, %v5898_v10  ;;  %8229 = vmatpush3.bf16.msra.mxu1 %v6045_v48  ;;  %v5870_v53 = vsel %vm1227_vm9, %v13865_v39, %v8521_v26  ;;  %v5869_v41 = vsel %vm1227_vm9, %v13866_v44, %v8520_v33  ;;  %v8531_v60 = vunpack.i.h.bf16 %v8529_v61  ;;  %v8530_v3 = vunpack.i.l.bf16 %v8529_v61  ;;  %v776_v26 = vld [vmem:[%s13361_s15] sm:$0xff]  ;;  %v777_v33 = vld [vmem:[%s13361_s15 + $0x8] sm:$0xff] }
 0x7f4   : > { %v8534_v24 = vpop.permute.xlu1 %8533 }
 0x7f5   : > { %v8536_v21 = vunpack.i.h.bf16 %v8534_v24  ;;  %v8535_v9 = vunpack.i.l.bf16 %v8534_v24  ;;  %v5872_v34 = vsel %vm1227_vm9, %v13867_v8, %v8531_v60  ;;  %v5871_v47 = vsel %vm1227_vm9, %v13868_v50, %v8530_v3 }
 0x7f6   : > { %v6181_v24 = vpack.c.bf16 %v777_v33, %v776_v26 }
 0x7f7   : > { %v5887_v27 = vsel %vm5879_vm11, %v5870_v53, %v8536_v21  ;;  %v5886_v14 = vsel %vm5879_vm11, %v5869_v41, %v8535_v9  ;;  %v7513_v9 = vld [vmem:[%s13358_s12] ss:$0 sm:$0xff] }
 0x7f8   : > { %v5899_v4 = vpack.c.bf16 %v5887_v27, %v5886_v14  ;;  %8246 = vmatprep.subr.bf16.mxu0 %v6181_v24 }
 0x7f9   : > { %8247 = vmatpush3.bf16.msra.mxu0 %v6181_v24 }
 0x7fa   : > { %v8539_v13 = vpop.permute.xlu1 %8538  ;;  %8217 = vmatmul.mubr.msk.bf16.gmra.mrb[112].mxu1 %vm5915_vm12, %v5899_v4 }
 0x7fb   : > { %v8541_v48 = vunpack.i.h.bf16 %v8539_v13  ;;  %v8540_v43 = vunpack.i.l.bf16 %v8539_v13 }
 0x7fd   : > { %v8544_v19 = vpop.permute.xlu0 %8543  ;;  %v5874_v5 = vsel %vm1227_vm9, %v13869_v62, %v8541_v48  ;;  %v5873_v7 = vsel %vm1227_vm9, %v13870_v23, %v8540_v43 }
 0x7fe   : > { %v8546_v52 = vunpack.i.h.bf16 %v8544_v19  ;;  %v8545_v28 = vunpack.i.l.bf16 %v8544_v19 }
 0x7ff   : > { %v8554_v36 = vpop.permute.xlu1 %8553 }
 0x800   : > { %v5889_v40 = vsel %vm5879_vm11, %v5872_v34, %v8546_v52  ;;  %v5888_v20 = vsel %vm5879_vm11, %v5871_v47, %v8545_v28  ;;  %v8556_v29 = vunpack.i.h.bf16 %v8554_v36  ;;  %v8555_v1 = vunpack.i.l.bf16 %v8554_v36 }
 0x801   : > { %v5900_v31 = vpack.c.bf16 %v5889_v40, %v5888_v20  ;;  %v8549_v55 = vpop.permute.xlu0 %8548 }
 0x802   : > { %v5891_v38 = vsel %vm5879_vm11, %v5874_v5, %v8556_v29  ;;  %v5890_v0 = vsel %vm5879_vm11, %v5873_v7, %v8555_v1  ;;  %v8551_v6 = vunpack.i.h.bf16 %v8549_v55  ;;  %v8550_v16 = vunpack.i.l.bf16 %v8549_v55 }
 0x803   : > { %v5901_v32 = vpack.c.bf16 %v5891_v38, %v5890_v0  ;;  %8220 = vmatprep.mubr.msk.bf16.mxu1 %vm5915_vm12, %v5900_v31  ;;  %v8559_v54 = vpop.permute.xlu1 %8558 }
 0x804   : > { %v5876_v2 = vsel %vm1227_vm9, %v13871_v15, %v8551_v6  ;;  %v5875_v57 = vsel %vm1227_vm9, %v13872_v58, %v8550_v16  ;;  %v8561_v37 = vunpack.i.h.bf16 %v8559_v54  ;;  %v8560_v59 = vunpack.i.l.bf16 %v8559_v54 }
 0x805   : > { %8221 = vmatmul.mubr.msk.bf16.gmra.mrb[116].mxu1 %vm5915_vm12, %v5901_v32  ;;  %v8564_v49 = vpop.permute.xlu0 %8563 }
 0x806   : > { %v8566_v35 = vunpack.i.h.bf16 %v8564_v49  ;;  %v8565_v42 = vunpack.i.l.bf16 %v8564_v49  ;;  %v5878_v17 = vsel %vm1227_vm9, %v13873_v11, %v8561_v37  ;;  %v5877_v45 = vsel %vm1227_vm9, %v13874_v22, %v8560_v59 }
 0x808   : > { %v5892_v51 = vsel %vm5879_vm11, %v5875_v57, %v8565_v42  ;;  %v5893_v56 = vsel %vm5879_vm11, %v5876_v2, %v8566_v35  ;;  %v7522_v2 = vld [vmem:[#allocation7] ss:$0 sm:$0xff] }
 0x809   : > { %v5902_v25 = vpack.c.bf16 %v5893_v56, %v5892_v51 }
 0x80b   : > { %8224 = vmatprep.mubr.msk.bf16.mxu1 %vm5915_vm12, %v5902_v25 }
 0x810   : > { %v8569_v18 = vpop.permute.xlu1 %8568 }
 0x811   : > { %v8571_v30 = vunpack.i.h.bf16 %v8569_v18  ;;  %v8570_v46 = vunpack.i.l.bf16 %v8569_v18 }
 0x813   : > { %v5894_v12 = vsel %vm5879_vm11, %v5877_v45, %v8570_v46  ;;  %v5895_v63 = vsel %vm5879_vm11, %v5878_v17, %v8571_v30 }
 0x814   : > { %v5903_v10 = vpack.c.bf16 %v5895_v63, %v5894_v12 }
 0x816   : > { %8225 = vmatmul.mubr.msk.bf16.gmra.mrb[120].mxu1 %vm5915_vm12, %v5903_v10 }
 0x8c5   : > { %v8214_v21 = vpop.f32.mrb[108].mxu1 }
 0x8c6   : > { %v5974_v39 = vpop.f32.mrb[109].mxu1  ;;  %v5983_v44 = vadd.f32 %v8214_v21, %v7513_v9 }
 0x8c7   : > { %v8215_v53 = vpop.f32.mrb[110].mxu1  ;;  %v5975_v14 = vadd.f32 %v7513_v9, %v5974_v39 }
 0x8c8   : > { %v5986_v41 = vadd.f32 %v8215_v53, %v7513_v9  ;;  %v5977_v27 = vpop.f32.mrb[111].mxu1 }
 0x8c9   : > { %v5978_v61 = vadd.f32 %v7513_v9, %v5977_v27 }
 0x8ca   : > { %v6038_v4 = vpack.c.bf16 %v5986_v41, %v5983_v44 }
 0x8cb   : > { %v6037_v13 = vpack.c.bf16 %v5978_v61, %v5975_v14 }
 0x8cd   : > { %8230 = vmatprep.mubr.msk.bf16.mxu1 %vm1227_vm9, %v6037_v13  ;;  %v8218_v60 = vpop.f32.mrb[112].mxu1 }
 0x8ce   : > { %8231 = vmatmul.mubr.msk.bf16.vlgmr.msra.gmra.mrb[124].mxu1 %vm1227_vm9, %v6038_v4  ;;  %v5990_v3 = vpop.f32.mrb[113].mxu1  ;;  %v5999_v43 = vadd.f32 %v8218_v60, %v7513_v9 }
 0x8cf   : > { %v8219_v48 = vpop.f32.mrb[114].mxu1  ;;  %v5991_v28 = vadd.f32 %v7513_v9, %v5990_v3 }
 0x8d0   : > { %v6002_v19 = vadd.f32 %v8219_v48, %v7513_v9  ;;  %v5993_v52 = vpop.f32.mrb[115].mxu1 }
 0x8d1   : > { %v5994_v8 = vadd.f32 %v7513_v9, %v5993_v52 }
 0x8d2   : > { %v6040_v34 = vpack.c.bf16 %v6002_v19, %v5999_v43 }
 0x8d3   : > { %v6039_v50 = vpack.c.bf16 %v5994_v8, %v5991_v28  ;;  %v781_v8 = vld [vmem:[%s13365_s19] sm:$0xff] }
 0x8d5   : > { %8234 = vmatprep.mubr.msk.bf16.mxu1 %vm1227_vm9, %v6039_v50 }
 0x8d6   : > { %8235 = vmatmul.mubr.msk.bf16.gmra.mrb[128].mxu1 %vm1227_vm9, %v6040_v34  ;;  %v782_v34 = vld [vmem:[%s13365_s19 + $0x8] sm:$0xff] }
 0x8d7   : > { %v6996_v50 = vpack.c.bf16 %v782_v34, %v781_v8 }
 0x8d8   : > { %v8222_v47 = vpop.f32.mrb[116].mxu1 }
 0x8d9   : > { %v6006_v36 = vpop.f32.mrb[117].mxu1  ;;  %v6015_v20 = vadd.f32 %v8222_v47, %v7513_v9  ;;  %v783_v47 = vld [vmem:[%s13365_s19 + $0x10] sm:$0xff]  ;;  %8264 = vmatprep.subr.bf16.mxu1 %v6996_v50 }
 0x8da   : > { %v8223_v40 = vpop.f32.mrb[118].mxu1  ;;  %v6007_v62 = vadd.f32 %v7513_v9, %v6006_v36  ;;  %v784_v36 = vld [vmem:[%s13365_s19 + $0x18] sm:$0xff]  ;;  %8265 = vmatpush3.bf16.msra.mxu1 %v6996_v50 }
 0x8db   : > { %v6018_v29 = vadd.f32 %v8223_v40, %v7513_v9  ;;  %v6009_v1 = vpop.f32.mrb[119].mxu1  ;;  %v785_v40 = vld [vmem:[%s13365_s19 + $0x20] sm:$0xff] }
 0x8dc   : > { %v6010_v5 = vadd.f32 %v7513_v9, %v6009_v1 }
 0x8dd   : > { %v6042_v23 = vpack.c.bf16 %v6018_v29, %v6015_v20  ;;  %v6997_v20 = vpack.c.bf16 %v784_v36, %v783_v47  ;;  %v786_v29 = vld [vmem:[%s13365_s19 + $0x28] sm:$0xff] }
 0x8de   : > { %v6041_v7 = vpack.c.bf16 %v6010_v5, %v6007_v62  ;;  %v6998_v1 = vpack.c.bf16 %v786_v29, %v785_v40  ;;  %v787_v62 = vld [vmem:[%s13365_s19 + $0x30] sm:$0xff]  ;;  %v788_v5 = vld [vmem:[%s13365_s19 + $0x38] sm:$0xff] }
 0x8df   : > { %8266 = vmatprep.subr.bf16.mxu1 %v6997_v20 }
 0x8e0   : > { %8238 = vmatprep.mubr.msk.bf16.mxu1 %vm1227_vm9, %v6041_v7  ;;  %8267 = vmatpush3.bf16.msra.mxu1 %v6997_v20  ;;  %v778_v7 = vld [vmem:[%s13362_s16] sm:$0x7] }
 0x8e1   : > { %8239 = vmatmul.mubr.msk.bf16.gmra.mrb[132].mxu1 %vm1227_vm9, %v6042_v23  ;;  %8268 = vmatprep.subr.bf16.mxu1 %v6998_v1  ;;  %v6999_v23 = vpack.c.bf16 %v788_v5, %v787_v62 }
 0x8e4   : > { %8269 = vmatpush3.bf16.msra.mxu1 %v6998_v1  ;;  %v780_v1 = vld [vmem:[%s13894_s21] sm:$0x7]  ;;  %s7561_s21 = sshll.u32 %s9006_s3, 10  ;;  %s8872_s3 = smov [#allocation8]  }
 0x8e5   : > { %8270 = vmatprep.subr.bf16.mxu1 %v6999_v23 }
 0x8e8   : > { %8271 = vmatpush3.bf16.msra.mxu1 %v6999_v23 }
 0x8e9   : > { %v8226_v31 = vpop.f32.mrb[120].mxu1 }
 0x8ea   : > { %v6022_v55 = vpop.f32.mrb[121].mxu1  ;;  %v6031_v0 = vadd.f32 %v8226_v31, %v7513_v9  ;;  %v13891_v31 = vld [vmem:[#allocation20_spill] sm:$0xff] }
 0x8eb   : > { %v8227_v38 = vpop.f32.mrb[122].mxu1  ;;  %v6023_v16 = vadd.f32 %v7513_v9, %v6022_v55  ;;  %v12589_v55 = vrot.slane %v778_v7, %v13891_v31 }
 0x8ec   : > { %v6034_v32 = vadd.f32 %v8227_v38, %v7513_v9  ;;  %v6025_v6 = vpop.f32.mrb[123].mxu1  ;;  %v13892_v38 = vld [vmem:[#allocation21_spill] sm:$0xff] }
 0x8ed   : > { %v6026_v49 = vadd.f32 %v7513_v9, %v6025_v6 }
 0x8ee   : > { %v6044_v35 = vpack.c.bf16 %v6034_v32, %v6031_v0  ;;  %v12592_v0 = vrot.slane %v778_v7, %v13892_v38 }
 0x8ef   : > { %v6043_v42 = vpack.c.bf16 %v6026_v49, %v6023_v16  ;;  %v13893_v16 = vld [vmem:[#allocation22_spill] sm:$0xff] }
 0x8f0   : > { %v12596_v49 = vrot.slane %v778_v7, %v13893_v16 }
 0x8f1   : > { %8242 = vmatprep.mubr.msk.bf16.mxu1 %vm1227_vm9, %v6043_v42 }
 0x8f2   : > { %8243 = vmatmul.mubr.msk.bf16.gmra.mrb[136].mxu1 %vm1227_vm9, %v6044_v35 }
 0x9a1   : > { %v8232_v15 = vpop.f32.mrb[124].mxu1 }
 0x9a2   : > { %v6110_v58 = vpop.f32.mrb[125].mxu1  ;;  %v12511_v37 = vadd.f32 %v8232_v15, %v7522_v2 }
 0x9a3   : > { %v8233_v57 = vpop.f32.mrb[126].mxu1  ;;  %v12507_v54 = vadd.f32 %v7522_v2, %v6110_v58 }
 0x9a4   : > { %v12505_v51 = vadd.f32 %v8233_v57, %v7522_v2  ;;  %v6113_v56 = vpop.f32.mrb[127].mxu1  ;;  %13878 = vst [vmem:[#allocation55_spill] sm:$0xff] %v12511_v37 }
 0x9a5   : > { %13876 = vst [vmem:[#allocation42_spill] sm:$0xff] %v12507_v54  ;;  %v12509_v25 = vadd.f32 %v7522_v2, %v6113_v56 }
 0x9a6   : > { %13875 = vst [vmem:[#allocation40_spill] sm:$0xff] %v12505_v51  ;;  %v6174_v18 = vpack.c.bf16 %v12505_v51, %v12511_v37 }
 0x9a7   : > { %13877 = vst [vmem:[#allocation24_spill] sm:$0xff] %v12509_v25  ;;  %v6173_v59 = vpack.c.bf16 %v12509_v25, %v12507_v54 }
 0x9a9   : > { %8248 = vmatprep.mubr.msk.bf16.mxu0 %vm1227_vm9, %v6173_v59  ;;  %v8236_v30 = vpop.f32.mrb[128].mxu1 }
 0x9aa   : > { %8249 = vmatmul.mubr.msk.bf16.vlgmr.msra.gmra.mrb[132].mxu0 %vm1227_vm9, %v6174_v18  ;;  %v6126_v46 = vpop.f32.mrb[129].mxu1  ;;  %v12525_v63 = vadd.f32 %v8236_v30, %v7522_v2  ;;  %v779_v30 = vld [vmem:[%s13363_s17] sm:$0x7] }
 0x9ab   : > { %v8237_v11 = vpop.f32.mrb[130].mxu1  ;;  %v12521_v45 = vadd.f32 %v7522_v2, %v6126_v46 }
 0x9ac   : > { %v12519_v17 = vadd.f32 %v8237_v11, %v7522_v2  ;;  %v6129_v22 = vpop.f32.mrb[131].mxu1  ;;  %13882 = vst [vmem:[#allocation43_spill] sm:$0xff] %v12525_v63 }
 0x9ad   : > { %13880 = vst [vmem:[#allocation39_spill] sm:$0xff] %v12521_v45  ;;  %v12523_v12 = vadd.f32 %v7522_v2, %v6129_v22 }
 0x9ae   : > { %13879 = vst [vmem:[#allocation54_spill] sm:$0xff] %v12519_v17  ;;  %v6176_v26 = vpack.c.bf16 %v12519_v17, %v12525_v63 }
 0x9af   : > { %13881 = vst [vmem:[#allocation47_spill] sm:$0xff] %v12523_v12  ;;  %v6175_v10 = vpack.c.bf16 %v12523_v12, %v12521_v45 }
 0x9b1   : > { %8252 = vmatprep.mubr.msk.bf16.mxu0 %vm1227_vm9, %v6175_v10 }
 0x9b2   : > { %8253 = vmatmul.mubr.msk.bf16.gmra.mrb[136].mxu0 %vm1227_vm9, %v6176_v26 }
 0x9b4   : > { %v8240_v33 = vpop.f32.mrb[132].mxu1 }
 0x9b5   : > { %v6142_v24 = vpop.f32.mrb[133].mxu1  ;;  %v12539_v41 = vadd.f32 %v8240_v33, %v7522_v2 }
 0x9b6   : > { %v8241_v21 = vpop.f32.mrb[134].mxu1  ;;  %v12535_v53 = vadd.f32 %v7522_v2, %v6142_v24  ;;  %v12618_v24 = vrot.slane %v779_v30, %v13891_v31 }
 0x9b7   : > { %v12533_v9 = vadd.f32 %v8241_v21, %v7522_v2  ;;  %v6145_v39 = vpop.f32.mrb[135].mxu1  ;;  %13886 = vst [vmem:[#allocation23_spill] sm:$0xff] %v12539_v41 }
 0x9b8   : > { %13884 = vst [vmem:[#allocation37_spill] sm:$0xff] %v12535_v53  ;;  %v12537_v44 = vadd.f32 %v7522_v2, %v6145_v39 }
 0x9b9   : > { %13883 = vst [vmem:[#allocation44_spill] sm:$0xff] %v12533_v9  ;;  %v6178_v14 = vpack.c.bf16 %v12533_v9, %v12539_v41 }
 0x9ba   : > { %13885 = vst [vmem:[#allocation56_spill] sm:$0xff] %v12537_v44  ;;  %v6177_v27 = vpack.c.bf16 %v12537_v44, %v12535_v53 }
 0x9bc   : > { %8256 = vmatprep.mubr.msk.bf16.mxu0 %vm1227_vm9, %v6177_v27 }
 0x9bd   : > { %8257 = vmatmul.mubr.msk.bf16.gmra.mrb[140].mxu0 %vm1227_vm9, %v6178_v14  ;;  %v12624_v14 = vrot.slane %v779_v30, %v13892_v38 }
 0x9c5   : > { %v8244_v61 = vpop.f32.mrb[136].mxu1 }
 0x9c6   : > { %v6158_v4 = vpop.f32.mrb[137].mxu1  ;;  %v12553_v19 = vadd.f32 %v8244_v61, %v7522_v2 }
 0x9c7   : > { %v8245_v13 = vpop.f32.mrb[138].mxu1  ;;  %v12549_v48 = vadd.f32 %v7522_v2, %v6158_v4 }
 0x9c8   : > { %v12547_v60 = vadd.f32 %v8245_v13, %v7522_v2  ;;  %v6161_v3 = vpop.f32.mrb[139].mxu1  ;;  %13890 = vst [vmem:[#allocation35_spill] sm:$0xff] %v12553_v19 }
 0x9c9   : > { %13888 = vst [vmem:[#allocation27_spill] sm:$0xff] %v12549_v48  ;;  %v12551_v43 = vadd.f32 %v7522_v2, %v6161_v3 }
 0x9ca   : > { %13887 = vst [vmem:[#allocation51_spill] sm:$0xff] %v12547_v60  ;;  %v6180_v28 = vpack.c.bf16 %v12547_v60, %v12553_v19 }
 0x9cb   : > { %13889 = vst [vmem:[#allocation34_spill] sm:$0xff] %v12551_v43  ;;  %v6179_v52 = vpack.c.bf16 %v12551_v43, %v12549_v48 }
 0x9cd   : > { %8260 = vmatprep.mubr.msk.bf16.mxu0 %vm1227_vm9, %v6179_v52 }
 0x9ce   : > { %8261 = vmatmul.mubr.msk.bf16.gmra.mrb[144].mxu0 %vm1227_vm9, %v6180_v28  ;;  %v12633_v28 = vrot.slane %v779_v30, %v13893_v16 }
 0xa7d   : > { %v8250_v32 = vpop.f32.mrb[132].mxu0 }
 0xa7e   : > { %v6253_v6 = vadd.f32 %v8250_v32, %v12589_v55  ;;  %v6244_v35 = vpop.f32.mrb[133].mxu0 }
 0xa7f   : > { %v6245_v42 = vadd.f32 %v6244_v35, %v12589_v55  ;;  %v8251_v15 = vpop.f32.mrb[134].mxu0 }
 0xa80   : > { %v6313_v2 = vmul.f32 %v12592_v0, %v6253_v6  ;;  %v6256_v58 = vadd.f32 %v8251_v15, %v12589_v55  ;;  %v6247_v57 = vpop.f32.mrb[135].mxu0 }
 0xa81   : > { %v6311_v56 = vmul.f32 %v12592_v0, %v6245_v42  ;;  %v6248_v59 = vadd.f32 %v6247_v57, %v12589_v55 }
 0xa82   : > { %v6333_v18 = vadd.f32 %v12596_v49, %v6313_v2  ;;  %v6314_v46 = vmul.f32 %v12592_v0, %v6256_v58 }
 0xa83   : > { %v12609_v11 = vadd.f32 %v12596_v49, %v6311_v56  ;;  %v6312_v22 = vmul.f32 %v12592_v0, %v6248_v59  ;;  %v12654_v59 = vrot.slane %v780_v1, %v13891_v31 }
 0xa84   : > { %v6365_v10 = vmul.f32 %v6333_v18, %v6333_v18  ;;  %v12613_v26 = vadd.f32 %v12596_v49, %v6314_v46 }
 0xa85   : > { %v6363_v33 = vmul.f32 %v12609_v11, %v12609_v11  ;;  %v12621_v21 = vadd.f32 %v12596_v49, %v6312_v22  ;;  %v8254_v39 = vpop.f32.mrb[136].mxu0 }
 0xa86   : > { %v6381_v27 = vmul.f32 %v6365_v10, %v6333_v18  ;;  %v6366_v61 = vmul.f32 %v12613_v26, %v12613_v26  ;;  %v6269_v4 = vadd.f32 %v8254_v39, %v12589_v55  ;;  %v6260_v13 = vpop.f32.mrb[137].mxu0  ;;  %v12658_v10 = vrot.slane %v780_v1, %v13892_v38 }
 0xa87   : > { %v6379_v3 = vmul.f32 %v6363_v33, %v12609_v11  ;;  %v6364_v52 = vmul.f32 %v12621_v21, %v12621_v21  ;;  %v6261_v8 = vadd.f32 %v6260_v13, %v12589_v55  ;;  %v8255_v34 = vpop.f32.mrb[138].mxu0 }
 0xa88   : > { %v6397_v50 = vmul.f32 0.044715, %v6381_v27  ;;  %v6382_v47 = vmul.f32 %v6366_v61, %v12613_v26  ;;  %v6317_v36 = vmul.f32 %v12592_v0, %v6269_v4  ;;  %v6272_v40 = vadd.f32 %v8255_v34, %v12589_v55  ;;  %v6263_v20 = vpop.f32.mrb[139].mxu0 }
 0xa89   : > { %v6395_v29 = vmul.f32 0.044715, %v6379_v3  ;;  %v6380_v62 = vmul.f32 %v6364_v52, %v12621_v21  ;;  %v6315_v5 = vmul.f32 %v12592_v0, %v6261_v8  ;;  %v6264_v23 = vadd.f32 %v6263_v20, %v12589_v55 }
 0xa8a   : > { %v6413_v7 = vadd.f32 %v6397_v50, %v6333_v18  ;;  %v6398_v32 = vmul.f32 0.044715, %v6382_v47  ;;  %v6337_v6 = vadd.f32 %v12596_v49, %v6317_v36  ;;  %v6318_v35 = vmul.f32 %v12592_v0, %v6272_v40 }
 0xa8b   : > { %v6411_v42 = vadd.f32 %v6395_v29, %v12609_v11  ;;  %v6396_v15 = vmul.f32 0.044715, %v6380_v62  ;;  %v12649_v2 = vadd.f32 %v12596_v49, %v6315_v5  ;;  %v6316_v58 = vmul.f32 %v12592_v0, %v6264_v23 }
 0xa8c   : > { %v6429_v57 = vmul.f32 0.7978846, %v6413_v7  ;;  %v6414_v56 = vadd.f32 %v6398_v32, %v12613_v26  ;;  %v6369_v30 = vmul.f32 %v6337_v6, %v6337_v6  ;;  %v12663_v61 = vadd.f32 %v12596_v49, %v6318_v35 }
 0xa8d   : > { %v6427_v46 = vmul.f32 0.7978846, %v6411_v42  ;;  %v6412_v22 = vadd.f32 %v6396_v15, %v12621_v21  ;;  %v6367_v33 = vmul.f32 %v12649_v2, %v12649_v2  ;;  %v12667_v3 = vadd.f32 %v12596_v49, %v6316_v58 }
 0xa8e   : > { %8642 = vtanh.f32 %v6429_v57  ;;  %v6430_v39 = vmul.f32 0.7978846, %v6414_v56  ;;  %v6385_v27 = vmul.f32 %v6369_v30, %v6337_v6  ;;  %v6370_v8 = vmul.f32 %v12663_v61, %v12663_v61 }
 0xa8f   : > { %8644 = vtanh.f32 %v6427_v46  ;;  %v6428_v4 = vmul.f32 0.7978846, %v6412_v22  ;;  %v6383_v13 = vmul.f32 %v6367_v33, %v12649_v2  ;;  %v12672_v50 = vrot.slane %v780_v1, %v13893_v16 }
 0xa90   : > { %8646 = vtanh.f32 %v6430_v39  ;;  %v6401_v52 = vmul.f32 0.044715, %v6385_v27  ;;  %v8258_v34 = vpop.f32.mrb[140].mxu0  ;;  %v6349_v47 = vmul.f32 0.5, %v6333_v18  ;;  %v6368_v40 = vmul.f32 %v12667_v3, %v12667_v3 }
 0xa91   : > { %8648 = vtanh.f32 %v6428_v4  ;;  %v6399_v36 = vmul.f32 0.044715, %v6383_v13  ;;  %v6276_v20 = vpop.f32.mrb[141].mxu0  ;;  %v6386_v62 = vmul.f32 %v6370_v8, %v12663_v61  ;;  %v6285_v5 = vadd.f32 %v8258_v34, %v12589_v55 }
 0xa92   : > { %v6417_v29 = vadd.f32 %v6401_v52, %v6337_v6  ;;  %v6277_v23 = vadd.f32 %v6276_v20, %v12589_v55  ;;  %v8259_v7 = vpop.f32.mrb[142].mxu0  ;;  %v6347_v32 = vmul.f32 0.5, %v12609_v11  ;;  %v6384_v18 = vmul.f32 %v6368_v40, %v12667_v3 }
 0xa93   : > { %v6415_v1 = vadd.f32 %v6399_v36, %v12649_v2  ;;  %v6288_v35 = vadd.f32 %v8259_v7, %v12589_v55  ;;  %v6279_v42 = vpop.f32.mrb[143].mxu0  ;;  %v6402_v58 = vmul.f32 0.044715, %v6386_v62  ;;  %v6321_v57 = vmul.f32 %v12592_v0, %v6285_v5 }
 0xa94   : > { %v6433_v15 = vmul.f32 0.7978846, %v6417_v29  ;;  %v6319_v56 = vmul.f32 %v12592_v0, %v6277_v23  ;;  %v6400_v46 = vmul.f32 0.044715, %v6384_v18  ;;  %v6280_v33 = vadd.f32 %v6279_v42, %v12589_v55 }
 0xa95   : > { %v6431_v30 = vmul.f32 0.7978846, %v6415_v1  ;;  %v6322_v22 = vmul.f32 %v12592_v0, %v6288_v35  ;;  %v6418_v11 = vadd.f32 %v6402_v58, %v12663_v61  ;;  %v6341_v39 = vadd.f32 %v12596_v49, %v6321_v57 }
 0xa96   : > { %8650 = vtanh.f32 %v6433_v15  ;;  %v6339_v27 = vadd.f32 %v12596_v49, %v6319_v56  ;;  %v6350_v4 = vmul.f32 0.5, %v12613_v26  ;;  %v6348_v13 = vmul.f32 0.5, %v12621_v21 }
 0xa97   : > { %v6416_v52 = vadd.f32 %v6400_v46, %v12667_v3  ;;  %v12694_v8 = vadd.f32 %v12596_v49, %v6322_v22  ;;  %v12696_v36 = vmul.f32 0.5, %v6337_v6  ;;  %8652 = vtanh.f32 %v6431_v30 }
 0xa98   : > { %v8643_v34 = vpop.eup %8642  ;;  %v6434_v40 = vmul.f32 0.7978846, %v6418_v11  ;;  %v6373_v20 = vmul.f32 %v6341_v39, %v6341_v39  ;;  %v6371_v23 = vmul.f32 %v6339_v27, %v6339_v27  ;;  %v6320_v7 = vmul.f32 %v12592_v0, %v6280_v33 }
 0xa99   : > { %v8645_v29 = vpop.eup %8644  ;;  %v6461_v62 = vadd.f32 1.0, %v8643_v34  ;;  %v6432_v5 = vmul.f32 0.7978846, %v6416_v52  ;;  %v6374_v18 = vmul.f32 %v12694_v8, %v12694_v8  ;;  %v12702_v15 = vmul.f32 0.5, %v12649_v2 }
 0xa9a   : > { %v8647_v26 = vpop.eup %8646  ;;  %v6459_v1 = vadd.f32 1.0, %v8645_v29  ;;  %8654 = vtanh.f32 %v6434_v40  ;;  %v6389_v21 = vmul.f32 %v6373_v20, %v6341_v39  ;;  %v6387_v58 = vmul.f32 %v6371_v23, %v6339_v27 }
 0xa9b   : > { %v8649_v35 = vpop.eup %8648  ;;  %v6477_v42 = vmul.f32 %v6461_v62, %v6349_v47  ;;  %v6462_v6 = vadd.f32 1.0, %v8647_v26  ;;  %8656 = vtanh.f32 %v6432_v5  ;;  %v6390_v33 = vmul.f32 %v6374_v18, %v12694_v8 }
 0xa9c   : > { %v6475_v57 = vmul.f32 %v6459_v1, %v6347_v32  ;;  %v6460_v56 = vadd.f32 1.0, %v8649_v35  ;;  %v6405_v30 = vmul.f32 0.044715, %v6389_v21  ;;  %v6403_v22 = vmul.f32 0.044715, %v6387_v58 }
 0xa9d   : > { %v6478_v46 = vmul.f32 %v6462_v6, %v6350_v4  ;;  %v12706_v11 = vadd.f32 %v12596_v49, %v6320_v7  ;;  %v6354_v47 = vmul.f32 0.5, %v12663_v61  ;;  %v6498_v20 = vrot.slane %v6477_v42, 7 }
 0xa9e   : > { %v6495_v52 = vrot.slane %v6475_v57, 7  ;;  %v6476_v34 = vmul.f32 %v6460_v56, %v6348_v13  ;;  %v6421_v40 = vadd.f32 %v6405_v30, %v6341_v39  ;;  %v6352_v29 = vmul.f32 0.5, %v12667_v3 }
 0xa9f   : > { %v6500_v2 = vrot.slane %v6478_v46, 7  ;;  %v12710_v32 = vmul.f32 0.5, %v6341_v39  ;;  %v12713_v23 = vmul.f32 0.5, %v6339_v27  ;;  %v12716_v7 = vmul.f32 0.5, %v12694_v8 }
 0xaa0   : > { %v8651_v62 = vpop.eup %8650  ;;  %v6549_v4 = vsel %vm945_vm3, 0.0, %v6495_v52  ;;  %v6496_v5 = vrot.slane %v6476_v34, 7  ;;  %v6419_v13 = vadd.f32 %v6403_v22, %v6339_v27  ;;  %v6406_v1 = vmul.f32 0.044715, %v6390_v33 }
 0xaa1   : > { %v12718_v26 = vpop.f32.mrb[144].mxu0  ;;  %v12721_v61 = vsel %vm945_vm3, %v6498_v20, %v6500_v2  ;;  %v12724_v3 = vmul.f32 0.5, %v12706_v11  ;;  %v8653_v21 = vpop.eup %8652  ;;  %v6624_v18 = vrot.slane %v6549_v4, 1  ;;  %v6437_v42 = vmul.f32 0.7978846, %v6421_v40 }
 0xaa2   : > { %v12726_v39 = vpop.f32.mrb[145].mxu0  ;;  %v6372_v6 = vmul.f32 %v12706_v11, %v12706_v11  ;;  %v6712_v57 = vrot.slane %v6549_v4, 2  ;;  %v6497_v56 = vsel %vm945_vm3, %v6495_v52, %v6496_v5  ;;  %v6499_v27 = vsel %vm945_vm3, %v6496_v5, %v6498_v20 }
 0xaa3   : > { %v12731_v58 = vpop.f32.mrb[146].mxu0  ;;  %v6465_v30 = vadd.f32 1.0, %v8651_v62  ;;  %v6717_v33 = vrot.slane %v12721_v61, 2  ;;  %v6608_v34 = vmul.f32 %v12618_v24, %v6497_v56  ;;  %v6625_v35 = vrot.slane %v6497_v56, 1 }
 0xaa4   : > { %v12735_v46 = vpop.f32.mrb[147].mxu0  ;;  %v8655_v22 = vpop.eup %8654  ;;  %v6627_v40 = vrot.slane %v6499_v27, 1  ;;  %v6609_v60 = vmul.f32 %v12618_v24, %v6499_v27  ;;  %v6713_v19 = vrot.slane %v6497_v56, 2  ;;  %v6715_v43 = vrot.slane %v6499_v27, 2 }
 0xaa5   : > { %v6463_v48 = vadd.f32 1.0, %v8653_v21  ;;  %v8657_v9 = vpop.eup %8656  ;;  %v6626_v52 = vsel %vm996_vm8, %v6624_v18, %v6625_v35  ;;  %v13895_v62 = vrot.slane %v12721_v61, 1  ;;  %v6466_v41 = vadd.f32 1.0, %v8655_v22 }
 0xaa6   : > { %v6628_v20 = vsel %vm996_vm8, %v6625_v35, %v6627_v40  ;;  %v6714_v17 = vsel %vm1018_vm7, %v6712_v57, %v6713_v19  ;;  %v6481_v56 = vmul.f32 %v6465_v30, %v12696_v36  ;;  %v6550_v21 = vsel %vm945_vm3, %v6500_v2, 0.0 }
 0xaa7   : > { %v6630_v5 = vsel %vm996_vm8, %v6627_v40, %v13895_v62  ;;  %v6681_v44 = vmul.f32 %v12624_v14, %v6628_v20  ;;  %v6716_v27 = vsel %vm1018_vm7, %v6713_v19, %v6715_v43  ;;  %v6718_v18 = vsel %vm1018_vm7, %v6715_v43, %v6717_v33 }
 0xaa8   : > { %v6682_v53 = vmul.f32 %v12624_v14, %v6630_v5  ;;  %v6422_v35 = vadd.f32 %v6406_v1, %v12694_v8  ;;  %v12754_v63 = vmul.f32 %v12618_v24, %v6549_v4  ;;  %v6754_v20 = vmul.f32 %v12633_v28, %v6718_v18 }
 0xaa9   : > { %v12756_v22 = vadd.f32 %v6681_v44, %v6608_v34  ;;  %v6610_v57 = vmul.f32 %v12618_v24, %v12721_v61  ;;  %v6479_v36 = vmul.f32 %v6463_v48, %v12702_v15  ;;  %v6482_v2 = vmul.f32 %v6466_v41, %v6354_v47 }
 0xaaa   : > { %v6698_v40 = vadd.f32 %v6682_v53, %v6609_v60  ;;  %v6464_v30 = vadd.f32 1.0, %v8657_v9  ;;  %v6551_v19 = vsel %vm1011_vm4, %v6550_v21, 0.0  ;;  %v6514_v62 = vrot.slane %v6481_v56, 5 }
 0xaab   : > { %v6435_v8 = vmul.f32 0.7978846, %v6419_v13  ;;  %v6511_v1 = vrot.slane %v6479_v36, 5  ;;  %v6516_v4 = vrot.slane %v6482_v2, 5  ;;  %8658 = vtanh.f32 %v6437_v42 }
 0xaac   : > { %v6770_v43 = vadd.f32 %v6754_v20, %v6698_v40  ;;  %v6480_v5 = vmul.f32 %v6464_v30, %v6352_v29  ;;  %v6680_v53 = vmul.f32 %v12624_v14, %v6626_v52  ;;  %v12765_v44 = vmul.f32 %v12633_v28, %v6714_v17 }
 0xaad   : > { %8660 = vtanh.f32 %v6435_v8  ;;  %v6438_v60 = vmul.f32 0.7978846, %v6422_v35  ;;  %v6552_v48 = vsel %vm962_vm5, %v6551_v19, %v6511_v1  ;;  %v12769_v9 = vsel %vm962_vm5, %v6514_v62, %v6516_v4 }
 0xaae   : > { %v6512_v41 = vrot.slane %v6480_v5, 5  ;;  %v6388_v15 = vmul.f32 %v6372_v6, %v12706_v11  ;;  %v6790_v47 = vadd.f32 %v12654_v59, %v6770_v43  ;;  %v6562_v13 = vrot.slane %v6552_v48, 2 }
 0xaaf   : > { %v6631_v29 = vrot.slane %v6552_v48, 1  ;;  %v6301_v42 = vadd.f32 %v12718_v26, %v12589_v55  ;;  %v6637_v34 = vrot.slane %v6552_v48, 3  ;;  %v6553_v17 = vsel %vm962_vm5, %v6516_v4, 0.0 }
 0xab0   : > { %v6567_v52 = vrot.slane %v12769_v9, 2  ;;  %v6642_v56 = vrot.slane %v12769_v9, 3  ;;  %v13896_v21 = vrot.slane %v12721_v61, 1  ;;  %v6719_v6 = vsel %vm1018_vm7, %v6717_v33, %v6562_v13 }
 0xab1   : > { %v13513_v35 = vrot.slane %v12769_v9, 4  ;;  %v6513_v40 = vsel %vm962_vm5, %v6511_v1, %v6512_v41  ;;  %v6755_v26 = vmul.f32 %v12633_v28, %v6719_v6  ;;  %v6515_v36 = vsel %vm962_vm5, %v6512_v41, %v6514_v62 }
 0xab2   : > { %v6632_v18 = vsel %vm996_vm8, %v13896_v21, %v6631_v29  ;;  %v6563_v2 = vrot.slane %v6513_v40, 2  ;;  %v6565_v30 = vrot.slane %v6515_v36, 2  ;;  %v6638_v19 = vrot.slane %v6513_v40, 3 }
 0xab3   : > { %v6683_v20 = vmul.f32 %v12624_v14, %v6632_v18  ;;  %v6640_v43 = vrot.slane %v6515_v36, 3  ;;  %v6725_v8 = vrot.slane %v6513_v40, 4  ;;  %v6727_v5 = vrot.slane %v6515_v36, 4 }
 0xab4   : > { %v6564_v4 = vsel %vm1018_vm7, %v6562_v13, %v6563_v2  ;;  %8662 = vtanh.f32 %v6438_v60  ;;  %v6724_v33 = vrot.slane %v6552_v48, 4  ;;  %v6566_v29 = vsel %vm1018_vm7, %v6563_v2, %v6565_v30 }
 0xab5   : > { %v6699_v61 = vadd.f32 %v6683_v20, %v6610_v57  ;;  %v6568_v1 = vsel %vm1018_vm7, %v6565_v30, %v6567_v52  ;;  %v6639_v21 = vsel %vm979_vm6, %v6637_v34, %v6638_v19  ;;  %v8659_v62 = vpop.eup %8658  ;;  %v6641_v18 = vsel %vm979_vm6, %v6638_v19, %v6640_v43 }
 0xab6   : > { %v6404_v6 = vmul.f32 0.044715, %v6388_v15  ;;  %v6293_v57 = vadd.f32 %v12726_v39, %v12589_v55  ;;  %v6753_v60 = vmul.f32 %v12633_v28, %v6716_v27  ;;  %v12798_v48 = vmul.f32 %v12658_v10, %v6790_v47 }
 0xab7   : > { %v6771_v41 = vadd.f32 %v6755_v26, %v6699_v61  ;;  %v8661_v13 = vpop.eup %8660  ;;  %v6643_v40 = vsel %vm979_vm6, %v6640_v43, %v6642_v56  ;;  %v6726_v34 = vsel %vm840_vm0, %v6724_v33, %v6725_v8  ;;  %v6554_v20 = vsel %vm840_vm0, %v6553_v17, 0.0 }
 0xab8   : > { %v12806_v26 = vmul.f32 %v12618_v24, %v6564_v4  ;;  %v6728_v15 = vsel %vm840_vm0, %v6725_v8, %v6727_v5  ;;  %v6730_v39 = vsel %vm840_vm0, %v6727_v5, %v13513_v35  ;;  %v12813_v27 = vmul.f32 %v12618_v24, %v6566_v29 }
 0xab9   : > { %v12816_v47 = vmul.f32 %v12618_v24, %v6568_v1  ;;  %v12819_v36 = vmul.f32 %v12624_v14, %v6639_v21  ;;  %v12822_v17 = vmul.f32 %v12624_v14, %v6641_v18  ;;  %v6467_v2 = vadd.f32 1.0, %v8661_v13 }
 0xaba   : > { %v6420_v30 = vadd.f32 %v6404_v6, %v12706_v11  ;;  %v6325_v19 = vmul.f32 %v12592_v0, %v6301_v42  ;;  %v6323_v43 = vmul.f32 %v12592_v0, %v6293_v57  ;;  %v6469_v8 = vadd.f32 1.0, %v8659_v62 }
 0xabb   : > { %v6304_v61 = vadd.f32 %v12731_v58, %v12589_v55  ;;  %v6296_v4 = vadd.f32 %v12735_v46, %v12589_v55  ;;  %v6696_v5 = vadd.f32 %v6680_v53, %v12754_v63  ;;  %v12833_v33 = vmul.f32 %v6467_v2, %v12713_v23 }
 0xabc   : > { %v6436_v29 = vmul.f32 0.7978846, %v6420_v30  ;;  %v6345_v1 = vadd.f32 %v12596_v49, %v6325_v19  ;;  %v6343_v11 = vadd.f32 %v12596_v49, %v6323_v43  ;;  %v6791_v42 = vadd.f32 %v12654_v59, %v6771_v41 }
 0xabd   : > { %v6326_v21 = vmul.f32 %v12592_v0, %v6304_v61  ;;  %v6324_v62 = vmul.f32 %v12592_v0, %v6296_v4  ;;  %v6768_v58 = vadd.f32 %v12765_v44, %v6696_v5  ;;  %v12842_v55 = vmul.f32 %v12624_v14, %v6643_v40 }
 0xabe   : > { %v8663_v18 = vpop.eup %8662  ;;  %v6524_v63 = vrot.slane %v12833_v33, 3  ;;  %8664 = vtanh.f32 %v6436_v29  ;;  %v6377_v23 = vmul.f32 %v6345_v1, %v6345_v1  ;;  %v12846_v46 = vmul.f32 %v6469_v8, %v12710_v32 }
 0xabf   : > { %v6470_v53 = vadd.f32 1.0, %v8663_v18  ;;  %v6375_v6 = vmul.f32 %v6343_v11, %v6343_v11  ;;  %v6346_v41 = vadd.f32 %v12596_v49, %v6326_v21  ;;  %v12850_v57 = vmul.f32 %v12633_v28, %v6726_v34 }
 0xac0   : > { %v12855_v0 = vsel %vm979_vm6, %v6554_v20, %v6524_v63  ;;  %v6393_v44 = vmul.f32 %v6377_v23, %v6345_v1  ;;  %v6769_v13 = vadd.f32 %v6753_v60, %v12756_v22  ;;  %v12859_v40 = vmul.f32 %v12633_v28, %v6728_v15 }
 0xac1   : > { %v6569_v32 = vrot.slane %v12855_v0, 2  ;;  %v6644_v2 = vrot.slane %v12855_v0, 3  ;;  %v6344_v30 = vadd.f32 %v12596_v49, %v6324_v62  ;;  %v12865_v34 = vmul.f32 %v12633_v28, %v6730_v39 }
 0xac2   : > { %v6486_v19 = vmul.f32 %v6470_v53, %v12716_v7  ;;  %v6409_v43 = vmul.f32 0.044715, %v6393_v44  ;;  %v6391_v20 = vmul.f32 %v6375_v6, %v6343_v11  ;;  %v6527_v8 = vrot.slane %v12846_v46, 3 }
 0xac3   : > { %v12872_v22 = vsel %vm1018_vm7, %v6567_v52, %v6569_v32  ;;  %v12877_v60 = vsel %vm979_vm6, %v6642_v56, %v6644_v2  ;;  %v6378_v49 = vmul.f32 %v6346_v41, %v6346_v41  ;;  %v12879_v39 = vmul.f32 0.5, %v6345_v1 }
 0xac4   : > { %v6529_v15 = vrot.slane %v6486_v19, 3  ;;  %v6425_v61 = vadd.f32 %v6409_v43, %v6345_v1  ;;  %v6407_v7 = vmul.f32 0.044715, %v6391_v20  ;;  %v6376_v5 = vmul.f32 %v6344_v30, %v6344_v30 }
 0xac5   : > { %v6394_v4 = vmul.f32 %v6378_v49, %v6346_v41  ;;  %v6788_v29 = vadd.f32 %v12654_v59, %v6768_v58  ;;  %v6789_v21 = vadd.f32 %v12654_v59, %v6769_v13  ;;  %v12886_v18 = vmul.f32 0.5, %v6343_v11 }
 0xac6   : > { %v12884_v52 = vsel %vm979_vm6, %v6527_v8, %v6529_v15  ;;  %v6441_v62 = vmul.f32 0.7978846, %v6425_v61  ;;  %v6423_v56 = vadd.f32 %v6407_v7, %v6343_v11  ;;  %v13514_v23 = vrot.slane %v12855_v0, 4 }
 0xac7   : > { %v6650_v46 = vrot.slane %v12855_v0, 5  ;;  %v6736_v1 = vrot.slane %v12855_v0, 6  ;;  %v6556_v53 = vsel %vm979_vm6, %v6529_v15, 0.0  ;;  %v6410_v44 = vmul.f32 0.044715, %v6394_v4 }
 0xac8   : > { %v8665_v6 = vpop.eup %8664  ;;  %8666 = vtanh.f32 %v6441_v62  ;;  %v6439_v58 = vmul.f32 0.7978846, %v6423_v56  ;;  %v6392_v13 = vmul.f32 %v6376_v5, %v6344_v30  ;;  %v6808_v2 = vmul.f32 %v12658_v10, %v6788_v29 }
 0xac9   : > { %v6468_v32 = vadd.f32 1.0, %v8665_v6  ;;  %v6809_v19 = vmul.f32 %v12658_v10, %v6789_v21  ;;  %v6811_v11 = vmul.f32 %v12658_v10, %v6791_v42  ;;  %v6426_v43 = vadd.f32 %v6410_v44, %v6346_v41 }
 0xaca   : > { %8668 = vtanh.f32 %v6439_v58  ;;  %v6408_v20 = vmul.f32 0.044715, %v6392_v13  ;;  %v12897_v49 = vadd.f32 %v12672_v50, %v12798_v48  ;;  %v12900_v61 = vmul.f32 0.5, %v6346_v41 }
 0xacb   : > { %v6484_v15 = vmul.f32 %v6468_v32, %v12724_v3  ;;  %v6828_v7 = vadd.f32 %v12672_v50, %v6808_v2  ;;  %v6829_v4 = vadd.f32 %v12672_v50, %v6809_v19  ;;  %v12905_v5 = vsel %vm1018_vm7, %v6556_v53, 0.0 }
 0xacc   : > { %v6442_v29 = vmul.f32 0.7978846, %v6426_v43  ;;  %v12907_v42 = vmul.f32 0.5, %v6344_v30  ;;  %v6424_v21 = vadd.f32 %v6408_v20, %v6344_v30  ;;  %v13517_v62 = vrot.slane %v12884_v52, 4 }
 0xacd   : > { %v13516_v48 = vrot.slane %v12884_v52, 5  ;;  %v6525_v3 = vrot.slane %v6484_v15, 3  ;;  %v12913_v6 = vadd.f32 %v12672_v50, %v6811_v11  ;;  %v12916_v58 = vmul.f32 0.5, %v12897_v49 }
 0xace   : > { %8670 = vtanh.f32 %v6442_v29  ;;  %v6440_v41 = vmul.f32 0.7978846, %v6424_v21  ;;  %v6860_v44 = vmul.f32 %v6828_v7, %v6828_v7  ;;  %v6861_v13 = vmul.f32 %v6829_v4, %v6829_v4 }
 0xacf   : > { %v6526_v53 = vsel %vm979_vm6, %v6524_v63, %v6525_v3  ;;  %v6528_v30 = vsel %vm979_vm6, %v6525_v3, %v6527_v8  ;;  %v6862_v11 = vmul.f32 %v12897_v49, %v12897_v49  ;;  %v12939_v56 = vmul.f32 0.5, %v6828_v7 }
 0xad0   : > { %v6577_v32 = vrot.slane %v6526_v53, 4  ;;  %v6579_v2 = vrot.slane %v6528_v30, 4  ;;  %v6651_v19 = vrot.slane %v6526_v53, 5  ;;  %v6653_v43 = vrot.slane %v6528_v30, 5 }
 0xad1   : > { %v6737_v20 = vrot.slane %v6526_v53, 6  ;;  %v6739_v15 = vrot.slane %v6528_v30, 6  ;;  %8672 = vtanh.f32 %v6440_v41  ;;  %v6876_v53 = vmul.f32 %v6860_v44, %v6828_v7 }
 0xad2   : > { %v8667_v29 = vpop.eup %8666  ;;  %v6578_v33 = vsel %vm840_vm0, %v13514_v23, %v6577_v32  ;;  %v6580_v63 = vsel %vm840_vm0, %v6577_v32, %v6579_v2  ;;  %v6582_v8 = vsel %vm840_vm0, %v6579_v2, %v13517_v62  ;;  %v6652_v21 = vsel %vm962_vm5, %v6650_v46, %v6651_v19 }
 0xad3   : > { %v6654_v3 = vsel %vm962_vm5, %v6651_v19, %v6653_v43  ;;  %v6877_v41 = vmul.f32 %v6861_v13, %v6829_v4  ;;  %v6863_v30 = vmul.f32 %v12913_v6, %v12913_v6  ;;  %v6656_v23 = vsel %vm962_vm5, %v6653_v43, %v13516_v48 }
 0xad4   : > { %v8669_v35 = vpop.eup %8668  ;;  %v6738_v32 = vsel %vm1011_vm4, %v6736_v1, %v6737_v20  ;;  %v12941_v12 = vmul.f32 0.5, %v6829_v4  ;;  %v12944_v46 = vmul.f32 %v12618_v24, %v6578_v33  ;;  %v6740_v44 = vsel %vm1011_vm4, %v6737_v20, %v6739_v15 }
 0xad5   : > { %v13897_v13 = vrot.slane %v12884_v52, 6  ;;  %v12953_v19 = vmul.f32 0.5, %v12913_v6  ;;  %v12956_v43 = vmul.f32 %v12618_v24, %v6580_v63  ;;  %v12959_v1 = vmul.f32 %v12618_v24, %v6582_v8 }
 0xad6   : > { %v6473_v48 = vadd.f32 1.0, %v8667_v29  ;;  %v6471_v62 = vadd.f32 1.0, %v8669_v35  ;;  %v6892_v33 = vmul.f32 0.044715, %v6876_v53  ;;  %v6893_v45 = vmul.f32 0.044715, %v6877_v41 }
 0xad7   : > { %v12950_v2 = vsel %vm1011_vm4, %v6739_v15, %v13897_v13  ;;  %v6878_v20 = vmul.f32 %v6862_v11, %v12897_v49  ;;  %v6879_v51 = vmul.f32 %v6863_v30, %v12913_v6  ;;  %v6700_v63 = vadd.f32 %v12819_v36, %v12806_v26 }
 0xad8   : > { %v8671_v37 = vpop.eup %8670  ;;  %v6489_v15 = vmul.f32 %v6473_v48, %v12879_v39  ;;  %v6487_v13 = vmul.f32 %v6471_v62, %v12886_v18  ;;  %v6701_v8 = vadd.f32 %v12822_v17, %v12813_v27  ;;  %v6908_v29 = vadd.f32 %v6892_v33, %v6828_v7 }
 0xad9   : > { %v6474_v25 = vadd.f32 1.0, %v8671_v37  ;;  %v6909_v35 = vadd.f32 %v6893_v45, %v6829_v4  ;;  %v6894_v53 = vmul.f32 0.044715, %v6878_v20  ;;  %v12970_v41 = vmul.f32 %v12624_v14, %v6652_v21 }
 0xada   : > { %v6537_v11 = vrot.slane %v6487_v13, 1  ;;  %v6895_v30 = vmul.f32 0.044715, %v6879_v51  ;;  %v6772_v54 = vadd.f32 %v12850_v57, %v6700_v63  ;;  %v6924_v62 = vmul.f32 0.7978846, %v6908_v29 }
 0xadb   : > { %v8673_v39 = vpop.eup %8672  ;;  %v6490_v18 = vmul.f32 %v6474_v25, %v12900_v61  ;;  %v6925_v48 = vmul.f32 0.7978846, %v6909_v35  ;;  %v6910_v26 = vadd.f32 %v6894_v53, %v12897_v49  ;;  %v6540_v36 = vrot.slane %v6489_v15, 1 }
 0xadc   : > { %v6558_v37 = vsel %vm996_vm8, %v12905_v5, %v6537_v11  ;;  %v6472_v45 = vadd.f32 1.0, %v8673_v39  ;;  %v6773_v27 = vadd.f32 %v12859_v40, %v6701_v8  ;;  %v6911_v51 = vadd.f32 %v6895_v30, %v12913_v6 }
 0xadd   : > { %v6583_v17 = vrot.slane %v6558_v37, 4  ;;  %v6590_v7 = vrot.slane %v6558_v37, 6  ;;  %v6657_v4 = vrot.slane %v6558_v37, 5  ;;  %v6542_v57 = vrot.slane %v6490_v18, 1 }
 0xade   : > { %v6488_v21 = vmul.f32 %v6472_v45, %v12907_v42  ;;  %8674 = vtanh.f32 %v6924_v62  ;;  %v6926_v25 = vmul.f32 0.7978846, %v6910_v26  ;;  %v13898_v61 = vrot.slane %v12884_v52, 4 }
 0xadf   : > { %v13899_v5 = vrot.slane %v12884_v52, 5  ;;  %v13900_v40 = vrot.slane %v12884_v52, 6  ;;  %8676 = vtanh.f32 %v6925_v48  ;;  %v12996_v42 = vmul.f32 %v12624_v14, %v6654_v3 }
 0xae0   : > { %v12983_v49 = vsel %vm840_vm0, %v13898_v61, %v6583_v17  ;;  %v12999_v6 = vmul.f32 %v12624_v14, %v6656_v23  ;;  %v13002_v15 = vsel %vm996_vm8, %v6540_v36, %v6542_v57  ;;  %v6559_v13 = vsel %vm996_vm8, %v6542_v57, 0.0 }
 0xae1   : > { %v12988_v33 = vsel %vm962_vm5, %v13899_v5, %v6657_v4  ;;  %v12993_v20 = vsel %vm1011_vm4, %v13900_v40, %v6590_v7  ;;  %v6595_v63 = vrot.slane %v13002_v15, 6  ;;  %v6597_v8 = vrot.slane %v6559_v13, 6 }
 0xae2   : > { %v6668_v52 = vrot.slane %v13002_v15, 7  ;;  %v6670_v29 = vrot.slane %v6559_v13, 7  ;;  %v13008_v35 = vmul.f32 %v12633_v28, %v6738_v32  ;;  %v13011_v3 = vmul.f32 %v12633_v28, %v6740_v44 }
 0xae3   : > { %v6538_v53 = vrot.slane %v6488_v21, 1  ;;  %v6927_v23 = vmul.f32 0.7978846, %v6911_v51  ;;  %v6663_v30 = vrot.slane %v6558_v37, 7  ;;  %v6598_v39 = vsel %vm1011_vm4, %v6595_v63, %v6597_v8 }
 0xae4   : > { %v6671_v18 = vsel %vm945_vm3, %v6668_v52, %v6670_v29  ;;  %8678 = vtanh.f32 %v6926_v25  ;;  %v6622_v62 = vmul.f32 %v12618_v24, %v6598_v39  ;;  %v6767_v37 = vmul.f32 %v12633_v28, %v6559_v13 }
 0xae5   : > { %v6695_v48 = vmul.f32 %v12624_v14, %v6671_v18  ;;  %v6539_v26 = vsel %vm996_vm8, %v6537_v11, %v6538_v53  ;;  %v6541_v32 = vsel %vm996_vm8, %v6538_v53, %v6540_v36  ;;  %8680 = vtanh.f32 %v6927_v23 }
 0xae6   : > { %v6591_v45 = vrot.slane %v6539_v26, 6  ;;  %v6593_v17 = vrot.slane %v6541_v32, 6  ;;  %v6664_v44 = vrot.slane %v6539_v26, 7  ;;  %v6666_v4 = vrot.slane %v6541_v32, 7 }
 0xae7   : > { %v6711_v51 = vadd.f32 %v6695_v48, %v6622_v62  ;;  %v6792_v57 = vadd.f32 %v12654_v59, %v6772_v54  ;;  %v13029_v5 = vmul.f32 %v12633_v28, %v12950_v2  ;;  %v6764_v2 = vmul.f32 %v12633_v28, %v6539_v26 }
 0xae8   : > { %v6592_v21 = vsel %vm1011_vm4, %v6590_v7, %v6591_v45  ;;  %v6594_v25 = vsel %vm1011_vm4, %v6591_v45, %v6593_v17  ;;  %v13024_v61 = vsel %vm1011_vm4, %v6593_v17, %v6595_v63  ;;  %v6665_v11 = vsel %vm945_vm3, %v6663_v30, %v6664_v44  ;;  %v8675_v36 = vpop.eup %8674 }
 0xae9   : > { %v13031_v40 = vadd.f32 %v6767_v37, %v6711_v51  ;;  %v6619_v13 = vmul.f32 %v12618_v24, %v6592_v21  ;;  %v6620_v54 = vmul.f32 %v12618_v24, %v6594_v25  ;;  %v8677_v8 = vpop.eup %8676  ;;  %v6667_v7 = vsel %vm945_vm3, %v6664_v44, %v6666_v4 }
 0xaea   : > { %v13037_v29 = vsel %vm945_vm3, %v6666_v4, %v6668_v52  ;;  %v6692_v63 = vmul.f32 %v12624_v14, %v6665_v11  ;;  %v6956_v53 = vadd.f32 1.0, %v8675_v36  ;;  %v6693_v23 = vmul.f32 %v12624_v14, %v6667_v7 }
 0xaeb   : > { %v6765_v30 = vmul.f32 %v12633_v28, %v6541_v32  ;;  %v6957_v39 = vadd.f32 1.0, %v8677_v8  ;;  %v6793_v48 = vadd.f32 %v12654_v59, %v6773_v27  ;;  %v6812_v45 = vmul.f32 %v12658_v10, %v6792_v57 }
 0xaec   : > { %v6708_v18 = vadd.f32 %v6692_v63, %v6619_v13  ;;  %v6972_v62 = vmul.f32 %v6956_v53, %v12939_v56  ;;  %v6709_v17 = vadd.f32 %v6693_v23, %v6620_v54  ;;  %v6614_v44 = vmul.f32 %v12618_v24, %v12872_v22 }
 0xaed   : > { %v6973_v52 = vmul.f32 %v6957_v39, %v12941_v12  ;;  %v6687_v4 = vmul.f32 %v12624_v14, %v12877_v60  ;;  %v6813_v32 = vmul.f32 %v12658_v10, %v6793_v48  ;;  %v13055_v56 = vadd.f32 %v12672_v50, %v6812_v45 }
 0xaee   : > { %v8679_v26 = vpop.eup %8678  ;;  %v13051_v51 = vadd.f32 %v6764_v2, %v6708_v18  ;;  %v6702_v27 = vadd.f32 %v12842_v55, %v12816_v47  ;;  %v13059_v37 = vadd.f32 %v6765_v30, %v6709_v17  ;;  %v6618_v22 = vmul.f32 %v12618_v24, %v12983_v49 }
 0xaef   : > { %v6988_v12 = vpack.c.bf16 %v6973_v52, %v6972_v62  ;;  %v6958_v57 = vadd.f32 1.0, %v8679_v26  ;;  %v6703_v21 = vadd.f32 %v6687_v4, %v6614_v44  ;;  %v13064_v60 = vadd.f32 %v12672_v50, %v6813_v32  ;;  %v8681_v55 = vpop.eup %8680 }
 0xaf0   : > { %v6864_v25 = vmul.f32 %v13055_v56, %v13055_v56  ;;  %v13901_v11 = vrot.slane %v12855_v0, 4  ;;  %v13902_v36 = vrot.slane %v12769_v9, 4  ;;  %v6691_v13 = vmul.f32 %v12624_v14, %v12988_v33 }
 0xaf1   : > { %8272 = vmatprep.mubr.msk.bf16.mxu1 %vm7004_vm13, %v6988_v12  ;;  %v6774_v54 = vadd.f32 %v12865_v34, %v6702_v27  ;;  %v6704_v8 = vadd.f32 %v12970_v41, %v12944_v46  ;;  %v6959_v7 = vadd.f32 1.0, %v8681_v55  ;;  %v6974_v0 = vmul.f32 %v6958_v57, %v12916_v58 }
 0xaf2   : > { %v6731_v47 = vsel %vm840_vm0, %v13902_v36, %v13901_v11  ;;  %v6865_v9 = vmul.f32 %v13064_v60, %v13064_v60  ;;  %v6880_v63 = vmul.f32 %v6864_v25, %v13055_v56  ;;  %v6705_v23 = vadd.f32 %v12996_v42, %v12956_v43 }
 0xaf3   : > { %v6759_v49 = vmul.f32 %v12633_v28, %v6731_v47  ;;  %v6794_v33 = vadd.f32 %v12654_v59, %v6774_v54  ;;  %v6776_v2 = vadd.f32 %v13008_v35, %v6704_v8  ;;  %v6975_v34 = vmul.f32 %v6959_v7, %v12953_v19 }
 0xaf4   : > { %v6881_v46 = vmul.f32 %v6865_v9, %v13064_v60  ;;  %v6896_v41 = vmul.f32 0.044715, %v6880_v63  ;;  %v6706_v58 = vadd.f32 %v12999_v6, %v12959_v1  ;;  %v6777_v18 = vadd.f32 %v13011_v3, %v6705_v23 }
 0xaf5   : > { %v6775_v53 = vadd.f32 %v6759_v49, %v6703_v21  ;;  %v6814_v39 = vmul.f32 %v12658_v10, %v6794_v33  ;;  %v6796_v62 = vadd.f32 %v12654_v59, %v6776_v2  ;;  %v6989_v48 = vpack.c.bf16 %v6975_v34, %v6974_v0 }
 0xaf6   : > { %v6897_v43 = vmul.f32 0.044715, %v6881_v46  ;;  %v6912_v42 = vadd.f32 %v6896_v41, %v13055_v56  ;;  %v6707_v35 = vadd.f32 %v6691_v13, %v6618_v22  ;;  %v6797_v1 = vadd.f32 %v12654_v59, %v6777_v18 }
 0xaf7   : > { %v6795_v30 = vadd.f32 %v12654_v59, %v6775_v53  ;;  %v13099_v45 = vadd.f32 %v12672_v50, %v6814_v39  ;;  %v6816_v6 = vmul.f32 %v12658_v10, %v6796_v62  ;;  %8273 = vmatmul.mubr.msk.bf16.vlgmr.msra.gmra.mrb[140].mxu1 %vm7004_vm13, %v6989_v48  ;;  %v6763_v52 = vmul.f32 %v12633_v28, %v12993_v20 }
 0xaf8   : > { %v6913_v3 = vadd.f32 %v6897_v43, %v13064_v60  ;;  %v6928_v17 = vmul.f32 0.7978846, %v6912_v42  ;;  %v6778_v44 = vadd.f32 %v13029_v5, %v6706_v58  ;;  %v6817_v32 = vmul.f32 %v12658_v10, %v6797_v1 }
 0xaf9   : > { %v6815_v19 = vmul.f32 %v12658_v10, %v6795_v30  ;;  %v6866_v26 = vmul.f32 %v13099_v45, %v13099_v45  ;;  %v13115_v12 = vadd.f32 %v12672_v50, %v6816_v6  ;;  %v6779_v57 = vadd.f32 %v6763_v52, %v6707_v35 }
 0xafa   : > { %v6929_v27 = vmul.f32 0.7978846, %v6913_v3  ;;  %8682 = vtanh.f32 %v6928_v17  ;;  %v13121_v5 = vadd.f32 %v12672_v50, %v6817_v32  ;;  %v6621_v22 = vmul.f32 %v12618_v24, %v13024_v61 }
 0xafb   : > { %v13109_v4 = vadd.f32 %v12672_v50, %v6815_v19  ;;  %v6882_v20 = vmul.f32 %v6866_v26, %v13099_v45  ;;  %v6868_v25 = vmul.f32 %v13115_v12, %v13115_v12  ;;  %v6798_v11 = vadd.f32 %v12654_v59, %v6778_v44 }
 0xafc   : > { %8684 = vtanh.f32 %v6929_v27  ;;  %v6803_v36 = vadd.f32 %v12654_v59, %v13031_v40  ;;  %v6869_v13 = vmul.f32 %v13121_v5, %v13121_v5  ;;  %v6799_v54 = vadd.f32 %v12654_v59, %v6779_v57 }
 0xafd   : > { %v6867_v21 = vmul.f32 %v13109_v4, %v13109_v4  ;;  %v6898_v55 = vmul.f32 0.044715, %v6882_v20  ;;  %v6884_v49 = vmul.f32 %v6868_v25, %v13115_v12  ;;  %v6818_v24 = vmul.f32 %v12658_v10, %v6798_v11 }
 0xafe   : > { %v6800_v61 = vadd.f32 %v12654_v59, %v13051_v51  ;;  %v6885_v40 = vmul.f32 %v6869_v13, %v13121_v5  ;;  %v6801_v0 = vadd.f32 %v12654_v59, %v13059_v37  ;;  %v6819_v63 = vmul.f32 %v12658_v10, %v6799_v54 }
 0xaff   : > { %v6883_v47 = vmul.f32 %v6867_v21, %v13109_v4  ;;  %v6914_v7 = vadd.f32 %v6898_v55, %v13099_v45  ;;  %v6900_v9 = vmul.f32 0.044715, %v6884_v49  ;;  %v13144_v53 = vadd.f32 %v12672_v50, %v6818_v24 }
 0xb00   : > { %v6820_v33 = vmul.f32 %v12658_v10, %v6800_v61  ;;  %v6901_v51 = vmul.f32 0.044715, %v6885_v40  ;;  %v6821_v34 = vmul.f32 %v12658_v10, %v6801_v0  ;;  %v6694_v46 = vmul.f32 %v12624_v14, %v13037_v29 }
 0xb01   : > { %v6899_v8 = vmul.f32 0.044715, %v6883_v47  ;;  %v6930_v2 = vmul.f32 0.7978846, %v6914_v7  ;;  %v6916_v41 = vadd.f32 %v6900_v9, %v13115_v12  ;;  %v13153_v37 = vadd.f32 %v12672_v50, %v6819_v63 }
 0xb02   : > { %v6870_v58 = vmul.f32 %v13144_v53, %v13144_v53  ;;  %v6848_v30 = vmul.f32 0.5, %v13055_v56  ;;  %v6917_v18 = vadd.f32 %v6901_v51, %v13121_v5  ;;  %v13163_v29 = vadd.f32 %v12672_v50, %v6820_v33 }
 0xb03   : > { %v6915_v23 = vadd.f32 %v6899_v8, %v13109_v4  ;;  %8686 = vtanh.f32 %v6930_v2  ;;  %v6932_v48 = vmul.f32 0.7978846, %v6916_v41  ;;  %v6871_v43 = vmul.f32 %v13153_v37, %v13153_v37 }
 0xb04   : > { %v8683_v62 = vpop.eup %8682  ;;  %v6886_v14 = vmul.f32 %v6870_v58, %v13144_v53  ;;  %v6933_v35 = vmul.f32 0.7978846, %v6917_v18  ;;  %v13166_v19 = vadd.f32 %v12672_v50, %v6821_v34  ;;  %v6849_v3 = vmul.f32 0.5, %v13064_v60 }
 0xb05   : > { %v6931_v39 = vmul.f32 0.7978846, %v6915_v23  ;;  %v6960_v42 = vadd.f32 1.0, %v8683_v62  ;;  %v6887_v1 = vmul.f32 %v6871_v43, %v13153_v37  ;;  %v6872_v32 = vmul.f32 %v13163_v29, %v13163_v29 }
 0xb06   : > { %v8685_v56 = vpop.eup %8684  ;;  %v6902_v6 = vmul.f32 0.044715, %v6886_v14  ;;  %v6873_v27 = vmul.f32 %v13166_v19, %v13166_v19  ;;  %v6766_v57 = vmul.f32 %v12633_v28, %v13002_v15  ;;  %v6710_v20 = vadd.f32 %v6694_v46, %v6621_v22 }
 0xb07   : > { %8688 = vtanh.f32 %v6931_v39  ;;  %v6961_v17 = vadd.f32 1.0, %v8685_v56  ;;  %v6976_v52 = vmul.f32 %v6960_v42, %v6848_v30  ;;  %v6903_v44 = vmul.f32 0.044715, %v6887_v1 }
 0xb08   : > { %8690 = vtanh.f32 %v6932_v48  ;;  %v6918_v26 = vadd.f32 %v6902_v6, %v13144_v53  ;;  %v6823_v25 = vmul.f32 %v12658_v10, %v6803_v36  ;;  %v6888_v47 = vmul.f32 %v6872_v32, %v13163_v29 }
 0xb09   : > { %8692 = vtanh.f32 %v6933_v35  ;;  %v6977_v21 = vmul.f32 %v6961_v17, %v6849_v3  ;;  %v6919_v60 = vadd.f32 %v6903_v44, %v13153_v37  ;;  %v6889_v55 = vmul.f32 %v6873_v27, %v13166_v19 }
 0xb0a   : > { %v6934_v11 = vmul.f32 0.7978846, %v6918_v26  ;;  %v6782_v49 = vadd.f32 %v6766_v57, %v6710_v20  ;;  %v13182_v54 = vadd.f32 %v12672_v50, %v6823_v25  ;;  %v6904_v61 = vmul.f32 0.044715, %v6888_v47 }
 0xb0b   : > { %v6990_v13 = vpack.c.bf16 %v6977_v21, %v6976_v52  ;;  %v6935_v24 = vmul.f32 0.7978846, %v6919_v60  ;;  %v6905_v28 = vmul.f32 0.044715, %v6889_v55  ;;  %v6850_v9 = vmul.f32 0.5, %v13099_v45 }
 0xb0c   : > { %8694 = vtanh.f32 %v6934_v11  ;;  %v6802_v22 = vadd.f32 %v12654_v59, %v6782_v49  ;;  %v6875_v36 = vmul.f32 %v13182_v54, %v13182_v54  ;;  %v6920_v7 = vadd.f32 %v6904_v61, %v13163_v29 }
 0xb0d   : > { %v8687_v15 = vpop.eup %8686  ;;  %8276 = vmatprep.mubr.msk.bf16.mxu1 %vm7004_vm13, %v6990_v13  ;;  %8696 = vtanh.f32 %v6935_v24  ;;  %v6921_v40 = vadd.f32 %v6905_v28, %v13166_v19  ;;  %v6851_v63 = vmul.f32 0.5, %v13109_v4  ;;  %v6852_v51 = vmul.f32 0.5, %v13115_v12 }
 0xb0e   : > { %v6962_v8 = vadd.f32 1.0, %v8687_v15  ;;  %v6822_v33 = vmul.f32 %v12658_v10, %v6802_v22  ;;  %v6891_v23 = vmul.f32 %v6875_v36, %v13182_v54  ;;  %v6936_v34 = vmul.f32 0.7978846, %v6920_v7 }
 0xb0f   : > { %v6937_v46 = vmul.f32 0.7978846, %v6921_v40  ;;  %v6853_v58 = vmul.f32 0.5, %v13121_v5  ;;  %v6854_v3 = vmul.f32 0.5, %v13144_v53  ;;  %v6855_v17 = vmul.f32 0.5, %v13153_v37 }
 0xb10   : > { %v6842_v39 = vadd.f32 %v12672_v50, %v6822_v33  ;;  %v6907_v18 = vmul.f32 0.044715, %v6891_v23  ;;  %v6978_v45 = vmul.f32 %v6962_v8, %v6850_v9  ;;  %8698 = vtanh.f32 %v6936_v34 }
 0xb11   : > { %v8689_v0 = vpop.eup %8688  ;;  %8700 = vtanh.f32 %v6937_v46  ;;  %v6856_v25 = vmul.f32 0.5, %v13163_v29  ;;  %v6857_v11 = vmul.f32 0.5, %v13166_v19  ;;  %v6859_v24 = vmul.f32 0.5, %v13182_v54  ;;  %v789_v19 = vld [vmem:[%s13903_s5] sm:$0x7]  ;;  %v13904_v46 = vld [vmem:[#allocation42_spill] sm:$0xff] }
 0xb12   : > { %v8691_v2 = vpop.eup %8690  ;;  %v6963_v59 = vadd.f32 1.0, %v8689_v0  ;;  %v6874_v48 = vmul.f32 %v6842_v39, %v6842_v39  ;;  %v6923_v12 = vadd.f32 %v6907_v18, %v13182_v54  ;;  %v6858_v28 = vmul.f32 0.5, %v6842_v39  ;;  %s13922_s5 = sld [smem:[#allocation83_spill]] }
 0xb13   : > { %v8693_v41 = vpop.eup %8692  ;;  %v6964_v30 = vadd.f32 1.0, %v8691_v2  ;;  %v13212_v8 = vrot.slane %v789_v19, %v13891_v31  ;;  %v13215_v40 = vrot.slane %v789_v19, %v13892_v38  ;;  %v13218_v0 = vrot.slane %v789_v19, %v13893_v16 }
 0xb14   : > { %v6979_v62 = vmul.f32 %v6963_v59, %v6851_v63  ;;  %v6965_v4 = vadd.f32 1.0, %v8693_v41  ;;  %v6890_v42 = vmul.f32 %v6874_v48, %v6842_v39  ;;  %v6939_v56 = vmul.f32 0.7978846, %v6923_v12 }
 0xb15   : > { %v6980_v10 = vmul.f32 %v6964_v30, %v6852_v51 }
 0xb16   : > { %v6991_v43 = vpack.c.bf16 %v6979_v62, %v6978_v45  ;;  %v6981_v14 = vmul.f32 %v6965_v4, %v6853_v58  ;;  %v8695_v35 = vpop.eup %8694  ;;  %v6906_v50 = vmul.f32 0.044715, %v6890_v42  ;;  %8702 = vtanh.f32 %v6939_v56  ;;  %v13906_v62 = vld [vmem:[#allocation55_spill] sm:$0xff] }
 0xb17   : > { %v6966_v1 = vadd.f32 1.0, %v8695_v35  ;;  %v8697_v6 = vpop.eup %8696 }
 0xb18   : > { %8277 = vmatmul.mubr.msk.bf16.gmra.mrb[144].mxu1 %vm7004_vm13, %v6991_v43  ;;  %v6992_v5 = vpack.c.bf16 %v6981_v14, %v6980_v10  ;;  %v6967_v52 = vadd.f32 1.0, %v8697_v6  ;;  %v6922_v44 = vadd.f32 %v6906_v50, %v6842_v39  ;;  %v13905_v39 = vld [vmem:[#allocation24_spill] sm:$0xff]  ;;  %s13300_s18 = scalar_lea.hbm %s13922_s5, %s7561_s21 }
 0xb19   : > { %v6982_v26 = vmul.f32 %v6966_v1, %v6854_v3  ;;  %v13907_v10 = vld [vmem:[#allocation40_spill] sm:$0xff] }
 0xb1a   : > { %8280 = vmatprep.mubr.msk.bf16.mxu1 %vm7004_vm13, %v6992_v5  ;;  %v6983_v32 = vmul.f32 %v6967_v52, %v6855_v17  ;;  %v6938_v27 = vmul.f32 0.7978846, %v6922_v44  ;;  %v8699_v57 = vpop.eup %8698  ;;  %v13908_v44 = vld [vmem:[#allocation39_spill] sm:$0xff] }
 0xb1b   : > { %v8701_v21 = vpop.eup %8700  ;;  %v6968_v60 = vadd.f32 1.0, %v8699_v57 }
 0xb1c   : > { %v6993_v20 = vpack.c.bf16 %v6983_v32, %v6982_v26  ;;  %8704 = vtanh.f32 %v6938_v27  ;;  %v6969_v47 = vadd.f32 1.0, %v8701_v21 }
 0xb1d   : > { %v6984_v53 = vmul.f32 %v6968_v60, %v6856_v25 }
 0xb1e   : > { %v6985_v55 = vmul.f32 %v6969_v47, %v6857_v11  ;;  %v13909_v11 = vld [vmem:[#allocation47_spill] sm:$0xff] }
 0xb20   : > { %8281 = vmatmul.mubr.msk.bf16.gmra.mrb[148].mxu1 %vm7004_vm13, %v6993_v20  ;;  %v8703_v37 = vpop.eup %8702  ;;  %v6994_v13 = vpack.c.bf16 %v6985_v55, %v6984_v53 }
 0xb21   : > { %v6971_v49 = vadd.f32 1.0, %v8703_v37 }
 0xb22   : > { %8284 = vmatprep.mubr.msk.bf16.mxu1 %vm7004_vm13, %v6994_v13  ;;  %v13910_v13 = vld [vmem:[#allocation43_spill] sm:$0xff] }
 0xb23   : > { %v6987_v29 = vmul.f32 %v6971_v49, %v6859_v24 }
 0xb26   : > { %v8705_v61 = vpop.eup %8704 }
 0xb27   : > { %v6970_v15 = vadd.f32 1.0, %v8705_v61 }
 0xb29   : > { %v6986_v22 = vmul.f32 %v6970_v15, %v6858_v28  ;;  %v13911_v15 = vld [vmem:[#allocation54_spill] sm:$0xff] }
 0xb2b   : > { %v6995_v36 = vpack.c.bf16 %v6987_v29, %v6986_v22 }
 0xb2d   : > { %8285 = vmatmul.mubr.msk.bf16.gmra.mrb[152].mxu1 %vm7004_vm13, %v6995_v36 }
 0xbca   : > { %v8274_v7 = vpop.f32.mrb[140].mxu1 }
 0xbcb   : > { %v7063_v54 = vpop.f32.mrb[141].mxu1  ;;  %v7072_v23 = vadd.f32 %v8274_v7, %v13212_v8 }
 0xbcc   : > { %v7064_v9 = vadd.f32 %v7063_v54, %v13212_v8  ;;  %v8275_v63 = vpop.f32.mrb[142].mxu1  ;;  %v13912_v54 = vld [vmem:[#allocation37_spill] sm:$0xff] }
 0xbcd   : > { %v7066_v33 = vpop.f32.mrb[143].mxu1  ;;  %v7132_v38 = vmul.f32 %v13215_v40, %v7072_v23  ;;  %v7075_v34 = vadd.f32 %v8275_v63, %v13212_v8 }
 0xbce   : > { %v7130_v2 = vmul.f32 %v13215_v40, %v7064_v9  ;;  %v7067_v59 = vadd.f32 %v7066_v33, %v13212_v8 }
 0xbcf   : > { %v7152_v58 = vadd.f32 %v13218_v0, %v7132_v38  ;;  %v7133_v30 = vmul.f32 %v13215_v40, %v7075_v34 }
 0xbd0   : > { %v7131_v31 = vmul.f32 %v13215_v40, %v7067_v59  ;;  %v7150_v51 = vadd.f32 %v13218_v0, %v7130_v2 }
 0xbd1   : > { %v7153_v45 = vadd.f32 %v13218_v0, %v7133_v30  ;;  %v7168_v4 = vadd.f32 %v7152_v58, %v13906_v62 }
 0xbd2   : > { %v7151_v16 = vadd.f32 %v13218_v0, %v7131_v31  ;;  %v7166_v41 = vadd.f32 %v7150_v51, %v13904_v46  ;;  %v13913_v46 = vld [vmem:[#allocation56_spill] sm:$0xff] }
 0xbd3   : > { %v7169_v48 = vadd.f32 %v7153_v45, %v13907_v10 }
 0xbd4   : > { %7182 = vxpose.xlu0.b32.start [1/16] (narrow) %v7166_v41, 16  ;;  %v7167_v18 = vadd.f32 %v7151_v16, %v13905_v39 }
 0xbd8   : > { %7183 = vxpose.xlu0.b32.cont [2/16] (narrow) %v7167_v18, 16 }
 0xbdc   : > { %7184 = vxpose.xlu0.b32.cont [3/16] (narrow) %v7168_v4, 16 }
 0xbe0   : > { %7185 = vxpose.xlu0.b32.cont [4/16] (narrow) %v7169_v48, 16 }
 0xbeb   : > { %v8278_v43 = vpop.f32.mrb[144].mxu1 }
 0xbec   : > { %v7079_v14 = vpop.f32.mrb[145].mxu1  ;;  %v7088_v5 = vadd.f32 %v8278_v43, %v13212_v8  ;;  %v13916_v43 = vld [vmem:[#allocation44_spill] sm:$0xff] }
 0xbed   : > { %v7080_v12 = vadd.f32 %v7079_v14, %v13212_v8  ;;  %v8279_v42 = vpop.f32.mrb[146].mxu1 }
 0xbee   : > { %v7082_v35 = vpop.f32.mrb[147].mxu1  ;;  %v7136_v3 = vmul.f32 %v13215_v40, %v7088_v5  ;;  %v7091_v17 = vadd.f32 %v8279_v42, %v13212_v8 }
 0xbef   : > { %v7134_v56 = vmul.f32 %v13215_v40, %v7080_v12  ;;  %v7083_v1 = vadd.f32 %v7082_v35, %v13212_v8  ;;  %v13917_v12 = vld [vmem:[#allocation27_spill] sm:$0xff]  ;;  %v13918_v35 = vld [vmem:[#allocation34_spill] sm:$0xff] }
 0xbf0   : > { %v7156_v21 = vadd.f32 %v13218_v0, %v7136_v3  ;;  %v7137_v20 = vmul.f32 %v13215_v40, %v7091_v17 }
 0xbf1   : > { %v7154_v50 = vadd.f32 %v13218_v0, %v7134_v56  ;;  %v7135_v6 = vmul.f32 %v13215_v40, %v7083_v1  ;;  %v13919_v56 = vld [vmem:[#allocation35_spill] sm:$0xff] }
 0xbf2   : > { %v7157_v53 = vadd.f32 %v13218_v0, %v7137_v20  ;;  %v7172_v49 = vadd.f32 %v7156_v21, %v13910_v13 }
 0xbf3   : > { %v7155_v52 = vadd.f32 %v13218_v0, %v7135_v6  ;;  %v7170_v26 = vadd.f32 %v7154_v50, %v13908_v44  ;;  %v8282_v32 = vpop.f32.mrb[148].mxu1 }
 0xbf4   : > { %v7095_v27 = vpop.f32.mrb[149].mxu1  ;;  %v7104_v24 = vadd.f32 %v8282_v32, %v13212_v8  ;;  %v7173_v29 = vadd.f32 %v7157_v53, %v13911_v15 }
 0xbf5   : > { %7186 = vxpose.xlu0.b32.cont [5/16] (narrow) %v7170_v26, 16  ;;  %v8283_v57 = vpop.f32.mrb[150].mxu1  ;;  %v7096_v25 = vadd.f32 %v7095_v27, %v13212_v8  ;;  %v7171_v47 = vadd.f32 %v7155_v52, %v13909_v11 }
 0xbf6   : > { %v7098_v60 = vpop.f32.mrb[151].mxu1  ;;  %v7140_v22 = vmul.f32 %v13215_v40, %v7104_v24  ;;  %v7107_v36 = vadd.f32 %v8283_v57, %v13212_v8 }
 0xbf7   : > { %v7138_v55 = vmul.f32 %v13215_v40, %v7096_v25  ;;  %v7099_v37 = vadd.f32 %v7098_v60, %v13212_v8 }
 0xbf8   : > { %v7160_v2 = vadd.f32 %v13218_v0, %v7140_v22  ;;  %v7141_v38 = vmul.f32 %v13215_v40, %v7107_v36 }
 0xbf9   : > { %7187 = vxpose.xlu0.b32.cont [6/16] (narrow) %v7171_v47, 16  ;;  %v7158_v61 = vadd.f32 %v13218_v0, %v7138_v55  ;;  %v7139_v28 = vmul.f32 %v13215_v40, %v7099_v37 }
 0xbfa   : > { %v7161_v45 = vadd.f32 %v13218_v0, %v7141_v38 }
 0xbfb   : > { %v7159_v19 = vadd.f32 %v13218_v0, %v7139_v28  ;;  %v7174_v9 = vadd.f32 %v7158_v61, %v13912_v54 }
 0xbfc   : > { %v7177_v14 = vadd.f32 %v7161_v45, %v13916_v43 }
 0xbfd   : > { %7188 = vxpose.xlu0.b32.cont [7/16] (narrow) %v7172_v49, 16  ;;  %v7175_v41 = vadd.f32 %v7159_v19, %v13913_v46 }
 0xc00   : > { %v8286_v7 = vpop.f32.mrb[152].mxu1 }
 0xc01   : > { %7189 = vxpose.xlu0.b32.cont [8/16] (narrow) %v7173_v29, 16  ;;  %v7120_v63 = vadd.f32 %v8286_v7, %v13212_v8  ;;  %v7111_v33 = vpop.f32.mrb[153].mxu1 }
 0xc02   : > { %v8287_v23 = vpop.f32.mrb[154].mxu1  ;;  %v7112_v34 = vadd.f32 %v7111_v33, %v13212_v8 }
 0xc03   : > { %v7144_v59 = vmul.f32 %v13215_v40, %v7120_v63  ;;  %v7123_v31 = vadd.f32 %v8287_v23, %v13212_v8  ;;  %v7114_v51 = vpop.f32.mrb[155].mxu1 }
 0xc04   : > { %v7115_v16 = vadd.f32 %v7114_v51, %v13212_v8  ;;  %v7142_v62 = vmul.f32 %v13215_v40, %v7112_v34  ;;  %v13915_v8 = vld [vmem:[#allocation23_spill] sm:$0xff] }
 0xc05   : > { %7190 = vxpose.xlu0.b32.cont [9/16] (narrow) %v7174_v9, 16  ;;  %v7164_v58 = vadd.f32 %v13218_v0, %v7144_v59  ;;  %v7145_v30 = vmul.f32 %v13215_v40, %v7123_v31  ;;  %v7176_v10 = vadd.f32 %v7160_v2, %v13915_v8 }
 0xc06   : > { %v7143_v39 = vmul.f32 %v13215_v40, %v7115_v16  ;;  %v7162_v48 = vadd.f32 %v13218_v0, %v7142_v62  ;;  %v13920_v40 = vld [vmem:[#allocation51_spill] sm:$0xff] }
 0xc07   : > { %v7165_v18 = vadd.f32 %v13218_v0, %v7145_v30  ;;  %v7180_v1 = vadd.f32 %v7164_v58, %v13919_v56 }
 0xc08   : > { %v7163_v4 = vadd.f32 %v13218_v0, %v7143_v39  ;;  %v7178_v42 = vadd.f32 %v7162_v48, %v13917_v12 }
 0xc09   : > { %7191 = vxpose.xlu0.b32.cont [10/16] (narrow) %v7175_v41, 16  ;;  %v7181_v50 = vadd.f32 %v7165_v18, %v13920_v40 }
 0xc0a   : > { %v7179_v5 = vadd.f32 %v7163_v4, %v13918_v35 }
 0xc0d   : > { %7192 = vxpose.xlu0.b32.cont [11/16] (narrow) %v7176_v10, 16 }
 0xc11   : > { %7193 = vxpose.xlu0.b32.cont [12/16] (narrow) %v7177_v14, 16 }
 0xc15   : > { %7194 = vxpose.xlu0.b32.cont [13/16] (narrow) %v7178_v42, 16 }
 0xc19   : > { %7195 = vxpose.xlu0.b32.cont [14/16] (narrow) %v7179_v5, 16 }
 0xc1d   : > { %7196 = vxpose.xlu0.b32.cont [15/16] (narrow) %v7180_v1, 16 }
 0xc21   : > { %7197 = vxpose.xlu0.b32.end [16/16] (narrow) %v7181_v50, 16 }
 0xc65   : > { %v7198_v6 = vpop.trf.xlu0 }
 0xc66   : > { %7214 = vst.msk [vmem:[%s690_s20] sm:$0xff] %vm3923_vm10, %v7198_v6  ;;  %7218 = vrot.lane.b32.xlu1 %v7198_v6, %s8869_s30 }
 0xc69   : > { %v7199_v0 = vpop.trf.xlu0 }
 0xc6a   : > { %7227 = vrot.lane.b32.xlu1 %v7198_v6, %s8870_s4  ;;  %7215 = vst.msk [vmem:[%s690_s20 + $0x8] sm:$0xff] %vm3923_vm10, %v7199_v0 }
 0xc6e   : > { %7236 = vrot.lane.b32.xlu1 %v7198_v6, %s8871_s26 }
 0xc72   : > { %7220 = vrot.lane.b32.xlu1 %v7199_v0, %s8869_s30  ;;  %s13305_s30 = scalar_lea.sflag [#allocation4], %s688_s24 }
 0xc76   : > { %7229 = vrot.lane.b32.xlu1 %v7199_v0, %s8870_s4  ;;  %s8790_s4 = scalar_lea.vmem %s13295_s25, 1024 }
 0xc77   : > { %p8791_p12 = scmp.ne.s32.totalorder %s13295_s25, %s8790_s4 }
 0xc79   : > { %p8792_p2 = pnand %p8791_p12, %p13923_p10 }
 0xc7a   : > { %7238 = vrot.lane.b32.xlu1 %v7199_v0, %s8871_s26  ;;  %s8794_s26 = sshll.u32 %s8872_s3, 4  ;;  %s8795_s26 = int_to_ptr.vmem [resolvable:$false] %s8794_s26 }
 0xc7b   : > { %p8793_p3 = pneg %p8792_p2  ;;  %s8796_s27 = scalar_lea.vmem %s8795_s26, 2048 }
 0xc7c   : > { %p8797_p4 = scmp.lt.s32.totalorder %s13295_s25, %s8795_s26  ;;  %p8798_p7 = scmp.lt.s32.totalorder %s8796_s27, %s8790_s4 }
 0xc7e   : > { %p8799_p8 = por %p8798_p7, %p8797_p4 }
 0xc80   : > { %p8800_p11 = pnand %p8799_p8, %p8793_p3 }
 0xcd8   : > { %v7219_v3 = vpop.permute.xlu1 %7218 }
 0xcd9   : > { %7547 = vst.msk [vmem:[%s690_s20 + $0x10] sm:$0xff] %vm3923_vm10, %v7219_v3 }
 0xcdc   : > { %v7228_v17 = vpop.permute.xlu1 %7227 }
 0xcdd   : > { %7549 = vst.msk [vmem:[%s690_s20 + $0x20] sm:$0xff] %vm3923_vm10, %v7228_v17 }
 0xce0   : > { %v7237_v52 = vpop.permute.xlu1 %7236 }
 0xce1   : > { %7551 = vst.msk [vmem:[%s690_s20 + $0x30] sm:$0xff] %vm3923_vm10, %v7237_v52 }
 0xce4   : > { %v7221_v44 = vpop.permute.xlu1 %7220 }
 0xce5   : > { %7548 = vst.msk [vmem:[%s690_s20 + $0x18] sm:$0xff] %vm3923_vm10, %v7221_v44 }
 0xce8   : > { %v7230_v26 = vpop.permute.xlu1 %7229 }
 0xce9   : > { %7550 = vst.msk [vmem:[%s690_s20 + $0x28] sm:$0xff] %vm3923_vm10, %v7230_v26 }
 0xcec   : > { %v7239_v32 = vpop.permute.xlu1 %7238 }
 0xced   : > { %7552 = vst.msk [vmem:[%s690_s20 + $0x38] sm:$0xff] %vm3923_vm10, %v7239_v32 }
 0xcee   : > { %8803 = shalt.err (!%p8800_p11)
}
 0xcef   : > { %s8804_s29 = scalar_lea.hbm %s13300_s18, 1024  ;;  %s8808_s21 = scalar_lea.hbm %s13922_s5, 2048 }
 0xcf0   : > { %p8805_p13 = scmp.ne.s32.totalorder %s13300_s18, %s8804_s29  ;;  %p8809_p6 = scmp.lt.u32.totalorder %s13300_s18, %s13922_s5 }
 0xcf1   : > { %p8810_p5 = scmp.lt.u32.totalorder %s8808_s21, %s8804_s29  ;;  %p8812_p12 = scmp.lt.u32.totalorder %s8804_s29, %s13300_s18 }
 0xcf2   : > { %p8806_p0 = pnand %p8805_p13, %p13923_p10 }
 0xcf3   : > { %p8811_p9 = por %p8810_p5, %p8809_p6 }
 0xcf4   : > { %p8807_p1 = pneg %p8806_p0 }
 0xcf5   : > { %p8813_p2 = por %p8812_p12, %p8811_p9 }
 0xcf7   : > { %p8814_p3 = pnand %p8813_p2, %p8807_p1 }
 0xcf9   : > { %8817 = shalt.err (!%p8814_p3)
}
 0xcfa   : > { %s8873_s4 = smov 128   ;;  %s8874_s26 = smov 8  }
 0xcfb   : > { %8425 = dma.vmem_to_hbm [thread:$0]  (%p13923_p10), %s13295_s25, 1024, %s13300_s18, %s13305_s30, %s8873_s4, %s8873_s4, %s8874_s26  }
 0xcfc PF: > { %s13924_s27 = sld [smem:[#allocation15_spill]]  ;;  %s13925_s24 = sld [smem:[#allocation12_spill]] }
 0xcfd   : > { %s13926_s20 = sld [smem:[#allocation19_spill]] }
 0xd02   : > { %p8447_p4 = scmp.ge.s32.totalorder %s13924_s27, 2  ;;  %s7275_s2 = sand.u32 1, %s13925_s24  }
 0xd03   : > { %p13927_p7 = scmp.ne.s32.totalorder %s13926_s20, 0  ;;  %s7276_s29 = scalar_lea.sflag [#allocation4], %s7275_s2 }
 0xd05   : > { %p8438_p8 = pnand %p8447_p4, %p13927_p7 }
 0xd07   : > { %8843 = dma.done.wait (!%p8438_p8), %s7276_s29, 1024  }
 0xd08   : > { %8845 = vsyncadd (!%p8438_p8), %s7276_s29, 4294966272  ;;  %s13928_s27 = sld [smem:[#allocation16_spill]]  ;;  %s13929_s2 = sld [smem:[#allocation13_spill]] }
 0xd09   : > { %s13930_s25 = sld [smem:[#allocation14_spill]]  ;;  %s13931_s26 = sld [smem:[#allocation17_spill]] }
 0xd0e   : > { %p33_p11 = scmp.ge.s32.totalorder %s13928_s27, 4  }
 0xd10   :  { %35 = sbr.rel (!%p33_p11) target bundleno = 15 (0xf), region = 155 }
 0xd17   :  { %7281 = vsyncpa [#allocation3], 1 }
 0xd18   :  { %7283 = vsyncpa [#allocation3 + $0x1], 1 }
 0xd19   :  { %7284 = vsyncpa [#allocation6], 1 }
 0xd1a   :  { %7285 = vsyncpa [#allocation4], 1 }
 0xd1b   :  { %7287 = vsyncpa [#allocation4 + $0x1], 1 }

</bundles_post_ra>
